<compile_context>
chip_gen: v7x
topology: tpu7x:2x2x1
jax: 0.10.0
libtpu: 0.0.40
codegen_flags: <defaults>
</compile_context>

<pallas_src>
import functools

import jax
import jax.numpy as jnp
from jax import lax
from jax.experimental import pallas as pl
from jax.experimental.pallas import tpu as pltpu

EPS = 1e-5   # GroupNorm eps (PyTorch default)
LANE = 128   # TPU lane width


def _round_up(n, m):
    return (n + m - 1) // m * m


def _chunk_bounds(C, shift_size):
    """torch.chunk(x, shift_size, dim=channel) boundaries, zipped with the shifts."""
    chunk = -(-C // shift_size)
    bounds, c0 = [], 0
    while c0 < C:
        bounds.append((c0, min(c0 + chunk, C)))
        c0 += chunk
    shifts = list(range(-(shift_size // 2), shift_size // 2 + 1))
    n = min(len(bounds), len(shifts))
    bounds, shifts = bounds[:n], shifts[:n]
    assert bounds[-1][1] == C, "channel chunks must cover all channels"
    return bounds, shifts


# --------------- Pallas kernel: one (batch, block-depth) grid step ------------------
def _layer_kernel(x_ref,
                  n1g_ref, n1b_ref,
                  c1w_ref, c1b_ref, an1g_ref, an1b_ref,
                  c21w_ref, c21b_ref, c22w_ref, c22b_ref,
                  an2g_ref, an2b_ref, c3w_ref, c3b_ref,
                  n2g_ref, n2b_ref,
                  f1w_ref, f1b_ref, f2w_ref, f2b_ref,
                  o_ref,
                  act_ref,
                  *, H, W, C, Cp, shift_size):
    d = pl.program_id(1)                       # block (depth) index
    hw = H * W
    bounds, shifts = _chunk_bounds(C, shift_size)
    n_real = float(hw * C)                     # GroupNorm counts only real channels

    # Load the batch element's activation into the VMEM carry only for the first block.
    @pl.when(d == 0)
    def _():
        act_ref[...] = x_ref[0].astype(jnp.float32).reshape(hw, Cp)

    def gelu(v):
        # tanh form -> EUP slot (erf form lowers to a long VPU polynomial).
        return jax.nn.gelu(v, approximate=True)

    def gnorm(v, g_ref, b_ref):
        # GroupNorm(1, C): per-sample stats over the real channels. Padded channels
        # (and their gamma/beta/bias/weight cols) are exactly zero, so sums are
        # unaffected and padded lanes stay zero after normalization.
        s = jnp.sum(v)
        ss = jnp.sum(v * v)
        mu = s / n_real
        var = jnp.maximum(ss / n_real - mu * mu, 0.0)   # clamp: one-pass var can cancel
        return (v - mu) * lax.rsqrt(var + EPS) * g_ref[0] + b_ref[0]

    def mm(v, w_ref, b_ref):
        # 1x1 conv == matmul over C: bf16 x bf16 on the MXU, f32 accumulation.
        return jnp.dot(v.astype(jnp.bfloat16), w_ref[0],
                       preferred_element_type=jnp.float32) + b_ref[0]

    x = act_ref[...]                           # (H*W, Cp) f32 carry
    shortcut = x

    # ---- AxialShift branch ----
    h = gnorm(x, n1g_ref, n1b_ref)             # block norm1 (MyNorm)
    h = mm(h, c1w_ref, c1b_ref)                # conv1
    h = gnorm(h, an1g_ref, an1b_ref)           # AxialShift.norm1
    hs = gelu(h)                               # (H*W, Cp)
    hs3 = hs.reshape(H, W, Cp)

    # Edge / channel-chunk masks (hoisted once per step; iotas are cheap).
    wi = lax.broadcasted_iota(jnp.int32, (H, W, 1), 1)     # w position
    hi = lax.broadcasted_iota(jnp.int32, (H, W, 1), 0)     # h position
    cid = lax.broadcasted_iota(jnp.int32, (1, 1, Cp), 2)   # channel id
    lt_masks = [cid < b1 for (_, b1) in bounds[:-1]]

    def shifted(s, row_step, pos, n):
        # out[h, w] = x[h, w - s] (row_step=1, W shift) or x[h - s, w] (row_step=W,
        # H shift), zero-filled at the edges. Implemented as a sublane roll of the
        # flat (H*W, Cp) activation (XLU) + an edge-validity select; rows that wrap
        # across the image boundary are exactly the masked-out ones.
        if s == 0:
            return hs3
        r = pltpu.roll(hs, (s * row_step) % hw, axis=0).reshape(H, W, Cp)
        return jnp.where((pos >= s) & (pos < n + s), r, 0.0)

    def combine(slabs):
        # Chained selects: channel c takes the slab of its chunk (smallest j with
        # c < end_j); padded channels fall through to the last slab (zero there).
        out = slabs[-1]
        for j in range(len(slabs) - 2, -1, -1):
            out = jnp.where(lt_masks[j], slabs[j], out)
        return out.reshape(hw, Cp)

    x_lr = combine([shifted(s, 1, wi, W) for s in shifts])       # torch shift(dim=3)
    acc = gelu(mm(x_lr, c21w_ref, c21b_ref))                     # conv2_1 + GELU
    x_td = combine([shifted(s, W, hi, H) for s in shifts])       # torch shift(dim=2)
    acc = acc + gelu(mm(x_td, c22w_ref, c22b_ref))               # conv2_2 + GELU, fused add

    h = gnorm(acc, an2g_ref, an2b_ref)          # AxialShift.norm2
    h = mm(h, c3w_ref, c3b_ref)                 # conv3
    y = shortcut + h                            # residual 1 (drop_path = Id)

    # ---- MLP branch ----
    h = gnorm(y, n2g_ref, n2b_ref)              # block norm2 (MyNorm)
    h = gelu(mm(h, f1w_ref, f1b_ref))           # fc1 + GELU
    h = mm(h, f2w_ref, f2b_ref)                 # fc2 (dropout p=0)
    y = y + h                                   # residual 2

    act_ref[...] = y                            # carry to next block (stays in VMEM)

    @pl.when(d == pl.num_programs(1) - 1)
    def _():
        o_ref[0] = y.reshape(H, W, Cp).astype(o_ref.dtype)


_PARAM_KEYS = ("n1_g", "n1_b",
               "c1_w", "c1_b", "an1_g", "an1_b",
               "c21_w", "c21_b", "c22_w", "c22_b",
               "an2_g", "an2_b", "c3_w", "c3_b",
               "n2_g", "n2_b",
               "fc1_w", "fc1_b", "fc2_w", "fc2_b")

_WEIGHT_KEYS = frozenset({"c1_w", "c21_w", "c22_w", "c3_w", "fc1_w", "fc2_w"})


def _pad_params(params, Cp, Hdp):
    """Zero-pad channel dims to lane multiples; weights -> bf16, vectors -> f32."""
    def pad_w(w, rows, cols):
        w = jnp.pad(w, ((0, rows - w.shape[0]), (0, cols - w.shape[1])))
        return w.astype(jnp.bfloat16)

    def pad_v(v, cols):
        return jnp.pad(v, ((0, 0), (0, cols - v.shape[1]))).astype(jnp.float32)

    out = {}
    for k in _PARAM_KEYS:
        p = params[k]
        if k in _WEIGHT_KEYS:
            rows = Hdp if k == "fc2_w" else Cp
            cols = Hdp if k == "fc1_w" else Cp
            out[k] = pad_w(p, rows, cols)
        else:
            cols = Hdp if k == "fc1_b" else Cp
            out[k] = pad_v(p, cols)
    return out


def prepare_layer_params(block_params_list, dim, hidden):
    """Pad to lane multiples, cast weights to bf16, stack with a leading depth dim.

    Done once, outside the forward, so no per-call pad/cast work remains."""
    Cp = _round_up(dim, LANE)
    Hdp = _round_up(hidden, LANE)
    padded = [_pad_params(p, Cp, Hdp) for p in block_params_list]
    return {k: jnp.stack([pp[k] for pp in padded], axis=0) for k in _PARAM_KEYS}


def _vmem_bytes(H, W, Cp, Hdp):
    """Rough per-core VMEM need: carry + double-buffered I/O & weights + transients."""
    hw = H * W
    act = hw * Cp * 4
    io = 2 * 2 * act                                     # x in + out, double-buffered
    weights = 2 * 2 * (4 * Cp * Cp + 2 * Cp * Hdp)       # bf16, double-buffered (prefetch d+1)
    vectors = 2 * 4 * (13 * Cp + Hdp)
    transients = 10 * act + hw * Hdp * 4                 # shortcut/h/rolled slabs/fc1 out
    return int(1.25 * (act + io + weights + vectors + transients))


def basic_layer_forward(x_nchw, H, W, stacked_params, shift_size):
    """BasicLayer.forward (downsample=None): returns (x, H, W, x, H, W), NCHW.

    One fused pallas_call: grid=(B, depth); the activation never leaves VMEM between
    blocks and block d+1's weights are prefetched behind block d's compute."""
    B, C, _, _ = x_nchw.shape
    depth, _, Cp = stacked_params["c1_w"].shape
    Hdp = stacked_params["fc1_w"].shape[2]

    x = jnp.transpose(x_nchw, (0, 2, 3, 1))                       # NCHW -> NHWC
    x = jnp.pad(x, ((0, 0), (0, 0), (0, 0), (0, Cp - C)))         # lane-dense channels

    flat = [stacked_params[k] for k in _PARAM_KEYS]
    param_specs = [pl.BlockSpec((1,) + p.shape[1:], lambda b, d: (d, 0, 0))
                   for p in flat]

    kernel = functools.partial(_layer_kernel, H=H, W=W, C=C, Cp=Cp,
                               shift_size=shift_size)
    vmem_limit = min(max(_vmem_bytes(H, W, Cp, Hdp), 16 * 1024 * 1024),
                     64 * 1024 * 1024)                            # fits v7x's 64 MiB too

    out = pl.pallas_call(
        kernel,
        out_shape=jax.ShapeDtypeStruct((B, H, W, Cp), x.dtype),
        grid=(B, depth),
        in_specs=[pl.BlockSpec((1, H, W, Cp), lambda b, d: (b, 0, 0, 0))] + param_specs,
        out_specs=pl.BlockSpec((1, H, W, Cp), lambda b, d: (b, 0, 0, 0)),
        scratch_shapes=[pltpu.VMEM((H * W, Cp), jnp.float32)],    # activation carry
        compiler_params=pltpu.CompilerParams(
            dimension_semantics=("parallel", "arbitrary"),
            vmem_limit_bytes=vmem_limit,
        ),
    )(x, *flat)

    out = out[..., :C]                                            # strip channel padding
    out_nchw = jnp.transpose(out, (0, 3, 1, 2))                   # NHWC -> NCHW
    return out_nchw, H, W, out_nchw, H, W


# ------------------------------- parameter init --------------------------------------
def init_block_params(key, dim, hidden):
    keys = iter(jax.random.split(key, 32))

    def w(shape, scale=0.05):
        return jax.random.normal(next(keys), shape, jnp.float32) * scale

    def affine(n):
        return (1.0 + 0.02 * jax.random.normal(next(keys), (1, n), jnp.float32),
                0.02 * jax.random.normal(next(keys), (1, n), jnp.float32))

    n1_g, n1_b = affine(dim)
    an1_g, an1_b = affine(dim)
    an2_g, an2_b = affine(dim)
    n2_g, n2_b = affine(dim)
    return dict(
        n1_g=n1_g, n1_b=n1_b,
        c1_w=w((dim, dim)), c1_b=w((1, dim)),
        an1_g=an1_g, an1_b=an1_b,
        c21_w=w((dim, dim)), c21_b=w((1, dim)),
        c22_w=w((dim, dim)), c22_b=w((1, dim)),
        an2_g=an2_g, an2_b=an2_b,
        c3_w=w((dim, dim)), c3_b=w((1, dim)),
        n2_g=n2_g, n2_b=n2_b,
        fc1_w=w((dim, hidden)), fc1_b=w((1, hidden)),
        fc2_w=w((hidden, dim)), fc2_b=w((1, dim)),
    )


# ------------------------------ pure-JAX reference -----------------------------------
# Torch-faithful semantics (erf GELU, two-pass GroupNorm, pad/roll/narrow shift);
# matmuls use bf16 inputs to mirror the MXU numerics of the kernel.
def _block_ref(x, p, shift_size):
    B, H, W, C = x.shape
    bounds, shifts = _chunk_bounds(C, shift_size)
    gelu = lambda v: jax.nn.gelu(v, approximate=False)   # torch nn.GELU (erf form)

    def gn(v, g, b):
        mu = jnp.mean(v, axis=(1, 2, 3), keepdims=True)
        var = jnp.mean(jnp.square(v - mu), axis=(1, 2, 3), keepdims=True)
        return (v - mu) * lax.rsqrt(var + EPS) * g.reshape(1, 1, 1, -1) + b.reshape(1, 1, 1, -1)

    def conv(v, w, b):
        return jnp.einsum("bhwc,cd->bhwd",
                          v.astype(jnp.bfloat16), w.astype(jnp.bfloat16),
                          preferred_element_type=jnp.float32) + b.reshape(1, 1, 1, -1)

    def shift_zero(v, s, axis):
        if s == 0:
            return v
        pads = [(0, 0)] * v.ndim
        if s > 0:
            pads[axis] = (s, 0)
            return lax.slice_in_dim(jnp.pad(v, pads), 0, v.shape[axis], axis=axis)
        pads[axis] = (0, -s)
        return lax.slice_in_dim(jnp.pad(v, pads), -s, -s + v.shape[axis], axis=axis)

    def ax_shift(v, axis):
        parts = [shift_zero(v[..., c0:c1], s, axis) for (c0, c1), s in zip(bounds, shifts)]
        return jnp.concatenate(parts, axis=-1)

    shortcut = x
    h = gn(x, p["n1_g"], p["n1_b"])
    h = conv(h, p["c1_w"], p["c1_b"])
    h = gn(h, p["an1_g"], p["an1_b"])
    h = gelu(h)
    x_lr = gelu(conv(ax_shift(h, axis=2), p["c21_w"], p["c21_b"]))   # W shift
    x_td = gelu(conv(ax_shift(h, axis=1), p["c22_w"], p["c22_b"]))   # H shift
    h = gn(x_lr + x_td, p["an2_g"], p["an2_b"])
    h = conv(h, p["c3_w"], p["c3_b"])
    y = shortcut + h
    h = gn(y, p["n2_g"], p["n2_b"])
    h = gelu(conv(h, p["fc1_w"], p["fc1_b"]))
    h = conv(h, p["fc2_w"], p["fc2_b"])
    return y + h


if __name__ == "__main__":
    B, dim, H, W = 2, 32, 16, 16
    depth, shift_size, mlp_ratio = 2, 5, 4.0
    hidden = int(dim * mlp_ratio)

    root = jax.random.PRNGKey(0)
    kx, kp = jax.random.split(root)
    x_nchw = jax.random.normal(kx, (B, dim, H, W), jnp.float32)   # PyTorch-style NCHW input
    block_keys = jax.random.split(kp, depth)
    blocks = [init_block_params(k, dim, hidden) for k in block_keys]

    # pad / bf16-cast / depth-stack weights ONCE (hoisted out of the forward)
    stacked = prepare_layer_params(blocks, dim, hidden)

    out, Ho, Wo, out_down, Wh, Ww = basic_layer_forward(x_nchw, H, W, stacked, shift_size)
    out = jax.block_until_ready(out)

    # sanity check vs pure-JAX torch-faithful reference
    ref = jnp.transpose(x_nchw, (0, 2, 3, 1))
    for p in blocks:
        ref = _block_ref(ref, p, shift_size)
    ref = jnp.transpose(ref, (0, 3, 1, 2))

    assert out.shape == x_nchw.shape
    assert (Ho, Wo, Wh, Ww) == (H, W, H, W)
    err = float(jnp.max(jnp.abs(out - ref)))
    if err > 2e-2:
        raise AssertionError(f"mismatch vs reference: max abs err {err}")
    print("KERNEL_OK")
</pallas_src>

<mosaic_0001>
module attributes {stable_mosaic.version = 11 : i64} {
  func.func @_layer_kernel(%arg0: i32, %arg1: i32, %arg2: memref<1x16x16x128xf32, #tpu.memory_space<vmem>>, %arg3: memref<1x1x128xf32, #tpu.memory_space<vmem>>, %arg4: memref<1x1x128xf32, #tpu.memory_space<vmem>>, %arg5: memref<1x128x128xbf16, #tpu.memory_space<vmem>>, %arg6: memref<1x1x128xf32, #tpu.memory_space<vmem>>, %arg7: memref<1x1x128xf32, #tpu.memory_space<vmem>>, %arg8: memref<1x1x128xf32, #tpu.memory_space<vmem>>, %arg9: memref<1x128x128xbf16, #tpu.memory_space<vmem>>, %arg10: memref<1x1x128xf32, #tpu.memory_space<vmem>>, %arg11: memref<1x128x128xbf16, #tpu.memory_space<vmem>>, %arg12: memref<1x1x128xf32, #tpu.memory_space<vmem>>, %arg13: memref<1x1x128xf32, #tpu.memory_space<vmem>>, %arg14: memref<1x1x128xf32, #tpu.memory_space<vmem>>, %arg15: memref<1x128x128xbf16, #tpu.memory_space<vmem>>, %arg16: memref<1x1x128xf32, #tpu.memory_space<vmem>>, %arg17: memref<1x1x128xf32, #tpu.memory_space<vmem>>, %arg18: memref<1x1x128xf32, #tpu.memory_space<vmem>>, %arg19: memref<1x128x128xbf16, #tpu.memory_space<vmem>>, %arg20: memref<1x1x128xf32, #tpu.memory_space<vmem>>, %arg21: memref<1x128x128xbf16, #tpu.memory_space<vmem>>, %arg22: memref<1x1x128xf32, #tpu.memory_space<vmem>>, %arg23: memref<1x16x16x128xf32, #tpu.memory_space<vmem>>, %arg24: memref<256x128xf32, #tpu.memory_space<vmem>>) attributes {dimension_semantics = [#tpu.dimension_semantics<parallel>, #tpu.dimension_semantics<arbitrary>], iteration_bounds = array<i64: 2, 2>, scalar_prefetch = 0 : i64, scratch_operands = 1 : i64, tpu.core_type = #tpu.core_type<tc>, window_params = [{transform_indices = @transform_0, window_bounds = array<i64: 1, 16, 16, 128>}, {transform_indices = @transform_1, window_bounds = array<i64: 1, 1, 128>}, {transform_indices = @transform_2, window_bounds = array<i64: 1, 1, 128>}, {transform_indices = @transform_3, window_bounds = array<i64: 1, 128, 128>}, {transform_indices = @transform_4, window_bounds = array<i64: 1, 1, 128>}, {transform_indices = @transform_5, window_bounds = array<i64: 1, 1, 128>}, {transform_indices = @transform_6, window_bounds = array<i64: 1, 1, 128>}, {transform_indices = @transform_7, window_bounds = array<i64: 1, 128, 128>}, {transform_indices = @transform_8, window_bounds = array<i64: 1, 1, 128>}, {transform_indices = @transform_9, window_bounds = array<i64: 1, 128, 128>}, {transform_indices = @transform_10, window_bounds = array<i64: 1, 1, 128>}, {transform_indices = @transform_11, window_bounds = array<i64: 1, 1, 128>}, {transform_indices = @transform_12, window_bounds = array<i64: 1, 1, 128>}, {transform_indices = @transform_13, window_bounds = array<i64: 1, 128, 128>}, {transform_indices = @transform_14, window_bounds = array<i64: 1, 1, 128>}, {transform_indices = @transform_15, window_bounds = array<i64: 1, 1, 128>}, {transform_indices = @transform_16, window_bounds = array<i64: 1, 1, 128>}, {transform_indices = @transform_17, window_bounds = array<i64: 1, 128, 128>}, {transform_indices = @transform_18, window_bounds = array<i64: 1, 1, 128>}, {transform_indices = @transform_19, window_bounds = array<i64: 1, 128, 128>}, {transform_indices = @transform_20, window_bounds = array<i64: 1, 1, 128>}, {transform_indices = @transform_21, window_bounds = array<i64: 1, 16, 16, 128>}]} {
    %c0_i32 = arith.constant 0 : i32
    %0 = arith.cmpi eq, %arg1, %c0_i32 : i32
    %1 = arith.extui %0 : i1 to i32
    %c0_i32_0 = arith.constant 0 : i32
    %2 = arith.cmpi ne, %1, %c0_i32_0 : i32
    scf.if %2 {
      %c0_130 = arith.constant 0 : index
      %c0_131 = arith.constant 0 : index
      %c0_132 = arith.constant 0 : index
      %c0_133 = arith.constant 0 : index
      %349 = vector.load %arg2[%c0_130, %c0_131, %c0_132, %c0_133] : memref<1x16x16x128xf32, #tpu.memory_space<vmem>>, vector<1x16x16x128xf32>
      %350 = vector.shape_cast %349 : vector<1x16x16x128xf32> to vector<16x16x128xf32>
      %351 = vector.shape_cast %350 : vector<16x16x128xf32> to vector<256x128xf32>
      %c0_134 = arith.constant 0 : index
      %c0_135 = arith.constant 0 : index
      %352 = vector.load %arg24[%c0_134, %c0_135] : memref<256x128xf32, #tpu.memory_space<vmem>>, vector<256x128xf32>
      tpu.vector_store %arg24[%c0_134, %c0_135], %351 {strides = array<i32>} : memref<256x128xf32, #tpu.memory_space<vmem>>, vector<256x128xf32>,
    } else {
    }
    %c0 = arith.constant 0 : index
    %c0_1 = arith.constant 0 : index
    %3 = vector.load %arg24[%c0, %c0_1] : memref<256x128xf32, #tpu.memory_space<vmem>>, vector<256x128xf32>
    %4 = vector.shape_cast %3 : vector<256x128xf32> to vector<1x256x128xf32>
    %cst = arith.constant dense<0.000000e+00> : vector<1xf32>
    %5 = vector.multi_reduction <add>, %4, %cst [1, 2] : vector<1x256x128xf32> to vector<1xf32>
    %6 = vector.shape_cast %5 : vector<1xf32> to vector<1x1x1xf32>
    %7 = vector.extract %6[0, 0, 0] : f32 from vector<1x1x1xf32>
    %8 = arith.mulf %3, %3 : vector<256x128xf32>
    %9 = vector.shape_cast %8 : vector<256x128xf32> to vector<1x256x128xf32>
    %cst_2 = arith.constant dense<0.000000e+00> : vector<1xf32>
    %10 = vector.multi_reduction <add>, %9, %cst_2 [1, 2] : vector<1x256x128xf32> to vector<1xf32>
    %11 = vector.shape_cast %10 : vector<1xf32> to vector<1x1x1xf32>
    %12 = vector.extract %11[0, 0, 0] : f32 from vector<1x1x1xf32>
    %cst_3 = arith.constant 8.192000e+03 : f32
    %13 = arith.divf %7, %cst_3 : f32
    %cst_4 = arith.constant 8.192000e+03 : f32
    %14 = arith.divf %12, %cst_4 : f32
    %15 = arith.mulf %13, %13 : f32
    %16 = arith.subf %14, %15 : f32
    %cst_5 = arith.constant 0.000000e+00 : f32
    %17 = arith.maximumf %16, %cst_5 : f32
    %18 = vector.broadcast %13 : f32 to vector<256x128xf32>
    %19 = arith.subf %3, %18 : vector<256x128xf32>
    %cst_6 = arith.constant 9.99999974E-6 : f32
    %20 = arith.addf %17, %cst_6 : f32
    %21 = math.rsqrt %20 : f32
    %22 = vector.broadcast %21 : f32 to vector<256x128xf32>
    %23 = arith.mulf %19, %22 : vector<256x128xf32>
    %c0_7 = arith.constant 0 : index
    %c0_8 = arith.constant 0 : index
    %c0_9 = arith.constant 0 : index
    %24 = vector.load %arg3[%c0_7, %c0_8, %c0_9] : memref<1x1x128xf32, #tpu.memory_space<vmem>>, vector<1x1x128xf32>
    %25 = vector.shape_cast %24 : vector<1x1x128xf32> to vector<1x128xf32>
    %26 = vector.broadcast %25 : vector<1x128xf32> to vector<256x128xf32>
    %27 = arith.mulf %23, %26 : vector<256x128xf32>
    %c0_10 = arith.constant 0 : index
    %c0_11 = arith.constant 0 : index
    %c0_12 = arith.constant 0 : index
    %28 = vector.load %arg4[%c0_10, %c0_11, %c0_12] : memref<1x1x128xf32, #tpu.memory_space<vmem>>, vector<1x1x128xf32>
    %29 = vector.shape_cast %28 : vector<1x1x128xf32> to vector<1x128xf32>
    %30 = vector.broadcast %29 : vector<1x128xf32> to vector<256x128xf32>
    %31 = arith.addf %27, %30 : vector<256x128xf32>
    %32 = arith.truncf %31 : vector<256x128xf32> to vector<256x128xbf16>
    %c0_13 = arith.constant 0 : index
    %c0_14 = arith.constant 0 : index
    %c0_15 = arith.constant 0 : index
    %33 = vector.load %arg5[%c0_13, %c0_14, %c0_15] : memref<1x128x128xbf16, #tpu.memory_space<vmem>>, vector<1x128x128xbf16>
    %34 = vector.shape_cast %33 : vector<1x128x128xbf16> to vector<128x128xbf16>
    %cst_16 = arith.constant dense<0.000000e+00> : vector<256x128xf32>
    %35 = tpu.matmul %32, %34, %cst_16 {dimension_numbers = #tpu.dot_dimension_numbers<[1], [0], [0], [1], [0, 0, 1, 1], [], []>} : vector<256x128xbf16>, vector<128x128xbf16>, vector<256x128xf32> -> vector<256x128xf32>
    %c0_17 = arith.constant 0 : index
    %c0_18 = arith.constant 0 : index
    %c0_19 = arith.constant 0 : index
    %36 = vector.load %arg6[%c0_17, %c0_18, %c0_19] : memref<1x1x128xf32, #tpu.memory_space<vmem>>, vector<1x1x128xf32>
    %37 = vector.shape_cast %36 : vector<1x1x128xf32> to vector<1x128xf32>
    %38 = vector.broadcast %37 : vector<1x128xf32> to vector<256x128xf32>
    %39 = arith.addf %35, %38 : vector<256x128xf32>
    %40 = vector.shape_cast %39 : vector<256x128xf32> to vector<1x256x128xf32>
    %cst_20 = arith.constant dense<0.000000e+00> : vector<1xf32>
    %41 = vector.multi_reduction <add>, %40, %cst_20 [1, 2] : vector<1x256x128xf32> to vector<1xf32>
    %42 = vector.shape_cast %41 : vector<1xf32> to vector<1x1x1xf32>
    %43 = vector.extract %42[0, 0, 0] : f32 from vector<1x1x1xf32>
    %44 = arith.mulf %39, %39 : vector<256x128xf32>
    %45 = vector.shape_cast %44 : vector<256x128xf32> to vector<1x256x128xf32>
    %cst_21 = arith.constant dense<0.000000e+00> : vector<1xf32>
    %46 = vector.multi_reduction <add>, %45, %cst_21 [1, 2] : vector<1x256x128xf32> to vector<1xf32>
    %47 = vector.shape_cast %46 : vector<1xf32> to vector<1x1x1xf32>
    %48 = vector.extract %47[0, 0, 0] : f32 from vector<1x1x1xf32>
    %cst_22 = arith.constant 8.192000e+03 : f32
    %49 = arith.divf %43, %cst_22 : f32
    %cst_23 = arith.constant 8.192000e+03 : f32
    %50 = arith.divf %48, %cst_23 : f32
    %51 = arith.mulf %49, %49 : f32
    %52 = arith.subf %50, %51 : f32
    %cst_24 = arith.constant 0.000000e+00 : f32
    %53 = arith.maximumf %52, %cst_24 : f32
    %54 = vector.broadcast %49 : f32 to vector<256x128xf32>
    %55 = arith.subf %39, %54 : vector<256x128xf32>
    %cst_25 = arith.constant 9.99999974E-6 : f32
    %56 = arith.addf %53, %cst_25 : f32
    %57 = math.rsqrt %56 : f32
    %58 = vector.broadcast %57 : f32 to vector<256x128xf32>
    %59 = arith.mulf %55, %58 : vector<256x128xf32>
    %c0_26 = arith.constant 0 : index
    %c0_27 = arith.constant 0 : index
    %c0_28 = arith.constant 0 : index
    %60 = vector.load %arg7[%c0_26, %c0_27, %c0_28] : memref<1x1x128xf32, #tpu.memory_space<vmem>>, vector<1x1x128xf32>
    %61 = vector.shape_cast %60 : vector<1x1x128xf32> to vector<1x128xf32>
    %62 = vector.broadcast %61 : vector<1x128xf32> to vector<256x128xf32>
    %63 = arith.mulf %59, %62 : vector<256x128xf32>
    %c0_29 = arith.constant 0 : index
    %c0_30 = arith.constant 0 : index
    %c0_31 = arith.constant 0 : index
    %64 = vector.load %arg8[%c0_29, %c0_30, %c0_31] : memref<1x1x128xf32, #tpu.memory_space<vmem>>, vector<1x1x128xf32>
    %65 = vector.shape_cast %64 : vector<1x1x128xf32> to vector<1x128xf32>
    %66 = vector.broadcast %65 : vector<1x128xf32> to vector<256x128xf32>
    %67 = arith.addf %63, %66 : vector<256x128xf32>
    %68 = arith.mulf %67, %67 : vector<256x128xf32>
    %69 = arith.mulf %67, %68 : vector<256x128xf32>
    %cst_32 = arith.constant 4.471500e-02 : f32
    %70 = vector.broadcast %cst_32 : f32 to vector<256x128xf32>
    %71 = arith.mulf %70, %69 : vector<256x128xf32>
    %72 = arith.addf %67, %71 : vector<256x128xf32>
    %cst_33 = arith.constant 0.797884583 : f32
    %73 = vector.broadcast %cst_33 : f32 to vector<256x128xf32>
    %74 = arith.mulf %73, %72 : vector<256x128xf32>
    %75 = math.tanh %74 : vector<256x128xf32>
    %cst_34 = arith.constant 1.000000e+00 : f32
    %76 = vector.broadcast %cst_34 : f32 to vector<256x128xf32>
    %77 = arith.addf %76, %75 : vector<256x128xf32>
    %cst_35 = arith.constant 5.000000e-01 : f32
    %78 = vector.broadcast %cst_35 : f32 to vector<256x128xf32>
    %79 = arith.mulf %78, %77 : vector<256x128xf32>
    %80 = arith.mulf %67, %79 : vector<256x128xf32>
    %81 = vector.shape_cast %80 : vector<256x128xf32> to vector<16x16x128xf32>
    %82 = tpu.iota {dimensions = array<i32: 1>} : vector<16x16x1xi32>
    %83 = tpu.iota {dimensions = array<i32: 0>} : vector<16x16x1xi32>
    %84 = tpu.iota {dimensions = array<i32: 2>} : vector<1x1x128xi32>
    %c7_i32 = arith.constant 7 : i32
    %85 = vector.broadcast %c7_i32 : i32 to vector<1x1x128xi32>
    %86 = arith.cmpi slt, %84, %85 : vector<1x1x128xi32>
    %c14_i32 = arith.constant 14 : i32
    %87 = vector.broadcast %c14_i32 : i32 to vector<1x1x128xi32>
    %88 = arith.cmpi slt, %84, %87 : vector<1x1x128xi32>
    %c21_i32 = arith.constant 21 : i32
    %89 = vector.broadcast %c21_i32 : i32 to vector<1x1x128xi32>
    %90 = arith.cmpi slt, %84, %89 : vector<1x1x128xi32>
    %c28_i32 = arith.constant 28 : i32
    %91 = vector.broadcast %c28_i32 : i32 to vector<1x1x128xi32>
    %92 = arith.cmpi slt, %84, %91 : vector<1x1x128xi32>
    %c254_i32 = arith.constant 254 : i32
    %93 = tpu.dynamic_rotate %80 by %c254_i32 dim 0 : vector<256x128xf32>, i32 -> vector<256x128xf32>
    %94 = vector.shape_cast %93 : vector<256x128xf32> to vector<16x16x128xf32>
    %c-2_i32 = arith.constant -2 : i32
    %95 = vector.broadcast %c-2_i32 : i32 to vector<16x16x1xi32>
    %96 = arith.cmpi sge, %82, %95 : vector<16x16x1xi32>
    %c14_i32_36 = arith.constant 14 : i32
    %97 = vector.broadcast %c14_i32_36 : i32 to vector<16x16x1xi32>
    %98 = arith.cmpi slt, %82, %97 : vector<16x16x1xi32>
    %99 = arith.andi %96, %98 : vector<16x16x1xi1>
    %cst_37 = arith.constant 0.000000e+00 : f32
    %100 = vector.shape_cast %99 : vector<16x16x1xi1> to vector<16x16x1xi1>
    %101 = vector.broadcast %100 : vector<16x16x1xi1> to vector<16x16x128xi1>
    %102 = vector.broadcast %cst_37 : f32 to vector<16x16x128xf32>
    %103 = arith.select %101, %94, %102 : vector<16x16x128xi1>, vector<16x16x128xf32>
    %c255_i32 = arith.constant 255 : i32
    %104 = tpu.dynamic_rotate %80 by %c255_i32 dim 0 : vector<256x128xf32>, i32 -> vector<256x128xf32>
    %105 = vector.shape_cast %104 : vector<256x128xf32> to vector<16x16x128xf32>
    %c-1_i32 = arith.constant -1 : i32
    %106 = vector.broadcast %c-1_i32 : i32 to vector<16x16x1xi32>
    %107 = arith.cmpi sge, %82, %106 : vector<16x16x1xi32>
    %c15_i32 = arith.constant 15 : i32
    %108 = vector.broadcast %c15_i32 : i32 to vector<16x16x1xi32>
    %109 = arith.cmpi slt, %82, %108 : vector<16x16x1xi32>
    %110 = arith.andi %107, %109 : vector<16x16x1xi1>
    %cst_38 = arith.constant 0.000000e+00 : f32
    %111 = vector.shape_cast %110 : vector<16x16x1xi1> to vector<16x16x1xi1>
    %112 = vector.broadcast %111 : vector<16x16x1xi1> to vector<16x16x128xi1>
    %113 = vector.broadcast %cst_38 : f32 to vector<16x16x128xf32>
    %114 = arith.select %112, %105, %113 : vector<16x16x128xi1>, vector<16x16x128xf32>
    %c1_i32 = arith.constant 1 : i32
    %115 = tpu.dynamic_rotate %80 by %c1_i32 dim 0 : vector<256x128xf32>, i32 -> vector<256x128xf32>
    %116 = vector.shape_cast %115 : vector<256x128xf32> to vector<16x16x128xf32>
    %c1_i32_39 = arith.constant 1 : i32
    %117 = vector.broadcast %c1_i32_39 : i32 to vector<16x16x1xi32>
    %118 = arith.cmpi sge, %82, %117 : vector<16x16x1xi32>
    %c17_i32 = arith.constant 17 : i32
    %119 = vector.broadcast %c17_i32 : i32 to vector<16x16x1xi32>
    %120 = arith.cmpi slt, %82, %119 : vector<16x16x1xi32>
    %121 = arith.andi %118, %120 : vector<16x16x1xi1>
    %cst_40 = arith.constant 0.000000e+00 : f32
    %122 = vector.shape_cast %121 : vector<16x16x1xi1> to vector<16x16x1xi1>
    %123 = vector.broadcast %122 : vector<16x16x1xi1> to vector<16x16x128xi1>
    %124 = vector.broadcast %cst_40 : f32 to vector<16x16x128xf32>
    %125 = arith.select %123, %116, %124 : vector<16x16x128xi1>, vector<16x16x128xf32>
    %c2_i32 = arith.constant 2 : i32
    %126 = tpu.dynamic_rotate %80 by %c2_i32 dim 0 : vector<256x128xf32>, i32 -> vector<256x128xf32>
    %127 = vector.shape_cast %126 : vector<256x128xf32> to vector<16x16x128xf32>
    %c2_i32_41 = arith.constant 2 : i32
    %128 = vector.broadcast %c2_i32_41 : i32 to vector<16x16x1xi32>
    %129 = arith.cmpi sge, %82, %128 : vector<16x16x1xi32>
    %c18_i32 = arith.constant 18 : i32
    %130 = vector.broadcast %c18_i32 : i32 to vector<16x16x1xi32>
    %131 = arith.cmpi slt, %82, %130 : vector<16x16x1xi32>
    %132 = arith.andi %129, %131 : vector<16x16x1xi1>
    %cst_42 = arith.constant 0.000000e+00 : f32
    %133 = vector.shape_cast %132 : vector<16x16x1xi1> to vector<16x16x1xi1>
    %134 = vector.broadcast %133 : vector<16x16x1xi1> to vector<16x16x128xi1>
    %135 = vector.broadcast %cst_42 : f32 to vector<16x16x128xf32>
    %136 = arith.select %134, %127, %135 : vector<16x16x128xi1>, vector<16x16x128xf32>
    %137 = vector.shape_cast %92 : vector<1x1x128xi1> to vector<1x1x128xi1>
    %138 = vector.broadcast %137 : vector<1x1x128xi1> to vector<16x16x128xi1>
    %139 = arith.select %138, %125, %136 : vector<16x16x128xi1>, vector<16x16x128xf32>
    %140 = vector.shape_cast %90 : vector<1x1x128xi1> to vector<1x1x128xi1>
    %141 = vector.broadcast %140 : vector<1x1x128xi1> to vector<16x16x128xi1>
    %142 = arith.select %141, %81, %139 : vector<16x16x128xi1>, vector<16x16x128xf32>
    %143 = vector.shape_cast %88 : vector<1x1x128xi1> to vector<1x1x128xi1>
    %144 = vector.broadcast %143 : vector<1x1x128xi1> to vector<16x16x128xi1>
    %145 = arith.select %144, %114, %142 : vector<16x16x128xi1>, vector<16x16x128xf32>
    %146 = vector.shape_cast %86 : vector<1x1x128xi1> to vector<1x1x128xi1>
    %147 = vector.broadcast %146 : vector<1x1x128xi1> to vector<16x16x128xi1>
    %148 = arith.select %147, %103, %145 : vector<16x16x128xi1>, vector<16x16x128xf32>
    %149 = vector.shape_cast %148 : vector<16x16x128xf32> to vector<256x128xf32>
    %150 = arith.truncf %149 : vector<256x128xf32> to vector<256x128xbf16>
    %c0_43 = arith.constant 0 : index
    %c0_44 = arith.constant 0 : index
    %c0_45 = arith.constant 0 : index
    %151 = vector.load %arg9[%c0_43, %c0_44, %c0_45] : memref<1x128x128xbf16, #tpu.memory_space<vmem>>, vector<1x128x128xbf16>
    %152 = vector.shape_cast %151 : vector<1x128x128xbf16> to vector<128x128xbf16>
    %cst_46 = arith.constant dense<0.000000e+00> : vector<256x128xf32>
    %153 = tpu.matmul %150, %152, %cst_46 {dimension_numbers = #tpu.dot_dimension_numbers<[1], [0], [0], [1], [0, 0, 1, 1], [], []>} : vector<256x128xbf16>, vector<128x128xbf16>, vector<256x128xf32> -> vector<256x128xf32>
    %c0_47 = arith.constant 0 : index
    %c0_48 = arith.constant 0 : index
    %c0_49 = arith.constant 0 : index
    %154 = vector.load %arg10[%c0_47, %c0_48, %c0_49] : memref<1x1x128xf32, #tpu.memory_space<vmem>>, vector<1x1x128xf32>
    %155 = vector.shape_cast %154 : vector<1x1x128xf32> to vector<1x128xf32>
    %156 = vector.broadcast %155 : vector<1x128xf32> to vector<256x128xf32>
    %157 = arith.addf %153, %156 : vector<256x128xf32>
    %158 = arith.mulf %157, %157 : vector<256x128xf32>
    %159 = arith.mulf %157, %158 : vector<256x128xf32>
    %cst_50 = arith.constant 4.471500e-02 : f32
    %160 = vector.broadcast %cst_50 : f32 to vector<256x128xf32>
    %161 = arith.mulf %160, %159 : vector<256x128xf32>
    %162 = arith.addf %157, %161 : vector<256x128xf32>
    %cst_51 = arith.constant 0.797884583 : f32
    %163 = vector.broadcast %cst_51 : f32 to vector<256x128xf32>
    %164 = arith.mulf %163, %162 : vector<256x128xf32>
    %165 = math.tanh %164 : vector<256x128xf32>
    %cst_52 = arith.constant 1.000000e+00 : f32
    %166 = vector.broadcast %cst_52 : f32 to vector<256x128xf32>
    %167 = arith.addf %166, %165 : vector<256x128xf32>
    %cst_53 = arith.constant 5.000000e-01 : f32
    %168 = vector.broadcast %cst_53 : f32 to vector<256x128xf32>
    %169 = arith.mulf %168, %167 : vector<256x128xf32>
    %170 = arith.mulf %157, %169 : vector<256x128xf32>
    %c224_i32 = arith.constant 224 : i32
    %171 = tpu.dynamic_rotate %80 by %c224_i32 dim 0 : vector<256x128xf32>, i32 -> vector<256x128xf32>
    %172 = vector.shape_cast %171 : vector<256x128xf32> to vector<16x16x128xf32>
    %c-2_i32_54 = arith.constant -2 : i32
    %173 = vector.broadcast %c-2_i32_54 : i32 to vector<16x16x1xi32>
    %174 = arith.cmpi sge, %83, %173 : vector<16x16x1xi32>
    %c14_i32_55 = arith.constant 14 : i32
    %175 = vector.broadcast %c14_i32_55 : i32 to vector<16x16x1xi32>
    %176 = arith.cmpi slt, %83, %175 : vector<16x16x1xi32>
    %177 = arith.andi %174, %176 : vector<16x16x1xi1>
    %cst_56 = arith.constant 0.000000e+00 : f32
    %178 = vector.shape_cast %177 : vector<16x16x1xi1> to vector<16x16x1xi1>
    %179 = vector.broadcast %178 : vector<16x16x1xi1> to vector<16x16x128xi1>
    %180 = vector.broadcast %cst_56 : f32 to vector<16x16x128xf32>
    %181 = arith.select %179, %172, %180 : vector<16x16x128xi1>, vector<16x16x128xf32>
    %c240_i32 = arith.constant 240 : i32
    %182 = tpu.dynamic_rotate %80 by %c240_i32 dim 0 : vector<256x128xf32>, i32 -> vector<256x128xf32>
    %183 = vector.shape_cast %182 : vector<256x128xf32> to vector<16x16x128xf32>
    %c-1_i32_57 = arith.constant -1 : i32
    %184 = vector.broadcast %c-1_i32_57 : i32 to vector<16x16x1xi32>
    %185 = arith.cmpi sge, %83, %184 : vector<16x16x1xi32>
    %c15_i32_58 = arith.constant 15 : i32
    %186 = vector.broadcast %c15_i32_58 : i32 to vector<16x16x1xi32>
    %187 = arith.cmpi slt, %83, %186 : vector<16x16x1xi32>
    %188 = arith.andi %185, %187 : vector<16x16x1xi1>
    %cst_59 = arith.constant 0.000000e+00 : f32
    %189 = vector.shape_cast %188 : vector<16x16x1xi1> to vector<16x16x1xi1>
    %190 = vector.broadcast %189 : vector<16x16x1xi1> to vector<16x16x128xi1>
    %191 = vector.broadcast %cst_59 : f32 to vector<16x16x128xf32>
    %192 = arith.select %190, %183, %191 : vector<16x16x128xi1>, vector<16x16x128xf32>
    %c16_i32 = arith.constant 16 : i32
    %193 = tpu.dynamic_rotate %80 by %c16_i32 dim 0 : vector<256x128xf32>, i32 -> vector<256x128xf32>
    %194 = vector.shape_cast %193 : vector<256x128xf32> to vector<16x16x128xf32>
    %c1_i32_60 = arith.constant 1 : i32
    %195 = vector.broadcast %c1_i32_60 : i32 to vector<16x16x1xi32>
    %196 = arith.cmpi sge, %83, %195 : vector<16x16x1xi32>
    %c17_i32_61 = arith.constant 17 : i32
    %197 = vector.broadcast %c17_i32_61 : i32 to vector<16x16x1xi32>
    %198 = arith.cmpi slt, %83, %197 : vector<16x16x1xi32>
    %199 = arith.andi %196, %198 : vector<16x16x1xi1>
    %cst_62 = arith.constant 0.000000e+00 : f32
    %200 = vector.shape_cast %199 : vector<16x16x1xi1> to vector<16x16x1xi1>
    %201 = vector.broadcast %200 : vector<16x16x1xi1> to vector<16x16x128xi1>
    %202 = vector.broadcast %cst_62 : f32 to vector<16x16x128xf32>
    %203 = arith.select %201, %194, %202 : vector<16x16x128xi1>, vector<16x16x128xf32>
    %c32_i32 = arith.constant 32 : i32
    %204 = tpu.dynamic_rotate %80 by %c32_i32 dim 0 : vector<256x128xf32>, i32 -> vector<256x128xf32>
    %205 = vector.shape_cast %204 : vector<256x128xf32> to vector<16x16x128xf32>
    %c2_i32_63 = arith.constant 2 : i32
    %206 = vector.broadcast %c2_i32_63 : i32 to vector<16x16x1xi32>
    %207 = arith.cmpi sge, %83, %206 : vector<16x16x1xi32>
    %c18_i32_64 = arith.constant 18 : i32
    %208 = vector.broadcast %c18_i32_64 : i32 to vector<16x16x1xi32>
    %209 = arith.cmpi slt, %83, %208 : vector<16x16x1xi32>
    %210 = arith.andi %207, %209 : vector<16x16x1xi1>
    %cst_65 = arith.constant 0.000000e+00 : f32
    %211 = vector.shape_cast %210 : vector<16x16x1xi1> to vector<16x16x1xi1>
    %212 = vector.broadcast %211 : vector<16x16x1xi1> to vector<16x16x128xi1>
    %213 = vector.broadcast %cst_65 : f32 to vector<16x16x128xf32>
    %214 = arith.select %212, %205, %213 : vector<16x16x128xi1>, vector<16x16x128xf32>
    %215 = vector.shape_cast %92 : vector<1x1x128xi1> to vector<1x1x128xi1>
    %216 = vector.broadcast %215 : vector<1x1x128xi1> to vector<16x16x128xi1>
    %217 = arith.select %216, %203, %214 : vector<16x16x128xi1>, vector<16x16x128xf32>
    %218 = vector.shape_cast %90 : vector<1x1x128xi1> to vector<1x1x128xi1>
    %219 = vector.broadcast %218 : vector<1x1x128xi1> to vector<16x16x128xi1>
    %220 = arith.select %219, %81, %217 : vector<16x16x128xi1>, vector<16x16x128xf32>
    %221 = vector.shape_cast %88 : vector<1x1x128xi1> to vector<1x1x128xi1>
    %222 = vector.broadcast %221 : vector<1x1x128xi1> to vector<16x16x128xi1>
    %223 = arith.select %222, %192, %220 : vector<16x16x128xi1>, vector<16x16x128xf32>
    %224 = vector.shape_cast %86 : vector<1x1x128xi1> to vector<1x1x128xi1>
    %225 = vector.broadcast %224 : vector<1x1x128xi1> to vector<16x16x128xi1>
    %226 = arith.select %225, %181, %223 : vector<16x16x128xi1>, vector<16x16x128xf32>
    %227 = vector.shape_cast %226 : vector<16x16x128xf32> to vector<256x128xf32>
    %228 = arith.truncf %227 : vector<256x128xf32> to vector<256x128xbf16>
    %c0_66 = arith.constant 0 : index
    %c0_67 = arith.constant 0 : index
    %c0_68 = arith.constant 0 : index
    %229 = vector.load %arg11[%c0_66, %c0_67, %c0_68] : memref<1x128x128xbf16, #tpu.memory_space<vmem>>, vector<1x128x128xbf16>
    %230 = vector.shape_cast %229 : vector<1x128x128xbf16> to vector<128x128xbf16>
    %cst_69 = arith.constant dense<0.000000e+00> : vector<256x128xf32>
    %231 = tpu.matmul %228, %230, %cst_69 {dimension_numbers = #tpu.dot_dimension_numbers<[1], [0], [0], [1], [0, 0, 1, 1], [], []>} : vector<256x128xbf16>, vector<128x128xbf16>, vector<256x128xf32> -> vector<256x128xf32>
    %c0_70 = arith.constant 0 : index
    %c0_71 = arith.constant 0 : index
    %c0_72 = arith.constant 0 : index
    %232 = vector.load %arg12[%c0_70, %c0_71, %c0_72] : memref<1x1x128xf32, #tpu.memory_space<vmem>>, vector<1x1x128xf32>
    %233 = vector.shape_cast %232 : vector<1x1x128xf32> to vector<1x128xf32>
    %234 = vector.broadcast %233 : vector<1x128xf32> to vector<256x128xf32>
    %235 = arith.addf %231, %234 : vector<256x128xf32>
    %236 = arith.mulf %235, %235 : vector<256x128xf32>
    %237 = arith.mulf %235, %236 : vector<256x128xf32>
    %cst_73 = arith.constant 4.471500e-02 : f32
    %238 = vector.broadcast %cst_73 : f32 to vector<256x128xf32>
    %239 = arith.mulf %238, %237 : vector<256x128xf32>
    %240 = arith.addf %235, %239 : vector<256x128xf32>
    %cst_74 = arith.constant 0.797884583 : f32
    %241 = vector.broadcast %cst_74 : f32 to vector<256x128xf32>
    %242 = arith.mulf %241, %240 : vector<256x128xf32>
    %243 = math.tanh %242 : vector<256x128xf32>
    %cst_75 = arith.constant 1.000000e+00 : f32
    %244 = vector.broadcast %cst_75 : f32 to vector<256x128xf32>
    %245 = arith.addf %244, %243 : vector<256x128xf32>
    %cst_76 = arith.constant 5.000000e-01 : f32
    %246 = vector.broadcast %cst_76 : f32 to vector<256x128xf32>
    %247 = arith.mulf %246, %245 : vector<256x128xf32>
    %248 = arith.mulf %235, %247 : vector<256x128xf32>
    %249 = arith.addf %170, %248 : vector<256x128xf32>
    %250 = vector.shape_cast %249 : vector<256x128xf32> to vector<1x256x128xf32>
    %cst_77 = arith.constant dense<0.000000e+00> : vector<1xf32>
    %251 = vector.multi_reduction <add>, %250, %cst_77 [1, 2] : vector<1x256x128xf32> to vector<1xf32>
    %252 = vector.shape_cast %251 : vector<1xf32> to vector<1x1x1xf32>
    %253 = vector.extract %252[0, 0, 0] : f32 from vector<1x1x1xf32>
    %254 = arith.mulf %249, %249 : vector<256x128xf32>
    %255 = vector.shape_cast %254 : vector<256x128xf32> to vector<1x256x128xf32>
    %cst_78 = arith.constant dense<0.000000e+00> : vector<1xf32>
    %256 = vector.multi_reduction <add>, %255, %cst_78 [1, 2] : vector<1x256x128xf32> to vector<1xf32>
    %257 = vector.shape_cast %256 : vector<1xf32> to vector<1x1x1xf32>
    %258 = vector.extract %257[0, 0, 0] : f32 from vector<1x1x1xf32>
    %cst_79 = arith.constant 8.192000e+03 : f32
    %259 = arith.divf %253, %cst_79 : f32
    %cst_80 = arith.constant 8.192000e+03 : f32
    %260 = arith.divf %258, %cst_80 : f32
    %261 = arith.mulf %259, %259 : f32
    %262 = arith.subf %260, %261 : f32
    %cst_81 = arith.constant 0.000000e+00 : f32
    %263 = arith.maximumf %262, %cst_81 : f32
    %264 = vector.broadcast %259 : f32 to vector<256x128xf32>
    %265 = arith.subf %249, %264 : vector<256x128xf32>
    %cst_82 = arith.constant 9.99999974E-6 : f32
    %266 = arith.addf %263, %cst_82 : f32
    %267 = math.rsqrt %266 : f32
    %268 = vector.broadcast %267 : f32 to vector<256x128xf32>
    %269 = arith.mulf %265, %268 : vector<256x128xf32>
    %c0_83 = arith.constant 0 : index
    %c0_84 = arith.constant 0 : index
    %c0_85 = arith.constant 0 : index
    %270 = vector.load %arg13[%c0_83, %c0_84, %c0_85] : memref<1x1x128xf32, #tpu.memory_space<vmem>>, vector<1x1x128xf32>
    %271 = vector.shape_cast %270 : vector<1x1x128xf32> to vector<1x128xf32>
    %272 = vector.broadcast %271 : vector<1x128xf32> to vector<256x128xf32>
    %273 = arith.mulf %269, %272 : vector<256x128xf32>
    %c0_86 = arith.constant 0 : index
    %c0_87 = arith.constant 0 : index
    %c0_88 = arith.constant 0 : index
    %274 = vector.load %arg14[%c0_86, %c0_87, %c0_88] : memref<1x1x128xf32, #tpu.memory_space<vmem>>, vector<1x1x128xf32>
    %275 = vector.shape_cast %274 : vector<1x1x128xf32> to vector<1x128xf32>
    %276 = vector.broadcast %275 : vector<1x128xf32> to vector<256x128xf32>
    %277 = arith.addf %273, %276 : vector<256x128xf32>
    %278 = arith.truncf %277 : vector<256x128xf32> to vector<256x128xbf16>
    %c0_89 = arith.constant 0 : index
    %c0_90 = arith.constant 0 : index
    %c0_91 = arith.constant 0 : index
    %279 = vector.load %arg15[%c0_89, %c0_90, %c0_91] : memref<1x128x128xbf16, #tpu.memory_space<vmem>>, vector<1x128x128xbf16>
    %280 = vector.shape_cast %279 : vector<1x128x128xbf16> to vector<128x128xbf16>
    %cst_92 = arith.constant dense<0.000000e+00> : vector<256x128xf32>
    %281 = tpu.matmul %278, %280, %cst_92 {dimension_numbers = #tpu.dot_dimension_numbers<[1], [0], [0], [1], [0, 0, 1, 1], [], []>} : vector<256x128xbf16>, vector<128x128xbf16>, vector<256x128xf32> -> vector<256x128xf32>
    %c0_93 = arith.constant 0 : index
    %c0_94 = arith.constant 0 : index
    %c0_95 = arith.constant 0 : index
    %282 = vector.load %arg16[%c0_93, %c0_94, %c0_95] : memref<1x1x128xf32, #tpu.memory_space<vmem>>, vector<1x1x128xf32>
    %283 = vector.shape_cast %282 : vector<1x1x128xf32> to vector<1x128xf32>
    %284 = vector.broadcast %283 : vector<1x128xf32> to vector<256x128xf32>
    %285 = arith.addf %281, %284 : vector<256x128xf32>
    %286 = arith.addf %3, %285 : vector<256x128xf32>
    %287 = vector.shape_cast %286 : vector<256x128xf32> to vector<1x256x128xf32>
    %cst_96 = arith.constant dense<0.000000e+00> : vector<1xf32>
    %288 = vector.multi_reduction <add>, %287, %cst_96 [1, 2] : vector<1x256x128xf32> to vector<1xf32>
    %289 = vector.shape_cast %288 : vector<1xf32> to vector<1x1x1xf32>
    %290 = vector.extract %289[0, 0, 0] : f32 from vector<1x1x1xf32>
    %291 = arith.mulf %286, %286 : vector<256x128xf32>
    %292 = vector.shape_cast %291 : vector<256x128xf32> to vector<1x256x128xf32>
    %cst_97 = arith.constant dense<0.000000e+00> : vector<1xf32>
    %293 = vector.multi_reduction <add>, %292, %cst_97 [1, 2] : vector<1x256x128xf32> to vector<1xf32>
    %294 = vector.shape_cast %293 : vector<1xf32> to vector<1x1x1xf32>
    %295 = vector.extract %294[0, 0, 0] : f32 from vector<1x1x1xf32>
    %cst_98 = arith.constant 8.192000e+03 : f32
    %296 = arith.divf %290, %cst_98 : f32
    %cst_99 = arith.constant 8.192000e+03 : f32
    %297 = arith.divf %295, %cst_99 : f32
    %298 = arith.mulf %296, %296 : f32
    %299 = arith.subf %297, %298 : f32
    %cst_100 = arith.constant 0.000000e+00 : f32
    %300 = arith.maximumf %299, %cst_100 : f32
    %301 = vector.broadcast %296 : f32 to vector<256x128xf32>
    %302 = arith.subf %286, %301 : vector<256x128xf32>
    %cst_101 = arith.constant 9.99999974E-6 : f32
    %303 = arith.addf %300, %cst_101 : f32
    %304 = math.rsqrt %303 : f32
    %305 = vector.broadcast %304 : f32 to vector<256x128xf32>
    %306 = arith.mulf %302, %305 : vector<256x128xf32>
    %c0_102 = arith.constant 0 : index
    %c0_103 = arith.constant 0 : index
    %c0_104 = arith.constant 0 : index
    %307 = vector.load %arg17[%c0_102, %c0_103, %c0_104] : memref<1x1x128xf32, #tpu.memory_space<vmem>>, vector<1x1x128xf32>
    %308 = vector.shape_cast %307 : vector<1x1x128xf32> to vector<1x128xf32>
    %309 = vector.broadcast %308 : vector<1x128xf32> to vector<256x128xf32>
    %310 = arith.mulf %306, %309 : vector<256x128xf32>
    %c0_105 = arith.constant 0 : index
    %c0_106 = arith.constant 0 : index
    %c0_107 = arith.constant 0 : index
    %311 = vector.load %arg18[%c0_105, %c0_106, %c0_107] : memref<1x1x128xf32, #tpu.memory_space<vmem>>, vector<1x1x128xf32>
    %312 = vector.shape_cast %311 : vector<1x1x128xf32> to vector<1x128xf32>
    %313 = vector.broadcast %312 : vector<1x128xf32> to vector<256x128xf32>
    %314 = arith.addf %310, %313 : vector<256x128xf32>
    %315 = arith.truncf %314 : vector<256x128xf32> to vector<256x128xbf16>
    %c0_108 = arith.constant 0 : index
    %c0_109 = arith.constant 0 : index
    %c0_110 = arith.constant 0 : index
    %316 = vector.load %arg19[%c0_108, %c0_109, %c0_110] : memref<1x128x128xbf16, #tpu.memory_space<vmem>>, vector<1x128x128xbf16>
    %317 = vector.shape_cast %316 : vector<1x128x128xbf16> to vector<128x128xbf16>
    %cst_111 = arith.constant dense<0.000000e+00> : vector<256x128xf32>
    %318 = tpu.matmul %315, %317, %cst_111 {dimension_numbers = #tpu.dot_dimension_numbers<[1], [0], [0], [1], [0, 0, 1, 1], [], []>} : vector<256x128xbf16>, vector<128x128xbf16>, vector<256x128xf32> -> vector<256x128xf32>
    %c0_112 = arith.constant 0 : index
    %c0_113 = arith.constant 0 : index
    %c0_114 = arith.constant 0 : index
    %319 = vector.load %arg20[%c0_112, %c0_113, %c0_114] : memref<1x1x128xf32, #tpu.memory_space<vmem>>, vector<1x1x128xf32>
    %320 = vector.shape_cast %319 : vector<1x1x128xf32> to vector<1x128xf32>
    %321 = vector.broadcast %320 : vector<1x128xf32> to vector<256x128xf32>
    %322 = arith.addf %318, %321 : vector<256x128xf32>
    %323 = arith.mulf %322, %322 : vector<256x128xf32>
    %324 = arith.mulf %322, %323 : vector<256x128xf32>
    %cst_115 = arith.constant 4.471500e-02 : f32
    %325 = vector.broadcast %cst_115 : f32 to vector<256x128xf32>
    %326 = arith.mulf %325, %324 : vector<256x128xf32>
    %327 = arith.addf %322, %326 : vector<256x128xf32>
    %cst_116 = arith.constant 0.797884583 : f32
    %328 = vector.broadcast %cst_116 : f32 to vector<256x128xf32>
    %329 = arith.mulf %328, %327 : vector<256x128xf32>
    %330 = math.tanh %329 : vector<256x128xf32>
    %cst_117 = arith.constant 1.000000e+00 : f32
    %331 = vector.broadcast %cst_117 : f32 to vector<256x128xf32>
    %332 = arith.addf %331, %330 : vector<256x128xf32>
    %cst_118 = arith.constant 5.000000e-01 : f32
    %333 = vector.broadcast %cst_118 : f32 to vector<256x128xf32>
    %334 = arith.mulf %333, %332 : vector<256x128xf32>
    %335 = arith.mulf %322, %334 : vector<256x128xf32>
    %336 = arith.truncf %335 : vector<256x128xf32> to vector<256x128xbf16>
    %c0_119 = arith.constant 0 : index
    %c0_120 = arith.constant 0 : index
    %c0_121 = arith.constant 0 : index
    %337 = vector.load %arg21[%c0_119, %c0_120, %c0_121] : memref<1x128x128xbf16, #tpu.memory_space<vmem>>, vector<1x128x128xbf16>
    %338 = vector.shape_cast %337 : vector<1x128x128xbf16> to vector<128x128xbf16>
    %cst_122 = arith.constant dense<0.000000e+00> : vector<256x128xf32>
    %339 = tpu.matmul %336, %338, %cst_122 {dimension_numbers = #tpu.dot_dimension_numbers<[1], [0], [0], [1], [0, 0, 1, 1], [], []>} : vector<256x128xbf16>, vector<128x128xbf16>, vector<256x128xf32> -> vector<256x128xf32>
    %c0_123 = arith.constant 0 : index
    %c0_124 = arith.constant 0 : index
    %c0_125 = arith.constant 0 : index
    %340 = vector.load %arg22[%c0_123, %c0_124, %c0_125] : memref<1x1x128xf32, #tpu.memory_space<vmem>>, vector<1x1x128xf32>
    %341 = vector.shape_cast %340 : vector<1x1x128xf32> to vector<1x128xf32>
    %342 = vector.broadcast %341 : vector<1x128xf32> to vector<256x128xf32>
    %343 = arith.addf %339, %342 : vector<256x128xf32>
    %344 = arith.addf %286, %343 : vector<256x128xf32>
    %c0_126 = arith.constant 0 : index
    %c0_127 = arith.constant 0 : index
    %345 = vector.load %arg24[%c0_126, %c0_127] : memref<256x128xf32, #tpu.memory_space<vmem>>, vector<256x128xf32>
    tpu.vector_store %arg24[%c0_126, %c0_127], %344 {strides = array<i32>} : memref<256x128xf32, #tpu.memory_space<vmem>>, vector<256x128xf32>,
    %c1_i32_128 = arith.constant 1 : i32
    %346 = arith.cmpi eq, %arg1, %c1_i32_128 : i32
    %347 = arith.extui %346 : i1 to i32
    %c0_i32_129 = arith.constant 0 : i32
    %348 = arith.cmpi ne, %347, %c0_i32_129 : i32
    scf.if %348 {
      %349 = vector.shape_cast %344 : vector<256x128xf32> to vector<16x16x128xf32>
      %c0_130 = arith.constant 0 : index
      %c0_131 = arith.constant 0 : index
      %c0_132 = arith.constant 0 : index
      %c0_133 = arith.constant 0 : index
      %350 = vector.load %arg23[%c0_130, %c0_131, %c0_132, %c0_133] : memref<1x16x16x128xf32, #tpu.memory_space<vmem>>, vector<1x16x16x128xf32>
      %351 = vector.shape_cast %350 : vector<1x16x16x128xf32> to vector<16x16x128xf32>
      %352 = vector.shape_cast %349 : vector<16x16x128xf32> to vector<1x16x16x128xf32>
      tpu.vector_store %arg23[%c0_130, %c0_131, %c0_132, %c0_133], %352 {strides = array<i32>} : memref<1x16x16x128xf32, #tpu.memory_space<vmem>>, vector<1x16x16x128xf32>,
    } else {
    }
    return
  }
  func.func @transform_0(%arg0: i32, %arg1: i32) -> (i32, i32, i32, i32) {
    %c0_i32 = arith.constant 0 : i32
    %c0_i32_0 = arith.constant 0 : i32
    %c0_i32_1 = arith.constant 0 : i32
    %c0_i32_2 = arith.constant 0 : i32
    return %arg0, %c0_i32, %c0_i32_0, %c0_i32_1 : i32, i32, i32, i32
  }
  func.func @transform_1(%arg0: i32, %arg1: i32) -> (i32, i32, i32) {
    %c0_i32 = arith.constant 0 : i32
    %c0_i32_0 = arith.constant 0 : i32
    %c0_i32_1 = arith.constant 0 : i32
    return %arg1, %c0_i32, %c0_i32_0 : i32, i32, i32
  }
  func.func @transform_2(%arg0: i32, %arg1: i32) -> (i32, i32, i32) {
    %c0_i32 = arith.constant 0 : i32
    %c0_i32_0 = arith.constant 0 : i32
    %c0_i32_1 = arith.constant 0 : i32
    return %arg1, %c0_i32, %c0_i32_0 : i32, i32, i32
  }
  func.func @transform_3(%arg0: i32, %arg1: i32) -> (i32, i32, i32) {
    %c0_i32 = arith.constant 0 : i32
    %c0_i32_0 = arith.constant 0 : i32
    %c0_i32_1 = arith.constant 0 : i32
    return %arg1, %c0_i32, %c0_i32_0 : i32, i32, i32
  }
  func.func @transform_4(%arg0: i32, %arg1: i32) -> (i32, i32, i32) {
    %c0_i32 = arith.constant 0 : i32
    %c0_i32_0 = arith.constant 0 : i32
    %c0_i32_1 = arith.constant 0 : i32
    return %arg1, %c0_i32, %c0_i32_0 : i32, i32, i32
  }
  func.func @transform_5(%arg0: i32, %arg1: i32) -> (i32, i32, i32) {
    %c0_i32 = arith.constant 0 : i32
    %c0_i32_0 = arith.constant 0 : i32
    %c0_i32_1 = arith.constant 0 : i32
    return %arg1, %c0_i32, %c0_i32_0 : i32, i32, i32
  }
  func.func @transform_6(%arg0: i32, %arg1: i32) -> (i32, i32, i32) {
    %c0_i32 = arith.constant 0 : i32
    %c0_i32_0 = arith.constant 0 : i32
    %c0_i32_1 = arith.constant 0 : i32
    return %arg1, %c0_i32, %c0_i32_0 : i32, i32, i32
  }
  func.func @transform_7(%arg0: i32, %arg1: i32) -> (i32, i32, i32) {
    %c0_i32 = arith.constant 0 : i32
    %c0_i32_0 = arith.constant 0 : i32
    %c0_i32_1 = arith.constant 0 : i32
    return %arg1, %c0_i32, %c0_i32_0 : i32, i32, i32
  }
  func.func @transform_8(%arg0: i32, %arg1: i32) -> (i32, i32, i32) {
    %c0_i32 = arith.constant 0 : i32
    %c0_i32_0 = arith.constant 0 : i32
    %c0_i32_1 = arith.constant 0 : i32
    return %arg1, %c0_i32, %c0_i32_0 : i32, i32, i32
  }
  func.func @transform_9(%arg0: i32, %arg1: i32) -> (i32, i32, i32) {
    %c0_i32 = arith.constant 0 : i32
    %c0_i32_0 = arith.constant 0 : i32
    %c0_i32_1 = arith.constant 0 : i32
    return %arg1, %c0_i32, %c0_i32_0 : i32, i32, i32
  }
  func.func @transform_10(%arg0: i32, %arg1: i32) -> (i32, i32, i32) {
    %c0_i32 = arith.constant 0 : i32
    %c0_i32_0 = arith.constant 0 : i32
    %c0_i32_1 = arith.constant 0 : i32
    return %arg1, %c0_i32, %c0_i32_0 : i32, i32, i32
  }
  func.func @transform_11(%arg0: i32, %arg1: i32) -> (i32, i32, i32) {
    %c0_i32 = arith.constant 0 : i32
    %c0_i32_0 = arith.constant 0 : i32
    %c0_i32_1 = arith.constant 0 : i32
    return %arg1, %c0_i32, %c0_i32_0 : i32, i32, i32
  }
  func.func @transform_12(%arg0: i32, %arg1: i32) -> (i32, i32, i32) {
    %c0_i32 = arith.constant 0 : i32
    %c0_i32_0 = arith.constant 0 : i32
    %c0_i32_1 = arith.constant 0 : i32
    return %arg1, %c0_i32, %c0_i32_0 : i32, i32, i32
  }
  func.func @transform_13(%arg0: i32, %arg1: i32) -> (i32, i32, i32) {
    %c0_i32 = arith.constant 0 : i32
    %c0_i32_0 = arith.constant 0 : i32
    %c0_i32_1 = arith.constant 0 : i32
    return %arg1, %c0_i32, %c0_i32_0 : i32, i32, i32
  }
  func.func @transform_14(%arg0: i32, %arg1: i32) -> (i32, i32, i32) {
    %c0_i32 = arith.constant 0 : i32
    %c0_i32_0 = arith.constant 0 : i32
    %c0_i32_1 = arith.constant 0 : i32
    return %arg1, %c0_i32, %c0_i32_0 : i32, i32, i32
  }
  func.func @transform_15(%arg0: i32, %arg1: i32) -> (i32, i32, i32) {
    %c0_i32 = arith.constant 0 : i32
    %c0_i32_0 = arith.constant 0 : i32
    %c0_i32_1 = arith.constant 0 : i32
    return %arg1, %c0_i32, %c0_i32_0 : i32, i32, i32
  }
  func.func @transform_16(%arg0: i32, %arg1: i32) -> (i32, i32, i32) {
    %c0_i32 = arith.constant 0 : i32
    %c0_i32_0 = arith.constant 0 : i32
    %c0_i32_1 = arith.constant 0 : i32
    return %arg1, %c0_i32, %c0_i32_0 : i32, i32, i32
  }
  func.func @transform_17(%arg0: i32, %arg1: i32) -> (i32, i32, i32) {
    %c0_i32 = arith.constant 0 : i32
    %c0_i32_0 = arith.constant 0 : i32
    %c0_i32_1 = arith.constant 0 : i32
    return %arg1, %c0_i32, %c0_i32_0 : i32, i32, i32
  }
  func.func @transform_18(%arg0: i32, %arg1: i32) -> (i32, i32, i32) {
    %c0_i32 = arith.constant 0 : i32
    %c0_i32_0 = arith.constant 0 : i32
    %c0_i32_1 = arith.constant 0 : i32
    return %arg1, %c0_i32, %c0_i32_0 : i32, i32, i32
  }
  func.func @transform_19(%arg0: i32, %arg1: i32) -> (i32, i32, i32) {
    %c0_i32 = arith.constant 0 : i32
    %c0_i32_0 = arith.constant 0 : i32
    %c0_i32_1 = arith.constant 0 : i32
    return %arg1, %c0_i32, %c0_i32_0 : i32, i32, i32
  }
  func.func @transform_20(%arg0: i32, %arg1: i32) -> (i32, i32, i32) {
    %c0_i32 = arith.constant 0 : i32
    %c0_i32_0 = arith.constant 0 : i32
    %c0_i32_1 = arith.constant 0 : i32
    return %arg1, %c0_i32, %c0_i32_0 : i32, i32, i32
  }
  func.func @transform_21(%arg0: i32, %arg1: i32) -> (i32, i32, i32, i32) {
    %c0_i32 = arith.constant 0 : i32
    %c0_i32_0 = arith.constant 0 : i32
    %c0_i32_1 = arith.constant 0 : i32
    %c0_i32_2 = arith.constant 0 : i32
    return %arg0, %c0_i32, %c0_i32_0, %c0_i32_1 : i32, i32, i32, i32
  }
}

</mosaic_0001>

<bundles_post_ra>
// kernel: tpu_custom_call.1
= control target key start
LH: loop header
LB: loop body
LE: loop exit
PB: predicated region body
PF: predicated region fallthrough
CT: control target
= control target key end

     0   :  { %s12533_s0 = inlined_call_operand.hbm [shape: f32[2,16,16,128], index: 0, kind: input, shape index: {}]   ;;  %s12534_s1 = inlined_call_operand.vmem [shape: f32[2,1,128], index: 1, kind: input, shape index: {}]   ;;  %s12535_s2 = inlined_call_operand.vmem [shape: f32[2,1,128], index: 2, kind: input, shape index: {}]   ;;  %s12536_s3 = inlined_call_operand.hbm [shape: bf16[2,128,128], index: 3, kind: input, shape index: {}]   ;;  %s12537_s4 = inlined_call_operand.vmem [shape: f32[2,1,128], index: 4, kind: input, shape index: {}]   ;;  %s12538_s5 = inlined_call_operand.vmem [shape: f32[2,1,128], index: 5, kind: input, shape index: {}]   ;;  %s12539_s6 = inlined_call_operand.vmem [shape: f32[2,1,128], index: 6, kind: input, shape index: {}]   ;;  %s12540_s7 = inlined_call_operand.hbm [shape: bf16[2,128,128], index: 7, kind: input, shape index: {}]   ;;  %s12541_s8 = inlined_call_operand.vmem [shape: f32[2,1,128], index: 8, kind: input, shape index: {}]   ;;  %s12542_s9 = inlined_call_operand.hbm [shape: bf16[2,128,128], index: 9, kind: input, shape index: {}]   ;;  %s12543_s10 = inlined_call_operand.vmem [shape: f32[2,1,128], index: 10, kind: input, shape index: {}]   ;;  %s12544_s11 = inlined_call_operand.vmem [shape: f32[2,1,128], index: 11, kind: input, shape index: {}]   ;;  %s12545_s12 = inlined_call_operand.vmem [shape: f32[2,1,128], index: 12, kind: input, shape index: {}]   ;;  %s12546_s13 = inlined_call_operand.hbm [shape: bf16[2,128,128], index: 13, kind: input, shape index: {}]   ;;  %s12547_s14 = inlined_call_operand.vmem [shape: f32[2,1,128], index: 14, kind: input, shape index: {}]   ;;  %s12548_s15 = inlined_call_operand.vmem [shape: f32[2,1,128], index: 15, kind: input, shape index: {}]   ;;  %s12549_s16 = inlined_call_operand.vmem [shape: f32[2,1,128], index: 16, kind: input, shape index: {}]   ;;  %s12550_s17 = inlined_call_operand.hbm [shape: bf16[2,128,128], index: 17, kind: input, shape index: {}]   ;;  %s12551_s18 = inlined_call_operand.vmem [shape: f32[2,1,128], index: 18, kind: input, shape index: {}]   ;;  %s12552_s19 = inlined_call_operand.hbm [shape: bf16[2,128,128], index: 19, kind: input, shape index: {}]   ;;  %s12553_s20 = inlined_call_operand.vmem [shape: f32[2,1,128], index: 20, kind: input, shape index: {}]   ;;  %s12554_s21 = inlined_call_operand.hbm [shape: f32[2,16,16,128], index: 21, kind: output, shape index: {}]  }
   0x1   :  { %12677 = sst [smem:[#allocation71_spill]] %s12533_s0 }
   0x2   :  { %12678 = sst [smem:[#allocation72_spill]] %s12534_s1 }
   0x3   :  { %12679 = sst [smem:[#allocation73_spill]] %s12535_s2 }
   0x4   :  { %12680 = sst [smem:[#allocation74_spill]] %s12536_s3 }
   0x5   :  { %12681 = sst [smem:[#allocation75_spill]] %s12537_s4 }
   0x6   :  { %12682 = sst [smem:[#allocation76_spill]] %s12538_s5 }
   0x7   :  { %12683 = sst [smem:[#allocation77_spill]] %s12539_s6 }
   0x8   :  { %12684 = sst [smem:[#allocation78_spill]] %s12540_s7 }
   0x9   :  { %12685 = sst [smem:[#allocation79_spill]] %s12541_s8 }
   0xa   :  { %12686 = sst [smem:[#allocation80_spill]] %s12542_s9 }
   0xb   :  { %12687 = sst [smem:[#allocation81_spill]] %s12543_s10 }
   0xc   :  { %12688 = sst [smem:[#allocation82_spill]] %s12544_s11 }
   0xd   :  { %12689 = sst [smem:[#allocation83_spill]] %s12545_s12 }
   0xe   :  { %12690 = sst [smem:[#allocation84_spill]] %s12546_s13 }
   0xf   :  { %12691 = sst [smem:[#allocation85_spill]] %s12547_s14 }
  0x10   :  { %12692 = sst [smem:[#allocation86_spill]] %s12548_s15 }
  0x11   :  { %12693 = sst [smem:[#allocation87_spill]] %s12549_s16 }
  0x12   :  { %12694 = sst [smem:[#allocation88_spill]] %s12550_s17 }
  0x13   :  { %12695 = sst [smem:[#allocation89_spill]] %s12551_s18 }
  0x14   :  { %12696 = sst [smem:[#allocation90_spill]] %s12552_s19 }
  0x15   :  { %12697 = sst [smem:[#allocation91_spill]] %s12553_s20 }
  0x16   :  { %12698 = sst [smem:[#allocation92_spill]] %s12554_s21 }
  0x17   :  { %26 = vsyncpa [#allocation4], 0 }
  0x18   :  { %28 = vsyncpa [#allocation4 + $0x1], 0 }
  0x19   :  { %29 = vsyncpa [#allocation7], 0 }
  0x1a   :  { %31 = vsyncpa [#allocation7 + $0x1], 0 }
  0x1b   :  { %32 = vsyncpa [#allocation10], 0 }
  0x1c   :  { %34 = vsyncpa [#allocation10 + $0x1], 0 }
  0x1d   :  { %35 = vsyncpa [#allocation13], 0 }
  0x1e   :  { %37 = vsyncpa [#allocation13 + $0x1], 0 }
  0x1f   :  { %38 = vsyncpa [#allocation5], 0 }
  0x20   :  { %40 = vsyncpa [#allocation5 + $0x1], 0  ;;  %s7722_s2 = smov 0   ;;  %s7724_s25 = smov 0  }
  0x21   :  { %s7726_s26 = smov 0   ;;  %s7728_s27 = smov 0  }
  0x22   :  { %s7730_s3 = smov 0   ;;  %s7732_s28 = smov 0  }
  0x23   :  { %s7734_s29 = smov 0   ;;  %s7736_s0 = smov 0  }
  0x24   :  { %s7738_s4 = smov 0   ;;  %s7740_s30 = smov 0  }
  0x25   :  { %s7742_s5 = smov 0  }
  0x26 LB: > { %12699 = sst [smem:[#allocation21_spill]] %s7559_s25  ;;  %p12559_p0 = scmp.eq.s32.totalorder %s7595_s5, 0  ;;  %s7595_s5 = sphi %s7742_s5, %s46_s5   ;;  %s7591_s30 = sphi %s7740_s30, %s12943_s30   ;;  %s7587_s4 = sphi %s7738_s4, %s12942_s4   ;;  %s7583_s0 = sphi %s7736_s0, %s12941_s0   ;;  %s7579_s29 = sphi %s7734_s29, %s12940_s29   ;;  %s7575_s28 = sphi %s7732_s28, %s12939_s28   ;;  %s7571_s3 = sphi %s7730_s3, %s12938_s3   ;;  %s7567_s27 = sphi %s7728_s27, %s12937_s27   ;;  %s7563_s26 = sphi %s7726_s26, %s12936_s26   ;;  %s7559_s25 = sphi %s7724_s25, %s12935_s25   ;;  %s7555_s2 = sphi %s7722_s2, %s12934_s2  }
  0x27   : > { %12700 = sst [smem:[#allocation22_spill]] %s7563_s26  ;;  %p150_p1 = scmp.ne.s32.totalorder %s7563_s26, %s7559_s25 }
  0x28   : > { %12701 = sst [smem:[#allocation23_spill]] %s7567_s27  ;;  %p12558_p2 = scmp.lt.s32.totalorder %s7595_s5, 4 }
  0x29   : > { %12702 = sst [smem:[#allocation24_spill]] %s7571_s3  ;;  %p152_p3 = por %p150_p1, %p12559_p0 }
  0x2a   : > { %12703 = sst [smem:[#allocation25_spill]] %s7575_s28  ;;  %s7786_s1 = sand.u32 1, %s7595_s5  }
  0x2b   : > { %12704 = sst [smem:[#allocation26_spill]] %s7579_s29  ;;  %s683_s24 = sand.u32 1, %s7563_s26  }
  0x2c   : > { %12705 = sst [smem:[#allocation27_spill]] %s7583_s0  ;;  %s7789_s21 = sshll.u32 %s683_s24, 6 }
  0x2d   : > { %12706 = sst [smem:[#allocation28_spill]] %s7587_s4  ;;  %s7792_s0 = sshll.u32 %s7587_s4, 10 }
  0x2e   : > { %12707 = sst [smem:[#allocation29_spill]] %s7591_s30  ;;  %s685_s23 = scalar_lea.vmem [#allocation6], %s7789_s21 }
  0x2f   : > { %12708 = sst [smem:[#allocation30_spill]] %s7595_s5  ;;  %s692_s15 = sshll.u32 %s685_s23, 4  ;;  %s7807_s15 = int_to_ptr.vmem [resolvable:$true] %s692_s15 }
  0x30   : > { %s12709_s16 = sld [smem:[#allocation74_spill]]  ;;  %p7803_p4 = pnand %p12558_p2, %p152_p3 }
  0x32   : > { %s12710_s14 = scalar_select %p7803_p4, 1, 0 }
  0x33   : > { %p7814_p6 = pneg %p7803_p4 }
  0x36   : > { %s7798_s22 = scalar_lea.hbm %s12709_s16, %s7792_s0  ;;  %s7256_s11 = scalar_lea.hbm %s12709_s16, 2048 }
  0x37   : > { %s7251_s12 = scalar_lea.hbm %s7798_s22, 1024  ;;  %p7257_p9 = scmp.lt.u32.totalorder %s7798_s22, %s12709_s16 }
  0x38   : > { %p7252_p5 = scmp.ne.s32.totalorder %s7798_s22, %s7251_s12  ;;  %p7258_p10 = scmp.lt.u32.totalorder %s7256_s11, %s7251_s12 }
  0x39   : > { %p7260_p12 = scmp.lt.u32.totalorder %s7251_s12, %s7798_s22 }
  0x3a   : > { %p7254_p7 = pnand %p7814_p6, %p7252_p5  ;;  %p7259_p11 = por %p7258_p10, %p7257_p9 }
  0x3c   : > { %p7255_p8 = pneg %p7254_p7  ;;  %p7261_p13 = por %p7260_p12, %p7259_p11 }
  0x3e   : > { %p7262_p1 = pnand %p7261_p13, %p7255_p8 }
  0x40   : > { %7265 = shalt.err (!%p7262_p1)
}
  0x41   : > { %s7266_s24 = scalar_lea.vmem %s7807_s15, 1024  ;;  %s7597_s20 = smov [#allocation6]  }
  0x42   : > { %p7267_p3 = scmp.ne.s32.totalorder %s7807_s15, %s7266_s24  ;;  %s7271_s23 = sshll.u32 %s7597_s20, 4  ;;  %s7272_s23 = int_to_ptr.vmem [resolvable:$false] %s7271_s23 }
  0x43   : > { %s7273_s8 = scalar_lea.vmem %s7272_s23, 2048  ;;  %p7274_p2 = scmp.lt.s32.totalorder %s7807_s15, %s7272_s23 }
  0x44   : > { %p7269_p5 = pnand %p7267_p3, %p7814_p6  ;;  %p7275_p0 = scmp.lt.s32.totalorder %s7273_s8, %s7266_s24 }
  0x46   : > { %p7270_p7 = pneg %p7269_p5  ;;  %p7276_p9 = por %p7275_p0, %p7274_p2 }
  0x48   : > { %p7277_p10 = pnand %p7276_p9, %p7270_p7 }
  0x4a   : > { %7280 = shalt.err (!%p7277_p10)
}
  0x4b   : > { %s12561_s10 = smov 64   ;;  %s12563_s11 = smov 4  }
  0x4c   : > { %s12712_s12 = scalar_lea.sflag [#allocation7], %s7786_s1  ;;  %p6214_p0 = scmp.ge.s32.totalorder %s7595_s5, 1 }
  0x4d   : > { %6788 = dma.hbm_to_vmem [thread:$0]  (!%p7803_p4), %s7798_s22, 1024, %s7807_s15, %s12712_s12, %s12561_s10, %s12561_s10, %s12563_s11  }
  0x4e   : > { %p877_p2 = scmp.lt.s32.totalorder %s7595_s5, 5  ;;  %s12715_s9 = sld [smem:[#allocation80_spill]] }
  0x4f   : > { %s751_s16 = scalar_lea.vmem [#allocation9], %s7789_s21  ;;  %s12566_s15 = scalar_lea.sflag [#allocation10], %s7786_s1 }
  0x50   : > { %p7844_p8 = pnand %p6214_p0, %p877_p2  ;;  %s758_s6 = sshll.u32 %s751_s16, 4  ;;  %s7855_s6 = int_to_ptr.vmem [resolvable:$true] %s758_s6 }
  0x52   : > { %s12713_s24 = scalar_select %p7844_p8, 1, 0 }
  0x54   : > { %12714 = sst [smem:[#allocation31_spill]] %s12713_s24  ;;  %s7852_s8 = scalar_lea.hbm %s12715_s9, %s7792_s0 }
  0x55   : > { %s7281_s22 = scalar_lea.hbm %s7852_s8, 1024  ;;  %s7286_s20 = scalar_lea.hbm %s12715_s9, 2048 }
  0x56   : > { %p7282_p11 = scmp.ne.s32.totalorder %s7852_s8, %s7281_s22  ;;  %p7287_p1 = scmp.lt.u32.totalorder %s7852_s8, %s12715_s9 }
  0x57   : > { %p7288_p3 = scmp.lt.u32.totalorder %s7286_s20, %s7281_s22  ;;  %p7290_p7 = scmp.lt.u32.totalorder %s7281_s22, %s7852_s8 }
  0x58   : > { %p7284_p12 = pnand %p7282_p11, %p7814_p6 }
  0x59   : > { %p7289_p5 = por %p7288_p3, %p7287_p1 }
  0x5a   : > { %p7285_p13 = pneg %p7284_p12 }
  0x5b   : > { %p7291_p9 = por %p7290_p7, %p7289_p5 }
  0x5d   : > { %p7292_p10 = pnand %p7291_p9, %p7285_p13 }
  0x5f   : > { %7295 = shalt.err (!%p7292_p10)
}
  0x60   : > { %s7296_s16 = scalar_lea.vmem %s7855_s6, 1024  ;;  %s7600_s10 = smov [#allocation9]  }
  0x61   : > { %p7297_p0 = scmp.ne.s32.totalorder %s7855_s6, %s7296_s16  ;;  %s7301_s12 = sshll.u32 %s7600_s10, 4  ;;  %s7302_s12 = int_to_ptr.vmem [resolvable:$false] %s7301_s12 }
  0x62   : > { %s7303_s11 = scalar_lea.vmem %s7302_s12, 2048  ;;  %p7304_p12 = scmp.lt.s32.totalorder %s7855_s6, %s7302_s12 }
  0x63   : > { %p7299_p2 = pnand %p7297_p0, %p7814_p6  ;;  %p7305_p8 = scmp.lt.s32.totalorder %s7303_s11, %s7296_s16 }
  0x65   : > { %p7300_p11 = pneg %p7299_p2  ;;  %p7306_p1 = por %p7305_p8, %p7304_p12 }
  0x67   : > { %p7307_p3 = pnand %p7306_p1, %p7300_p11 }
  0x69   : > { %7310 = shalt.err (!%p7307_p3)
}
  0x6a   : > { %s12716_s22 = smov 4   ;;  %s12717_s20 = smov 64  }
  0x6b   : > { %6794 = dma.hbm_to_vmem [thread:$0]  (!%p7803_p4), %s7852_s8, 1024, %s7855_s6, %s12566_s15, %s12717_s20, %s12717_s20, %s12716_s22  }
  0x6c   : > { %s12718_s17 = sld [smem:[#allocation88_spill]]  ;;  %s829_s12 = scalar_lea.vmem [#allocation12], %s7789_s21 }
  0x6d   : > { %s836_s11 = sshll.u32 %s829_s12, 4  ;;  %s12567_s9 = scalar_lea.sflag [#allocation13], %s7786_s1  ;;  %s7891_s11 = int_to_ptr.vmem [resolvable:$true] %s836_s11 }
  0x72   : > { %s7888_s16 = scalar_lea.hbm %s12718_s17, %s7792_s0  ;;  %s7316_s23 = scalar_lea.hbm %s12718_s17, 2048 }
  0x73   : > { %s7311_s29 = scalar_lea.hbm %s7888_s16, 1024  ;;  %p7317_p7 = scmp.lt.u32.totalorder %s7888_s16, %s12718_s17 }
  0x74   : > { %p7312_p8 = scmp.ne.s32.totalorder %s7888_s16, %s7311_s29  ;;  %p7318_p9 = scmp.lt.u32.totalorder %s7316_s23, %s7311_s29 }
  0x75   : > { %p7320_p0 = scmp.lt.u32.totalorder %s7311_s29, %s7888_s16 }
  0x76   : > { %p7314_p13 = pnand %p7312_p8, %p7814_p6  ;;  %p7319_p10 = por %p7318_p9, %p7317_p7 }
  0x78   : > { %p7315_p5 = pneg %p7314_p13  ;;  %p7321_p2 = por %p7320_p0, %p7319_p10 }
  0x7a   : > { %p7322_p11 = pnand %p7321_p2, %p7315_p5 }
  0x7c   : > { %7325 = shalt.err (!%p7322_p11)
}
  0x7d   : > { %s7326_s12 = scalar_lea.vmem %s7891_s11, 1024  ;;  %s7601_s6 = smov [#allocation12]  }
  0x7e   : > { %p7327_p12 = scmp.ne.s32.totalorder %s7891_s11, %s7326_s12  ;;  %s7331_s8 = sshll.u32 %s7601_s6, 4  ;;  %s7332_s8 = int_to_ptr.vmem [resolvable:$false] %s7331_s8 }
  0x7f   : > { %s7333_s15 = scalar_lea.vmem %s7332_s8, 2048  ;;  %p7334_p8 = scmp.lt.s32.totalorder %s7891_s11, %s7332_s8 }
  0x80   : > { %p7329_p1 = pnand %p7327_p12, %p7814_p6  ;;  %p7335_p13 = scmp.lt.s32.totalorder %s7333_s15, %s7326_s12 }
  0x82   : > { %p7330_p3 = pneg %p7329_p1  ;;  %p7336_p7 = por %p7335_p13, %p7334_p8 }
  0x84   : > { %p7337_p9 = pnand %p7336_p7, %p7330_p3 }
  0x86   : > { %7340 = shalt.err (!%p7337_p9)
}
  0x87   : > { %6800 = dma.hbm_to_vmem [thread:$0]  (!%p7803_p4), %s7888_s16, 1024, %s7891_s11, %s12567_s9, %s12717_s20, %s12717_s20, %s12716_s22  }
  0x88   : > { %s7921_s29 = sadd.s32 4294967295, %s7595_s5   ;;  %s6190_s23 = sadd.s32 4294967294, %s7595_s5  }
  0x89   : > { %s12719_s10 = sadd.s32 1, %s7587_s4  ;;  %s58_s12 = sadd.s32 1, %s7591_s30 }
  0x8a   : > { %p56_p5 = scmp.ge.s32.totalorder %s12719_s10, 2  ;;  %s65_s6 = sadd.s32 1, %s7575_s28 }
  0x8b   : > { %s12720_s8 = smov %s12719_s10  ;;  %p72_p10 = scmp.ne.s32.totalorder %s7575_s28, %s7571_s3 }
  0x8c   : > { %s12945_s8 = smov (%p56_p5, %s12720_s8), 0  ;;  %s12947_s12 = smov (!%p56_p5, %s58_s12), %s7591_s30 }
  0x8d   : > { %12721 = sst [smem:[#allocation32_spill]] %s12945_s8  ;;  %p78_p0 = scmp.ne.s32.totalorder %s7571_s3, %s7567_s27 }
  0x8e   : > { %p60_p2 = scmp.ge.s32.totalorder %s12947_s12, 2  ;;  %p79_p11 = scmp.eq.s32.totalorder %s7921_s29, 0 }
  0x8f   : > { %p12722_p12 = scmp.eq.s32.totalorder %s7595_s5, 0  ;;  %s140_s11 = ssub.s32 %s7587_s4, %s12945_s8 }
  0x90   : > { %s12949_s12 = smov (%p60_p2, %s12947_s12), 0  ;;  %p7954_p3 = por %p79_p11, %p78_p0 }
  0x91   : > { %p7943_p1 = por %p12722_p12, %p72_p10  ;;  %12724 = sst [smem:[#allocation33_spill]] %s12949_s12 }
  0x92   : > { %s12725_s15 = scalar_select %p7954_p3, 1, 0 }
  0x93   : > { %p141_p8 = scmp.eq.s32.totalorder %s140_s11, 0  ;;  %s62_s10 = ssub.s32 %s7591_s30, %s12949_s12 }
  0x94   : > { %12726 = sst [smem:[#allocation34_spill]] %s12725_s15  ;;  %p156_p13 = scmp.ne.s32.totalorder %s7559_s25, %s7555_s2 }
  0x95   : > { %p63_p7 = scmp.eq.s32.totalorder %s62_s10, 0  ;;  %p622_p9 = scmp.eq.s32.totalorder %s7921_s29, 3 }
  0x96   : > { %s12727_s9 = sadd.s32 1, %s7563_s26  ;;  %p7971_p5 = por %p156_p13, %p79_p11 }
  0x97   : > { %s7966_s17 = scalar_select %p141_p8, %s7563_s26, %s12727_s9  }
  0x98   : > { %s7969_s8 = scalar_select %p63_p7, %s7575_s28, %s65_s6  }
  0x99   : > { %12728 = sst [smem:[#allocation35_spill]] %s7966_s17  ;;  %p7978_p2 = por %p622_p9, %p72_p10 }
  0x9a   : > { %12729 = sst [smem:[#allocation36_spill]] %s7969_s8  ;;  %p628_p12 = scmp.eq.s32.totalorder %s6190_s23, 3 }
  0x9b   : > { %s12730_s4 = scalar_select %p7971_p5, 1, 0 }
  0x9c   : > { %s12732_s15 = scalar_select %p7978_p2, 1, 0 }
  0x9d   : > { %12731 = sst [smem:[#allocation37_spill]] %s12730_s4  ;;  %s648_s2 = sand.u32 1, %s7575_s28  }
  0x9e   : > { %12733 = sst [smem:[#allocation38_spill]] %s12732_s15  ;;  %s6193_s11 = sshll.u32 %s648_s2, 8 }
  0x9f   : > { %p7986_p3 = por %p628_p12, %p78_p0  ;;  %s6302_s9 = sshll.u32 %s7591_s30, 12 }
  0xa0   : > { %s652_s6 = scalar_lea.vmem [#allocation3], %s6193_s11  ;;  %s12736_s26 = sld [smem:[#allocation71_spill]] }
  0xa1   : > { %s12734_s10 = scalar_select %p7986_p3, 1, 0 }
  0xa2   : > { %s659_s12 = sshll.u32 %s652_s6, 4  ;;  %p12738_p10 = scmp.lt.s32.totalorder %s7595_s5, 4  ;;  %s7996_s12 = int_to_ptr.vmem [resolvable:$true] %s659_s12 }
  0xa3   : > { %12735 = sst [smem:[#allocation39_spill]] %s12734_s10  ;;  %s12740_s7 = sld [smem:[#allocation78_spill]] }
  0xa4   : > { %p8002_p0 = pnand %p12738_p10, %p7943_p1 }
  0xa6   : > { %s12737_s24 = smov %s12736_s26  ;;  %s7994_s4 = scalar_lea.hbm %s12736_s26, %s6302_s9 }
  0xa7   : > { %s8012_s26 = scalar_lea.sflag [#allocation4], %s648_s2  ;;  %s7341_s8 = scalar_lea.hbm %s7994_s4, 4096 }
  0xa8   : > { %p7342_p11 = scmp.ne.s32.totalorder %s7994_s4, %s7341_s8  ;;  %p7343_p8 = pneg %p8002_p0 }
  0xa9   : > { %s8010_s17 = scalar_lea.hbm %s12740_s7, %s7792_s0  ;;  %s7346_s6 = scalar_lea.hbm %s12737_s24, 8192 }
  0xaa   : > { %p7344_p13 = pnand %p7343_p8, %p7342_p11  ;;  %p7347_p7 = scmp.lt.u32.totalorder %s7994_s4, %s12737_s24 }
  0xab   : > { %p7348_p9 = scmp.lt.u32.totalorder %s7346_s6, %s7341_s8  ;;  %p7350_p10 = scmp.lt.u32.totalorder %s7341_s8, %s7994_s4 }
  0xac   : > { %p7345_p1 = pneg %p7344_p13 }
  0xad   : > { %p7349_p12 = por %p7348_p9, %p7347_p7 }
  0xaf   : > { %p7351_p3 = por %p7350_p10, %p7349_p12 }
  0xb1   : > { %p7352_p2 = pnand %p7351_p3, %p7345_p1 }
  0xb3   : > { %7355 = shalt.err (!%p7352_p2)
}
  0xb4   : > { %s7356_s2 = scalar_lea.vmem %s7996_s12, 4096  ;;  %s7602_s11 = smov [#allocation3]  }
  0xb5   : > { %p7357_p11 = scmp.ne.s32.totalorder %s7996_s12, %s7356_s2  ;;  %s7361_s16 = sshll.u32 %s7602_s11, 4  ;;  %s7362_s16 = int_to_ptr.vmem [resolvable:$false] %s7361_s16 }
  0xb6   : > { %s7363_s28 = scalar_lea.vmem %s7362_s16, 8192  ;;  %p7364_p4 = scmp.lt.s32.totalorder %s7996_s12, %s7362_s16 }
  0xb7   : > { %p7359_p13 = pnand %p7357_p11, %p7343_p8  ;;  %p7365_p7 = scmp.lt.s32.totalorder %s7363_s28, %s7356_s2 }
  0xb9   : > { %p7360_p5 = pneg %p7359_p13  ;;  %p7366_p9 = por %p7365_p7, %p7364_p4 }
  0xbb   : > { %p7367_p12 = pnand %p7366_p9, %p7360_p5 }
  0xbd   : > { %7370 = shalt.err (!%p7367_p12)
}
  0xbe   : > { %s7603_s8 = smov 128   ;;  %s7604_s9 = smov 8  }
  0xbf   : > { %6785 = dma.hbm_to_vmem [thread:$0]  (!%p8002_p0), %s7994_s4, 4096, %s7996_s12, %s8012_s26, %s7603_s8, %s7603_s8, %s7604_s9  }
  0xc0   : > { %s724_s6 = scalar_lea.vmem [#allocation8], %s7789_s21  ;;  %s12741_s13 = sld [smem:[#allocation84_spill]] }
  0xc1   : > { %s731_s30 = sshll.u32 %s724_s6, 4  ;;  %s7371_s28 = scalar_lea.hbm %s8010_s17, 1024  ;;  %s8041_s30 = int_to_ptr.vmem [resolvable:$true] %s731_s30 }
  0xc2   : > { %p7372_p4 = scmp.ne.s32.totalorder %s8010_s17, %s7371_s28  ;;  %s7376_s27 = scalar_lea.hbm %s12740_s7, 2048 }
  0xc3   : > { %p7377_p2 = scmp.lt.u32.totalorder %s8010_s17, %s12740_s7  ;;  %p7378_p0 = scmp.lt.u32.totalorder %s7376_s27, %s7371_s28 }
  0xc4   : > { %p7374_p3 = pnand %p7372_p4, %p7814_p6  ;;  %p7380_p1 = scmp.lt.u32.totalorder %s7371_s28, %s8010_s17 }
  0xc5   : > { %p7379_p8 = por %p7378_p0, %p7377_p2 }
  0xc6   : > { %s8047_s16 = scalar_lea.hbm %s12741_s13, %s7792_s0  ;;  %p7375_p5 = pneg %p7374_p3 }
  0xc7   : > { %p7381_p10 = por %p7380_p1, %p7379_p8 }
  0xc9   : > { %p7382_p11 = pnand %p7381_p10, %p7375_p5 }
  0xcb   : > { %7385 = shalt.err (!%p7382_p11)
}
  0xcc   : > { %s7386_s12 = scalar_lea.vmem %s8041_s30, 1024  ;;  %s7605_s24 = smov [#allocation8]  }
  0xcd   : > { %p7387_p13 = scmp.ne.s32.totalorder %s8041_s30, %s7386_s12  ;;  %s7391_s10 = sshll.u32 %s7605_s24, 4  ;;  %s7392_s10 = int_to_ptr.vmem [resolvable:$false] %s7391_s10 }
  0xce   : > { %s7393_s26 = scalar_lea.vmem %s7392_s10, 2048  ;;  %p7394_p12 = scmp.lt.s32.totalorder %s8041_s30, %s7392_s10 }
  0xcf   : > { %p7389_p7 = pnand %p7387_p13, %p7814_p6  ;;  %p7395_p4 = scmp.lt.s32.totalorder %s7393_s26, %s7386_s12 }
  0xd1   : > { %p7390_p9 = pneg %p7389_p7  ;;  %p7396_p3 = por %p7395_p4, %p7394_p12 }
  0xd3   : > { %p7397_p2 = pnand %p7396_p3, %p7390_p9 }
  0xd5   : > { %7400 = shalt.err (!%p7397_p2)
}
  0xd6   : > { %p12742_p5 = scmp.ne.s32.totalorder %s12710_s14, 0  ;;  %s12743_s27 = scalar_lea.sflag [#allocation7], %s7786_s1 }
  0xd7   : > { %s790_s8 = scalar_lea.vmem [#allocation11], %s7789_s21  ;;  %s12744_s19 = sld [smem:[#allocation90_spill]] }
  0xd8   : > { %6791 = dma.hbm_to_vmem [thread:$0]  (!%p12742_p5), %s8010_s17, 1024, %s8041_s30, %s12743_s27, %s12717_s20, %s12717_s20, %s12716_s22  }
  0xd9   : > { %s797_s9 = sshll.u32 %s790_s8, 4  ;;  %s7401_s28 = scalar_lea.hbm %s8047_s16, 1024  ;;  %s8076_s9 = int_to_ptr.vmem [resolvable:$true] %s797_s9 }
  0xda   : > { %p7402_p0 = scmp.ne.s32.totalorder %s8047_s16, %s7401_s28  ;;  %s7406_s12 = scalar_lea.hbm %s12741_s13, 2048 }
  0xdb   : > { %p7407_p10 = scmp.lt.u32.totalorder %s8047_s16, %s12741_s13  ;;  %p7408_p11 = scmp.lt.u32.totalorder %s7406_s12, %s7401_s28 }
  0xdc   : > { %p7404_p8 = pnand %p7402_p0, %p7814_p6  ;;  %p7410_p7 = scmp.lt.u32.totalorder %s7401_s28, %s8047_s16 }
  0xdd   : > { %s8082_s11 = scalar_lea.hbm %s12744_s19, %s7792_s0  ;;  %p7409_p13 = por %p7408_p11, %p7407_p10 }
  0xde   : > { %p7405_p1 = pneg %p7404_p8 }
  0xdf   : > { %p7411_p9 = por %p7410_p7, %p7409_p13 }
  0xe1   : > { %p7412_p12 = pnand %p7411_p9, %p7405_p1 }
  0xe3   : > { %7415 = shalt.err (!%p7412_p12)
}
  0xe4   : > { %s7416_s0 = scalar_lea.vmem %s8076_s9, 1024  ;;  %s7606_s30 = smov [#allocation11]  }
  0xe5   : > { %p7417_p4 = scmp.ne.s32.totalorder %s8076_s9, %s7416_s0  ;;  %s7421_s10 = sshll.u32 %s7606_s30, 4  ;;  %s7422_s10 = int_to_ptr.vmem [resolvable:$false] %s7421_s10 }
  0xe6   : > { %s7423_s26 = scalar_lea.vmem %s7422_s10, 2048  ;;  %p7424_p0 = scmp.lt.s32.totalorder %s8076_s9, %s7422_s10 }
  0xe7   : > { %p7419_p3 = pnand %p7417_p4, %p7814_p6  ;;  %p7425_p8 = scmp.lt.s32.totalorder %s7423_s26, %s7416_s0 }
  0xe9   : > { %p7420_p2 = pneg %p7419_p3  ;;  %p7426_p10 = por %p7425_p8, %p7424_p0 }
  0xeb   : > { %p7427_p11 = pnand %p7426_p10, %p7420_p2 }
  0xed   : > { %7430 = shalt.err (!%p7427_p11)
}
  0xee   : > { %s12745_s27 = scalar_lea.sflag [#allocation10], %s7786_s1  ;;  %s856_s8 = scalar_lea.vmem [#allocation14], %s7789_s21 }
  0xef   : > { %6797 = dma.hbm_to_vmem [thread:$0]  (!%p12742_p5), %s8047_s16, 1024, %s8076_s9, %s12745_s27, %s12717_s20, %s12717_s20, %s12716_s22  }
  0xf0   : > { %s863_s6 = sshll.u32 %s856_s8, 4  ;;  %s7431_s2 = scalar_lea.hbm %s8082_s11, 1024  ;;  %s8111_s6 = int_to_ptr.vmem [resolvable:$true] %s863_s6 }
  0xf1   : > { %p7432_p1 = scmp.ne.s32.totalorder %s8082_s11, %s7431_s2  ;;  %s7436_s4 = scalar_lea.hbm %s12744_s19, 2048 }
  0xf2   : > { %p7437_p9 = scmp.lt.u32.totalorder %s8082_s11, %s12744_s19  ;;  %p7438_p12 = scmp.lt.u32.totalorder %s7436_s4, %s7431_s2 }
  0xf3   : > { %p7434_p13 = pnand %p7432_p1, %p7814_p6  ;;  %p7440_p3 = scmp.lt.u32.totalorder %s7431_s2, %s8082_s11 }
  0xf4   : > { %p7439_p4 = por %p7438_p12, %p7437_p9 }
  0xf5   : > { %p7435_p7 = pneg %p7434_p13 }
  0xf6   : > { %p7441_p2 = por %p7440_p3, %p7439_p4 }
  0xf8   : > { %p7442_p0 = pnand %p7441_p2, %p7435_p7 }
  0xfa   : > { %7445 = shalt.err (!%p7442_p0)
}
  0xfb   : > { %s7446_s21 = scalar_lea.vmem %s8111_s6, 1024  ;;  %s7607_s16 = smov [#allocation14]  }
  0xfc   : > { %p7447_p8 = scmp.ne.s32.totalorder %s8111_s6, %s7446_s21  ;;  %s7451_s9 = sshll.u32 %s7607_s16, 4  ;;  %s7452_s9 = int_to_ptr.vmem [resolvable:$false] %s7451_s9 }
  0xfd   : > { %s7453_s17 = scalar_lea.vmem %s7452_s9, 2048  ;;  %p7454_p1 = scmp.lt.s32.totalorder %s8111_s6, %s7452_s9 }
  0xfe   : > { %p7449_p10 = pnand %p7447_p8, %p7814_p6  ;;  %p7455_p13 = scmp.lt.s32.totalorder %s7453_s17, %s7446_s21 }
 0x100   : > { %p7450_p11 = pneg %p7449_p10  ;;  %p7456_p9 = por %p7455_p13, %p7454_p1 }
 0x102   : > { %p7457_p12 = pnand %p7456_p9, %p7450_p11 }
 0x104   : > { %7460 = shalt.err (!%p7457_p12)
}
 0x105   : > { %s12746_s0 = scalar_lea.sflag [#allocation13], %s7786_s1  ;;  %s12747_s18 = sld [smem:[#allocation31_spill]] }
 0x106   : > { %6803 = dma.hbm_to_vmem [thread:$0]  (!%p12742_p5), %s8082_s11, 1024, %s8111_s6, %s12746_s0, %s12717_s20, %s12717_s20, %s12716_s22  }
 0x10b   : > { %p12748_p6 = scmp.ne.s32.totalorder %s12747_s18, 0 }
 0x10d   : > { %881 = sbr.rel (%p12748_p6) target bundleno = 3205 (0xc85), region = 104 }
 0x114   : > { %s12749_s30 = sld [smem:[#allocation34_spill]]  ;;  %s8142_s10 = sand.u32 1, %s7571_s3  }
 0x115   : > { %s12587_s26 = sshll.u32 %s8142_s10, 8  ;;  %s884_s14 = scalar_lea.sflag [#allocation4], %s8142_s10 }
 0x116   : > { %s8148_s27 = scalar_lea.vmem [#allocation3], %s12587_s26 }
 0x11a   : > { %p12750_p7 = scmp.ne.s32.totalorder %s12749_s30, 0 }
 0x11c   : > { %7534 = dma.done.wait (%p12750_p7), %s884_s14, 4096  }
 0x11d   : > { %7536 = vsyncadd (%p12750_p7), %s884_s14, 4294963200  ;;  %s12751_s1 = sld [smem:[#allocation37_spill]]  ;;  %s892_s22 = sand.u32 1, %s7921_s29  }
 0x11e   : > { %s894_s20 = sand.u32 1, %s7559_s25   ;;  %s893_s8 = scalar_lea.sflag [#allocation7], %s892_s22 }
 0x11f   : > { %s8156_s11 = sshll.u32 %s894_s20, 6 }
 0x120   : > { %s8159_s6 = scalar_lea.vmem [#allocation6], %s8156_s11 }
 0x123   : > { %p12752_p5 = scmp.ne.s32.totalorder %s12751_s1, 0 }
 0x125   : > { %7538 = dma.done.wait (%p12752_p5), %s893_s8, 2048  }
 0x126   : > { %7540 = vsyncadd (%p12752_p5), %s893_s8, 4294965248  ;;  %s8166_s2 = scalar_lea.vmem [#allocation8], %s8156_s11  ;;  %s911_s28 = scalar_lea.sflag [#allocation10], %s892_s22 }
 0x127   : > { %s8169_s23 = scalar_lea.vmem [#allocation9], %s8156_s11 }
 0x128   : > { %7542 = dma.done.wait (%p12752_p5), %s911_s28, 2048  }
 0x129   : > { %7544 = vsyncadd (%p12752_p5), %s911_s28, 4294965248  ;;  %s8176_s29 = scalar_lea.vmem [#allocation11], %s8156_s11  ;;  %s929_s4 = scalar_lea.sflag [#allocation13], %s892_s22 }
 0x12a   : > { %12753 = sst [smem:[#allocation40_spill]] %s8176_s29  ;;  %s8179_s12 = scalar_lea.vmem [#allocation12], %s8156_s11 }
 0x12b   : > { %12754 = sst [smem:[#allocation41_spill]] %s8179_s12 }
 0x12c   : > { %7546 = dma.done.wait (%p12752_p5), %s929_s4, 2048  }
 0x12d   : > { %7548 = vsyncadd (%p12752_p5), %s929_s4, 4294965248  ;;  %s12755_s24 = sld [smem:[#allocation26_spill]]  ;;  %s12761_s15 = sld [smem:[#allocation79_spill]] }
 0x12e   : > { %s12763_s30 = sld [smem:[#allocation81_spill]]  ;;  %s12765_s9 = sld [smem:[#allocation83_spill]] }
 0x12f   : > { %s12766_s19 = sld [smem:[#allocation85_spill]]  ;;  %s12768_s18 = sld [smem:[#allocation87_spill]] }
 0x130   : > { %s12769_s22 = sld [smem:[#allocation89_spill]]  ;;  %s12770_s4 = sld [smem:[#allocation91_spill]] }
 0x131   : > { %s12771_s7 = sshll.u32 %s8142_s10, 8 }
 0x132   : > { %s8254_s13 = scalar_lea.vmem [#allocation15], %s12771_s7 }
 0x133   : > { %p1072_p4 = scmp.lt.s32.totalorder %s12755_s24, 1  ;;  %p6223_p3 = scmp.ne.s32.totalorder %s12755_s24, 0 }
 0x134   : > { %v1119_v0 = vld [vmem:[%s8148_s27] sm:$0xff] (!%p6223_p3)  ;;  %v1120_v1 = vld [vmem:[%s8148_s27 + $0x8] sm:$0xff] (!%p6223_p3)  ;;  %v1121_v2 = vld [vmem:[%s8148_s27 + $0x10] sm:$0xff] (!%p6223_p3) }
 0x135   : > { %s8187_s21 = scalar_select %p1072_p4, %s12755_s24, 1 }
 0x136   : > { %1151 = vst [vmem:[#allocation2] sm:$0xff] (!%p6223_p3), %v1119_v0  ;;  %1152 = vst [vmem:[#allocation2 + $0x8] sm:$0xff] (!%p6223_p3), %v1120_v1  ;;  %v1122_v3 = vld [vmem:[%s8148_s27 + $0x18] sm:$0xff] (!%p6223_p3)  ;;  %v1123_v4 = vld [vmem:[%s8148_s27 + $0x20] sm:$0xff] (!%p6223_p3) }
 0x137   : > { %s8213_s17 = scalar_lea.vmem %s12761_s15, %s8187_s21  ;;  %s8219_s14 = scalar_lea.vmem %s12763_s30, %s8187_s21  ;;  %1153 = vst [vmem:[#allocation2 + $0x10] sm:$0xff] (!%p6223_p3), %v1121_v2  ;;  %v1124_v5 = vld [vmem:[%s8148_s27 + $0x28] sm:$0xff] (!%p6223_p3)  ;;  %1154 = vst [vmem:[#allocation2 + $0x18] sm:$0xff] (!%p6223_p3), %v1122_v3  ;;  %v1125_v6 = vld [vmem:[%s8148_s27 + $0x30] sm:$0xff] (!%p6223_p3) }
 0x138   : > { %12762 = sst [smem:[#allocation42_spill]] %s8213_s17  ;;  %s1098_s26 = scalar_lea.vmem %s12765_s9, %s8187_s21  ;;  %1155 = vst [vmem:[#allocation2 + $0x20] sm:$0xff] (!%p6223_p3), %v1123_v4  ;;  %1156 = vst [vmem:[#allocation2 + $0x28] sm:$0xff] (!%p6223_p3), %v1124_v5  ;;  %v1126_v7 = vld [vmem:[%s8148_s27 + $0x38] sm:$0xff] (!%p6223_p3)  ;;  %v1127_v8 = vld [vmem:[%s8148_s27 + $0x40] sm:$0xff] (!%p6223_p3) }
 0x139   : > { %s1101_s3 = scalar_lea.vmem %s12766_s19, %s8187_s21  ;;  %s12767_s15 = sld [smem:[#allocation86_spill]]  ;;  %1157 = vst [vmem:[#allocation2 + $0x30] sm:$0xff] (!%p6223_p3), %v1125_v6  ;;  %1158 = vst [vmem:[#allocation2 + $0x38] sm:$0xff] (!%p6223_p3), %v1126_v7  ;;  %v1128_v9 = vld [vmem:[%s8148_s27 + $0x48] sm:$0xff] (!%p6223_p3)  ;;  %v1129_v10 = vld [vmem:[%s8148_s27 + $0x50] sm:$0xff] (!%p6223_p3) }
 0x13a   : > { %s1107_s30 = scalar_lea.vmem %s12768_s18, %s8187_s21  ;;  %s1110_s20 = scalar_lea.vmem %s12769_s22, %s8187_s21  ;;  %1159 = vst [vmem:[#allocation2 + $0x40] sm:$0xff] (!%p6223_p3), %v1127_v8  ;;  %v1130_v11 = vld [vmem:[%s8148_s27 + $0x58] sm:$0xff] (!%p6223_p3)  ;;  %1160 = vst [vmem:[#allocation2 + $0x48] sm:$0xff] (!%p6223_p3), %v1128_v9  ;;  %v1131_v12 = vld [vmem:[%s8148_s27 + $0x60] sm:$0xff] (!%p6223_p3) }
 0x13b   : > { %s1113_s16 = scalar_lea.vmem %s12770_s4, %s8187_s21  ;;  %s8250_s9 = scalar_lea.vmem [#allocation14], %s8156_s11  ;;  %1161 = vst [vmem:[#allocation2 + $0x50] sm:$0xff] (!%p6223_p3), %v1129_v10  ;;  %1162 = vst [vmem:[#allocation2 + $0x58] sm:$0xff] (!%p6223_p3), %v1130_v11  ;;  %v1132_v13 = vld [vmem:[%s8148_s27 + $0x68] sm:$0xff] (!%p6223_p3)  ;;  %v1133_v14 = vld [vmem:[%s8148_s27 + $0x70] sm:$0xff] (!%p6223_p3) }
 0x13c   : > { %1118 = sbr.rel (%p6223_p3) target bundleno = 326 (0x146), region = 136  ;;  %1163 = vst [vmem:[#allocation2 + $0x60] sm:$0xff] (!%p6223_p3), %v1131_v12  ;;  %1164 = vst [vmem:[#allocation2 + $0x68] sm:$0xff] (!%p6223_p3), %v1132_v13  ;;  %v1134_v15 = vld [vmem:[%s8148_s27 + $0x78] sm:$0xff] (!%p6223_p3)  ;;  %v1135_v16 = vld [vmem:[%s8148_s27 + $0x80] sm:$0xff] (!%p6223_p3) }
 0x13d   : > { %1165 = vst [vmem:[#allocation2 + $0x70] sm:$0xff] (!%p6223_p3), %v1133_v14  ;;  %v1136_v17 = vld [vmem:[%s8148_s27 + $0x88] sm:$0xff] (!%p6223_p3)  ;;  %1166 = vst [vmem:[#allocation2 + $0x78] sm:$0xff] (!%p6223_p3), %v1134_v15  ;;  %v1137_v18 = vld [vmem:[%s8148_s27 + $0x90] sm:$0xff] (!%p6223_p3) }
 0x13e   : > { %1167 = vst [vmem:[#allocation2 + $0x80] sm:$0xff] (!%p6223_p3), %v1135_v16  ;;  %1168 = vst [vmem:[#allocation2 + $0x88] sm:$0xff] (!%p6223_p3), %v1136_v17  ;;  %v1138_v19 = vld [vmem:[%s8148_s27 + $0x98] sm:$0xff] (!%p6223_p3)  ;;  %v1139_v20 = vld [vmem:[%s8148_s27 + $0xa0] sm:$0xff] (!%p6223_p3) }
 0x13f   : > { %s1104_s1 = scalar_lea.vmem %s12767_s15, %s8187_s21  ;;  %1169 = vst [vmem:[#allocation2 + $0x90] sm:$0xff] (!%p6223_p3), %v1137_v18  ;;  %1170 = vst [vmem:[#allocation2 + $0x98] sm:$0xff] (!%p6223_p3), %v1138_v19  ;;  %v1140_v21 = vld [vmem:[%s8148_s27 + $0xa8] sm:$0xff] (!%p6223_p3)  ;;  %v1141_v22 = vld [vmem:[%s8148_s27 + $0xb0] sm:$0xff] (!%p6223_p3) }
 0x140   : > { %1171 = vst [vmem:[#allocation2 + $0xa0] sm:$0xff] (!%p6223_p3), %v1139_v20  ;;  %v1142_v23 = vld [vmem:[%s8148_s27 + $0xb8] sm:$0xff] (!%p6223_p3)  ;;  %1172 = vst [vmem:[#allocation2 + $0xa8] sm:$0xff] (!%p6223_p3), %v1140_v21  ;;  %v1143_v24 = vld [vmem:[%s8148_s27 + $0xc0] sm:$0xff] (!%p6223_p3) }
 0x141   : > { %1173 = vst [vmem:[#allocation2 + $0xb0] sm:$0xff] (!%p6223_p3), %v1141_v22  ;;  %1174 = vst [vmem:[#allocation2 + $0xb8] sm:$0xff] (!%p6223_p3), %v1142_v23  ;;  %v1144_v25 = vld [vmem:[%s8148_s27 + $0xc8] sm:$0xff] (!%p6223_p3)  ;;  %v1145_v26 = vld [vmem:[%s8148_s27 + $0xd0] sm:$0xff] (!%p6223_p3) }
 0x142   : > { %1175 = vst [vmem:[#allocation2 + $0xc0] sm:$0xff] (!%p6223_p3), %v1143_v24  ;;  %1176 = vst [vmem:[#allocation2 + $0xc8] sm:$0xff] (!%p6223_p3), %v1144_v25  ;;  %v1146_v27 = vld [vmem:[%s8148_s27 + $0xd8] sm:$0xff] (!%p6223_p3)  ;;  %v1147_v28 = vld [vmem:[%s8148_s27 + $0xe0] sm:$0xff] (!%p6223_p3) }
 0x143   : > { %1177 = vst [vmem:[#allocation2 + $0xd0] sm:$0xff] %v1145_v26  ;;  %v1148_v29 = vld [vmem:[%s8148_s27 + $0xe8] sm:$0xff]  ;;  %1178 = vst [vmem:[#allocation2 + $0xd8] sm:$0xff] %v1146_v27  ;;  %v1149_v30 = vld [vmem:[%s8148_s27 + $0xf0] sm:$0xff] }
 0x144   : > { %1179 = vst [vmem:[#allocation2 + $0xe0] sm:$0xff] %v1147_v28  ;;  %1180 = vst [vmem:[#allocation2 + $0xe8] sm:$0xff] %v1148_v29  ;;  %v1150_v31 = vld [vmem:[%s8148_s27 + $0xf8] sm:$0xff] }
 0x145   : > { %1181 = vst [vmem:[#allocation2 + $0xf0] sm:$0xff] %v1149_v30  ;;  %1182 = vst [vmem:[#allocation2 + $0xf8] sm:$0xff] %v1150_v31 }
 0x146 PF: > { %v8289_v32 = vld [vmem:[#allocation2] sm:$0xff]  ;;  %v8291_v33 = vld [vmem:[#allocation2 + $0x8] sm:$0xff]  ;;  %v8293_v34 = vld [vmem:[#allocation2 + $0x10] sm:$0xff]  ;;  %s12772_s0 = sld [smem:[#allocation72_spill]]  ;;  %s12774_s4 = sld [smem:[#allocation73_spill]] }
 0x147   : > { %v1215_v35 = vadd.f32 %v8291_v33, %v8289_v32  ;;  %v1255_v36 = vmul.f32 %v8289_v32, %v8289_v32  ;;  %v1256_v37 = vmul.f32 %v8291_v33, %v8291_v33  ;;  %v8301_v38 = vld [vmem:[#allocation2 + $0x18] sm:$0xff]  ;;  %v1257_v39 = vmul.f32 %v8293_v34, %v8293_v34  ;;  %v8306_v41 = vld [vmem:[#allocation2 + $0x20] sm:$0xff]  ;;  %v8311_v45 = vld [vmem:[#allocation2 + $0x28] sm:$0xff]  ;;  %s12781_s22 = sld [smem:[#allocation76_spill]] }
 0x148   : > { %v1258_v42 = vmul.f32 %v8301_v38, %v8301_v38  ;;  %v1259_v46 = vmul.f32 %v8306_v41, %v8306_v41  ;;  %v8316_v49 = vld [vmem:[#allocation2 + $0x30] sm:$0xff]  ;;  %v1260_v50 = vmul.f32 %v8311_v45, %v8311_v45  ;;  %v8321_v53 = vld [vmem:[#allocation2 + $0x38] sm:$0xff]  ;;  %v8323_v54 = vld [vmem:[#allocation2 + $0x40] sm:$0xff] }
 0x149   : > { %v1216_v40 = vadd.f32 %v1215_v35, %v8293_v34  ;;  %v1287_v43 = vadd.f32 %v1256_v37, %v1255_v36  ;;  %v1261_v55 = vmul.f32 %v8316_v49, %v8316_v49  ;;  %v8328_v58 = vld [vmem:[#allocation2 + $0x48] sm:$0xff]  ;;  %v1262_v59 = vmul.f32 %v8321_v53, %v8321_v53  ;;  %v8333_v62 = vld [vmem:[#allocation2 + $0x50] sm:$0xff]  ;;  %v8338_v2 = vld [vmem:[#allocation2 + $0x58] sm:$0xff] }
 0x14a   : > { %v1263_v63 = vmul.f32 %v8323_v54, %v8323_v54  ;;  %v1264_v3 = vmul.f32 %v8328_v58, %v8328_v58  ;;  %v8343_v6 = vld [vmem:[#allocation2 + $0x60] sm:$0xff]  ;;  %v1265_v7 = vmul.f32 %v8333_v62, %v8333_v62  ;;  %v8348_v10 = vld [vmem:[#allocation2 + $0x68] sm:$0xff]  ;;  %v1266_v11 = vmul.f32 %v8338_v2, %v8338_v2  ;;  %v8353_v14 = vld [vmem:[#allocation2 + $0x70] sm:$0xff] }
 0x14b   : > { %v1217_v44 = vadd.f32 %v1216_v40, %v8301_v38  ;;  %v1288_v47 = vadd.f32 %v1287_v43, %v1257_v39  ;;  %v1267_v15 = vmul.f32 %v8343_v6, %v8343_v6  ;;  %v8358_v18 = vld [vmem:[#allocation2 + $0x78] sm:$0xff]  ;;  %v1268_v19 = vmul.f32 %v8348_v10, %v8348_v10  ;;  %v8363_v22 = vld [vmem:[#allocation2 + $0x80] sm:$0xff]  ;;  %v8368_v26 = vld [vmem:[#allocation2 + $0x88] sm:$0xff] }
 0x14c   : > { %v1269_v23 = vmul.f32 %v8353_v14, %v8353_v14  ;;  %v1270_v27 = vmul.f32 %v8358_v18, %v8358_v18  ;;  %v8373_v30 = vld [vmem:[#allocation2 + $0x90] sm:$0xff]  ;;  %v1271_v31 = vmul.f32 %v8363_v22, %v8363_v22  ;;  %v8378_v37 = vld [vmem:[#allocation2 + $0x98] sm:$0xff]  ;;  %v1272_v39 = vmul.f32 %v8368_v26, %v8368_v26  ;;  %v8383_v43 = vld [vmem:[#allocation2 + $0xa0] sm:$0xff]  ;;  %s12773_s18 = scalar_lea.vmem %s12772_s0, %s8187_s21  ;;  %s12775_s7 = scalar_lea.vmem %s12774_s4, %s8187_s21 }
 0x14d   : > { %v1218_v48 = vadd.f32 %v1217_v44, %v8306_v41  ;;  %v1289_v51 = vadd.f32 %v1288_v47, %v1258_v42  ;;  %v1273_v44 = vmul.f32 %v8373_v30, %v8373_v30  ;;  %s12782_s8 = scalar_lea.vmem %s12781_s22, %s8187_s21 }
 0x14f   : > { %v1219_v52 = vadd.f32 %v1218_v48, %v8311_v45  ;;  %v1290_v56 = vadd.f32 %v1289_v51, %v1259_v46  ;;  %v8388_v48 = vld [vmem:[#allocation2 + $0xa8] sm:$0xff] }
 0x151   : > { %v1220_v57 = vadd.f32 %v1219_v52, %v8316_v49  ;;  %v1291_v60 = vadd.f32 %v1290_v56, %v1260_v50  ;;  %v1274_v50 = vmul.f32 %v8378_v37, %v8378_v37  ;;  %v1275_v56 = vmul.f32 %v8383_v43, %v8383_v43 }
 0x153   : > { %v1221_v61 = vadd.f32 %v1220_v57, %v8321_v53  ;;  %v1292_v0 = vadd.f32 %v1291_v60, %v1261_v55  ;;  %v8393_v55 = vld [vmem:[#allocation2 + $0xb0] sm:$0xff]  ;;  %v1276_v60 = vmul.f32 %v8388_v48, %v8388_v48 }
 0x155   : > { %v1222_v1 = vadd.f32 %v1221_v61, %v8323_v54  ;;  %v1293_v4 = vadd.f32 %v1292_v0, %v1262_v59  ;;  %v8401_v0 = vld [vmem:[#allocation2 + $0xb8] sm:$0xff] }
 0x157   : > { %v1223_v5 = vadd.f32 %v1222_v1, %v8328_v58  ;;  %v1294_v8 = vadd.f32 %v1293_v4, %v1263_v63  ;;  %v1277_v1 = vmul.f32 %v8393_v55, %v8393_v55 }
 0x159   : > { %v1224_v9 = vadd.f32 %v1223_v5, %v8333_v62  ;;  %v1295_v12 = vadd.f32 %v1294_v8, %v1264_v3  ;;  %v8406_v5 = vld [vmem:[#allocation2 + $0xc0] sm:$0xff] }
 0x15b   : > { %v1225_v13 = vadd.f32 %v1224_v9, %v8338_v2  ;;  %v1296_v16 = vadd.f32 %v1295_v12, %v1265_v7  ;;  %v1278_v7 = vmul.f32 %v8401_v0, %v8401_v0  ;;  %v1279_v12 = vmul.f32 %v8406_v5, %v8406_v5 }
 0x15d   : > { %v1226_v17 = vadd.f32 %v1225_v13, %v8343_v6  ;;  %v1297_v20 = vadd.f32 %v1296_v16, %v1266_v11  ;;  %v8411_v11 = vld [vmem:[#allocation2 + $0xc8] sm:$0xff]  ;;  %v8416_v16 = vld [vmem:[#allocation2 + $0xd0] sm:$0xff] }
 0x15f   : > { %v1227_v21 = vadd.f32 %v1226_v17, %v8348_v10  ;;  %v1298_v24 = vadd.f32 %v1297_v20, %v1267_v15  ;;  %v1280_v17 = vmul.f32 %v8411_v11, %v8411_v11 }
 0x161   : > { %v1228_v25 = vadd.f32 %v1227_v21, %v8353_v14  ;;  %v1299_v28 = vadd.f32 %v1298_v24, %v1268_v19  ;;  %v8421_v21 = vld [vmem:[#allocation2 + $0xd8] sm:$0xff] }
 0x163   : > { %v1229_v29 = vadd.f32 %v1228_v25, %v8358_v18  ;;  %v1300_v35 = vadd.f32 %v1299_v28, %v1269_v23  ;;  %v1281_v23 = vmul.f32 %v8416_v16, %v8416_v16  ;;  %v1282_v28 = vmul.f32 %v8421_v21, %v8421_v21 }
 0x165   : > { %v1230_v36 = vadd.f32 %v1229_v29, %v8363_v22  ;;  %v1301_v40 = vadd.f32 %v1300_v35, %v1270_v27  ;;  %v8426_v27 = vld [vmem:[#allocation2 + $0xe0] sm:$0xff]  ;;  %v8431_v35 = vld [vmem:[#allocation2 + $0xe8] sm:$0xff] }
 0x167   : > { %v1231_v42 = vadd.f32 %v1230_v36, %v8368_v26  ;;  %v1302_v46 = vadd.f32 %v1301_v40, %v1271_v31  ;;  %v1283_v36 = vmul.f32 %v8426_v27, %v8426_v27 }
 0x169   : > { %v1232_v47 = vadd.f32 %v1231_v42, %v8373_v30  ;;  %v1303_v51 = vadd.f32 %v1302_v46, %v1272_v39  ;;  %v8436_v42 = vld [vmem:[#allocation2 + $0xf0] sm:$0xff] }
 0x16b   : > { %v1233_v52 = vadd.f32 %v1232_v47, %v8378_v37  ;;  %v1304_v57 = vadd.f32 %v1303_v51, %v1273_v44  ;;  %v1284_v44 = vmul.f32 %v8431_v35, %v8431_v35  ;;  %v1285_v51 = vmul.f32 %v8436_v42, %v8436_v42 }
 0x16d   : > { %v1234_v59 = vadd.f32 %v1233_v52, %v8383_v43  ;;  %v1305_v61 = vadd.f32 %v1304_v57, %v1274_v50  ;;  %v8441_v50 = vld [vmem:[#allocation2 + $0xf8] sm:$0xff] }
 0x16e   : > { %v1286_v57 = vmul.f32 %v8441_v50, %v8441_v50 }
 0x16f   : > { %v1235_v63 = vadd.f32 %v1234_v59, %v8388_v48  ;;  %v1306_v3 = vadd.f32 %v1305_v61, %v1275_v56 }
 0x171   : > { %v1236_v4 = vadd.f32 %v1235_v63, %v8393_v55  ;;  %v1307_v8 = vadd.f32 %v1306_v3, %v1276_v60  ;;  %v6906_v3 = vld [vmem:[%s8159_s6 + $0x8] sm:$0xff]  }
 0x173   : > { %v1237_v9 = vadd.f32 %v1236_v4, %v8401_v0  ;;  %v1308_v13 = vadd.f32 %v1307_v8, %v1277_v1  ;;  %v6905_v1 = vld [vmem:[%s8159_s6] sm:$0xff]   ;;  %v6907_v4 = vld [vmem:[%s8159_s6 + $0x10] sm:$0xff]  }
 0x174   : > { %6454 = vmatprep.subr.bf16.mxu0 %v6905_v1  ;;  %v6909_v8 = vld [vmem:[%s8159_s6 + $0x20] sm:$0xff]  }
 0x175   : > { %v1238_v15 = vadd.f32 %v1237_v9, %v8406_v5  ;;  %v1309_v19 = vadd.f32 %v1308_v13, %v1278_v7  ;;  %6455 = vmatpush3.bf16.msra.mxu0 %v6905_v1  ;;  %v6908_v7 = vld [vmem:[%s8159_s6 + $0x18] sm:$0xff]   ;;  %v6910_v9 = vld [vmem:[%s8159_s6 + $0x28] sm:$0xff]  }
 0x176   : > { %6456 = vmatprep.subr.bf16.mxu0 %v6906_v3 }
 0x177   : > { %v1239_v20 = vadd.f32 %v1238_v15, %v8411_v11  ;;  %v1310_v24 = vadd.f32 %v1309_v19, %v1279_v12 }
 0x179   : > { %v1240_v25 = vadd.f32 %v1239_v20, %v8416_v16  ;;  %v1311_v29 = vadd.f32 %v1310_v24, %v1280_v17  ;;  %6457 = vmatpush3.bf16.msra.mxu0 %v6906_v3 }
 0x17a   : > { %6458 = vmatprep.subr.bf16.mxu0 %v6907_v4 }
 0x17b   : > { %v1241_v31 = vadd.f32 %v1240_v25, %v8421_v21  ;;  %v1312_v39 = vadd.f32 %v1311_v29, %v1281_v23  ;;  %v6911_v25 = vld [vmem:[%s8159_s6 + $0x30] sm:$0xff]  }
 0x17d   : > { %v1242_v40 = vadd.f32 %v1241_v31, %v8426_v27  ;;  %v1313_v46 = vadd.f32 %v1312_v39, %v1282_v28  ;;  %6459 = vmatpush3.bf16.msra.mxu0 %v6907_v4  ;;  %v6912_v28 = vld [vmem:[%s8159_s6 + $0x38] sm:$0xff]   ;;  %s7608_s6 = smov 0.0   ;;  %v8494_v4 = vld [vmem:[%s12775_s7] ss:$0 sm:$0xff] }
 0x17e   : > { %6460 = vmatprep.subr.bf16.mxu0 %v6908_v7 }
 0x17f   : > { %v1243_v47 = vadd.f32 %v1242_v40, %v8431_v35  ;;  %v1314_v52 = vadd.f32 %v1313_v46, %v1283_v36 }
 0x181   : > { %v1244_v56 = vadd.f32 %v1243_v47, %v8436_v42  ;;  %v1315_v59 = vadd.f32 %v1314_v52, %v1284_v44  ;;  %6461 = vmatpush3.bf16.msra.mxu0 %v6908_v7 }
 0x182   : > { %6462 = vmatprep.subr.bf16.mxu0 %v6909_v8 }
 0x183   : > { %v1245_v60 = vadd.f32 %v1244_v56, %v8441_v50  ;;  %v1316_v61 = vadd.f32 %v1315_v59, %v1285_v51 }
 0x185   : > { %1246 = vadd.xlane.f32.xlu0 %v1245_v60  ;;  %v1317_v63 = vadd.f32 %v1316_v61, %v1286_v57  ;;  %6463 = vmatpush3.bf16.msra.mxu0 %v6909_v8 }
 0x186   : > { %6464 = vmatprep.subr.bf16.mxu0 %v6910_v9 }
 0x189   : > { %1318 = vadd.xlane.f32.xlu0 %v1317_v63  ;;  %6465 = vmatpush3.bf16.msra.mxu0 %v6910_v9 }
 0x18a   : > { %6466 = vmatprep.subr.bf16.mxu0 %v6911_v25 }
 0x18d   : > { %6467 = vmatpush3.bf16.msra.mxu0 %v6911_v25 }
 0x18e   : > { %6468 = vmatprep.subr.bf16.mxu0 %v6912_v28 }
 0x191   : > { %6469 = vmatpush3.bf16.msra.mxu0 %v6912_v28 }
 0x212   : > { %v1247_v12 = vpop.xlane.xlu0 %1246 }
 0x213   : > { %v1248_v13 = vrot.slane %v1247_v12, 4 }
 0x215   : > { %v1249_v15 = vadd.f32 %v1248_v13, %v1247_v12 }
 0x216   : > { %v1319_v17 = vpop.xlane.xlu0 %1318 }
 0x217   : > { %v1250_v19 = vrot.slane %v1249_v15, 2  ;;  %v1320_v20 = vrot.slane %v1319_v17, 4 }
 0x219   : > { %v1321_v23 = vadd.f32 %v1320_v20, %v1319_v17  ;;  %v1251_v24 = vadd.f32 %v1250_v19, %v1249_v15 }
 0x21b   : > { %v1322_v29 = vrot.slane %v1321_v23, 2  ;;  %v1252_v31 = vrot.slane %v1251_v24, 1 }
 0x21d   : > { %v1253_v36 = vadd.f32 %v1252_v31, %v1251_v24  ;;  %v1323_v39 = vadd.f32 %v1322_v29, %v1321_v23 }
 0x21f   : > { %6742 = vpush %v1253_v36  ;;  %v1324_v40 = vrot.slane %v1323_v39, 1 }
 0x221   : > { %v1325_v44 = vadd.f32 %v1324_v40, %v1323_v39 }
 0x223   : > { %6744 = vpush %v1325_v44 }
 0x250   : > { %s6743_s27 = spop %6742 }
 0x251   : > { %s1329_s11 = smul.f32 0.00012207031, %s6743_s27  ;;  %s12783_s27 = sld [smem:[#allocation77_spill]] }
 0x253   : > { %s1333_s29 = smul.f32 %s1329_s11, %s1329_s11  ;;  %v8458_v51 = vstv %s1329_s11 }
 0x254   : > { %s6745_s12 = spop %6744  ;;  %v1337_v52 = vsub.f32 %v8289_v32, %v8458_v51  ;;  %v1338_v56 = vsub.f32 %v8291_v33, %v8458_v51  ;;  %v1339_v57 = vsub.f32 %v8293_v34, %v8458_v51  ;;  %v1340_v59 = vsub.f32 %v8301_v38, %v8458_v51  ;;  %v8477_v32 = vld [vmem:[%s12773_s18] ss:$0 sm:$0xff]  ;;  %s12863_s18 = sld [smem:[#allocation82_spill]] }
 0x255   : > { %s1332_s24 = smul.f32 0.00012207031, %s6745_s12  ;;  %v1341_v60 = vsub.f32 %v8306_v41, %v8458_v51  ;;  %v1342_v33 = vsub.f32 %v8311_v45, %v8458_v51  ;;  %v1343_v34 = vsub.f32 %v8316_v49, %v8458_v51  ;;  %v1344_v38 = vsub.f32 %v8321_v53, %v8458_v51 }
 0x256   : > { %v1345_v53 = vsub.f32 %v8323_v54, %v8458_v51  ;;  %v1346_v7 = vsub.f32 %v8328_v58, %v8458_v51 }
 0x257   : > { %s1334_s28 = ssub.f32 %s1332_s24, %s1333_s29  ;;  %s12776_s29 = sld [smem:[#allocation75_spill]] }
 0x258   : > { %s12784_s11 = scalar_lea.vmem %s12783_s27, %s8187_s21 }
 0x259   : > { %s1335_s17 = smax.f32 %s7608_s6, %s1334_s28 }
 0x25a   : > { %s1369_s19 = sadd.f32 1e-05, %s1335_s17  ;;  %s12864_s22 = scalar_lea.vmem %s12863_s18, %s8187_s21 }
 0x25c   : > { %v1370_v46 = vstv %s1369_s19 }
 0x25d   : > { %6953 = vrsqrt.f32 %v1370_v46  ;;  %s12777_s12 = scalar_lea.vmem %s12776_s29, %s8187_s21  ;;  %s12853_s29 = sld [smem:[#allocation42_spill]] }
 0x25e   : > { %s12925_s21 = sld [smem:[#allocation26_spill]] }
 0x264   : > { %p6296_p2 = scmp.ne.s32.totalorder %s12925_s21, 1 }
 0x267   : > { %v6954_v47 = vpop.eup %6953 }
 0x268   : > { %6746 = vpush %v6954_v47 }
 0x299   : > { %s6747_s25 = spop %6746 }
 0x29a   : > { %v8470_v61 = vstv %s6747_s25 }
 0x29b   : > { %v1374_v63 = vmul.f32 %v8470_v61, %v1337_v52  ;;  %v1375_v41 = vmul.f32 %v8470_v61, %v1338_v56  ;;  %v1376_v1 = vmul.f32 %v8470_v61, %v1339_v57  ;;  %v1377_v3 = vmul.f32 %v8470_v61, %v1340_v59 }
 0x29c   : > { %v1378_v45 = vmul.f32 %v8470_v61, %v1341_v60  ;;  %v1379_v49 = vmul.f32 %v8470_v61, %v1342_v33  ;;  %v1380_v19 = vmul.f32 %v8470_v61, %v1343_v34  ;;  %v1381_v20 = vmul.f32 %v8470_v61, %v1344_v38 }
 0x29d   : > { %v1413_v8 = vmul.f32 %v8477_v32, %v1374_v63  ;;  %v1414_v9 = vmul.f32 %v8477_v32, %v1375_v41  ;;  %v1415_v12 = vmul.f32 %v8477_v32, %v1376_v1  ;;  %v1416_v13 = vmul.f32 %v8477_v32, %v1377_v3 }
 0x29e   : > { %v1417_v15 = vmul.f32 %v8477_v32, %v1378_v45  ;;  %v1418_v17 = vmul.f32 %v8477_v32, %v1379_v49  ;;  %v1382_v36 = vmul.f32 %v8470_v61, %v1345_v53  ;;  %v1383_v39 = vmul.f32 %v8470_v61, %v1346_v7 }
 0x29f   : > { %v1452_v54 = vadd.f32 %v8494_v4, %v1413_v8  ;;  %v1453_v58 = vadd.f32 %v8494_v4, %v1414_v9  ;;  %v1454_v23 = vadd.f32 %v8494_v4, %v1415_v12  ;;  %v1455_v24 = vadd.f32 %v8494_v4, %v1416_v13 }
 0x2a0   : > { %v1456_v25 = vadd.f32 %v8494_v4, %v1417_v15  ;;  %v1457_v28 = vadd.f32 %v8494_v4, %v1418_v17  ;;  %v1419_v40 = vmul.f32 %v8477_v32, %v1380_v19  ;;  %v1420_v44 = vmul.f32 %v8477_v32, %v1381_v20 }
 0x2a1   : > { %v1484_v29 = vpack.c.bf16 %v1453_v58, %v1452_v54  ;;  %v1485_v31 = vpack.c.bf16 %v1455_v24, %v1454_v23  ;;  %v1421_v47 = vmul.f32 %v8477_v32, %v1382_v36  ;;  %v1422_v52 = vmul.f32 %v8477_v32, %v1383_v39 }
 0x2a2   : > { %v1486_v46 = vpack.c.bf16 %v1457_v28, %v1456_v25  ;;  %v1347_v56 = vsub.f32 %v8333_v62, %v8458_v51  ;;  %v1348_v57 = vsub.f32 %v8338_v2, %v8458_v51  ;;  %v1349_v59 = vsub.f32 %v8343_v6, %v8458_v51 }
 0x2a3   : > { %6470 = vmatprep.mubr.bf16.mxu0 %v1484_v29  ;;  %v1350_v60 = vsub.f32 %v8348_v10, %v8458_v51  ;;  %v1458_v33 = vadd.f32 %v8494_v4, %v1419_v40  ;;  %v1459_v34 = vadd.f32 %v8494_v4, %v1420_v44  ;;  %v1460_v62 = vadd.f32 %v8494_v4, %v1421_v47 }
 0x2a4   : > { %6471 = vmatmul.mubr.bf16.vlgmr.msra.gmra.mrb[0].mxu0 %v1485_v31  ;;  %v1384_v38 = vmul.f32 %v8470_v61, %v1347_v56  ;;  %v1385_v63 = vmul.f32 %v8470_v61, %v1348_v57  ;;  %v1461_v41 = vadd.f32 %v8494_v4, %v1422_v52  ;;  %v1386_v2 = vmul.f32 %v8470_v61, %v1349_v59 }
 0x2a5   : > { %6474 = vmatprep.mubr.bf16.mxu0 %v1486_v46  ;;  %v1387_v1 = vmul.f32 %v8470_v61, %v1350_v60  ;;  %v1487_v6 = vpack.c.bf16 %v1459_v34, %v1458_v33  ;;  %v1351_v7 = vsub.f32 %v8353_v14, %v8458_v51  ;;  %v1352_v8 = vsub.f32 %v8358_v18, %v8458_v51 }
 0x2a6   : > { %v1423_v3 = vmul.f32 %v8477_v32, %v1384_v38  ;;  %v1424_v10 = vmul.f32 %v8477_v32, %v1385_v63  ;;  %v1488_v45 = vpack.c.bf16 %v1461_v41, %v1460_v62  ;;  %v1425_v49 = vmul.f32 %v8477_v32, %v1386_v2 }
 0x2a7   : > { %v1426_v53 = vmul.f32 %v8477_v32, %v1387_v1  ;;  %v1353_v9 = vsub.f32 %v8363_v22, %v8458_v51  ;;  %v1354_v12 = vsub.f32 %v8368_v26, %v8458_v51  ;;  %v1388_v17 = vmul.f32 %v8470_v61, %v1351_v7 }
 0x2a8   : > { %v1462_v13 = vadd.f32 %v8494_v4, %v1423_v3  ;;  %v1463_v15 = vadd.f32 %v8494_v4, %v1424_v10  ;;  %v1389_v19 = vmul.f32 %v8470_v61, %v1352_v8  ;;  %v1464_v14 = vadd.f32 %v8494_v4, %v1425_v49 }
 0x2a9   : > { %v1465_v20 = vadd.f32 %v8494_v4, %v1426_v53  ;;  %v1390_v18 = vmul.f32 %v8470_v61, %v1353_v9  ;;  %v1391_v54 = vmul.f32 %v8470_v61, %v1354_v12  ;;  %v1427_v58 = vmul.f32 %v8477_v32, %v1388_v17 }
 0x2aa   : > { %v1489_v22 = vpack.c.bf16 %v1463_v15, %v1462_v13  ;;  %v1428_v26 = vmul.f32 %v8477_v32, %v1389_v19  ;;  %v1355_v28 = vsub.f32 %v8373_v30, %v8458_v51  ;;  %v1356_v29 = vsub.f32 %v8378_v37, %v8458_v51 }
 0x2ab   : > { %v1490_v23 = vpack.c.bf16 %v1465_v20, %v1464_v14  ;;  %v1429_v24 = vmul.f32 %v8477_v32, %v1390_v18  ;;  %v1430_v25 = vmul.f32 %v8477_v32, %v1391_v54  ;;  %v1357_v31 = vsub.f32 %v8383_v43, %v8458_v51 }
 0x2ac   : > { %6475 = vmatmul.mubr.bf16.gmra.mrb[4].mxu0 %v1487_v6  ;;  %v1358_v36 = vsub.f32 %v8388_v48, %v8458_v51  ;;  %v1466_v39 = vadd.f32 %v8494_v4, %v1427_v58  ;;  %v1467_v40 = vadd.f32 %v8494_v4, %v1428_v26  ;;  %v1392_v44 = vmul.f32 %v8470_v61, %v1355_v28 }
 0x2ad   : > { %6478 = vmatprep.mubr.bf16.mxu0 %v1488_v45  ;;  %v1393_v46 = vmul.f32 %v8470_v61, %v1356_v29  ;;  %v1468_v30 = vadd.f32 %v8494_v4, %v1429_v24  ;;  %v1469_v47 = vadd.f32 %v8494_v4, %v1430_v25  ;;  %v1394_v37 = vmul.f32 %v8470_v61, %v1357_v31 }
 0x2ae   : > { %v1395_v52 = vmul.f32 %v8470_v61, %v1358_v36  ;;  %v1491_v43 = vpack.c.bf16 %v1467_v40, %v1466_v39  ;;  %v1431_v56 = vmul.f32 %v8477_v32, %v1392_v44  ;;  %v1359_v33 = vsub.f32 %v8393_v55, %v8458_v51 }
 0x2af   : > { %v1432_v48 = vmul.f32 %v8477_v32, %v1393_v46  ;;  %v1492_v57 = vpack.c.bf16 %v1469_v47, %v1468_v30  ;;  %v1433_v59 = vmul.f32 %v8477_v32, %v1394_v37  ;;  %v1360_v34 = vsub.f32 %v8401_v0, %v8458_v51 }
 0x2b0   : > { %v1434_v60 = vmul.f32 %v8477_v32, %v1395_v52  ;;  %v1361_v38 = vsub.f32 %v8406_v5, %v8458_v51  ;;  %v1362_v63 = vsub.f32 %v8411_v11, %v8458_v51  ;;  %v1470_v62 = vadd.f32 %v8494_v4, %v1431_v56 }
 0x2b1   : > { %v1471_v41 = vadd.f32 %v8494_v4, %v1432_v48  ;;  %v1396_v2 = vmul.f32 %v8470_v61, %v1359_v33  ;;  %v1397_v1 = vmul.f32 %v8470_v61, %v1360_v34  ;;  %v1472_v55 = vadd.f32 %v8494_v4, %v1433_v59 }
 0x2b2   : > { %v1473_v6 = vadd.f32 %v8494_v4, %v1434_v60  ;;  %v1398_v0 = vmul.f32 %v8470_v61, %v1361_v38  ;;  %v1399_v3 = vmul.f32 %v8470_v61, %v1362_v63  ;;  %v1363_v7 = vsub.f32 %v8416_v16, %v8458_v51 }
 0x2b3   : > { %v1493_v5 = vpack.c.bf16 %v1471_v41, %v1470_v62  ;;  %v1435_v10 = vmul.f32 %v8477_v32, %v1396_v2  ;;  %v1436_v11 = vmul.f32 %v8477_v32, %v1397_v1  ;;  %v1364_v8 = vsub.f32 %v8421_v21, %v8458_v51 }
 0x2b4   : > { %6479 = vmatmul.mubr.bf16.gmra.mrb[8].mxu0 %v1489_v22  ;;  %v1494_v45 = vpack.c.bf16 %v1473_v6, %v1472_v55  ;;  %v1437_v49 = vmul.f32 %v8477_v32, %v1398_v0  ;;  %v1438_v53 = vmul.f32 %v8477_v32, %v1399_v3  ;;  %v1365_v9 = vsub.f32 %v8426_v27, %v8458_v51 }
 0x2b5   : > { %6482 = vmatprep.mubr.bf16.mxu0 %v1490_v23  ;;  %v1366_v12 = vsub.f32 %v8431_v35, %v8458_v51  ;;  %v1474_v13 = vadd.f32 %v8494_v4, %v1435_v10  ;;  %v1475_v15 = vadd.f32 %v8494_v4, %v1436_v11  ;;  %v1400_v17 = vmul.f32 %v8470_v61, %v1363_v7 }
 0x2b6   : > { %v1401_v19 = vmul.f32 %v8470_v61, %v1364_v8  ;;  %v1476_v16 = vadd.f32 %v8494_v4, %v1437_v49  ;;  %v1477_v14 = vadd.f32 %v8494_v4, %v1438_v53  ;;  %v1402_v21 = vmul.f32 %v8470_v61, %v1365_v9 }
 0x2b7   : > { %v1403_v20 = vmul.f32 %v8470_v61, %v1366_v12  ;;  %v1495_v27 = vpack.c.bf16 %v1475_v15, %v1474_v13  ;;  %v1439_v18 = vmul.f32 %v8477_v32, %v1400_v17  ;;  %v1367_v26 = vsub.f32 %v8436_v42, %v8458_v51 }
 0x2b8   : > { %v1440_v35 = vmul.f32 %v8477_v32, %v1401_v19  ;;  %v1496_v54 = vpack.c.bf16 %v1477_v14, %v1476_v16  ;;  %v1441_v22 = vmul.f32 %v8477_v32, %v1402_v21  ;;  %v1368_v23 = vsub.f32 %v8441_v50, %v8458_v51 }
 0x2b9   : > { %v1442_v58 = vmul.f32 %v8477_v32, %v1403_v20  ;;  %v1478_v24 = vadd.f32 %v8494_v4, %v1439_v18  ;;  %v1404_v28 = vmul.f32 %v8470_v61, %v1367_v26 }
 0x2ba   : > { %v1479_v25 = vadd.f32 %v8494_v4, %v1440_v35  ;;  %v1405_v29 = vmul.f32 %v8470_v61, %v1368_v23  ;;  %v1480_v31 = vadd.f32 %v8494_v4, %v1441_v22  ;;  %v8641_v61 = vld [vmem:[%s12777_s12] ss:$0 sm:$0xff] }
 0x2bb   : > { %v1481_v36 = vadd.f32 %v8494_v4, %v1442_v58  ;;  %v1443_v42 = vmul.f32 %v8477_v32, %v1404_v28 }
 0x2bc   : > { %6483 = vmatmul.mubr.bf16.gmra.mrb[12].mxu0 %v1491_v43  ;;  %v1497_v39 = vpack.c.bf16 %v1479_v25, %v1478_v24  ;;  %v1444_v40 = vmul.f32 %v8477_v32, %v1405_v29 }
 0x2bd   : > { %6486 = vmatprep.mubr.bf16.mxu0 %v1492_v57  ;;  %v1498_v50 = vpack.c.bf16 %v1481_v36, %v1480_v31  ;;  %v1482_v51 = vadd.f32 %v8494_v4, %v1443_v42 }
 0x2be   : > { %v1483_v44 = vadd.f32 %v8494_v4, %v1444_v40 }
 0x2c0   : > { %v1499_v46 = vpack.c.bf16 %v1483_v44, %v1482_v51 }
 0x2c4   : > { %6487 = vmatmul.mubr.bf16.gmra.mrb[16].mxu0 %v1493_v5 }
 0x2c5   : > { %6490 = vmatprep.mubr.bf16.mxu0 %v1494_v45 }
 0x2cc   : > { %6491 = vmatmul.mubr.bf16.gmra.mrb[20].mxu0 %v1495_v27 }
 0x2cd   : > { %6494 = vmatprep.mubr.bf16.mxu0 %v1496_v54 }
 0x2d4   : > { %6495 = vmatmul.mubr.bf16.gmra.mrb[24].mxu0 %v1497_v39 }
 0x2d5   : > { %6498 = vmatprep.mubr.bf16.mxu0 %v1498_v50 }
 0x2dc   : > { %6499 = vmatmul.mubr.bf16.gmra.mrb[28].mxu0 %v1499_v46 }
 0x377   : > { %v6472_v30 = vpop.f32.mrb[0].mxu0 }
 0x378   : > { %v1605_v47 = vpop.f32.mrb[1].mxu0  ;;  %v8647_v43 = vadd.f32 %v6472_v30, %v8641_v61 }
 0x379   : > { %v8644_v37 = vadd.f32 %v8641_v61, %v1605_v47  ;;  %v6473_v32 = vpop.f32.mrb[2].mxu0 }
 0x37a   : > { %v1608_v52 = vpop.f32.mrb[3].mxu0  ;;  %v8655_v48 = vadd.f32 %v6473_v32, %v8641_v61  ;;  %v1774_v60 = vmul.f32 %v8647_v43, %v8647_v43 }
 0x37b   : > { %v8650_v4 = vadd.f32 %v8641_v61, %v1608_v52  ;;  %v1772_v56 = vmul.f32 %v8644_v37, %v8644_v37 }
 0x37c   : > { %v1775_v62 = vmul.f32 %v8655_v48, %v8655_v48 }
 0x37d   : > { %v1732_v57 = vadd.f32 %v8650_v4, %v8644_v37  ;;  %v1773_v59 = vmul.f32 %v8650_v4, %v8650_v4 }
 0x37f   : > { %v1733_v33 = vadd.f32 %v1732_v57, %v8647_v43  ;;  %v1804_v34 = vadd.f32 %v1773_v59, %v1772_v56  ;;  %v6476_v38 = vpop.f32.mrb[4].mxu0 }
 0x380   : > { %v1621_v63 = vpop.f32.mrb[5].mxu0  ;;  %v8671_v6 = vadd.f32 %v6476_v38, %v8641_v61 }
 0x381   : > { %v1805_v41 = vadd.f32 %v1804_v34, %v1774_v60  ;;  %v8667_v2 = vadd.f32 %v8641_v61, %v1621_v63  ;;  %v1734_v1 = vadd.f32 %v1733_v33, %v8655_v48  ;;  %v6477_v55 = vpop.f32.mrb[6].mxu0 }
 0x382   : > { %v1624_v0 = vpop.f32.mrb[7].mxu0  ;;  %v8680_v49 = vadd.f32 %v6477_v55, %v8641_v61  ;;  %v1778_v8 = vmul.f32 %v8671_v6, %v8671_v6 }
 0x383   : > { %v1735_v3 = vadd.f32 %v1734_v1, %v8667_v2  ;;  %v1776_v5 = vmul.f32 %v8667_v2, %v8667_v2  ;;  %v1806_v10 = vadd.f32 %v1805_v41, %v1775_v62  ;;  %v8677_v11 = vadd.f32 %v8641_v61, %v1624_v0 }
 0x384   : > { %v1779_v17 = vmul.f32 %v8680_v49, %v8680_v49 }
 0x385   : > { %v1807_v45 = vadd.f32 %v1806_v10, %v1776_v5  ;;  %v1736_v53 = vadd.f32 %v1735_v3, %v8677_v11  ;;  %v1777_v7 = vmul.f32 %v8677_v11, %v8677_v11 }
 0x387   : > { %v1737_v9 = vadd.f32 %v1736_v53, %v8671_v6  ;;  %v1808_v12 = vadd.f32 %v1807_v45, %v1777_v7  ;;  %v6480_v13 = vpop.f32.mrb[8].mxu0 }
 0x388   : > { %v1637_v15 = vpop.f32.mrb[9].mxu0  ;;  %v8695_v20 = vadd.f32 %v6480_v13, %v8641_v61 }
 0x389   : > { %v1809_v19 = vadd.f32 %v1808_v12, %v1778_v8  ;;  %v8691_v16 = vadd.f32 %v8641_v61, %v1637_v15  ;;  %v1738_v14 = vadd.f32 %v1737_v9, %v8680_v49  ;;  %v6481_v21 = vpop.f32.mrb[10].mxu0 }
 0x38a   : > { %v1640_v27 = vpop.f32.mrb[11].mxu0  ;;  %v8704_v26 = vadd.f32 %v6481_v21, %v8641_v61  ;;  %v1782_v25 = vmul.f32 %v8695_v20, %v8695_v20 }
 0x38b   : > { %v1739_v18 = vadd.f32 %v1738_v14, %v8691_v16  ;;  %v1780_v35 = vmul.f32 %v8691_v16, %v8691_v16  ;;  %v1810_v54 = vadd.f32 %v1809_v19, %v1779_v17  ;;  %v8701_v22 = vadd.f32 %v8641_v61, %v1640_v27 }
 0x38c   : > { %v1783_v39 = vmul.f32 %v8704_v26, %v8704_v26 }
 0x38d   : > { %v1811_v58 = vadd.f32 %v1810_v54, %v1780_v35  ;;  %v1740_v23 = vadd.f32 %v1739_v18, %v8701_v22  ;;  %v1781_v24 = vmul.f32 %v8701_v22, %v8701_v22 }
 0x38f   : > { %v1741_v28 = vadd.f32 %v1740_v23, %v8695_v20  ;;  %v1812_v29 = vadd.f32 %v1811_v58, %v1781_v24  ;;  %v6484_v31 = vpop.f32.mrb[12].mxu0 }
 0x390   : > { %v1653_v36 = vpop.f32.mrb[13].mxu0  ;;  %v8719_v44 = vadd.f32 %v6484_v31, %v8641_v61 }
 0x391   : > { %v1813_v42 = vadd.f32 %v1812_v29, %v1782_v25  ;;  %v8715_v40 = vadd.f32 %v8641_v61, %v1653_v36  ;;  %v1742_v50 = vadd.f32 %v1741_v28, %v8704_v26  ;;  %v6485_v51 = vpop.f32.mrb[14].mxu0 }
 0x392   : > { %v1656_v46 = vpop.f32.mrb[15].mxu0  ;;  %v8728_v57 = vadd.f32 %v6485_v51, %v8641_v61  ;;  %v1786_v33 = vmul.f32 %v8719_v44, %v8719_v44 }
 0x393   : > { %v1743_v30 = vadd.f32 %v1742_v50, %v8715_v40  ;;  %v1784_v47 = vmul.f32 %v8715_v40, %v8715_v40  ;;  %v1814_v32 = vadd.f32 %v1813_v42, %v1783_v39  ;;  %v8725_v52 = vadd.f32 %v8641_v61, %v1656_v46 }
 0x394   : > { %v1787_v41 = vmul.f32 %v8728_v57, %v8728_v57 }
 0x395   : > { %v1815_v56 = vadd.f32 %v1814_v32, %v1784_v47  ;;  %v1744_v59 = vadd.f32 %v1743_v30, %v8725_v52  ;;  %v1785_v60 = vmul.f32 %v8725_v52, %v8725_v52 }
 0x397   : > { %v1745_v34 = vadd.f32 %v1744_v59, %v8719_v44  ;;  %v1816_v38 = vadd.f32 %v1815_v56, %v1785_v60  ;;  %v6488_v63 = vpop.f32.mrb[16].mxu0 }
 0x398   : > { %v1669_v62 = vpop.f32.mrb[17].mxu0  ;;  %v8743_v5 = vadd.f32 %v6488_v63, %v8641_v61 }
 0x399   : > { %v1817_v1 = vadd.f32 %v1816_v38, %v1786_v33  ;;  %v8739_v55 = vadd.f32 %v8641_v61, %v1669_v62  ;;  %v1746_v0 = vadd.f32 %v1745_v34, %v8728_v57  ;;  %v6489_v3 = vpop.f32.mrb[18].mxu0 }
 0x39a   : > { %v1672_v10 = vpop.f32.mrb[19].mxu0  ;;  %v8752_v12 = vadd.f32 %v6489_v3, %v8641_v61  ;;  %v1790_v17 = vmul.f32 %v8743_v5, %v8743_v5 }
 0x39b   : > { %v1747_v45 = vadd.f32 %v1746_v0, %v8739_v55  ;;  %v1788_v53 = vmul.f32 %v8739_v55, %v8739_v55  ;;  %v1818_v7 = vadd.f32 %v1817_v1, %v1787_v41  ;;  %v8749_v8 = vadd.f32 %v8641_v61, %v1672_v10 }
 0x39c   : > { %v1791_v18 = vmul.f32 %v8752_v12, %v8752_v12 }
 0x39d   : > { %v1819_v9 = vadd.f32 %v1818_v7, %v1788_v53  ;;  %v1748_v13 = vadd.f32 %v1747_v45, %v8749_v8  ;;  %v1789_v15 = vmul.f32 %v8749_v8, %v8749_v8 }
 0x39f   : > { %v1749_v19 = vadd.f32 %v1748_v13, %v8743_v5  ;;  %v1820_v14 = vadd.f32 %v1819_v9, %v1789_v15  ;;  %v6492_v21 = vpop.f32.mrb[20].mxu0 }
 0x3a0   : > { %v1685_v27 = vpop.f32.mrb[21].mxu0  ;;  %v8767_v24 = vadd.f32 %v6492_v21, %v8641_v61 }
 0x3a1   : > { %v1821_v35 = vadd.f32 %v1820_v14, %v1790_v17  ;;  %v8763_v54 = vadd.f32 %v8641_v61, %v1685_v27  ;;  %v1750_v58 = vadd.f32 %v1749_v19, %v8752_v12  ;;  %v6493_v23 = vpop.f32.mrb[22].mxu0 }
 0x3a2   : > { %v1688_v25 = vpop.f32.mrb[23].mxu0  ;;  %v8776_v42 = vadd.f32 %v6493_v23, %v8641_v61  ;;  %v1794_v46 = vmul.f32 %v8767_v24, %v8767_v24 }
 0x3a3   : > { %v1751_v28 = vadd.f32 %v1750_v58, %v8763_v54  ;;  %v1792_v29 = vmul.f32 %v8763_v54, %v8763_v54  ;;  %v1822_v31 = vadd.f32 %v1821_v35, %v1791_v18  ;;  %v8773_v36 = vadd.f32 %v8641_v61, %v1688_v25 }
 0x3a4   : > { %v1795_v59 = vmul.f32 %v8776_v42, %v8776_v42 }
 0x3a5   : > { %v1823_v39 = vadd.f32 %v1822_v31, %v1792_v29  ;;  %v1752_v50 = vadd.f32 %v1751_v28, %v8773_v36  ;;  %v1793_v51 = vmul.f32 %v8773_v36, %v8773_v36 }
 0x3a7   : > { %v1753_v30 = vadd.f32 %v1752_v50, %v8767_v24  ;;  %v1824_v47 = vadd.f32 %v1823_v39, %v1793_v51  ;;  %v6496_v32 = vpop.f32.mrb[24].mxu0 }
 0x3a8   : > { %v1701_v56 = vpop.f32.mrb[25].mxu0  ;;  %v8791_v63 = vadd.f32 %v6496_v32, %v8641_v61 }
 0x3a9   : > { %v1825_v60 = vadd.f32 %v1824_v47, %v1794_v46  ;;  %v8787_v33 = vadd.f32 %v8641_v61, %v1701_v56  ;;  %v1754_v34 = vadd.f32 %v1753_v30, %v8776_v42  ;;  %v6497_v38 = vpop.f32.mrb[26].mxu0 }
 0x3aa   : > { %v1704_v62 = vpop.f32.mrb[27].mxu0  ;;  %v8800_v45 = vadd.f32 %v6497_v38, %v8641_v61  ;;  %v1798_v9 = vmul.f32 %v8791_v63, %v8791_v63  ;;  %v6913_v38 = vld [vmem:[%s8169_s23] sm:$0xff]  }
 0x3ab   : > { %v1755_v41 = vadd.f32 %v1754_v34, %v8787_v33  ;;  %v1796_v1 = vmul.f32 %v8787_v33, %v8787_v33  ;;  %v1826_v0 = vadd.f32 %v1825_v60, %v1795_v59  ;;  %v8797_v3 = vadd.f32 %v8641_v61, %v1704_v62  ;;  %v6914_v62 = vld [vmem:[%s8169_s23 + $0x8] sm:$0xff]   ;;  %6550 = vmatprep.subr.bf16.mxu0 %v6913_v38 }
 0x3ac   : > { %v1799_v14 = vmul.f32 %v8800_v45, %v8800_v45  ;;  %6551 = vmatpush3.bf16.msra.mxu0 %v6913_v38 }
 0x3ad   : > { %v1827_v10 = vadd.f32 %v1826_v0, %v1796_v1  ;;  %v1756_v53 = vadd.f32 %v1755_v41, %v8797_v3  ;;  %v1797_v7 = vmul.f32 %v8797_v3, %v8797_v3  ;;  %6552 = vmatprep.subr.bf16.mxu0 %v6914_v62  ;;  %v6915_v41 = vld [vmem:[%s8169_s23 + $0x10] sm:$0xff]  }
 0x3af   : > { %v1757_v13 = vadd.f32 %v1756_v53, %v8791_v63  ;;  %v1828_v15 = vadd.f32 %v1827_v10, %v1797_v7  ;;  %v6500_v17 = vpop.f32.mrb[28].mxu0 }
 0x3b0   : > { %v1717_v19 = vpop.f32.mrb[29].mxu0  ;;  %v8815_v58 = vadd.f32 %v6500_v17, %v8641_v61  ;;  %6553 = vmatpush3.bf16.msra.mxu0 %v6914_v62 }
 0x3b1   : > { %v1829_v21 = vadd.f32 %v1828_v15, %v1798_v9  ;;  %v8811_v27 = vadd.f32 %v8641_v61, %v1717_v19  ;;  %v1758_v18 = vadd.f32 %v1757_v13, %v8800_v45  ;;  %v6501_v35 = vpop.f32.mrb[30].mxu0  ;;  %6554 = vmatprep.subr.bf16.mxu0 %v6915_v41 }
 0x3b2   : > { %v1720_v23 = vpop.f32.mrb[31].mxu0  ;;  %v1802_v46 = vmul.f32 %v8815_v58, %v8815_v58  ;;  %v8829_v30 = vadd.f32 %v6501_v35, %v8641_v61  ;;  %v6916_v35 = vld [vmem:[%s8169_s23 + $0x18] sm:$0xff]  }
 0x3b3   : > { %v1759_v25 = vadd.f32 %v1758_v18, %v8811_v27  ;;  %v1800_v28 = vmul.f32 %v8811_v27, %v8811_v27  ;;  %v1830_v29 = vadd.f32 %v1829_v21, %v1799_v14  ;;  %v8821_v31 = vadd.f32 %v8641_v61, %v1720_v23  ;;  %v6917_v23 = vld [vmem:[%s8169_s23 + $0x20] sm:$0xff]  }
 0x3b4   : > { %v1803_v60 = vmul.f32 %v8829_v30, %v8829_v30  ;;  %6555 = vmatpush3.bf16.msra.mxu0 %v6915_v41 }
 0x3b5   : > { %v1831_v39 = vadd.f32 %v1830_v29, %v1800_v28  ;;  %v1801_v50 = vmul.f32 %v8821_v31, %v8821_v31  ;;  %v1760_v51 = vadd.f32 %v1759_v25, %v8821_v31  ;;  %6556 = vmatprep.subr.bf16.mxu0 %v6916_v35  ;;  %v6918_v29 = vld [vmem:[%s8166_s2] sm:$0xff]  }
 0x3b6   : > { %6502 = vmatprep.subr.bf16.mxu1 %v6918_v29 }
 0x3b7   : > { %v1761_v47 = vadd.f32 %v1760_v51, %v8815_v58  ;;  %v1832_v32 = vadd.f32 %v1831_v39, %v1801_v50  ;;  %6503 = vmatpush3.bf16.msra.mxu1 %v6918_v29  ;;  %v6919_v39 = vld [vmem:[%s8166_s2 + $0x8] sm:$0xff]   ;;  %v6921_v50 = vld [vmem:[%s8166_s2 + $0x10] sm:$0xff]   ;;  %v6922_v51 = vld [vmem:[%s8166_s2 + $0x18] sm:$0xff]  }
 0x3b8   : > { %6557 = vmatpush3.bf16.msra.mxu0 %v6916_v35  ;;  %6504 = vmatprep.subr.bf16.mxu1 %v6919_v39 }
 0x3b9   : > { %v1762_v56 = vadd.f32 %v1761_v47, %v8829_v30  ;;  %v1833_v59 = vadd.f32 %v1832_v32, %v1802_v46  ;;  %6558 = vmatprep.subr.bf16.mxu0 %v6917_v23  ;;  %v6920_v46 = vld [vmem:[%s8169_s23 + $0x28] sm:$0xff]   ;;  %v6924_v47 = vld [vmem:[%s8166_s2 + $0x20] sm:$0xff]   ;;  %v6923_v32 = vld [vmem:[%s8169_s23 + $0x30] sm:$0xff]  }
 0x3bb   : > { %1763 = vadd.xlane.f32.xlu1 %v1762_v56  ;;  %v1834_v34 = vadd.f32 %v1833_v59, %v1803_v60  ;;  %6505 = vmatpush3.bf16.msra.mxu1 %v6919_v39  ;;  %v6925_v56 = vld [vmem:[%s8166_s2 + $0x28] sm:$0xff]   ;;  %v6926_v59 = vld [vmem:[%s8169_s23 + $0x38] sm:$0xff]   ;;  %v6927_v60 = vld [vmem:[%s8166_s2 + $0x30] sm:$0xff]  }
 0x3bc   : > { %6559 = vmatpush3.bf16.msra.mxu0 %v6917_v23  ;;  %6506 = vmatprep.subr.bf16.mxu1 %v6921_v50 }
 0x3bd   : > { %6560 = vmatprep.subr.bf16.mxu0 %v6920_v46 }
 0x3bf   : > { %1835 = vadd.xlane.f32.xlu1 %v1834_v34  ;;  %6507 = vmatpush3.bf16.msra.mxu1 %v6921_v50  ;;  %v6928_v34 = vld [vmem:[%s8166_s2 + $0x38] sm:$0xff]   ;;  %v6235_v50 = vld [vmem:[%s12782_s8] ss:$0 sm:$0xff] }
 0x3c0   : > { %6508 = vmatprep.subr.bf16.mxu1 %v6922_v51  ;;  %6561 = vmatpush3.bf16.msra.mxu0 %v6920_v46 }
 0x3c1   : > { %6562 = vmatprep.subr.bf16.mxu0 %v6923_v32 }
 0x3c3   : > { %6509 = vmatpush3.bf16.msra.mxu1 %v6922_v51 }
 0x3c4   : > { %6510 = vmatprep.subr.bf16.mxu1 %v6924_v47  ;;  %6563 = vmatpush3.bf16.msra.mxu0 %v6923_v32 }
 0x3c5   : > { %6564 = vmatprep.subr.bf16.mxu0 %v6926_v59 }
 0x3c7   : > { %6511 = vmatpush3.bf16.msra.mxu1 %v6924_v47 }
 0x3c8   : > { %6512 = vmatprep.subr.bf16.mxu1 %v6925_v56  ;;  %6565 = vmatpush3.bf16.msra.mxu0 %v6926_v59 }
 0x3cb   : > { %6513 = vmatpush3.bf16.msra.mxu1 %v6925_v56 }
 0x3cc   : > { %6514 = vmatprep.subr.bf16.mxu1 %v6927_v60 }
 0x3cf   : > { %6515 = vmatpush3.bf16.msra.mxu1 %v6927_v60 }
 0x3d0   : > { %6516 = vmatprep.subr.bf16.mxu1 %v6928_v34 }
 0x3d3   : > { %6517 = vmatpush3.bf16.msra.mxu1 %v6928_v34 }
 0x448   : > { %v1764_v61 = vpop.xlane.xlu1 %1763 }
 0x449   : > { %v1765_v1 = vrot.slane %v1764_v61, 4 }
 0x44b   : > { %v1766_v0 = vadd.f32 %v1765_v1, %v1764_v61 }
 0x44c   : > { %v1836_v10 = vpop.xlane.xlu1 %1835 }
 0x44d   : > { %v1767_v53 = vrot.slane %v1766_v0, 2  ;;  %v1837_v7 = vrot.slane %v1836_v10, 4 }
 0x44f   : > { %v1838_v9 = vadd.f32 %v1837_v7, %v1836_v10  ;;  %v1768_v13 = vadd.f32 %v1767_v53, %v1766_v0  ;;  %v2289_v10 = vlaneseq }
 0x451   : > { %v1839_v15 = vrot.slane %v1838_v9, 2  ;;  %v1769_v17 = vrot.slane %v1768_v13, 1 }
 0x453   : > { %v1770_v19 = vadd.f32 %v1769_v17, %v1768_v13  ;;  %v1840_v14 = vadd.f32 %v1839_v15, %v1838_v9 }
 0x455   : > { %6748 = vpush %v1770_v19  ;;  %v1841_v21 = vrot.slane %v1840_v14, 1 }
 0x457   : > { %v1842_v18 = vadd.f32 %v1841_v21, %v1840_v14 }
 0x459   : > { %6750 = vpush %v1842_v18 }
 0x486   : > { %s6749_s24 = spop %6748 }
 0x487   : > { %s8840_s28 = smul.f32 0.00012207031, %s6749_s24 }
 0x489   : > { %s1850_s17 = smul.f32 %s8840_s28, %s8840_s28  ;;  %v8857_v38 = vstv %s8840_s28 }
 0x48a   : > { %s6751_s19 = spop %6750  ;;  %v1854_v62 = vsub.f32 %v8644_v37, %v8857_v38  ;;  %v1855_v41 = vsub.f32 %v8650_v4, %v8857_v38  ;;  %v1856_v61 = vsub.f32 %v8647_v43, %v8857_v38  ;;  %v1857_v1 = vsub.f32 %v8655_v48, %v8857_v38 }
 0x48b   : > { %s1849_s25 = smul.f32 0.00012207031, %s6751_s19  ;;  %v1858_v0 = vsub.f32 %v8667_v2, %v8857_v38  ;;  %v1859_v53 = vsub.f32 %v8677_v11, %v8857_v38  ;;  %v1860_v7 = vsub.f32 %v8671_v6, %v8857_v38  ;;  %v1861_v37 = vsub.f32 %v8680_v49, %v8857_v38 }
 0x48c   : > { %v1862_v4 = vsub.f32 %v8691_v16, %v8857_v38  ;;  %v1863_v43 = vsub.f32 %v8701_v22, %v8857_v38  ;;  %v1864_v48 = vsub.f32 %v8695_v20, %v8857_v38  ;;  %v1865_v2 = vsub.f32 %v8704_v26, %v8857_v38 }
 0x48d   : > { %s1851_s5 = ssub.f32 %s1849_s25, %s1850_s17  ;;  %v1866_v11 = vsub.f32 %v8715_v40, %v8857_v38  ;;  %v1867_v6 = vsub.f32 %v8725_v52, %v8857_v38  ;;  %v1868_v49 = vsub.f32 %v8719_v44, %v8857_v38  ;;  %v1869_v16 = vsub.f32 %v8728_v57, %v8857_v38 }
 0x48e   : > { %v1870_v22 = vsub.f32 %v8739_v55, %v8857_v38  ;;  %v1871_v20 = vsub.f32 %v8749_v8, %v8857_v38  ;;  %v1872_v26 = vsub.f32 %v8743_v5, %v8857_v38  ;;  %v1873_v40 = vsub.f32 %v8752_v12, %v8857_v38 }
 0x48f   : > { %s1852_s15 = smax.f32 %s7608_s6, %s1851_s5  ;;  %v8899_v52 = vshrl.u32 %v2289_v10, 7  ;;  %v1874_v44 = vsub.f32 %v8763_v54, %v8857_v38  ;;  %v1875_v57 = vsub.f32 %v8773_v36, %v8857_v38  ;;  %v1876_v55 = vsub.f32 %v8767_v24, %v8857_v38 }
 0x490   : > { %s1886_s0 = sadd.f32 1e-05, %s1852_s15  ;;  %v1877_v8 = vsub.f32 %v8776_v42, %v8857_v38  ;;  %v1878_v5 = vsub.f32 %v8787_v33, %v8857_v38  ;;  %v1879_v12 = vsub.f32 %v8797_v3, %v8857_v38  ;;  %v1880_v13 = vsub.f32 %v8791_v63, %v8857_v38 }
 0x491   : > { %12778 = vst [vmem:[#allocation43_spill] sm:$0xff] %v8899_v52  ;;  %v1881_v54 = vsub.f32 %v8800_v45, %v8857_v38  ;;  %v1882_v36 = vsub.f32 %v8811_v27, %v8857_v38  ;;  %v1883_v24 = vsub.f32 %v8821_v31, %v8857_v38  ;;  %v1884_v42 = vsub.f32 %v8815_v58, %v8857_v38 }
 0x492   : > { %v1887_v25 = vstv %s1886_s0  ;;  %v1885_v33 = vsub.f32 %v8829_v30, %v8857_v38  ;;  %v8925_v3 = vand.u32 127, %v2289_v10  ;;  %v8928_v63 = vadd.s32 8, %v8899_v52 }
 0x493   : > { %6955 = vrsqrt.f32 %v1887_v25 }
 0x494   : > { %12779 = vst [vmem:[#allocation44_spill] sm:$0xff] %v8925_v3  ;;  %12780 = vst [vmem:[#allocation45_spill] sm:$0xff] %v8928_v63 }
 0x49d   : > { %v6956_v28 = vpop.eup %6955 }
 0x49e   : > { %6752 = vpush %v6956_v28 }
 0x4cf   : > { %s6753_s2 = spop %6752 }
 0x4d0   : > { %v1890_v9 = vstv %s6753_s2 }
 0x4d1   : > { %v1891_v15 = vmul.f32 %v1890_v9, %v1854_v62  ;;  %v1892_v17 = vmul.f32 %v1890_v9, %v1855_v41  ;;  %v1893_v45 = vmul.f32 %v1890_v9, %v1856_v61  ;;  %v1909_v19 = vmul.f32 %v1890_v9, %v1872_v26 }
 0x4d2   : > { %v1910_v27 = vmul.f32 %v1890_v9, %v1873_v40  ;;  %v1911_v14 = vmul.f32 %v1890_v9, %v1874_v44  ;;  %v1912_v21 = vmul.f32 %v1890_v9, %v1875_v57  ;;  %v1913_v31 = vmul.f32 %v1890_v9, %v1876_v55 }
 0x4d3   : > { %v1914_v18 = vmul.f32 %v1890_v9, %v1877_v8  ;;  %v1915_v35 = vmul.f32 %v1890_v9, %v1878_v5  ;;  %v1916_v58 = vmul.f32 %v1890_v9, %v1879_v12  ;;  %v1917_v23 = vmul.f32 %v1890_v9, %v1880_v13 }
 0x4d4   : > { %v1918_v25 = vmul.f32 %v1890_v9, %v1881_v54  ;;  %v1894_v30 = vmul.f32 %v1890_v9, %v1857_v1  ;;  %v1919_v28 = vmul.f32 %v1890_v9, %v1882_v36  ;;  %v1920_v29 = vmul.f32 %v1890_v9, %v1883_v24 }
 0x4d5   : > { %v1921_v39 = vmul.f32 %v1890_v9, %v1884_v42  ;;  %v1895_v51 = vmul.f32 %v1890_v9, %v1858_v0  ;;  %v1896_v46 = vmul.f32 %v1890_v9, %v1859_v53  ;;  %v1897_v47 = vmul.f32 %v1890_v9, %v1860_v7 }
 0x4d6   : > { %v1898_v32 = vmul.f32 %v1890_v9, %v1861_v37  ;;  %v1899_v56 = vmul.f32 %v1890_v9, %v1862_v4  ;;  %v1900_v59 = vmul.f32 %v1890_v9, %v1863_v43  ;;  %v1901_v60 = vmul.f32 %v1890_v9, %v1864_v48 }
 0x4d7   : > { %v1902_v34 = vmul.f32 %v1890_v9, %v1865_v2  ;;  %v1903_v38 = vmul.f32 %v1890_v9, %v1866_v11  ;;  %v1904_v62 = vmul.f32 %v1890_v9, %v1867_v6  ;;  %v1905_v41 = vmul.f32 %v1890_v9, %v1868_v49 }
 0x4d8   : > { %v1906_v61 = vmul.f32 %v1890_v9, %v1869_v16  ;;  %v1907_v1 = vmul.f32 %v1890_v9, %v1870_v22  ;;  %v1908_v10 = vmul.f32 %v1890_v9, %v1871_v20  ;;  %v1922_v26 = vmul.f32 %v1890_v9, %v1885_v33  ;;  %v6236_v20 = vld [vmem:[%s12784_s11] ss:$0 sm:$0xff] }
 0x4d9   : > { %v1930_v40 = vmul.f32 %v6235_v50, %v1891_v15  ;;  %v1931_v44 = vmul.f32 %v6235_v50, %v1892_v17  ;;  %v1932_v57 = vmul.f32 %v6235_v50, %v1893_v45  ;;  %v1948_v55 = vmul.f32 %v6235_v50, %v1909_v19 }
 0x4da   : > { %v1949_v0 = vmul.f32 %v6235_v50, %v1910_v27  ;;  %v1950_v53 = vmul.f32 %v6235_v50, %v1911_v14  ;;  %v1951_v7 = vmul.f32 %v6235_v50, %v1912_v21  ;;  %v1952_v37 = vmul.f32 %v6235_v50, %v1913_v31 }
 0x4db   : > { %v1953_v4 = vmul.f32 %v6235_v50, %v1914_v18  ;;  %v1954_v43 = vmul.f32 %v6235_v50, %v1915_v35  ;;  %v1955_v48 = vmul.f32 %v6235_v50, %v1916_v58  ;;  %v1956_v2 = vmul.f32 %v6235_v50, %v1917_v23 }
 0x4dc   : > { %v1957_v11 = vmul.f32 %v6235_v50, %v1918_v25  ;;  %v1933_v6 = vmul.f32 %v6235_v50, %v1894_v30  ;;  %v1958_v49 = vmul.f32 %v6235_v50, %v1919_v28  ;;  %v1959_v16 = vmul.f32 %v6235_v50, %v1920_v29 }
 0x4dd   : > { %v1960_v22 = vmul.f32 %v6235_v50, %v1921_v39  ;;  %v1934_v9 = vmul.f32 %v6235_v50, %v1895_v51  ;;  %v1935_v8 = vmul.f32 %v6235_v50, %v1896_v46  ;;  %v1936_v5 = vmul.f32 %v6235_v50, %v1897_v47 }
 0x4de   : > { %v1937_v12 = vmul.f32 %v6235_v50, %v1898_v32  ;;  %v1938_v13 = vmul.f32 %v6235_v50, %v1899_v56  ;;  %v1939_v54 = vmul.f32 %v6235_v50, %v1900_v59  ;;  %v1940_v36 = vmul.f32 %v6235_v50, %v1901_v60 }
 0x4df   : > { %v1941_v24 = vmul.f32 %v6235_v50, %v1902_v34  ;;  %v1942_v42 = vmul.f32 %v6235_v50, %v1903_v38  ;;  %v1943_v33 = vmul.f32 %v6235_v50, %v1904_v62  ;;  %v1944_v15 = vmul.f32 %v6235_v50, %v1905_v41 }
 0x4e0   : > { %v1945_v17 = vmul.f32 %v6235_v50, %v1906_v61  ;;  %v1946_v45 = vmul.f32 %v6235_v50, %v1907_v1  ;;  %v1947_v19 = vmul.f32 %v6235_v50, %v1908_v10  ;;  %v1961_v27 = vmul.f32 %v6235_v50, %v1922_v26 }
 0x4e1   : > { %v8940_v14 = vadd.f32 %v6236_v20, %v1930_v40  ;;  %v8942_v21 = vadd.f32 %v6236_v20, %v1931_v44  ;;  %v8944_v31 = vadd.f32 %v6236_v20, %v1932_v57  ;;  %v8946_v18 = vadd.f32 %v6236_v20, %v1948_v55 }
 0x4e2   : > { %v8948_v35 = vadd.f32 %v6236_v20, %v1949_v0  ;;  %v8950_v58 = vadd.f32 %v6236_v20, %v1950_v53  ;;  %v8952_v23 = vadd.f32 %v6236_v20, %v1951_v7  ;;  %v8954_v25 = vadd.f32 %v6236_v20, %v1952_v37 }
 0x4e3   : > { %12785 = vst [vmem:[#allocation46_spill] sm:$0xff] %v8946_v18  ;;  %v8956_v30 = vadd.f32 %v6236_v20, %v1953_v4  ;;  %v8958_v28 = vadd.f32 %v6236_v20, %v1954_v43  ;;  %v8960_v29 = vadd.f32 %v6236_v20, %v1955_v48  ;;  %v8962_v39 = vadd.f32 %v6236_v20, %v1956_v2 }
 0x4e4   : > { %12786 = vst [vmem:[#allocation47_spill] sm:$0xff] %v8948_v35  ;;  %12787 = vst [vmem:[#allocation48_spill] sm:$0xff] %v8950_v58  ;;  %v8964_v50 = vadd.f32 %v6236_v20, %v1957_v11  ;;  %v8966_v51 = vadd.f32 %v6236_v20, %v1933_v6  ;;  %v8968_v46 = vadd.f32 %v6236_v20, %v1958_v49 }
 0x4e5   : > { %12788 = vst [vmem:[#allocation49_spill] sm:$0xff] %v8952_v23  ;;  %12789 = vst [vmem:[#allocation50_spill] sm:$0xff] %v8954_v25  ;;  %v8970_v47 = vadd.f32 %v6236_v20, %v1959_v16  ;;  %v8972_v32 = vadd.f32 %v6236_v20, %v1960_v22  ;;  %v8974_v56 = vadd.f32 %v6236_v20, %v1934_v9 }
 0x4e6   : > { %12790 = vst [vmem:[#allocation51_spill] sm:$0xff] %v8956_v30  ;;  %12791 = vst [vmem:[#allocation52_spill] sm:$0xff] %v8958_v28  ;;  %v8976_v59 = vadd.f32 %v6236_v20, %v1935_v8  ;;  %v8978_v60 = vadd.f32 %v6236_v20, %v1936_v5  ;;  %v8980_v34 = vadd.f32 %v6236_v20, %v1937_v12 }
 0x4e7   : > { %12792 = vst [vmem:[#allocation53_spill] sm:$0xff] %v8960_v29  ;;  %12793 = vst [vmem:[#allocation54_spill] sm:$0xff] %v8962_v39  ;;  %v8982_v38 = vadd.f32 %v6236_v20, %v1938_v13  ;;  %v8984_v62 = vadd.f32 %v6236_v20, %v1939_v54  ;;  %v8986_v41 = vadd.f32 %v6236_v20, %v1940_v36 }
 0x4e8   : > { %12794 = vst [vmem:[#allocation55_spill] sm:$0xff] %v8964_v50  ;;  %12795 = vst [vmem:[#allocation56_spill] sm:$0xff] %v8968_v46  ;;  %v8988_v61 = vadd.f32 %v6236_v20, %v1941_v24  ;;  %v8990_v1 = vadd.f32 %v6236_v20, %v1942_v42  ;;  %v8992_v10 = vadd.f32 %v6236_v20, %v1943_v33 }
 0x4e9   : > { %12796 = vst [vmem:[#allocation57_spill] sm:$0xff] %v8970_v47  ;;  %12797 = vst [vmem:[#allocation58_spill] sm:$0xff] %v8972_v32  ;;  %v8994_v26 = vadd.f32 %v6236_v20, %v1944_v15  ;;  %v8996_v40 = vadd.f32 %v6236_v20, %v1945_v17  ;;  %v8998_v44 = vadd.f32 %v6236_v20, %v1946_v45 }
 0x4ea   : > { %12798 = vst [vmem:[#allocation59_spill] sm:$0xff] %v8980_v34  ;;  %12799 = vst [vmem:[#allocation60_spill] sm:$0xff] %v8982_v38  ;;  %v9000_v57 = vadd.f32 %v6236_v20, %v1947_v19  ;;  %v9002_v55 = vadd.f32 %v6236_v20, %v1961_v27  ;;  %v2001_v0 = vmul.f32 %v8940_v14, %v8940_v14 }
 0x4eb   : > { %12800 = vst [vmem:[#allocation61_spill] sm:$0xff] %v8984_v62  ;;  %12801 = vst [vmem:[#allocation62_spill] sm:$0xff] %v8986_v41  ;;  %v2002_v53 = vmul.f32 %v8942_v21, %v8942_v21  ;;  %v2003_v7 = vmul.f32 %v8944_v31, %v8944_v31  ;;  %v2004_v37 = vmul.f32 %v8966_v51, %v8966_v51 }
 0x4ec   : > { %12802 = vst [vmem:[#allocation63_spill] sm:$0xff] %v8988_v61  ;;  %12803 = vst [vmem:[#allocation64_spill] sm:$0xff] %v8990_v1  ;;  %v2005_v4 = vmul.f32 %v8974_v56, %v8974_v56  ;;  %v2006_v43 = vmul.f32 %v8976_v59, %v8976_v59  ;;  %v2007_v48 = vmul.f32 %v8978_v60, %v8978_v60 }
 0x4ed   : > { %12804 = vst [vmem:[#allocation65_spill] sm:$0xff] %v8992_v10  ;;  %12805 = vst [vmem:[#allocation66_spill] sm:$0xff] %v8994_v26  ;;  %v2008_v2 = vmul.f32 %v8980_v34, %v8980_v34  ;;  %v2009_v11 = vmul.f32 %v8982_v38, %v8982_v38  ;;  %v2010_v6 = vmul.f32 %v8984_v62, %v8984_v62 }
 0x4ee   : > { %12806 = vst [vmem:[#allocation67_spill] sm:$0xff] %v8996_v40  ;;  %12807 = vst [vmem:[#allocation68_spill] sm:$0xff] %v8998_v44  ;;  %v2011_v49 = vmul.f32 %v8986_v41, %v8986_v41  ;;  %v2012_v16 = vmul.f32 %v8988_v61, %v8988_v61  ;;  %v2013_v22 = vmul.f32 %v8990_v1, %v8990_v1 }
 0x4ef   : > { %12808 = vst [vmem:[#allocation69_spill] sm:$0xff] %v9000_v57  ;;  %12809 = vst [vmem:[#allocation70_spill] sm:$0xff] %v9002_v55  ;;  %v2014_v20 = vmul.f32 %v8992_v10, %v8992_v10  ;;  %v2015_v9 = vmul.f32 %v8994_v26, %v8994_v26  ;;  %v2016_v8 = vmul.f32 %v8996_v40, %v8996_v40 }
 0x4f0   : > { %v2017_v5 = vmul.f32 %v8998_v44, %v8998_v44  ;;  %v2018_v12 = vmul.f32 %v9000_v57, %v9000_v57  ;;  %v2019_v13 = vmul.f32 %v8946_v18, %v8946_v18  ;;  %v2020_v54 = vmul.f32 %v8948_v35, %v8948_v35 }
 0x4f1   : > { %v2021_v36 = vmul.f32 %v8950_v58, %v8950_v58  ;;  %v2022_v24 = vmul.f32 %v8952_v23, %v8952_v23  ;;  %v2023_v42 = vmul.f32 %v8954_v25, %v8954_v25  ;;  %v2024_v33 = vmul.f32 %v8956_v30, %v8956_v30 }
 0x4f2   : > { %v2025_v15 = vmul.f32 %v8958_v28, %v8958_v28  ;;  %v2026_v17 = vmul.f32 %v8960_v29, %v8960_v29  ;;  %v2027_v45 = vmul.f32 %v8962_v39, %v8962_v39  ;;  %v2028_v19 = vmul.f32 %v8964_v50, %v8964_v50 }
 0x4f3   : > { %v2029_v27 = vmul.f32 %v8968_v46, %v8968_v46  ;;  %v2030_v63 = vmul.f32 %v8970_v47, %v8970_v47  ;;  %v2031_v52 = vmul.f32 %v8972_v32, %v8972_v32  ;;  %v2032_v3 = vmul.f32 %v9002_v55, %v9002_v55 }
 0x4f4   : > { %v2033_v29 = vmul.f32 %v2001_v0, %v8940_v14  ;;  %v2034_v28 = vmul.f32 %v2002_v53, %v8942_v21  ;;  %v2035_v39 = vmul.f32 %v2003_v7, %v8944_v31  ;;  %v2036_v50 = vmul.f32 %v2004_v37, %v8966_v51 }
 0x4f5   : > { %v2037_v30 = vmul.f32 %v2005_v4, %v8974_v56  ;;  %v2038_v46 = vmul.f32 %v2006_v43, %v8976_v59  ;;  %v2039_v47 = vmul.f32 %v2007_v48, %v8978_v60  ;;  %v2040_v25 = vmul.f32 %v2008_v2, %v8980_v34 }
 0x4f6   : > { %v2041_v32 = vmul.f32 %v2009_v11, %v8982_v38  ;;  %v2042_v55 = vmul.f32 %v2010_v6, %v8984_v62  ;;  %v2043_v0 = vmul.f32 %v2011_v49, %v8986_v41  ;;  %v2044_v53 = vmul.f32 %v2012_v16, %v8988_v61  ;;  %v12810_v61 = vld [vmem:[#allocation50_spill] sm:$0xff] }
 0x4f7   : > { %v2045_v7 = vmul.f32 %v2013_v22, %v8990_v1  ;;  %v2046_v37 = vmul.f32 %v2014_v20, %v8992_v10  ;;  %v2047_v4 = vmul.f32 %v2015_v9, %v8994_v26  ;;  %v2048_v43 = vmul.f32 %v2016_v8, %v8996_v40  ;;  %v12811_v1 = vld [vmem:[#allocation51_spill] sm:$0xff]  ;;  %v12812_v10 = vld [vmem:[#allocation52_spill] sm:$0xff]  ;;  %v12813_v26 = vld [vmem:[#allocation53_spill] sm:$0xff] }
 0x4f8   : > { %v2049_v48 = vmul.f32 %v2017_v5, %v8998_v44  ;;  %v2050_v2 = vmul.f32 %v2018_v12, %v9000_v57  ;;  %v2051_v11 = vmul.f32 %v2019_v13, %v8946_v18  ;;  %v2052_v6 = vmul.f32 %v2020_v54, %v8948_v35  ;;  %v12814_v40 = vld [vmem:[#allocation54_spill] sm:$0xff]  ;;  %v12815_v44 = vld [vmem:[#allocation55_spill] sm:$0xff]  ;;  %v12816_v13 = vld [vmem:[#allocation56_spill] sm:$0xff] }
 0x4f9   : > { %v2053_v49 = vmul.f32 %v2021_v36, %v8950_v58  ;;  %v2054_v16 = vmul.f32 %v2022_v24, %v8952_v23  ;;  %v2055_v22 = vmul.f32 %v2023_v42, %v12810_v61  ;;  %v2056_v20 = vmul.f32 %v2024_v33, %v12811_v1  ;;  %v12817_v54 = vld [vmem:[#allocation57_spill] sm:$0xff]  ;;  %v12818_v24 = vld [vmem:[#allocation58_spill] sm:$0xff] }
 0x4fa   : > { %v2057_v9 = vmul.f32 %v2025_v15, %v12812_v10  ;;  %v2058_v8 = vmul.f32 %v2026_v17, %v12813_v26  ;;  %v2059_v5 = vmul.f32 %v2027_v45, %v12814_v40  ;;  %v2060_v12 = vmul.f32 %v2028_v19, %v12815_v44  ;;  %v12819_v1 = vld [vmem:[#allocation70_spill] sm:$0xff] }
 0x4fb   : > { %v2065_v57 = vmul.f32 0.044715, %v2033_v29  ;;  %v2061_v18 = vmul.f32 %v2029_v27, %v12816_v13  ;;  %v2062_v35 = vmul.f32 %v2030_v63, %v12817_v54  ;;  %v2066_v36 = vmul.f32 0.044715, %v2034_v28 }
 0x4fc   : > { %v2067_v58 = vmul.f32 0.044715, %v2035_v39  ;;  %v2063_v23 = vmul.f32 %v2031_v52, %v12818_v24  ;;  %v2068_v42 = vmul.f32 0.044715, %v2036_v50  ;;  %v2069_v61 = vmul.f32 0.044715, %v2037_v30 }
 0x4fd   : > { %v2070_v33 = vmul.f32 0.044715, %v2038_v46  ;;  %v2064_v15 = vmul.f32 %v2032_v3, %v12819_v1  ;;  %v2071_v10 = vmul.f32 0.044715, %v2039_v47  ;;  %v2072_v17 = vmul.f32 0.044715, %v2040_v25 }
 0x4fe   : > { %v2073_v26 = vmul.f32 0.044715, %v2041_v32  ;;  %v2074_v45 = vmul.f32 0.044715, %v2042_v55  ;;  %v2075_v40 = vmul.f32 0.044715, %v2043_v0  ;;  %v2097_v29 = vadd.f32 %v2065_v57, %v8940_v14 }
 0x4ff   : > { %v2076_v19 = vmul.f32 0.044715, %v2044_v53  ;;  %v2077_v27 = vmul.f32 0.044715, %v2045_v7  ;;  %v2078_v13 = vmul.f32 0.044715, %v2046_v37  ;;  %v2098_v28 = vadd.f32 %v2066_v36, %v8942_v21 }
 0x500   : > { %v2079_v63 = vmul.f32 0.044715, %v2047_v4  ;;  %v2080_v39 = vmul.f32 0.044715, %v2048_v43  ;;  %v2081_v52 = vmul.f32 0.044715, %v2049_v48  ;;  %v2099_v30 = vadd.f32 %v2067_v58, %v8944_v31 }
 0x501   : > { %v2082_v50 = vmul.f32 0.044715, %v2050_v2  ;;  %v2083_v46 = vmul.f32 0.044715, %v2051_v11  ;;  %v2084_v3 = vmul.f32 0.044715, %v2052_v6  ;;  %v2100_v25 = vadd.f32 %v2068_v42, %v8966_v51 }
 0x502   : > { %v2085_v47 = vmul.f32 0.044715, %v2053_v49  ;;  %v2086_v32 = vmul.f32 0.044715, %v2054_v16  ;;  %v2087_v55 = vmul.f32 0.044715, %v2055_v22  ;;  %v2101_v57 = vadd.f32 %v2069_v61, %v8974_v56 }
 0x503   : > { %v2088_v0 = vmul.f32 0.044715, %v2056_v20  ;;  %v2089_v53 = vmul.f32 0.044715, %v2057_v9  ;;  %v2090_v7 = vmul.f32 0.044715, %v2058_v8  ;;  %v2102_v4 = vadd.f32 %v2070_v33, %v8976_v59 }
 0x504   : > { %v2091_v37 = vmul.f32 0.044715, %v2059_v5  ;;  %v2092_v43 = vmul.f32 0.044715, %v2060_v12  ;;  %v2093_v48 = vmul.f32 0.044715, %v2061_v18  ;;  %v2103_v58 = vadd.f32 %v2071_v10, %v8978_v60 }
 0x505   : > { %v2094_v2 = vmul.f32 0.044715, %v2062_v35  ;;  %v2095_v11 = vmul.f32 0.044715, %v2063_v23  ;;  %v2096_v6 = vmul.f32 0.044715, %v2064_v15  ;;  %v2104_v49 = vadd.f32 %v2072_v17, %v8980_v34 }
 0x506   : > { %v2105_v16 = vadd.f32 %v2073_v26, %v8982_v38  ;;  %v2106_v22 = vadd.f32 %v2074_v45, %v8984_v62  ;;  %v2107_v61 = vadd.f32 %v2075_v40, %v8986_v41  ;;  %v12820_v20 = vld [vmem:[#allocation63_spill] sm:$0xff]  ;;  %v12821_v8 = vld [vmem:[#allocation64_spill] sm:$0xff]  ;;  %v12822_v36 = vld [vmem:[#allocation65_spill] sm:$0xff]  ;;  %v2129_v38 = vmul.f32 0.7978846, %v2097_v29 }
 0x507   : > { %v2108_v9 = vadd.f32 %v2076_v19, %v12820_v20  ;;  %v2109_v5 = vadd.f32 %v2077_v27, %v12821_v8  ;;  %v2110_v12 = vadd.f32 %v2078_v13, %v12822_v36  ;;  %v12823_v18 = vld [vmem:[#allocation66_spill] sm:$0xff]  ;;  %v12824_v42 = vld [vmem:[#allocation67_spill] sm:$0xff]  ;;  %v12825_v23 = vld [vmem:[#allocation68_spill] sm:$0xff]  ;;  %v2130_v45 = vmul.f32 0.7978846, %v2098_v28 }
 0x508   : > { %v2111_v35 = vadd.f32 %v2079_v63, %v12823_v18  ;;  %v2112_v10 = vadd.f32 %v2080_v39, %v12824_v42  ;;  %v2113_v33 = vadd.f32 %v2081_v52, %v12825_v23  ;;  %v12826_v15 = vld [vmem:[#allocation69_spill] sm:$0xff]  ;;  %v12827_v34 = vld [vmem:[#allocation46_spill] sm:$0xff]  ;;  %v12828_v62 = vld [vmem:[#allocation47_spill] sm:$0xff]  ;;  %v2131_v20 = vmul.f32 0.7978846, %v2099_v30 }
 0x509   : > { %v2114_v17 = vadd.f32 %v2082_v50, %v12826_v15  ;;  %v2115_v26 = vadd.f32 %v2083_v46, %v12827_v34  ;;  %v2116_v40 = vadd.f32 %v2084_v3, %v12828_v62  ;;  %v12829_v41 = vld [vmem:[#allocation48_spill] sm:$0xff]  ;;  %v2132_v27 = vmul.f32 0.7978846, %v2100_v25  ;;  %v12830_v8 = vld [vmem:[#allocation49_spill] sm:$0xff]  ;;  %v12831_v36 = vld [vmem:[#allocation50_spill] sm:$0xff] }
 0x50a   : > { %v2117_v19 = vadd.f32 %v2085_v47, %v12829_v41  ;;  %v2118_v13 = vadd.f32 %v2086_v32, %v12830_v8  ;;  %v2119_v63 = vadd.f32 %v2087_v55, %v12831_v36  ;;  %v2133_v18 = vmul.f32 0.7978846, %v2101_v57  ;;  %v12832_v39 = vld [vmem:[#allocation51_spill] sm:$0xff]  ;;  %v12833_v23 = vld [vmem:[#allocation52_spill] sm:$0xff]  ;;  %v12834_v29 = vld [vmem:[#allocation53_spill] sm:$0xff] }
 0x50b   : > { %6957 = vtanh.f32 %v2129_v38  ;;  %v2120_v52 = vadd.f32 %v2088_v0, %v12832_v39  ;;  %v2121_v50 = vadd.f32 %v2089_v53, %v12833_v23  ;;  %v2134_v15 = vmul.f32 0.7978846, %v2102_v4  ;;  %v12835_v46 = vld [vmem:[#allocation54_spill] sm:$0xff]  ;;  %v12836_v47 = vld [vmem:[#allocation56_spill] sm:$0xff] }
 0x50c   : > { %6959 = vtanh.f32 %v2130_v45  ;;  %v2122_v28 = vadd.f32 %v2090_v7, %v12834_v29  ;;  %v2123_v3 = vadd.f32 %v2091_v37, %v12835_v46  ;;  %v2135_v62 = vmul.f32 0.7978846, %v2103_v58 }
 0x50d   : > { %6961 = vtanh.f32 %v2131_v20  ;;  %v2124_v30 = vadd.f32 %v2092_v43, %v12815_v44  ;;  %v2125_v25 = vadd.f32 %v2093_v48, %v12836_v47  ;;  %v2136_v32 = vmul.f32 0.7978846, %v2104_v49 }
 0x50e   : > { %6963 = vtanh.f32 %v2132_v27  ;;  %v2126_v38 = vadd.f32 %v2094_v2, %v12817_v54  ;;  %v2127_v55 = vadd.f32 %v2095_v11, %v12818_v24  ;;  %v2137_v0 = vmul.f32 0.7978846, %v2105_v16 }
 0x50f   : > { %6965 = vtanh.f32 %v2133_v18  ;;  %v2128_v57 = vadd.f32 %v2096_v6, %v12819_v1  ;;  %v2138_v53 = vmul.f32 0.7978846, %v2106_v22  ;;  %v2139_v7 = vmul.f32 0.7978846, %v2107_v61 }
 0x510   : > { %6967 = vtanh.f32 %v2134_v15  ;;  %v2140_v37 = vmul.f32 0.7978846, %v2108_v9  ;;  %v2141_v4 = vmul.f32 0.7978846, %v2109_v5  ;;  %v2142_v58 = vmul.f32 0.7978846, %v2110_v12 }
 0x511   : > { %6969 = vtanh.f32 %v2135_v62  ;;  %v2143_v43 = vmul.f32 0.7978846, %v2111_v35  ;;  %v2144_v20 = vmul.f32 0.7978846, %v2112_v10  ;;  %v2145_v48 = vmul.f32 0.7978846, %v2113_v33 }
 0x512   : > { %6971 = vtanh.f32 %v2136_v32  ;;  %v2146_v49 = vmul.f32 0.7978846, %v2114_v17  ;;  %v2147_v45 = vmul.f32 0.7978846, %v2115_v26  ;;  %v2148_v2 = vmul.f32 0.7978846, %v2116_v40 }
 0x513   : > { %6973 = vtanh.f32 %v2137_v0  ;;  %v2149_v11 = vmul.f32 0.7978846, %v2117_v19  ;;  %v2150_v16 = vmul.f32 0.7978846, %v2118_v13  ;;  %v9132_v18 = vmul.f32 0.7978846, %v2119_v63 }
 0x514   : > { %6975 = vtanh.f32 %v2138_v53  ;;  %v9134_v22 = vmul.f32 0.7978846, %v2120_v52  ;;  %v9136_v61 = vmul.f32 0.7978846, %v2121_v50  ;;  %v9138_v9 = vmul.f32 0.7978846, %v2122_v28 }
 0x515   : > { %v6958_v6 = vpop.eup %6957  ;;  %6977 = vtanh.f32 %v2139_v7  ;;  %v9140_v5 = vmul.f32 0.7978846, %v2123_v3  ;;  %v9142_v12 = vmul.f32 0.7978846, %v2124_v30  ;;  %v9144_v33 = vmul.f32 0.7978846, %v2125_v25 }
 0x516   : > { %v6960_v62 = vpop.eup %6959  ;;  %6979 = vtanh.f32 %v2140_v37  ;;  %v2193_v35 = vadd.f32 1.0, %v6958_v6  ;;  %v9146_v15 = vmul.f32 0.7978846, %v2126_v38  ;;  %v9148_v40 = vmul.f32 0.7978846, %v2127_v55 }
 0x517   : > { %v6962_v10 = vpop.eup %6961  ;;  %6981 = vtanh.f32 %v2141_v4  ;;  %v2194_v17 = vadd.f32 1.0, %v6960_v62  ;;  %v9150_v63 = vmul.f32 0.7978846, %v2128_v57 }
 0x518   : > { %v6964_v26 = vpop.eup %6963  ;;  %6983 = vtanh.f32 %v2142_v58  ;;  %v2195_v19 = vadd.f32 1.0, %v6962_v10  ;;  %v2225_v27 = vmul.f32 0.5, %v2193_v35 }
 0x519   : > { %v6966_v13 = vpop.eup %6965  ;;  %6985 = vtanh.f32 %v2143_v43  ;;  %v2196_v52 = vadd.f32 1.0, %v6964_v26  ;;  %v2226_v50 = vmul.f32 0.5, %v2194_v17 }
 0x51a   : > { %v6968_v28 = vpop.eup %6967  ;;  %6987 = vtanh.f32 %v2144_v20  ;;  %v2197_v3 = vadd.f32 1.0, %v6966_v13  ;;  %v2227_v30 = vmul.f32 0.5, %v2195_v19  ;;  %v9153_v25 = vmul.f32 %v2225_v27, %v8940_v14 }
 0x51b   : > { %v6970_v32 = vpop.eup %6969  ;;  %6989 = vtanh.f32 %v2145_v48  ;;  %v2198_v38 = vadd.f32 1.0, %v6968_v28  ;;  %v2228_v55 = vmul.f32 0.5, %v2196_v52  ;;  %v9156_v0 = vmul.f32 %v2226_v50, %v8942_v21  ;;  %v12839_v52 = vld [vmem:[#allocation60_spill] sm:$0xff] }
 0x51c   : > { %v6972_v53 = vpop.eup %6971  ;;  %6991 = vtanh.f32 %v2146_v49  ;;  %v2199_v57 = vadd.f32 1.0, %v6970_v32  ;;  %v2229_v7 = vmul.f32 0.5, %v2197_v3  ;;  %v9159_v37 = vmul.f32 %v2227_v30, %v8944_v31  ;;  %v12840_v3 = vld [vmem:[#allocation61_spill] sm:$0xff] }
 0x51d   : > { %v6974_v4 = vpop.eup %6973  ;;  %6993 = vtanh.f32 %v2147_v45  ;;  %v2200_v58 = vadd.f32 1.0, %v6972_v53  ;;  %v2230_v43 = vmul.f32 0.5, %v2198_v38  ;;  %v9162_v14 = vmul.f32 %v2228_v55, %v8966_v51  ;;  %v12841_v55 = vld [vmem:[#allocation62_spill] sm:$0xff] }
 0x51e   : > { %v6976_v20 = vpop.eup %6975  ;;  %6995 = vtanh.f32 %v2148_v2  ;;  %v2201_v48 = vadd.f32 1.0, %v6974_v4  ;;  %v2231_v6 = vmul.f32 0.5, %v2199_v57  ;;  %v9165_v21 = vmul.f32 %v2229_v7, %v8974_v56  ;;  %v12837_v2 = vld [vmem:[#allocation44_spill] sm:$0xff]  ;;  %v12842_v4 = vld [vmem:[#allocation63_spill] sm:$0xff] }
 0x51f   : > { %v6978_v49 = vpop.eup %6977  ;;  %6997 = vtanh.f32 %v2149_v11  ;;  %v2202_v62 = vadd.f32 1.0, %v6976_v20  ;;  %v2232_v35 = vmul.f32 0.5, %v2200_v58  ;;  %v9168_v31 = vmul.f32 %v2230_v43, %v8976_v59  ;;  %v12838_v11 = vld [vmem:[#allocation59_spill] sm:$0xff] }
 0x520   : > { %v6980_v45 = vpop.eup %6979  ;;  %6999 = vtanh.f32 %v2150_v16  ;;  %v2203_v10 = vadd.f32 1.0, %v6978_v49  ;;  %v2233_v17 = vmul.f32 0.5, %v2201_v48  ;;  %v9171_v51 = vmul.f32 %v2231_v6, %v8978_v60  ;;  %v12843_v48 = vld [vmem:[#allocation64_spill] sm:$0xff] }
 0x521   : > { %vm2296_vm0 = vcmp.lt.s32.totalorder %v12837_v2, 21  ;;  %v6982_v26 = vpop.eup %6981  ;;  %7001 = vtanh.f32 %v9132_v18  ;;  %v2204_v56 = vadd.f32 1.0, %v6980_v45  ;;  %v2234_v19 = vmul.f32 0.5, %v2202_v62  ;;  %v12844_v45 = vld [vmem:[#allocation65_spill] sm:$0xff] }
 0x522   : > { %v9176_v27 = vmul.f32 %v2232_v35, %v12838_v11  ;;  %v6984_v13 = vpop.eup %6983  ;;  %7003 = vtanh.f32 %v9134_v22  ;;  %v2205_v59 = vadd.f32 1.0, %v6982_v26  ;;  %v2235_v16 = vmul.f32 0.5, %v2203_v10  ;;  %v12845_v26 = vld [vmem:[#allocation66_spill] sm:$0xff] }
 0x523   : > { %v9180_v50 = vmul.f32 %v2233_v17, %v12839_v52  ;;  %vm2295_vm1 = vcmp.lt.s32.totalorder %v12837_v2, 14  ;;  %v6986_v60 = vpop.eup %6985  ;;  %7005 = vtanh.f32 %v9136_v61  ;;  %v2206_v28 = vadd.f32 1.0, %v6984_v13 }
 0x524   : > { %v2236_v18 = vmul.f32 0.5, %v2204_v56  ;;  %v9185_v30 = vmul.f32 %v2234_v19, %v12840_v3  ;;  %v6988_v32 = vpop.eup %6987  ;;  %7007 = vtanh.f32 %v9138_v9  ;;  %v2207_v38 = vadd.f32 1.0, %v6986_v60  ;;  %v12846_v60 = vld [vmem:[#allocation68_spill] sm:$0xff] }
 0x525   : > { %v2237_v22 = vmul.f32 0.5, %v2205_v59  ;;  %v9189_v53 = vmul.f32 %v2235_v16, %v12841_v55  ;;  %vm2294_vm2 = vcmp.lt.s32.totalorder %v12837_v2, 7  ;;  %v6990_v57 = vpop.eup %6989  ;;  %7009 = vtanh.f32 %v9140_v5 }
 0x526   : > { %v2208_v7 = vadd.f32 1.0, %v6988_v32  ;;  %v2238_v61 = vmul.f32 0.5, %v2206_v28  ;;  %v9194_v58 = vmul.f32 %v2236_v18, %v12842_v4  ;;  %v6992_v43 = vpop.eup %6991  ;;  %7011 = vtanh.f32 %v9142_v12  ;;  %v12847_v32 = vld [vmem:[#allocation69_spill] sm:$0xff]  ;;  %vm10320_vm12 = vmneg %vm2294_vm2 }
 0x527   : > { %v2209_v20 = vadd.f32 1.0, %v6990_v57  ;;  %v2239_v9 = vmul.f32 0.5, %v2207_v38  ;;  %v9198_v6 = vmul.f32 %v2237_v22, %v12843_v48  ;;  %v6994_v49 = vpop.eup %6993  ;;  %7013 = vtanh.f32 %v9144_v33  ;;  %vm6257_vm13 = vmpackc.low %vm10320_vm12, %vm10320_vm12 }
 0x528   : > { %v2210_v62 = vadd.f32 1.0, %v6992_v43  ;;  %v2240_v35 = vmul.f32 0.5, %v2208_v7  ;;  %v9202_v5 = vmul.f32 %v2238_v61, %v12844_v45  ;;  %vm2297_vm3 = vcmp.lt.s32.totalorder %v12837_v2, 28  ;;  %v6996_v10 = vpop.eup %6995  ;;  %v12848_v43 = vld [vmem:[#allocation47_spill] sm:$0xff] }
 0x529   : > { %7015 = vtanh.f32 %v9146_v15  ;;  %v2211_v17 = vadd.f32 1.0, %v6994_v49  ;;  %v2241_v12 = vmul.f32 0.5, %v2209_v20  ;;  %v9207_v56 = vmul.f32 %v2239_v9, %v12845_v26  ;;  %v6998_v19 = vpop.eup %6997 }
 0x52a   : > { %7017 = vtanh.f32 %v9148_v40  ;;  %v2212_v11 = vadd.f32 1.0, %v6996_v10  ;;  %v2242_v33 = vmul.f32 0.5, %v2210_v62  ;;  %v9211_v13 = vmul.f32 %v2240_v35, %v12824_v42  ;;  %v7000_v59 = vpop.eup %6999 }
 0x52b   : > { %7019 = vtanh.f32 %v9150_v63  ;;  %v2213_v16 = vadd.f32 1.0, %v6998_v19  ;;  %v2243_v52 = vmul.f32 0.5, %v2211_v17  ;;  %v9215_v15 = vmul.f32 %v2241_v12, %v12846_v60  ;;  %v7002_v28 = vpop.eup %7001 }
 0x52c   : > { %v2214_v18 = vadd.f32 1.0, %v7000_v59  ;;  %v2244_v3 = vmul.f32 0.5, %v2212_v11  ;;  %v9218_v38 = vmul.f32 %v2242_v33, %v12847_v32  ;;  %v3470_v40 = vsel %vm2296_vm0, %v9153_v25, 0.0  ;;  %v7004_v42 = vpop.eup %7003 }
 0x52d   : > { %v2215_v22 = vadd.f32 1.0, %v7002_v28  ;;  %v2245_v55 = vmul.f32 0.5, %v2213_v16  ;;  %v9224_v63 = vmul.f32 %v2243_v52, %v12827_v34  ;;  %v3471_v57 = vsel %vm2296_vm0, %v9156_v0, 0.0  ;;  %v7006_v7 = vpop.eup %7005 }
 0x52e   : > { %v2216_v61 = vadd.f32 1.0, %v7004_v42  ;;  %v2246_v4 = vmul.f32 0.5, %v2214_v18  ;;  %v9230_v20 = vmul.f32 %v2244_v3, %v12848_v43  ;;  %v3502_v9 = vsel %vm2295_vm1, %v9159_v37, %v3470_v40  ;;  %v7008_v48 = vpop.eup %7007  ;;  %v12849_v18 = vld [vmem:[#allocation43_spill] sm:$0xff] }
 0x52f   : > { %v2217_v49 = vadd.f32 1.0, %v7006_v7  ;;  %v2247_v62 = vmul.f32 0.5, %v2215_v22  ;;  %v9236_v34 = vmul.f32 %v2245_v55, %v12829_v41  ;;  %v3503_v35 = vsel %vm2295_vm1, %v9162_v14, %v3471_v57  ;;  %v7010_v45 = vpop.eup %7009  ;;  %v12850_v22 = vld [vmem:[#allocation45_spill] sm:$0xff] }
 0x530   : > { %v2218_v10 = vadd.f32 1.0, %v7008_v48  ;;  %v2248_v17 = vmul.f32 0.5, %v2216_v61  ;;  %v9242_v12 = vmul.f32 %v2246_v4, %v12830_v8  ;;  %v3534_v26 = vsel %vm2294_vm2, %v9165_v21, %v3502_v9  ;;  %v7012_v19 = vpop.eup %7011 }
 0x531   : > { %v2219_v11 = vadd.f32 1.0, %v7010_v45  ;;  %v2249_v33 = vmul.f32 0.5, %v2217_v49  ;;  %v9248_v41 = vmul.f32 %v2247_v62, %v12831_v36  ;;  %v3535_v59 = vsel %vm2294_vm2, %v9168_v31, %v3503_v35  ;;  %v7014_v16 = vpop.eup %7013 }
 0x532   : > { %v2220_v52 = vadd.f32 1.0, %v7012_v19  ;;  %v2250_v60 = vmul.f32 0.5, %v2218_v10  ;;  %v9254_v8 = vmul.f32 %v2248_v17, %v12832_v39  ;;  %v3566_v28 = vpack.c.bf16 %v3535_v59, %v3534_v26 }
 0x533   : > { %vm2330_vm4 = vcmp.lt.s32.totalorder %v12849_v18, 6  ;;  %v7016_v3 = vpop.eup %7015  ;;  %v2221_v32 = vadd.f32 1.0, %v7014_v16  ;;  %v2251_v40 = vmul.f32 0.5, %v2219_v11  ;;  %v9258_v42 = vmul.f32 %v2249_v33, %v12833_v23 }
 0x534   : > { %v3440_v36 = vsel %vm2297_vm3, %v9153_v25, 0.0  ;;  %vm2366_vm5 = vcmp.lt.s32.totalorder %v12850_v22, 14  ;;  %vm2437_vm6 = vcmp.lt.s32.totalorder %v12849_v18, 7  ;;  %v7018_v55 = vpop.eup %7017  ;;  %v2222_v39 = vadd.f32 1.0, %v7016_v3  ;;  %6566 = vmatprep.mubr.bf16.mxu0 %v3566_v28 }
 0x535   : > { %v2252_v57 = vmul.f32 0.5, %v2220_v52  ;;  %v9266_v7 = vmul.f32 %v2250_v60, %v12834_v29  ;;  %v3441_v23 = vsel %vm2297_vm3, %v9156_v0, 0.0  ;;  %v7020_v61 = vpop.eup %7019  ;;  %v2223_v4 = vadd.f32 1.0, %v7018_v55 }
 0x536   : > { %v2253_v43 = vmul.f32 0.5, %v2221_v32  ;;  %v9272_v9 = vmul.f32 %v2251_v40, %v12835_v46  ;;  %v3472_v48 = vsel %vm2296_vm0, %v9159_v37, %v3440_v36  ;;  %vm2473_vm7 = vcmp.lt.s32.totalorder %v12850_v22, 15 }
 0x537   : > { %vm2544_vm8 = vcmp.lt.s32.totalorder %v12849_v18, 1  ;;  %v2224_v29 = vadd.f32 1.0, %v7020_v61  ;;  %v2254_v49 = vmul.f32 0.5, %v2222_v39  ;;  %v9280_v62 = vmul.f32 %v2252_v57, %v12815_v44 }
 0x538   : > { %v3473_v35 = vsel %vm2296_vm0, %v9162_v14, %v3441_v23  ;;  %vm2651_vm9 = vcmp.lt.s32.totalorder %v12849_v18, 2  ;;  %v2255_v46 = vmul.f32 0.5, %v2223_v4  ;;  %v9287_v45 = vmul.f32 %v2253_v43, %v12836_v47 }
 0x539   : > { %v3504_v10 = vsel %vm2295_vm1, %v9165_v21, %v3472_v48  ;;  %v3505_v17 = vsel %vm2295_vm1, %v9168_v31, %v3473_v35  ;;  %vm2577_vm10 = vcmp.ge.s32.totalorder %v12849_v18, 1  ;;  %v2256_v44 = vmul.f32 0.5, %v2224_v29 }
 0x53a   : > { %v9297_v26 = vmul.f32 %v2254_v49, %v12817_v54  ;;  %v3536_v19 = vsel %vm2294_vm2, %v9171_v51, %v3504_v10  ;;  %v3537_v47 = vsel %vm2294_vm2, %v9176_v27, %v3505_v17  ;;  %vm2684_vm11 = vcmp.ge.s32.totalorder %v12849_v18, 2 }
 0x53b   : > { %v9307_v11 = vmul.f32 %v2255_v46, %v12818_v24  ;;  %v3567_v33 = vpack.c.bf16 %v3537_v47, %v3536_v19  ;;  %v3442_v54 = vsel %vm2297_vm3, %v9159_v37, %v9153_v25  ;;  %v3443_v59 = vsel %vm2297_vm3, %v9162_v14, %v9156_v0 }
 0x53c   : > { %v9318_v16 = vmul.f32 %v2256_v44, %v12819_v1  ;;  %v3474_v52 = vsel %vm2296_vm0, %v9165_v21, %v3442_v54  ;;  %v3475_v24 = vsel %vm2296_vm0, %v9168_v31, %v3443_v59  ;;  %v2298_v60 = vrot.slane %v9153_v25, 2 }
 0x53d   : > { %6567 = vmatmul.mubr.bf16.vlgmr.msra.gmra.mrb[32].mxu0 %v3567_v33  ;;  %v3506_v28 = vsel %vm2295_vm1, %v9171_v51, %v3474_v52  ;;  %v3507_v1 = vsel %vm2295_vm1, %v9176_v27, %v3475_v24  ;;  %v2299_v3 = vrot.slane %v9156_v0, 2  ;;  %v2300_v32 = vrot.slane %v9159_v37, 2 }
 0x53e   : > { %v3538_v40 = vsel %vm2294_vm2, %v9180_v50, %v3506_v28  ;;  %v3539_v36 = vsel %vm2294_vm2, %v9185_v30, %v3507_v1  ;;  %v2405_v55 = vrot.slane %v9153_v25, 1  ;;  %v2406_v39 = vrot.slane %v9156_v0, 1 }
 0x53f   : > { %v3568_v57 = vpack.c.bf16 %v3539_v36, %v3538_v40  ;;  %v2360_v23 = vsel %vm2330_vm4, %v2299_v3, %v2300_v32  ;;  %v2361_v61 = vsel %vm2330_vm4, %v2298_v60, %v2299_v3  ;;  %v2407_v4 = vrot.slane %v9159_v37, 1 }
 0x540   : > { %v2374_v43 = vsel %vm2366_vm5, %v2360_v23, 0.0  ;;  %v2468_v48 = vsel %vm2437_vm6, %v2405_v55, %v2406_v39  ;;  %v2512_v29 = vrot.slane %v9153_v25, 7  ;;  %v2513_v49 = vrot.slane %v9156_v0, 7 }
 0x541   : > { %6570 = vmatprep.mubr.bf16.mxu0 %v3568_v57  ;;  %v2467_v35 = vsel %vm2437_vm6, %v2406_v39, %v2407_v4  ;;  %v2543_v46 = vrot.slane %v9318_v16, 7  ;;  %v2619_v10 = vrot.slane %v9153_v25, 6  ;;  %v2620_v17 = vrot.slane %v9156_v0, 6 }
 0x542   : > { %v2481_v44 = vsel %vm2473_vm7, %v2467_v35, 0.0  ;;  %v2575_v19 = vsel %vm2544_vm8, %v2512_v29, %v2513_v49  ;;  %v2650_v47 = vrot.slane %v9318_v16, 6  ;;  %v2301_v33 = vrot.slane %v9162_v14, 2 }
 0x543   : > { %v2576_v54 = vsel %vm2544_vm8, %v2543_v46, %v2512_v29  ;;  %v2682_v59 = vsel %vm2651_vm9, %v2619_v10, %v2620_v17  ;;  %v2302_v52 = vrot.slane %v9165_v21, 2  ;;  %v2408_v24 = vrot.slane %v9162_v14, 1 }
 0x544   : > { %v2587_v28 = vsel %vm2577_vm10, %v2576_v54, 0.0  ;;  %v2683_v1 = vsel %vm2651_vm9, %v2650_v47, %v2619_v10  ;;  %v2729_v3 = vsel %vm2297_vm3, %v2575_v19, %v2682_v59  ;;  %v2359_v40 = vsel %vm2330_vm4, %v2300_v32, %v2301_v33 }
 0x545   : > { %v2694_v36 = vsel %vm2684_vm11, %v2683_v1, 0.0  ;;  %v2763_v39 = vsel %vm2296_vm0, %v9156_v0, %v2729_v3  ;;  %v2358_v57 = vsel %vm2330_vm4, %v2301_v33, %v2302_v52  ;;  %v2409_v23 = vrot.slane %v9165_v21, 1 }
 0x546   : > { %v2728_v29 = vsel %vm2297_vm3, %v2587_v28, %v2694_v36  ;;  %v2797_v35 = vsel %vm2295_vm1, %v2481_v44, %v2763_v39  ;;  %v2376_v32 = vsel %vm2366_vm5, %v2358_v57, 0.0  ;;  %v2466_v10 = vsel %vm2437_vm6, %v2407_v4, %v2408_v24 }
 0x547   : > { %v2762_v0 = vsel %vm2296_vm0, %v9153_v25, %v2728_v29  ;;  %v2831_v19 = vsel %vm2294_vm2, %v2374_v43, %v2797_v35  ;;  %v2465_v33 = vsel %vm2437_vm6, %v2408_v24, %v2409_v23  ;;  %v2514_v54 = vrot.slane %v9159_v37, 7 }
 0x548   : > { %v2796_v44 = vsel %vm2295_vm1, %v2468_v48, %v2762_v0  ;;  %v2483_v59 = vsel %vm2473_vm7, %v2465_v33, 0.0  ;;  %v2515_v4 = vrot.slane %v9162_v14, 7  ;;  %v2621_v28 = vrot.slane %v9159_v37, 6 }
 0x549   : > { %v2830_v1 = vsel %vm2294_vm2, %v2361_v61, %v2796_v44  ;;  %v2574_v43 = vsel %vm2544_vm8, %v2513_v49, %v2514_v54  ;;  %v2622_v24 = vrot.slane %v9162_v14, 6  ;;  %v2303_v3 = vrot.slane %v9168_v31, 2 }
 0x54a   : > { %v2862_v36 = vpack.c.bf16 %v2831_v19, %v2830_v1  ;;  %v2573_v48 = vsel %vm2544_vm8, %v2514_v54, %v2515_v4  ;;  %v2589_v39 = vsel %vm2577_vm10, %v2574_v43, 0.0  ;;  %v2681_v57 = vsel %vm2651_vm9, %v2620_v17, %v2621_v28 }
 0x54b   : > { %v2680_v61 = vsel %vm2651_vm9, %v2621_v28, %v2622_v24  ;;  %v2696_v49 = vsel %vm2684_vm11, %v2681_v57, 0.0  ;;  %v2304_v29 = vrot.slane %v9171_v51, 2  ;;  %v2357_v35 = vsel %vm2330_vm4, %v2302_v52, %v2303_v3 }
 0x54c   : > { %6518 = vmatprep.mubr.bf16.mxu1 %v2862_v36  ;;  %v2730_v0 = vsel %vm2297_vm3, %v2589_v39, %v2696_v49  ;;  %v2731_v19 = vsel %vm2297_vm3, %v2573_v48, %v2680_v61  ;;  %v2410_v17 = vrot.slane %v9168_v31, 1  ;;  %v2411_v33 = vrot.slane %v9171_v51, 1 }
 0x54d   : > { %v2764_v54 = vsel %vm2296_vm0, %v9159_v37, %v2730_v0  ;;  %v2765_v44 = vsel %vm2296_vm0, %v9162_v14, %v2731_v19  ;;  %v2356_v52 = vsel %vm2330_vm4, %v2303_v3, %v2304_v29  ;;  %v2516_v28 = vrot.slane %v9165_v21, 7 }
 0x54e   : > { %v2798_v1 = vsel %vm2295_vm1, %v2466_v10, %v2764_v54  ;;  %v2799_v43 = vsel %vm2295_vm1, %v2483_v59, %v2765_v44  ;;  %v2378_v36 = vsel %vm2366_vm5, %v2356_v52, 0.0  ;;  %v2463_v48 = vsel %vm2437_vm6, %v2410_v17, %v2411_v33 }
 0x54f   : > { %v2832_v39 = vsel %vm2294_vm2, %v2359_v40, %v2798_v1  ;;  %v2833_v3 = vsel %vm2294_vm2, %v2376_v32, %v2799_v43  ;;  %v2464_v10 = vsel %vm2437_vm6, %v2409_v23, %v2410_v17  ;;  %v2485_v59 = vsel %vm2473_vm7, %v2463_v48, 0.0 }
 0x550   : > { %v2863_v57 = vpack.c.bf16 %v2833_v3, %v2832_v39  ;;  %v2517_v61 = vrot.slane %v9168_v31, 7  ;;  %v2572_v49 = vsel %vm2544_vm8, %v2515_v4, %v2516_v28  ;;  %v2623_v0 = vrot.slane %v9165_v21, 6 }
 0x551   : > { %v2591_v40 = vsel %vm2577_vm10, %v2572_v49, 0.0  ;;  %v2624_v19 = vrot.slane %v9168_v31, 6  ;;  %v3444_v23 = vsel %vm2297_vm3, %v9165_v21, %v9159_v37  ;;  %v3445_v32 = vsel %vm2297_vm3, %v9168_v31, %v9162_v14 }
 0x552   : > { %6519 = vmatmul.mubr.bf16.vlgmr.msra.gmra.mrb[0].mxu1 %v2863_v57  ;;  %v2571_v4 = vsel %vm2544_vm8, %v2516_v28, %v2517_v61  ;;  %v2679_v17 = vsel %vm2651_vm9, %v2622_v24, %v2623_v0  ;;  %v3476_v54 = vsel %vm2296_vm0, %v9171_v51, %v3444_v23  ;;  %v3477_v37 = vsel %vm2296_vm0, %v9176_v27, %v3445_v32 }
 0x553   : > { %v2678_v44 = vsel %vm2651_vm9, %v2623_v0, %v2624_v19  ;;  %v2698_v14 = vsel %vm2684_vm11, %v2679_v17, 0.0  ;;  %v3508_v52 = vsel %vm2295_vm1, %v9180_v50, %v3476_v54  ;;  %v3509_v24 = vsel %vm2295_vm1, %v9185_v30, %v3477_v37 }
 0x554   : > { %v2732_v28 = vsel %vm2297_vm3, %v2591_v40, %v2698_v14  ;;  %v2733_v1 = vsel %vm2297_vm3, %v2571_v4, %v2678_v44  ;;  %v3540_v43 = vsel %vm2294_vm2, %v9189_v53, %v3508_v52  ;;  %v3541_v48 = vsel %vm2294_vm2, %v9194_v58, %v3509_v24 }
 0x555   : > { %v2766_v39 = vsel %vm2296_vm0, %v9165_v21, %v2732_v28  ;;  %v2767_v3 = vsel %vm2296_vm0, %v9168_v31, %v2733_v1  ;;  %v3569_v57 = vpack.c.bf16 %v3541_v48, %v3540_v43  ;;  %v3446_v49 = vsel %vm2297_vm3, %v9171_v51, %v9165_v21 }
 0x556   : > { %v2800_v0 = vsel %vm2295_vm1, %v2464_v10, %v2766_v39  ;;  %v2801_v40 = vsel %vm2295_vm1, %v2485_v59, %v2767_v3  ;;  %v3447_v23 = vsel %vm2297_vm3, %v9176_v27, %v9168_v31  ;;  %v3478_v32 = vsel %vm2296_vm0, %v9180_v50, %v3446_v49 }
 0x557   : > { %v2834_v4 = vsel %vm2294_vm2, %v2357_v35, %v2800_v0  ;;  %v2835_v21 = vsel %vm2294_vm2, %v2378_v36, %v2801_v40  ;;  %6571 = vmatmul.mubr.bf16.gmra.mrb[36].mxu0 %v3569_v57  ;;  %v3479_v10 = vsel %vm2296_vm0, %v9185_v30, %v3447_v23  ;;  %v3510_v59 = vsel %vm2295_vm1, %v9189_v53, %v3478_v32 }
 0x558   : > { %v2864_v31 = vpack.c.bf16 %v2835_v21, %v2834_v4  ;;  %v3511_v17 = vsel %vm2295_vm1, %v9194_v58, %v3479_v10  ;;  %v3542_v35 = vsel %vm2294_vm2, %v9198_v6, %v3510_v59  ;;  %v2305_v36 = vrot.slane %v9176_v27, 2 }
 0x559   : > { %v3543_v54 = vsel %vm2294_vm2, %v9202_v5, %v3511_v17  ;;  %v2306_v37 = vrot.slane %v9180_v50, 2  ;;  %v2412_v44 = vrot.slane %v9176_v27, 1  ;;  %v2413_v14 = vrot.slane %v9180_v50, 1 }
 0x55a   : > { %6522 = vmatprep.mubr.bf16.mxu1 %v2864_v31  ;;  %v3570_v52 = vpack.c.bf16 %v3543_v54, %v3542_v35  ;;  %v2355_v24 = vsel %vm2330_vm4, %v2304_v29, %v2305_v36  ;;  %v2518_v28 = vrot.slane %v9171_v51, 7  ;;  %v2519_v1 = vrot.slane %v9176_v27, 7 }
 0x55b   : > { %v2354_v43 = vsel %vm2330_vm4, %v2305_v36, %v2306_v37  ;;  %v2461_v48 = vsel %vm2437_vm6, %v2412_v44, %v2413_v14  ;;  %v2462_v39 = vsel %vm2437_vm6, %v2411_v33, %v2412_v44  ;;  %v2625_v3 = vrot.slane %v9171_v51, 6 }
 0x55c   : > { %6574 = vmatprep.mubr.bf16.mxu0 %v3570_v52  ;;  %v2380_v29 = vsel %vm2366_vm5, %v2354_v43, 0.0  ;;  %v2487_v57 = vsel %vm2473_vm7, %v2461_v48, 0.0  ;;  %v2569_v49 = vsel %vm2544_vm8, %v2518_v28, %v2519_v1  ;;  %v2570_v0 = vsel %vm2544_vm8, %v2517_v61, %v2518_v28 }
 0x55d   : > { %v2593_v40 = vsel %vm2577_vm10, %v2570_v0, 0.0  ;;  %v2626_v33 = vrot.slane %v9176_v27, 6  ;;  %v2677_v23 = vsel %vm2651_vm9, %v2624_v19, %v2625_v3  ;;  %v2307_v32 = vrot.slane %v9185_v30, 2 }
 0x55e   : > { %v2700_v4 = vsel %vm2684_vm11, %v2677_v23, 0.0  ;;  %v2308_v21 = vrot.slane %v9189_v53, 2  ;;  %v2414_v10 = vrot.slane %v9185_v30, 1  ;;  %v2415_v59 = vrot.slane %v9189_v53, 1 }
 0x55f   : > { %v2676_v61 = vsel %vm2651_vm9, %v2625_v3, %v2626_v33  ;;  %v2734_v31 = vsel %vm2297_vm3, %v2593_v40, %v2700_v4  ;;  %v2353_v19 = vsel %vm2330_vm4, %v2306_v37, %v2307_v32  ;;  %v2520_v17 = vrot.slane %v9180_v50, 7 }
 0x560   : > { %v2735_v35 = vsel %vm2297_vm3, %v2569_v49, %v2676_v61  ;;  %v2768_v36 = vsel %vm2296_vm0, %v9171_v51, %v2734_v31  ;;  %v2352_v54 = vsel %vm2330_vm4, %v2307_v32, %v2308_v21  ;;  %v2459_v44 = vsel %vm2437_vm6, %v2414_v10, %v2415_v59 }
 0x561   : > { %v2769_v37 = vsel %vm2296_vm0, %v9176_v27, %v2735_v35  ;;  %v2802_v52 = vsel %vm2295_vm1, %v2462_v39, %v2768_v36  ;;  %v2382_v28 = vsel %vm2366_vm5, %v2352_v54, 0.0  ;;  %v2460_v43 = vsel %vm2437_vm6, %v2413_v14, %v2414_v10 }
 0x562   : > { %v2803_v48 = vsel %vm2295_vm1, %v2487_v57, %v2769_v37  ;;  %v2836_v3 = vsel %vm2294_vm2, %v2355_v24, %v2802_v52  ;;  %v2489_v49 = vsel %vm2473_vm7, %v2459_v44, 0.0  ;;  %v2521_v0 = vrot.slane %v9185_v30, 7 }
 0x563   : > { %v2837_v39 = vsel %vm2294_vm2, %v2380_v29, %v2803_v48  ;;  %v2568_v40 = vsel %vm2544_vm8, %v2519_v1, %v2520_v17  ;;  %v2627_v23 = vrot.slane %v9180_v50, 6  ;;  %v2628_v14 = vrot.slane %v9185_v30, 6 }
 0x564   : > { %v2865_v32 = vpack.c.bf16 %v2837_v39, %v2836_v3  ;;  %v2567_v57 = vsel %vm2544_vm8, %v2520_v17, %v2521_v0  ;;  %v2595_v24 = vsel %vm2577_vm10, %v2568_v40, 0.0  ;;  %v3448_v4 = vsel %vm2297_vm3, %v9180_v50, %v9171_v51 }
 0x565   : > { %v2674_v29 = vsel %vm2651_vm9, %v2627_v23, %v2628_v14  ;;  %v2675_v1 = vsel %vm2651_vm9, %v2626_v33, %v2627_v23  ;;  %v3449_v10 = vsel %vm2297_vm3, %v9185_v30, %v9176_v27  ;;  %v3480_v61 = vsel %vm2296_vm0, %v9189_v53, %v3448_v4 }
 0x566   : > { %6523 = vmatmul.mubr.bf16.gmra.mrb[4].mxu1 %v2865_v32  ;;  %v2702_v31 = vsel %vm2684_vm11, %v2675_v1, 0.0  ;;  %v2737_v51 = vsel %vm2297_vm3, %v2567_v57, %v2674_v29  ;;  %v3481_v33 = vsel %vm2296_vm0, %v9194_v58, %v3449_v10  ;;  %v3512_v17 = vsel %vm2295_vm1, %v9198_v6, %v3480_v61 }
 0x567   : > { %v2736_v27 = vsel %vm2297_vm3, %v2595_v24, %v2702_v31  ;;  %v2771_v35 = vsel %vm2296_vm0, %v9185_v30, %v2737_v51  ;;  %v3513_v36 = vsel %vm2295_vm1, %v9202_v5, %v3481_v33  ;;  %v3544_v54 = vsel %vm2294_vm2, %v9207_v56, %v3512_v17 }
 0x568   : > { %v2770_v44 = vsel %vm2296_vm0, %v9180_v50, %v2736_v27  ;;  %v2805_v37 = vsel %vm2295_vm1, %v2489_v49, %v2771_v35  ;;  %v3545_v52 = vsel %vm2294_vm2, %v9211_v13, %v3513_v36  ;;  %v3450_v48 = vsel %vm2297_vm3, %v9189_v53, %v9180_v50 }
 0x569   : > { %v2804_v3 = vsel %vm2295_vm1, %v2460_v43, %v2770_v44  ;;  %v2839_v39 = vsel %vm2294_vm2, %v2382_v28, %v2805_v37  ;;  %v3571_v40 = vpack.c.bf16 %v3545_v52, %v3544_v54  ;;  %v3451_v49 = vsel %vm2297_vm3, %v9194_v58, %v9185_v30 }
 0x56a   : > { %v2838_v23 = vsel %vm2294_vm2, %v2353_v19, %v2804_v3  ;;  %v3482_v32 = vsel %vm2296_vm0, %v9198_v6, %v3450_v48  ;;  %v3483_v50 = vsel %vm2296_vm0, %v9202_v5, %v3451_v49  ;;  %v2309_v43 = vrot.slane %v9194_v58, 2 }
 0x56b   : > { %v2866_v28 = vpack.c.bf16 %v2839_v39, %v2838_v23  ;;  %6575 = vmatmul.mubr.bf16.gmra.mrb[40].mxu0 %v3571_v40  ;;  %v3514_v57 = vsel %vm2295_vm1, %v9207_v56, %v3482_v32  ;;  %v3515_v30 = vsel %vm2295_vm1, %v9211_v13, %v3483_v50  ;;  %v2310_v19 = vrot.slane %v9198_v6, 2 }
 0x56c   : > { %v3546_v24 = vsel %vm2294_vm2, %v9215_v15, %v3514_v57  ;;  %v3547_v4 = vsel %vm2294_vm2, %v9218_v38, %v3515_v30  ;;  %v2351_v29 = vsel %vm2330_vm4, %v2308_v21, %v2309_v43  ;;  %v2416_v1 = vrot.slane %v9194_v58, 1 }
 0x56d   : > { %6526 = vmatprep.mubr.bf16.mxu1 %v2866_v28  ;;  %v3572_v10 = vpack.c.bf16 %v3547_v4, %v3546_v24  ;;  %v2350_v61 = vsel %vm2330_vm4, %v2309_v43, %v2310_v19  ;;  %v2417_v31 = vrot.slane %v9198_v6, 1  ;;  %v2522_v51 = vrot.slane %v9189_v53, 7 }
 0x56e   : > { %v2384_v33 = vsel %vm2366_vm5, %v2350_v61, 0.0  ;;  %v2458_v17 = vsel %vm2437_vm6, %v2415_v59, %v2416_v1  ;;  %v2523_v21 = vrot.slane %v9194_v58, 7  ;;  %v2629_v27 = vrot.slane %v9189_v53, 6 }
 0x56f   : > { %6578 = vmatprep.mubr.bf16.mxu0 %v3572_v10  ;;  %v2457_v35 = vsel %vm2437_vm6, %v2416_v1, %v2417_v31  ;;  %v2566_v36 = vsel %vm2544_vm8, %v2521_v0, %v2522_v51  ;;  %v2630_v54 = vrot.slane %v9194_v58, 6  ;;  %v2311_v44 = vrot.slane %v9202_v5, 2 }
 0x570   : > { %v2491_v37 = vsel %vm2473_vm7, %v2457_v35, 0.0  ;;  %v2565_v59 = vsel %vm2544_vm8, %v2522_v51, %v2523_v21  ;;  %v2597_v52 = vsel %vm2577_vm10, %v2566_v36, 0.0  ;;  %v2673_v48 = vsel %vm2651_vm9, %v2628_v14, %v2629_v27 }
 0x571   : > { %v2672_v3 = vsel %vm2651_vm9, %v2629_v27, %v2630_v54  ;;  %v2704_v0 = vsel %vm2684_vm11, %v2673_v48, 0.0  ;;  %v2312_v39 = vrot.slane %v9207_v56, 2  ;;  %v2349_v40 = vsel %vm2330_vm4, %v2310_v19, %v2311_v44 }
 0x572   : > { %v2738_v49 = vsel %vm2297_vm3, %v2597_v52, %v2704_v0  ;;  %v2739_v23 = vsel %vm2297_vm3, %v2565_v59, %v2672_v3  ;;  %v2418_v32 = vrot.slane %v9202_v5, 1  ;;  %v2419_v14 = vrot.slane %v9207_v56, 1 }
 0x573   : > { %v2772_v50 = vsel %vm2296_vm0, %v9189_v53, %v2738_v49  ;;  %v2773_v43 = vsel %vm2296_vm0, %v9194_v58, %v2739_v23  ;;  %v2348_v28 = vsel %vm2330_vm4, %v2311_v44, %v2312_v39  ;;  %v2524_v57 = vrot.slane %v9198_v6, 7 }
 0x574   : > { %v2806_v30 = vsel %vm2295_vm1, %v2458_v17, %v2772_v50  ;;  %v2807_v19 = vsel %vm2295_vm1, %v2491_v37, %v2773_v43  ;;  %v2386_v24 = vsel %vm2366_vm5, %v2348_v28, 0.0  ;;  %v2455_v4 = vsel %vm2437_vm6, %v2418_v32, %v2419_v14 }
 0x575   : > { %v2840_v1 = vsel %vm2294_vm2, %v2351_v29, %v2806_v30  ;;  %v2841_v10 = vsel %vm2294_vm2, %v2384_v33, %v2807_v19  ;;  %v2456_v61 = vsel %vm2437_vm6, %v2417_v31, %v2418_v32  ;;  %v2493_v51 = vsel %vm2473_vm7, %v2455_v4, 0.0 }
 0x576   : > { %v2867_v17 = vpack.c.bf16 %v2841_v10, %v2840_v1  ;;  %v2525_v27 = vrot.slane %v9202_v5, 7  ;;  %v2564_v35 = vsel %vm2544_vm8, %v2523_v21, %v2524_v57  ;;  %v2631_v36 = vrot.slane %v9198_v6, 6 }
 0x577   : > { %v2599_v29 = vsel %vm2577_vm10, %v2564_v35, 0.0  ;;  %v2632_v44 = vrot.slane %v9202_v5, 6  ;;  %v3452_v31 = vsel %vm2297_vm3, %v9198_v6, %v9189_v53  ;;  %v3453_v33 = vsel %vm2297_vm3, %v9202_v5, %v9194_v58 }
 0x578   : > { %6527 = vmatmul.mubr.bf16.gmra.mrb[8].mxu1 %v2867_v17  ;;  %v2563_v21 = vsel %vm2544_vm8, %v2524_v57, %v2525_v27  ;;  %v2671_v37 = vsel %vm2651_vm9, %v2630_v54, %v2631_v36  ;;  %v3484_v59 = vsel %vm2296_vm0, %v9207_v56, %v3452_v31  ;;  %v3485_v53 = vsel %vm2296_vm0, %v9211_v13, %v3453_v33 }
 0x579   : > { %v2670_v52 = vsel %vm2651_vm9, %v2631_v36, %v2632_v44  ;;  %v2706_v58 = vsel %vm2684_vm11, %v2671_v37, 0.0  ;;  %v3516_v48 = vsel %vm2295_vm1, %v9215_v15, %v3484_v59  ;;  %v3517_v54 = vsel %vm2295_vm1, %v9218_v38, %v3485_v53 }
 0x57a   : > { %v2740_v3 = vsel %vm2297_vm3, %v2599_v29, %v2706_v58  ;;  %v2741_v0 = vsel %vm2297_vm3, %v2563_v21, %v2670_v52  ;;  %v3548_v49 = vsel %vm2294_vm2, %v9224_v63, %v3516_v48  ;;  %v3549_v23 = vsel %vm2294_vm2, %v9230_v20, %v3517_v54 }
 0x57b   : > { %v2774_v32 = vsel %vm2296_vm0, %v9198_v6, %v2740_v3  ;;  %v2775_v50 = vsel %vm2296_vm0, %v9202_v5, %v2741_v0  ;;  %v3573_v43 = vpack.c.bf16 %v3549_v23, %v3548_v49  ;;  %v3454_v28 = vsel %vm2297_vm3, %v9207_v56, %v9198_v6 }
 0x57c   : > { %v2808_v57 = vsel %vm2295_vm1, %v2456_v61, %v2774_v32  ;;  %v2809_v30 = vsel %vm2295_vm1, %v2493_v51, %v2775_v50  ;;  %v3455_v19 = vsel %vm2297_vm3, %v9211_v13, %v9202_v5  ;;  %v3486_v4 = vsel %vm2296_vm0, %v9215_v15, %v3454_v28 }
 0x57d   : > { %v2842_v1 = vsel %vm2294_vm2, %v2349_v40, %v2808_v57  ;;  %v2843_v6 = vsel %vm2294_vm2, %v2386_v24, %v2809_v30  ;;  %6579 = vmatmul.mubr.bf16.gmra.mrb[44].mxu0 %v3573_v43  ;;  %v3487_v10 = vsel %vm2296_vm0, %v9218_v38, %v3455_v19  ;;  %v3518_v61 = vsel %vm2295_vm1, %v9224_v63, %v3486_v4 }
 0x57e   : > { %v2868_v5 = vpack.c.bf16 %v2843_v6, %v2842_v1  ;;  %v3519_v51 = vsel %vm2295_vm1, %v9230_v20, %v3487_v10  ;;  %v3550_v40 = vsel %vm2294_vm2, %v9236_v34, %v3518_v61  ;;  %v2313_v24 = vrot.slane %v9211_v13, 2 }
 0x57f   : > { %v3551_v17 = vsel %vm2294_vm2, %v9242_v12, %v3519_v51  ;;  %v2314_v35 = vrot.slane %v9215_v15, 2  ;;  %v2420_v36 = vrot.slane %v9211_v13, 1  ;;  %v2421_v29 = vrot.slane %v9215_v15, 1 }
 0x580   : > { %6530 = vmatprep.mubr.bf16.mxu1 %v2868_v5  ;;  %v3574_v31 = vpack.c.bf16 %v3551_v17, %v3550_v40  ;;  %v2347_v33 = vsel %vm2330_vm4, %v2312_v39, %v2313_v24  ;;  %v2526_v21 = vrot.slane %v9207_v56, 7  ;;  %v2527_v37 = vrot.slane %v9211_v13, 7 }
 0x581   : > { %v2346_v59 = vsel %vm2330_vm4, %v2313_v24, %v2314_v35  ;;  %v2453_v53 = vsel %vm2437_vm6, %v2420_v36, %v2421_v29  ;;  %v2454_v52 = vsel %vm2437_vm6, %v2419_v14, %v2420_v36  ;;  %v2633_v58 = vrot.slane %v9207_v56, 6 }
 0x582   : > { %6582 = vmatprep.mubr.bf16.mxu0 %v3574_v31  ;;  %v2388_v39 = vsel %vm2366_vm5, %v2346_v59, 0.0  ;;  %v2495_v48 = vsel %vm2473_vm7, %v2453_v53, 0.0  ;;  %v2561_v54 = vsel %vm2544_vm8, %v2526_v21, %v2527_v37  ;;  %v2562_v3 = vsel %vm2544_vm8, %v2525_v27, %v2526_v21 }
 0x583   : > { %v2601_v0 = vsel %vm2577_vm10, %v2562_v3, 0.0  ;;  %v2634_v14 = vrot.slane %v9211_v13, 6  ;;  %v2669_v49 = vsel %vm2651_vm9, %v2632_v44, %v2633_v58  ;;  %v2315_v23 = vrot.slane %v9218_v38, 2 }
 0x584   : > { %v2708_v32 = vsel %vm2684_vm11, %v2669_v49, 0.0  ;;  %v2316_v50 = vrot.slane %v9224_v63, 2  ;;  %v2422_v43 = vrot.slane %v9218_v38, 1  ;;  %v2423_v28 = vrot.slane %v9224_v63, 1 }
 0x585   : > { %v2668_v27 = vsel %vm2651_vm9, %v2633_v58, %v2634_v14  ;;  %v2742_v57 = vsel %vm2297_vm3, %v2601_v0, %v2708_v32  ;;  %v2345_v44 = vsel %vm2330_vm4, %v2314_v35, %v2315_v23  ;;  %v2528_v30 = vrot.slane %v9215_v15, 7 }
 0x586   : > { %v2743_v19 = vsel %vm2297_vm3, %v2561_v54, %v2668_v27  ;;  %v2776_v4 = vsel %vm2296_vm0, %v9207_v56, %v2742_v57  ;;  %v2344_v1 = vsel %vm2330_vm4, %v2315_v23, %v2316_v50  ;;  %v2451_v6 = vsel %vm2437_vm6, %v2422_v43, %v2423_v28 }
 0x587   : > { %v2777_v10 = vsel %vm2296_vm0, %v9211_v13, %v2743_v19  ;;  %v2810_v61 = vsel %vm2295_vm1, %v2454_v52, %v2776_v4  ;;  %v2390_v5 = vsel %vm2366_vm5, %v2344_v1, 0.0  ;;  %v2452_v51 = vsel %vm2437_vm6, %v2421_v29, %v2422_v43 }
 0x588   : > { %v2811_v40 = vsel %vm2295_vm1, %v2495_v48, %v2777_v10  ;;  %v2844_v24 = vsel %vm2294_vm2, %v2347_v33, %v2810_v61  ;;  %v2497_v17 = vsel %vm2473_vm7, %v2451_v6, 0.0  ;;  %v2529_v35 = vrot.slane %v9218_v38, 7 }
 0x589   : > { %v2845_v36 = vsel %vm2294_vm2, %v2388_v39, %v2811_v40  ;;  %v2560_v31 = vsel %vm2544_vm8, %v2527_v37, %v2528_v30  ;;  %v2635_v21 = vrot.slane %v9215_v15, 6  ;;  %v2636_v29 = vrot.slane %v9218_v38, 6 }
 0x58a   : > { %v2869_v59 = vpack.c.bf16 %v2845_v36, %v2844_v24  ;;  %v2559_v53 = vsel %vm2544_vm8, %v2528_v30, %v2529_v35  ;;  %v2603_v33 = vsel %vm2577_vm10, %v2560_v31, 0.0  ;;  %v3456_v52 = vsel %vm2297_vm3, %v9215_v15, %v9207_v56 }
 0x58b   : > { %v2666_v58 = vsel %vm2651_vm9, %v2635_v21, %v2636_v29  ;;  %v2667_v37 = vsel %vm2651_vm9, %v2634_v14, %v2635_v21  ;;  %v3457_v39 = vsel %vm2297_vm3, %v9218_v38, %v9211_v13  ;;  %v3488_v48 = vsel %vm2296_vm0, %v9224_v63, %v3456_v52 }
 0x58c   : > { %6531 = vmatmul.mubr.bf16.gmra.mrb[12].mxu1 %v2869_v59  ;;  %v2710_v54 = vsel %vm2684_vm11, %v2667_v37, 0.0  ;;  %v2745_v56 = vsel %vm2297_vm3, %v2559_v53, %v2666_v58  ;;  %v3489_v3 = vsel %vm2296_vm0, %v9230_v20, %v3457_v39  ;;  %v3520_v0 = vsel %vm2295_vm1, %v9236_v34, %v3488_v48 }
 0x58d   : > { %v2744_v13 = vsel %vm2297_vm3, %v2603_v33, %v2710_v54  ;;  %v2779_v14 = vsel %vm2296_vm0, %v9218_v38, %v2745_v56  ;;  %v3521_v49 = vsel %vm2295_vm1, %v9242_v12, %v3489_v3  ;;  %v3552_v23 = vsel %vm2294_vm2, %v9248_v41, %v3520_v0 }
 0x58e   : > { %v2778_v32 = vsel %vm2296_vm0, %v9215_v15, %v2744_v13  ;;  %v2813_v43 = vsel %vm2295_vm1, %v2497_v17, %v2779_v14  ;;  %v3553_v27 = vsel %vm2294_vm2, %v9254_v8, %v3521_v49  ;;  %v3458_v57 = vsel %vm2297_vm3, %v9224_v63, %v9215_v15 }
 0x58f   : > { %v2812_v30 = vsel %vm2295_vm1, %v2452_v51, %v2778_v32  ;;  %v2847_v19 = vsel %vm2294_vm2, %v2390_v5, %v2813_v43  ;;  %v3575_v4 = vpack.c.bf16 %v3553_v27, %v3552_v23  ;;  %v3459_v1 = vsel %vm2297_vm3, %v9230_v20, %v9218_v38 }
 0x590   : > { %v2846_v6 = vsel %vm2294_vm2, %v2345_v44, %v2812_v30  ;;  %v3490_v10 = vsel %vm2296_vm0, %v9236_v34, %v3458_v57  ;;  %v3491_v15 = vsel %vm2296_vm0, %v9242_v12, %v3459_v1  ;;  %v2317_v61 = vrot.slane %v9230_v20, 2 }
 0x591   : > { %v2870_v5 = vpack.c.bf16 %v2847_v19, %v2846_v6  ;;  %6583 = vmatmul.mubr.bf16.gmra.mrb[48].mxu0 %v3575_v4  ;;  %v3522_v51 = vsel %vm2295_vm1, %v9248_v41, %v3490_v10  ;;  %v3523_v38 = vsel %vm2295_vm1, %v9254_v8, %v3491_v15  ;;  %v2318_v44 = vrot.slane %v9236_v34, 2 }
 0x592   : > { %v3554_v40 = vsel %vm2294_vm2, %v9258_v42, %v3522_v51  ;;  %v3555_v24 = vsel %vm2294_vm2, %v9266_v7, %v3523_v38  ;;  %v2343_v17 = vsel %vm2330_vm4, %v2316_v50, %v2317_v61  ;;  %v2424_v36 = vrot.slane %v9230_v20, 1 }
 0x593   : > { %6534 = vmatprep.mubr.bf16.mxu1 %v2870_v5  ;;  %v3576_v31 = vpack.c.bf16 %v3555_v24, %v3554_v40  ;;  %v2342_v21 = vsel %vm2330_vm4, %v2317_v61, %v2318_v44  ;;  %v2425_v59 = vrot.slane %v9236_v34, 1  ;;  %v2530_v53 = vrot.slane %v9224_v63, 7 }
 0x594   : > { %v2392_v33 = vsel %vm2366_vm5, %v2342_v21, 0.0  ;;  %v2450_v52 = vsel %vm2437_vm6, %v2423_v28, %v2424_v36  ;;  %v2531_v50 = vrot.slane %v9230_v20, 7  ;;  %v2637_v58 = vrot.slane %v9224_v63, 6 }
 0x595   : > { %6586 = vmatprep.mubr.bf16.mxu0 %v3576_v31  ;;  %v2449_v37 = vsel %vm2437_vm6, %v2424_v36, %v2425_v59  ;;  %v2558_v39 = vsel %vm2544_vm8, %v2529_v35, %v2530_v53  ;;  %v2638_v48 = vrot.slane %v9230_v20, 6  ;;  %v2319_v54 = vrot.slane %v9242_v12, 2 }
 0x596   : > { %v2499_v56 = vsel %vm2473_vm7, %v2449_v37, 0.0  ;;  %v2557_v28 = vsel %vm2544_vm8, %v2530_v53, %v2531_v50  ;;  %v2605_v3 = vsel %vm2577_vm10, %v2558_v39, 0.0  ;;  %v2665_v0 = vsel %vm2651_vm9, %v2636_v29, %v2637_v58 }
 0x597   : > { %v2664_v13 = vsel %vm2651_vm9, %v2637_v58, %v2638_v48  ;;  %v2712_v35 = vsel %vm2684_vm11, %v2665_v0, 0.0  ;;  %v2320_v14 = vrot.slane %v9248_v41, 2  ;;  %v2341_v49 = vsel %vm2330_vm4, %v2318_v44, %v2319_v54 }
 0x598   : > { %v2746_v23 = vsel %vm2297_vm3, %v2605_v3, %v2712_v35  ;;  %v2747_v32 = vsel %vm2297_vm3, %v2557_v28, %v2664_v13  ;;  %v2426_v43 = vrot.slane %v9242_v12, 1  ;;  %v2427_v29 = vrot.slane %v9248_v41, 1 }
 0x599   : > { %v2780_v27 = vsel %vm2296_vm0, %v9224_v63, %v2746_v23  ;;  %v2781_v57 = vsel %vm2296_vm0, %v9230_v20, %v2747_v32  ;;  %v2340_v30 = vsel %vm2330_vm4, %v2319_v54, %v2320_v14  ;;  %v2532_v19 = vrot.slane %v9236_v34, 7 }
 0x59a   : > { %v2814_v4 = vsel %vm2295_vm1, %v2450_v52, %v2780_v27  ;;  %v2815_v1 = vsel %vm2295_vm1, %v2499_v56, %v2781_v57  ;;  %v2394_v6 = vsel %vm2366_vm5, %v2340_v30, 0.0  ;;  %v2447_v10 = vsel %vm2437_vm6, %v2426_v43, %v2427_v29 }
 0x59b   : > { %v2848_v15 = vsel %vm2294_vm2, %v2343_v17, %v2814_v4  ;;  %v2849_v61 = vsel %vm2294_vm2, %v2392_v33, %v2815_v1  ;;  %v2448_v5 = vsel %vm2437_vm6, %v2425_v59, %v2426_v43  ;;  %v2501_v51 = vsel %vm2473_vm7, %v2447_v10, 0.0 }
 0x59c   : > { %v2871_v38 = vpack.c.bf16 %v2849_v61, %v2848_v15  ;;  %v2533_v44 = vrot.slane %v9242_v12, 7  ;;  %v2556_v40 = vsel %vm2544_vm8, %v2531_v50, %v2532_v19  ;;  %v2639_v24 = vrot.slane %v9236_v34, 6 }
 0x59d   : > { %v2607_v17 = vsel %vm2577_vm10, %v2556_v40, 0.0  ;;  %v2640_v36 = vrot.slane %v9242_v12, 6  ;;  %v3460_v31 = vsel %vm2297_vm3, %v9236_v34, %v9224_v63  ;;  %v3461_v21 = vsel %vm2297_vm3, %v9242_v12, %v9230_v20 }
 0x59e   : > { %6535 = vmatmul.mubr.bf16.gmra.mrb[16].mxu1 %v2871_v38  ;;  %v2555_v59 = vsel %vm2544_vm8, %v2532_v19, %v2533_v44  ;;  %v2663_v53 = vsel %vm2651_vm9, %v2638_v48, %v2639_v24  ;;  %v3492_v33 = vsel %vm2296_vm0, %v9248_v41, %v3460_v31  ;;  %v3493_v63 = vsel %vm2296_vm0, %v9254_v8, %v3461_v21 }
 0x59f   : > { %v2662_v52 = vsel %vm2651_vm9, %v2639_v24, %v2640_v36  ;;  %v2714_v20 = vsel %vm2684_vm11, %v2663_v53, 0.0  ;;  %v3524_v50 = vsel %vm2295_vm1, %v9258_v42, %v3492_v33  ;;  %v3525_v58 = vsel %vm2295_vm1, %v9266_v7, %v3493_v63 }
 0x5a0   : > { %v2748_v37 = vsel %vm2297_vm3, %v2607_v17, %v2714_v20  ;;  %v2749_v39 = vsel %vm2297_vm3, %v2555_v59, %v2662_v52  ;;  %v3556_v48 = vsel %vm2294_vm2, %v9272_v9, %v3524_v50  ;;  %v3557_v54 = vsel %vm2294_vm2, %v9280_v62, %v3525_v58 }
 0x5a1   : > { %v2782_v56 = vsel %vm2296_vm0, %v9236_v34, %v2748_v37  ;;  %v2783_v28 = vsel %vm2296_vm0, %v9242_v12, %v2749_v39  ;;  %v3577_v3 = vpack.c.bf16 %v3557_v54, %v3556_v48  ;;  %v3462_v0 = vsel %vm2297_vm3, %v9248_v41, %v9236_v34 }
 0x5a2   : > { %v2816_v13 = vsel %vm2295_vm1, %v2448_v5, %v2782_v56  ;;  %v2817_v35 = vsel %vm2295_vm1, %v2501_v51, %v2783_v28  ;;  %v3463_v23 = vsel %vm2297_vm3, %v9254_v8, %v9242_v12  ;;  %v3494_v32 = vsel %vm2296_vm0, %v9258_v42, %v3462_v0 }
 0x5a3   : > { %v2850_v43 = vsel %vm2294_vm2, %v2341_v49, %v2816_v13  ;;  %v2851_v34 = vsel %vm2294_vm2, %v2394_v6, %v2817_v35  ;;  %6587 = vmatmul.mubr.bf16.gmra.mrb[52].mxu0 %v3577_v3  ;;  %v3495_v27 = vsel %vm2296_vm0, %v9266_v7, %v3463_v23  ;;  %v3526_v57 = vsel %vm2295_vm1, %v9272_v9, %v3494_v32 }
 0x5a4   : > { %v2872_v12 = vpack.c.bf16 %v2851_v34, %v2850_v43  ;;  %v3527_v30 = vsel %vm2295_vm1, %v9280_v62, %v3495_v27  ;;  %v3558_v49 = vsel %vm2294_vm2, %v9287_v45, %v3526_v57  ;;  %v2321_v19 = vrot.slane %v9254_v8, 2 }
 0x5a5   : > { %v3559_v4 = vsel %vm2294_vm2, %v9297_v26, %v3527_v30  ;;  %v2322_v1 = vrot.slane %v9258_v42, 2  ;;  %v2428_v6 = vrot.slane %v9254_v8, 1  ;;  %v2429_v10 = vrot.slane %v9258_v42, 1 }
 0x5a6   : > { %6538 = vmatprep.mubr.bf16.mxu1 %v2872_v12  ;;  %v3578_v15 = vpack.c.bf16 %v3559_v4, %v3558_v49  ;;  %v2339_v61 = vsel %vm2330_vm4, %v2320_v14, %v2321_v19  ;;  %v2534_v5 = vrot.slane %v9248_v41, 7  ;;  %v2535_v51 = vrot.slane %v9254_v8, 7 }
 0x5a7   : > { %v2338_v38 = vsel %vm2330_vm4, %v2321_v19, %v2322_v1  ;;  %v2445_v40 = vsel %vm2437_vm6, %v2428_v6, %v2429_v10  ;;  %v2446_v24 = vsel %vm2437_vm6, %v2427_v29, %v2428_v6  ;;  %v2641_v17 = vrot.slane %v9248_v41, 6 }
 0x5a8   : > { %6590 = vmatprep.mubr.bf16.mxu0 %v3578_v15  ;;  %v2396_v14 = vsel %vm2366_vm5, %v2338_v38, 0.0  ;;  %v2503_v31 = vsel %vm2473_vm7, %v2445_v40, 0.0  ;;  %v2553_v21 = vsel %vm2544_vm8, %v2534_v5, %v2535_v51  ;;  %v2554_v59 = vsel %vm2544_vm8, %v2533_v44, %v2534_v5 }
 0x5a9   : > { %v2609_v53 = vsel %vm2577_vm10, %v2554_v59, 0.0  ;;  %v2642_v29 = vrot.slane %v9254_v8, 6  ;;  %v2661_v33 = vsel %vm2651_vm9, %v2640_v36, %v2641_v17  ;;  %v2323_v63 = vrot.slane %v9266_v7, 2 }
 0x5aa   : > { %v2716_v52 = vsel %vm2684_vm11, %v2661_v33, 0.0  ;;  %v2324_v20 = vrot.slane %v9272_v9, 2  ;;  %v2430_v50 = vrot.slane %v9266_v7, 1  ;;  %v2431_v58 = vrot.slane %v9272_v9, 1 }
 0x5ab   : > { %v2660_v44 = vsel %vm2651_vm9, %v2641_v17, %v2642_v29  ;;  %v2750_v37 = vsel %vm2297_vm3, %v2609_v53, %v2716_v52  ;;  %v2337_v36 = vsel %vm2330_vm4, %v2322_v1, %v2323_v63  ;;  %v2536_v39 = vrot.slane %v9258_v42, 7 }
 0x5ac   : > { %v2751_v48 = vsel %vm2297_vm3, %v2553_v21, %v2660_v44  ;;  %v2784_v54 = vsel %vm2296_vm0, %v9248_v41, %v2750_v37  ;;  %v2336_v56 = vsel %vm2330_vm4, %v2323_v63, %v2324_v20  ;;  %v2443_v28 = vsel %vm2437_vm6, %v2430_v50, %v2431_v58 }
 0x5ad   : > { %v2785_v3 = vsel %vm2296_vm0, %v9254_v8, %v2751_v48  ;;  %v2818_v0 = vsel %vm2295_vm1, %v2446_v24, %v2784_v54  ;;  %v2398_v13 = vsel %vm2366_vm5, %v2336_v56, 0.0  ;;  %v2444_v35 = vsel %vm2437_vm6, %v2429_v10, %v2430_v50 }
 0x5ae   : > { %v2819_v23 = vsel %vm2295_vm1, %v2503_v31, %v2785_v3  ;;  %v2852_v32 = vsel %vm2294_vm2, %v2339_v61, %v2818_v0  ;;  %v2505_v43 = vsel %vm2473_vm7, %v2443_v28, 0.0  ;;  %v2537_v34 = vrot.slane %v9266_v7, 7 }
 0x5af   : > { %v2853_v27 = vsel %vm2294_vm2, %v2396_v14, %v2819_v23  ;;  %v2552_v57 = vsel %vm2544_vm8, %v2535_v51, %v2536_v39  ;;  %v2643_v12 = vrot.slane %v9258_v42, 6  ;;  %v2644_v30 = vrot.slane %v9266_v7, 6 }
 0x5b0   : > { %v2873_v49 = vpack.c.bf16 %v2853_v27, %v2852_v32  ;;  %v2551_v19 = vsel %vm2544_vm8, %v2536_v39, %v2537_v34  ;;  %v2611_v4 = vsel %vm2577_vm10, %v2552_v57, 0.0  ;;  %v3464_v1 = vsel %vm2297_vm3, %v9258_v42, %v9248_v41 }
 0x5b1   : > { %v2658_v6 = vsel %vm2651_vm9, %v2643_v12, %v2644_v30  ;;  %v2659_v10 = vsel %vm2651_vm9, %v2642_v29, %v2643_v12  ;;  %v3465_v15 = vsel %vm2297_vm3, %v9266_v7, %v9254_v8  ;;  %v3496_v61 = vsel %vm2296_vm0, %v9272_v9, %v3464_v1 }
 0x5b2   : > { %6539 = vmatmul.mubr.bf16.gmra.mrb[20].mxu1 %v2873_v49  ;;  %v2718_v5 = vsel %vm2684_vm11, %v2659_v10, 0.0  ;;  %v2753_v41 = vsel %vm2297_vm3, %v2551_v19, %v2658_v6  ;;  %v3497_v51 = vsel %vm2296_vm0, %v9280_v62, %v3465_v15  ;;  %v3528_v38 = vsel %vm2295_vm1, %v9287_v45, %v3496_v61 }
 0x5b3   : > { %v2752_v8 = vsel %vm2297_vm3, %v2611_v4, %v2718_v5  ;;  %v2787_v40 = vsel %vm2296_vm0, %v9266_v7, %v2753_v41  ;;  %v3529_v24 = vsel %vm2295_vm1, %v9297_v26, %v3497_v51  ;;  %v3560_v17 = vsel %vm2294_vm2, %v9307_v11, %v3528_v38 }
 0x5b4   : > { %v2786_v14 = vsel %vm2296_vm0, %v9258_v42, %v2752_v8  ;;  %v2821_v31 = vsel %vm2295_vm1, %v2505_v43, %v2787_v40  ;;  %v3561_v21 = vsel %vm2294_vm2, %v9318_v16, %v3529_v24  ;;  %v3466_v59 = vsel %vm2297_vm3, %v9272_v9, %v9258_v42 }
 0x5b5   : > { %v2820_v29 = vsel %vm2295_vm1, %v2444_v35, %v2786_v14  ;;  %v2855_v33 = vsel %vm2294_vm2, %v2398_v13, %v2821_v31  ;;  %v3579_v63 = vpack.c.bf16 %v3561_v21, %v3560_v17  ;;  %v3467_v52 = vsel %vm2297_vm3, %v9280_v62, %v9266_v7 }
 0x5b6   : > { %v2854_v42 = vsel %vm2294_vm2, %v2337_v36, %v2820_v29  ;;  %v3498_v50 = vsel %vm2296_vm0, %v9287_v45, %v3466_v59  ;;  %v3499_v44 = vsel %vm2296_vm0, %v9297_v26, %v3467_v52  ;;  %v2325_v37 = vrot.slane %v9280_v62, 2 }
 0x5b7   : > { %v2874_v39 = vpack.c.bf16 %v2855_v33, %v2854_v42  ;;  %6591 = vmatmul.mubr.bf16.gmra.mrb[56].mxu0 %v3579_v63  ;;  %v3530_v48 = vsel %vm2295_vm1, %v9307_v11, %v3498_v50  ;;  %v3531_v7 = vsel %vm2295_vm1, %v9318_v16, %v3499_v44  ;;  %v2326_v36 = vrot.slane %v9287_v45, 2 }
 0x5b8   : > { %v6258_v54 = vpack.c.bf16 %v3531_v7, %v3530_v48  ;;  %v2335_v56 = vsel %vm2330_vm4, %v2324_v20, %v2325_v37  ;;  %v2432_v28 = vrot.slane %v9280_v62, 1  ;;  %v2433_v3 = vrot.slane %v9287_v45, 1 }
 0x5b9   : > { %6542 = vmatprep.mubr.bf16.mxu1 %v2874_v39  ;;  %v2334_v0 = vsel %vm2330_vm4, %v2325_v37, %v2326_v36  ;;  %v2538_v13 = vrot.slane %v9272_v9, 7  ;;  %v2539_v35 = vrot.slane %v9280_v62, 7  ;;  %v2645_v23 = vrot.slane %v9272_v9, 6 }
 0x5ba   : > { %6594 = vmatprep.mubr.msk.bf16.mxu0 %vm6257_vm13, %v6258_v54  ;;  %v2400_v20 = vsel %vm2366_vm5, %v2334_v0, 0.0  ;;  %v2441_v32 = vsel %vm2437_vm6, %v2432_v28, %v2433_v3  ;;  %v2442_v43 = vsel %vm2437_vm6, %v2431_v58, %v2432_v28  ;;  %v2646_v27 = vrot.slane %v9280_v62, 6 }
 0x5bb   : > { %v2507_v57 = vsel %vm2473_vm7, %v2441_v32, 0.0  ;;  %v2549_v12 = vsel %vm2544_vm8, %v2538_v13, %v2539_v35  ;;  %v2550_v49 = vsel %vm2544_vm8, %v2537_v34, %v2538_v13  ;;  %v2657_v19 = vsel %vm2651_vm9, %v2644_v30, %v2645_v23 }
 0x5bc   : > { %v2613_v4 = vsel %vm2577_vm10, %v2550_v49, 0.0  ;;  %v2656_v58 = vsel %vm2651_vm9, %v2645_v23, %v2646_v27  ;;  %v2720_v1 = vsel %vm2684_vm11, %v2657_v19, 0.0  ;;  %v2327_v6 = vrot.slane %v9297_v26, 2 }
 0x5bd   : > { %v2754_v10 = vsel %vm2297_vm3, %v2613_v4, %v2720_v1  ;;  %v2755_v34 = vsel %vm2297_vm3, %v2549_v12, %v2656_v58  ;;  %v2328_v15 = vrot.slane %v9307_v11, 2  ;;  %v2434_v30 = vrot.slane %v9297_v26, 1 }
 0x5be   : > { %v2788_v61 = vsel %vm2296_vm0, %v9272_v9, %v2754_v10  ;;  %v2789_v5 = vsel %vm2296_vm0, %v9280_v62, %v2755_v34  ;;  %v2333_v41 = vsel %vm2330_vm4, %v2326_v36, %v2327_v6  ;;  %v2435_v51 = vrot.slane %v9307_v11, 1 }
 0x5bf   : > { %v2822_v38 = vsel %vm2295_vm1, %v2442_v43, %v2788_v61  ;;  %v2823_v8 = vsel %vm2295_vm1, %v2507_v57, %v2789_v5  ;;  %v2332_v40 = vsel %vm2330_vm4, %v2327_v6, %v2328_v15  ;;  %v2440_v24 = vsel %vm2437_vm6, %v2433_v3, %v2434_v30 }
 0x5c0   : > { %v2856_v17 = vsel %vm2294_vm2, %v2335_v56, %v2822_v38  ;;  %v2857_v14 = vsel %vm2294_vm2, %v2400_v20, %v2823_v8  ;;  %v2439_v31 = vsel %vm2437_vm6, %v2434_v30, %v2435_v51  ;;  %v2540_v29 = vrot.slane %v9287_v45, 7  ;;  %v10538_v8 = vld [vmem:[%s8219_s14] ss:$0 sm:$0xff] }
 0x5c1   : > { %v2875_v21 = vpack.c.bf16 %v2857_v14, %v2856_v17  ;;  %v2509_v59 = vsel %vm2473_vm7, %v2439_v31, 0.0  ;;  %v2541_v33 = vrot.slane %v9297_v26, 7  ;;  %v2647_v63 = vrot.slane %v9287_v45, 6 }
 0x5c2   : > { %v2648_v52 = vrot.slane %v9297_v26, 6  ;;  %v3468_v42 = vsel %vm2297_vm3, %v9287_v45, %v9272_v9  ;;  %v3469_v50 = vsel %vm2297_vm3, %v9297_v26, %v9280_v62  ;;  %v2548_v37 = vsel %vm2544_vm8, %v2539_v35, %v2540_v29 }
 0x5c3   : > { %6543 = vmatmul.mubr.bf16.gmra.mrb[24].mxu1 %v2875_v21  ;;  %v2547_v44 = vsel %vm2544_vm8, %v2540_v29, %v2541_v33  ;;  %v3500_v39 = vsel %vm2296_vm0, %v9307_v11, %v3468_v42  ;;  %v3501_v9 = vsel %vm2296_vm0, %v9318_v16, %v3469_v50  ;;  %v2615_v48 = vsel %vm2577_vm10, %v2548_v37, 0.0 }
 0x5c4   : > { %v2654_v62 = vsel %vm2651_vm9, %v2647_v63, %v2648_v52  ;;  %v2655_v7 = vsel %vm2651_vm9, %v2646_v27, %v2647_v63  ;;  %v3532_v36 = vsel %vm2295_vm1, 0.0, %v3500_v39  ;;  %v3533_v28 = vsel %vm2295_vm1, 0.0, %v3501_v9 }
 0x5c5   : > { %v2722_v54 = vsel %vm2684_vm11, %v2655_v7, 0.0  ;;  %v2757_v56 = vsel %vm2297_vm3, %v2547_v44, %v2654_v62  ;;  %v2329_v3 = vrot.slane %v9318_v16, 2  ;;  %v6263_v35 = vpack.c.bf16 %v3533_v28, %v3532_v36 }
 0x5c6   : > { %v2756_v0 = vsel %vm2297_vm3, %v2615_v48, %v2722_v54  ;;  %v2791_v13 = vsel %vm2296_vm0, %v9297_v26, %v2757_v56  ;;  %v2436_v23 = vrot.slane %v9318_v16, 1  ;;  %v2402_v20 = vsel %vm2366_vm5, %v2332_v40, 0.0  ;;  %v10569_v56 = vld [vmem:[%s12853_s29] ss:$0 sm:$0xff] }
 0x5c7   : > { %v2790_v32 = vsel %vm2296_vm0, %v9287_v45, %v2756_v0  ;;  %v2825_v43 = vsel %vm2295_vm1, %v2509_v59, %v2791_v13  ;;  %6595 = vmatmul.mubr.msk.bf16.gmra.mrb[60].mxu0 %vm6257_vm13, %v6263_v35  ;;  %v2542_v12 = vrot.slane %v9307_v11, 7  ;;  %v2649_v49 = vrot.slane %v9307_v11, 6 }
 0x5c8   : > { %v2824_v27 = vsel %vm2295_vm1, %v2440_v24, %v2790_v32  ;;  %v2859_v57 = vsel %vm2294_vm2, %v2402_v20, %v2825_v43  ;;  %v2469_v45 = vsel %vm2437_vm6, %v2436_v23, %v2405_v55  ;;  %v2362_v53 = vsel %vm2330_vm4, %v2329_v3, %v2298_v60 }
 0x5c9   : > { %v2858_v26 = vsel %vm2294_vm2, %v2333_v41, %v2824_v27  ;;  %v2511_v4 = vsel %vm2473_vm7, %v2469_v45, 0.0  ;;  %v2545_v58 = vsel %vm2544_vm8, %v2542_v12, %v2543_v46  ;;  %v2546_v55 = vsel %vm2544_vm8, %v2541_v33, %v2542_v12 }
 0x5ca   : > { %v2876_v19 = vpack.c.bf16 %v2859_v57, %v2858_v26  ;;  %v2652_v1 = vsel %vm2651_vm9, %v2649_v49, %v2650_v47  ;;  %v2653_v25 = vsel %vm2651_vm9, %v2648_v52, %v2649_v49  ;;  %v2617_v60 = vsel %vm2577_vm10, %v2546_v55, 0.0 }
 0x5cb   : > { %v2724_v6 = vsel %vm2684_vm11, %v2653_v25, 0.0  ;;  %v2759_v46 = vsel %vm2297_vm3, %v2545_v58, %v2652_v1  ;;  %v2404_v34 = vsel %vm2366_vm5, %v2362_v53, 0.0  ;;  %v2438_v30 = vsel %vm2437_vm6, %v2435_v51, %v2436_v23 }
 0x5cc   : > { %6546 = vmatprep.mubr.bf16.mxu1 %v2876_v19  ;;  %v2758_v10 = vsel %vm2297_vm3, %v2617_v60, %v2724_v6  ;;  %v2793_v47 = vsel %vm2296_vm0, %v9318_v16, %v2759_v46  ;;  %v2331_v41 = vsel %vm2330_vm4, %v2328_v15, %v2329_v3 }
 0x5cd   : > { %v2792_v61 = vsel %vm2296_vm0, %v9307_v11, %v2758_v10  ;;  %v2827_v5 = vsel %vm2295_vm1, %v2511_v4, %v2793_v47 }
 0x5ce   : > { %v2826_v16 = vsel %vm2295_vm1, %v2438_v30, %v2792_v61  ;;  %v2861_v22 = vsel %vm2294_vm2, %v2404_v34, %v2827_v5 }
 0x5cf   : > { %v2860_v51 = vsel %vm2294_vm2, %v2331_v41, %v2826_v16 }
 0x5d0   : > { %v2877_v38 = vpack.c.bf16 %v2861_v22, %v2860_v51 }
 0x5d2   : > { %6547 = vmatmul.mubr.bf16.gmra.mrb[28].mxu1 %v2877_v38 }
 0x610   : > { %v6568_v40 = vpop.f32.mrb[32].mxu0 }
 0x611   : > { %v10541_v24 = vadd.f32 %v6568_v40, %v10538_v8  ;;  %v3687_v11 = vpop.f32.mrb[33].mxu0 }
 0x612   : > { %v10544_v18 = vadd.f32 %v10538_v8, %v3687_v11  ;;  %v6569_v15 = vpop.f32.mrb[34].mxu0 }
 0x613   : > { %v3816_v17 = vmul.f32 %v10541_v24, %v10541_v24  ;;  %v10549_v14 = vadd.f32 %v6569_v15, %v10538_v8  ;;  %v3690_v2 = vpop.f32.mrb[35].mxu0 }
 0x614   : > { %v3814_v31 = vmul.f32 %v10544_v18, %v10544_v18  ;;  %v10554_v21 = vadd.f32 %v10538_v8, %v3690_v2 }
 0x615   : > { %v3848_v59 = vmul.f32 %v3816_v17, %v10541_v24  ;;  %v3817_v29 = vmul.f32 %v10549_v14, %v10549_v14 }
 0x616   : > { %v3846_v33 = vmul.f32 %v3814_v31, %v10544_v18  ;;  %v3815_v52 = vmul.f32 %v10554_v21, %v10554_v21 }
 0x617   : > { %v3880_v63 = vmul.f32 0.044715, %v3848_v59  ;;  %v3849_v44 = vmul.f32 %v3817_v29, %v10549_v14 }
 0x618   : > { %v3878_v42 = vmul.f32 0.044715, %v3846_v33  ;;  %v3847_v39 = vmul.f32 %v3815_v52, %v10554_v21 }
 0x619   : > { %v3912_v50 = vadd.f32 %v3880_v63, %v10541_v24  ;;  %v3881_v48 = vmul.f32 0.044715, %v3849_v44 }
 0x61a   : > { %v3910_v37 = vadd.f32 %v3878_v42, %v10544_v18  ;;  %v3879_v7 = vmul.f32 0.044715, %v3847_v39 }
 0x61b   : > { %v3944_v9 = vmul.f32 0.7978846, %v3912_v50  ;;  %v3913_v36 = vadd.f32 %v3881_v48, %v10549_v14 }
 0x61c   : > { %v3942_v62 = vmul.f32 0.7978846, %v3910_v37  ;;  %v3911_v54 = vadd.f32 %v3879_v7, %v10554_v21 }
 0x61d   : > { %7021 = vtanh.f32 %v3944_v9  ;;  %v3945_v28 = vmul.f32 0.7978846, %v3913_v36 }
 0x61e   : > { %7023 = vtanh.f32 %v3942_v62  ;;  %v3943_v35 = vmul.f32 0.7978846, %v3911_v54 }
 0x61f   : > { %7025 = vtanh.f32 %v3945_v28 }
 0x620   : > { %7027 = vtanh.f32 %v3943_v35 }
 0x625   : > { %v6520_v3 = vpop.f32.mrb[0].mxu1 }
 0x626   : > { %v10572_v0 = vadd.f32 %v6520_v3, %v10569_v56  ;;  %v2983_v13 = vpop.f32.mrb[1].mxu1 }
 0x627   : > { %v10575_v23 = vadd.f32 %v10569_v56, %v2983_v13  ;;  %v6521_v20 = vpop.f32.mrb[2].mxu1  ;;  %v7022_v19 = vpop.eup %7021 }
 0x628   : > { %v3112_v32 = vmul.f32 %v10572_v0, %v10572_v0  ;;  %v10580_v43 = vadd.f32 %v6521_v20, %v10569_v56  ;;  %v2986_v27 = vpop.f32.mrb[3].mxu1  ;;  %v7024_v55 = vpop.eup %7023  ;;  %v4008_v47 = vadd.f32 1.0, %v7022_v19 }
 0x629   : > { %v3110_v57 = vmul.f32 %v10575_v23, %v10575_v23  ;;  %v10585_v26 = vadd.f32 %v10569_v56, %v2986_v27  ;;  %v4006_v5 = vadd.f32 1.0, %v7024_v55  ;;  %v7026_v63 = vpop.eup %7025 }
 0x62a   : > { %v3144_v45 = vmul.f32 %v3112_v32, %v10572_v0  ;;  %v3113_v12 = vmul.f32 %v10580_v43, %v10580_v43  ;;  %v6572_v49 = vpop.f32.mrb[36].mxu0  ;;  %v7028_v39 = vpop.eup %7027  ;;  %v4040_v9 = vmul.f32 0.5, %v4008_v47  ;;  %v4009_v7 = vadd.f32 1.0, %v7026_v63 }
 0x62b   : > { %v3142_v53 = vmul.f32 %v3110_v57, %v10575_v23  ;;  %v3111_v4 = vmul.f32 %v10585_v26, %v10585_v26  ;;  %v3703_v58 = vpop.f32.mrb[37].mxu0  ;;  %v10597_v61 = vadd.f32 %v6572_v49, %v10538_v8  ;;  %v4038_v28 = vmul.f32 0.5, %v4006_v5 }
 0x62c   : > { %v3176_v1 = vmul.f32 0.044715, %v3144_v45  ;;  %v3145_v25 = vmul.f32 %v3113_v12, %v10580_v43  ;;  %v6573_v60 = vpop.f32.mrb[38].mxu0  ;;  %v10601_v22 = vadd.f32 %v10538_v8, %v3703_v58  ;;  %v4007_v35 = vadd.f32 1.0, %v7028_v39 }
 0x62d   : > { %v3174_v6 = vmul.f32 0.044715, %v3142_v53  ;;  %v3143_v46 = vmul.f32 %v3111_v4, %v10585_v26  ;;  %v3706_v10 = vpop.f32.mrb[39].mxu0  ;;  %v3820_v40 = vmul.f32 %v10597_v61, %v10597_v61  ;;  %v10607_v11 = vadd.f32 %v6573_v60, %v10538_v8 }
 0x62e   : > { %v3208_v34 = vadd.f32 %v3176_v1, %v10572_v0  ;;  %v3177_v30 = vmul.f32 0.044715, %v3145_v25  ;;  %v3818_v2 = vmul.f32 %v10601_v22, %v10601_v22  ;;  %v10613_v31 = vadd.f32 %v10538_v8, %v3706_v10 }
 0x62f   : > { %v3206_v41 = vadd.f32 %v3174_v6, %v10575_v23  ;;  %v3175_v16 = vmul.f32 0.044715, %v3143_v46  ;;  %v3852_v29 = vmul.f32 %v3820_v40, %v10597_v61  ;;  %v3821_v33 = vmul.f32 %v10607_v11, %v10607_v11 }
 0x630   : > { %v3240_v51 = vmul.f32 0.7978846, %v3208_v34  ;;  %v3209_v38 = vadd.f32 %v3177_v30, %v10580_v43  ;;  %v3850_v42 = vmul.f32 %v3818_v2, %v10601_v22  ;;  %v3819_v50 = vmul.f32 %v10613_v31, %v10613_v31 }
 0x631   : > { %v3238_v15 = vmul.f32 0.7978846, %v3206_v41  ;;  %v3207_v17 = vadd.f32 %v3175_v16, %v10585_v26  ;;  %v3884_v44 = vmul.f32 0.044715, %v3852_v29  ;;  %v3853_v37 = vmul.f32 %v3821_v33, %v10607_v11 }
 0x632   : > { %7029 = vtanh.f32 %v3240_v51  ;;  %v3241_v59 = vmul.f32 0.7978846, %v3209_v38  ;;  %v3882_v48 = vmul.f32 0.044715, %v3850_v42  ;;  %v3851_v62 = vmul.f32 %v3819_v50, %v10613_v31 }
 0x633   : > { %7031 = vtanh.f32 %v3238_v15  ;;  %v3239_v52 = vmul.f32 0.7978846, %v3207_v17  ;;  %v3916_v36 = vadd.f32 %v3884_v44, %v10597_v61  ;;  %v3885_v54 = vmul.f32 0.044715, %v3853_v37 }
 0x634   : > { %7033 = vtanh.f32 %v3241_v59  ;;  %v3914_v3 = vadd.f32 %v3882_v48, %v10601_v22  ;;  %v3883_v13 = vmul.f32 0.044715, %v3851_v62  ;;  %v4072_v27 = vmul.f32 %v4040_v9, %v10541_v24 }
 0x635   : > { %7035 = vtanh.f32 %v3239_v52  ;;  %v3948_v20 = vmul.f32 0.7978846, %v3916_v36  ;;  %v3917_v32 = vadd.f32 %v3885_v54, %v10607_v11  ;;  %v4041_v49 = vmul.f32 0.5, %v4009_v7 }
 0x636   : > { %v3946_v57 = vmul.f32 0.7978846, %v3914_v3  ;;  %v3915_v45 = vadd.f32 %v3883_v13, %v10613_v31  ;;  %v4070_v58 = vmul.f32 %v4038_v28, %v10544_v18  ;;  %v4039_v60 = vmul.f32 0.5, %v4007_v35 }
 0x637   : > { %7037 = vtanh.f32 %v3948_v20  ;;  %v3949_v19 = vmul.f32 0.7978846, %v3917_v32  ;;  %v4073_v41 = vmul.f32 %v4041_v49, %v10549_v14 }
 0x638   : > { %7039 = vtanh.f32 %v3946_v57  ;;  %v3947_v55 = vmul.f32 0.7978846, %v3915_v45  ;;  %v4071_v28 = vmul.f32 %v4039_v60, %v10554_v21 }
 0x639   : > { %v6524_v12 = vpop.f32.mrb[4].mxu1  ;;  %7041 = vtanh.f32 %v3949_v19 }
 0x63a   : > { %v10629_v53 = vadd.f32 %v6524_v12, %v10569_v56  ;;  %v2999_v4 = vpop.f32.mrb[5].mxu1  ;;  %7043 = vtanh.f32 %v3947_v55 }
 0x63b   : > { %v10633_v1 = vadd.f32 %v10569_v56, %v2999_v4  ;;  %v6525_v25 = vpop.f32.mrb[6].mxu1 }
 0x63c   : > { %v7030_v24 = vpop.eup %7029  ;;  %v3116_v6 = vmul.f32 %v10629_v53, %v10629_v53  ;;  %v10638_v46 = vadd.f32 %v6525_v25, %v10569_v56  ;;  %v3002_v10 = vpop.f32.mrb[7].mxu1 }
 0x63d   : > { %v7032_v47 = vpop.eup %7031  ;;  %v3304_v34 = vadd.f32 1.0, %v7030_v24  ;;  %v3114_v18 = vmul.f32 %v10633_v1, %v10633_v1  ;;  %v10643_v30 = vadd.f32 %v10569_v56, %v3002_v10 }
 0x63e   : > { %v7034_v5 = vpop.eup %7033  ;;  %v3302_v16 = vadd.f32 1.0, %v7032_v47  ;;  %v3148_v51 = vmul.f32 %v3116_v6, %v10629_v53  ;;  %v3117_v38 = vmul.f32 %v10638_v46, %v10638_v46  ;;  %v6576_v40 = vpop.f32.mrb[40].mxu0 }
 0x63f   : > { %v7036_v15 = vpop.eup %7035  ;;  %v3336_v17 = vmul.f32 0.5, %v3304_v34  ;;  %v3305_v2 = vadd.f32 1.0, %v7034_v5  ;;  %v3146_v59 = vmul.f32 %v3114_v18, %v10633_v1  ;;  %v3115_v29 = vmul.f32 %v10643_v30, %v10643_v30  ;;  %v3719_v33 = vpop.f32.mrb[41].mxu0 }
 0x640   : > { %v3334_v63 = vmul.f32 0.5, %v3302_v16  ;;  %v3303_v52 = vadd.f32 1.0, %v7036_v15  ;;  %v3180_v42 = vmul.f32 0.044715, %v3148_v51  ;;  %v3149_v14 = vmul.f32 %v3117_v38, %v10638_v46  ;;  %v6577_v50 = vpop.f32.mrb[42].mxu0 }
 0x641   : > { %v3368_v44 = vmul.f32 %v3336_v17, %v10572_v0  ;;  %v3337_v37 = vmul.f32 0.5, %v3305_v2  ;;  %v3178_v39 = vmul.f32 0.044715, %v3146_v59  ;;  %v3147_v9 = vmul.f32 %v3115_v29, %v10643_v30  ;;  %v3722_v48 = vpop.f32.mrb[43].mxu0  ;;  %v7038_v0 = vpop.eup %7037 }
 0x642   : > { %v3366_v62 = vmul.f32 %v3334_v63, %v10575_v23  ;;  %v3335_v7 = vmul.f32 0.5, %v3303_v52  ;;  %v3212_v36 = vadd.f32 %v3180_v42, %v10629_v53  ;;  %v3181_v54 = vmul.f32 0.044715, %v3149_v14  ;;  %v7040_v23 = vpop.eup %7039 }
 0x643   : > { %v10658_v3 = vadd.f32 %v4072_v27, %v3368_v44  ;;  %v3369_v13 = vmul.f32 %v3337_v37, %v10580_v43  ;;  %v3210_v35 = vadd.f32 %v3178_v39, %v10633_v1  ;;  %v3179_v45 = vmul.f32 0.044715, %v3147_v9  ;;  %v7042_v27 = vpop.eup %7041 }
 0x644   : > { %v10662_v20 = vadd.f32 %v4070_v58, %v3366_v62  ;;  %v3367_v32 = vmul.f32 %v3335_v7, %v10585_v26  ;;  %v3244_v57 = vmul.f32 0.7978846, %v3212_v36  ;;  %v4012_v49 = vadd.f32 1.0, %v7038_v0  ;;  %v7044_v58 = vpop.eup %7043 }
 0x645   : > { %v10665_v12 = vadd.f32 %v4073_v41, %v3369_v13  ;;  %v3242_v19 = vmul.f32 0.7978846, %v3210_v35  ;;  %v3213_v21 = vadd.f32 %v3181_v54, %v10638_v46  ;;  %v4176_v43 = vmul.f32 %v10658_v3, %v10658_v3 }
 0x646   : > { %v10670_v4 = vadd.f32 %v4071_v28, %v3367_v32  ;;  %v4010_v55 = vadd.f32 1.0, %v7040_v23  ;;  %7045 = vtanh.f32 %v3244_v57  ;;  %v4174_v26 = vmul.f32 %v10662_v20, %v10662_v20 }
 0x647   : > { %v4044_v25 = vmul.f32 0.5, %v4012_v49  ;;  %v4013_v24 = vadd.f32 1.0, %v7042_v27  ;;  %7047 = vtanh.f32 %v3242_v19  ;;  %v4011_v47 = vadd.f32 1.0, %v7044_v58 }
 0x648   : > { %v4134_v60 = vadd.f32 %v10670_v4, %v10662_v20  ;;  %v4175_v6 = vmul.f32 %v10670_v4, %v10670_v4  ;;  %v4042_v10 = vmul.f32 0.5, %v4010_v55  ;;  %v10680_v34 = vmul.f32 %v10665_v12, %v10665_v12 }
 0x649   : > { %v4045_v18 = vmul.f32 0.5, %v4013_v24  ;;  %v3245_v5 = vmul.f32 0.7978846, %v3213_v21  ;;  %v3211_v41 = vadd.f32 %v3179_v45, %v10643_v30  ;;  %v4076_v38 = vmul.f32 %v4044_v25, %v10597_v61 }
 0x64a   : > { %v4135_v16 = vadd.f32 %v4134_v60, %v10658_v3  ;;  %v4206_v51 = vadd.f32 %v4175_v6, %v4174_v26  ;;  %v4043_v15 = vmul.f32 0.5, %v4011_v47  ;;  %v10686_v17 = vmul.f32 %v4042_v10, %v10601_v22 }
 0x64b   : > { %7049 = vtanh.f32 %v3245_v5  ;;  %v3243_v2 = vmul.f32 0.7978846, %v3211_v41  ;;  %v10689_v59 = vadd.f32 %v6576_v40, %v10538_v8  ;;  %v6528_v29 = vpop.f32.mrb[8].mxu1  ;;  %v10694_v52 = vmul.f32 %v4045_v18, %v10607_v11 }
 0x64c   : > { %v10691_v63 = vadd.f32 %v4206_v51, %v4176_v43  ;;  %v10697_v42 = vmul.f32 %v4043_v15, %v10613_v31  ;;  %v10700_v61 = vadd.f32 %v10538_v8, %v3719_v33  ;;  %v3015_v14 = vpop.f32.mrb[9].mxu1  ;;  %v10705_v40 = vadd.f32 %v6577_v50, %v10538_v8 }
 0x64d   : > { %7051 = vtanh.f32 %v3243_v2  ;;  %v3824_v22 = vmul.f32 %v10689_v59, %v10689_v59  ;;  %v10708_v44 = vadd.f32 %v10538_v8, %v3722_v48  ;;  %v6529_v37 = vpop.f32.mrb[10].mxu1  ;;  %v10711_v11 = vadd.f32 %v4135_v16, %v10665_v12 }
 0x64e   : > { %v3822_v31 = vmul.f32 %v10700_v61, %v10700_v61  ;;  %v10716_v33 = vadd.f32 %v6528_v29, %v10569_v56  ;;  %v10719_v39 = vadd.f32 %v10569_v56, %v3015_v14  ;;  %v3018_v9 = vpop.f32.mrb[11].mxu1  ;;  %v3825_v48 = vmul.f32 %v10705_v40, %v10705_v40 }
 0x64f   : > { %v3856_v50 = vmul.f32 %v3824_v22, %v10689_v59  ;;  %v3823_v62 = vmul.f32 %v10708_v44, %v10708_v44  ;;  %v10727_v7 = vadd.f32 %v6529_v37, %v10569_v56  ;;  %v10735_v35 = vadd.f32 %v10569_v56, %v3018_v9 }
 0x650   : > { %v7046_v36 = vpop.eup %7045  ;;  %v3854_v54 = vmul.f32 %v3822_v31, %v10700_v61  ;;  %v3120_v28 = vmul.f32 %v10716_v33, %v10716_v33  ;;  %v3118_v13 = vmul.f32 %v10719_v39, %v10719_v39  ;;  %v6580_v0 = vpop.f32.mrb[44].mxu0  ;;  %v3857_v23 = vmul.f32 %v3825_v48, %v10705_v40 }
 0x651   : > { %v7048_v32 = vpop.eup %7047  ;;  %v3308_v57 = vadd.f32 1.0, %v7046_v36  ;;  %v3888_v45 = vmul.f32 0.044715, %v3856_v50  ;;  %v3855_v49 = vmul.f32 %v3823_v62, %v10708_v44  ;;  %v3735_v19 = vpop.f32.mrb[45].mxu0 }
 0x652   : > { %v3306_v21 = vadd.f32 1.0, %v7048_v32  ;;  %v3886_v27 = vmul.f32 0.044715, %v3854_v54  ;;  %v3152_v43 = vmul.f32 %v3120_v28, %v10716_v33  ;;  %v3150_v55 = vmul.f32 %v3118_v13, %v10719_v39  ;;  %v6581_v58 = vpop.f32.mrb[46].mxu0 }
 0x653   : > { %v3340_v26 = vmul.f32 0.5, %v3308_v57  ;;  %v3920_v25 = vadd.f32 %v3888_v45, %v10689_v59  ;;  %v3889_v24 = vmul.f32 0.044715, %v3857_v23  ;;  %v3887_v60 = vmul.f32 0.044715, %v3855_v49  ;;  %v3738_v6 = vpop.f32.mrb[47].mxu0 }
 0x654   : > { %v3338_v10 = vmul.f32 0.5, %v3306_v21  ;;  %v3918_v47 = vadd.f32 %v3886_v27, %v10700_v61  ;;  %v3184_v18 = vmul.f32 0.044715, %v3152_v43  ;;  %v3182_v5 = vmul.f32 0.044715, %v3150_v55 }
 0x655   : > { %v7050_v41 = vpop.eup %7049  ;;  %v3372_v16 = vmul.f32 %v3340_v26, %v10629_v53  ;;  %v3952_v51 = vmul.f32 0.7978846, %v3920_v25  ;;  %v3921_v15 = vadd.f32 %v3889_v24, %v10705_v40  ;;  %v3919_v2 = vadd.f32 %v3887_v60, %v10708_v44 }
 0x656   : > { %v3370_v29 = vmul.f32 %v3338_v10, %v10633_v1  ;;  %v3309_v14 = vadd.f32 1.0, %v7050_v41  ;;  %v3950_v22 = vmul.f32 0.7978846, %v3918_v47  ;;  %v3216_v37 = vadd.f32 %v3184_v18, %v10716_v33 }
 0x657   : > { %v7052_v31 = vpop.eup %7051  ;;  %v10748_v9 = vadd.f32 %v4076_v38, %v3372_v16  ;;  %7053 = vtanh.f32 %v3952_v51  ;;  %v3953_v50 = vmul.f32 0.7978846, %v3921_v15  ;;  %v3951_v48 = vmul.f32 0.7978846, %v3919_v2 }
 0x658   : > { %v10751_v62 = vadd.f32 %v10686_v17, %v3370_v29  ;;  %v3341_v53 = vmul.f32 0.5, %v3309_v14  ;;  %v3307_v36 = vadd.f32 1.0, %v7052_v31  ;;  %7055 = vtanh.f32 %v3950_v22 }
 0x659   : > { %v4208_v54 = vadd.f32 %v10691_v63, %v10680_v34  ;;  %7057 = vtanh.f32 %v3953_v50  ;;  %v3248_v1 = vmul.f32 0.7978846, %v3216_v37  ;;  %v3214_v28 = vadd.f32 %v3182_v5, %v10719_v39 }
 0x65a   : > { %v4180_v38 = vmul.f32 %v10748_v9, %v10748_v9  ;;  %v4178_v13 = vmul.f32 %v10751_v62, %v10751_v62  ;;  %v3373_v32 = vmul.f32 %v3341_v53, %v10638_v46  ;;  %v3339_v17 = vmul.f32 0.5, %v3307_v36 }
 0x65b   : > { %7059 = vtanh.f32 %v3951_v48  ;;  %v3246_v57 = vmul.f32 0.7978846, %v3214_v28  ;;  %v3121_v45 = vmul.f32 %v10727_v7, %v10727_v7  ;;  %v3119_v34 = vmul.f32 %v10735_v35, %v10735_v35 }
 0x65c   : > { %v4137_v63 = vadd.f32 %v10711_v11, %v10751_v62  ;;  %v10768_v23 = vadd.f32 %v10694_v52, %v3373_v32  ;;  %v3371_v49 = vmul.f32 %v3339_v17, %v10643_v30  ;;  %7061 = vtanh.f32 %v3248_v1 }
 0x65d   : > { %7063 = vtanh.f32 %v3246_v57  ;;  %v3153_v46 = vmul.f32 %v3121_v45, %v10727_v7  ;;  %v3151_v21 = vmul.f32 %v3119_v34, %v10735_v35  ;;  %v10774_v27 = vadd.f32 %v6580_v0, %v10538_v8 }
 0x65e   : > { %v4209_v43 = vadd.f32 %v4208_v54, %v4178_v13  ;;  %v10777_v55 = vadd.f32 %v10697_v42, %v3371_v49  ;;  %v10780_v11 = vadd.f32 %v10538_v8, %v3735_v19  ;;  %v10783_v52 = vadd.f32 %v6581_v58, %v10538_v8 }
 0x65f   : > { %v3185_v30 = vmul.f32 0.044715, %v3153_v46  ;;  %v3183_v26 = vmul.f32 0.044715, %v3151_v21  ;;  %v3828_v25 = vmul.f32 %v10774_v27, %v10774_v27  ;;  %v10788_v24 = vadd.f32 %v10538_v8, %v3738_v6  ;;  %v6532_v0 = vpop.f32.mrb[12].mxu1 }
 0x660   : > { %v4138_v60 = vadd.f32 %v4137_v63, %v10777_v55  ;;  %v4179_v42 = vmul.f32 %v10777_v55, %v10777_v55  ;;  %v3826_v19 = vmul.f32 %v10780_v11, %v10780_v11  ;;  %v3829_v58 = vmul.f32 %v10783_v52, %v10783_v52  ;;  %v3031_v10 = vpop.f32.mrb[13].mxu1 }
 0x661   : > { %v7054_v47 = vpop.eup %7053  ;;  %v4181_v18 = vmul.f32 %v10768_v23, %v10768_v23  ;;  %v3217_v6 = vadd.f32 %v3185_v30, %v10727_v7  ;;  %v3215_v5 = vadd.f32 %v3183_v26, %v10735_v35  ;;  %v3860_v41 = vmul.f32 %v3828_v25, %v10774_v27  ;;  %v6533_v16 = vpop.f32.mrb[14].mxu1 }
 0x662   : > { %v7056_v51 = vpop.eup %7055  ;;  %v4139_v15 = vadd.f32 %v4138_v60, %v10748_v9  ;;  %v4210_v2 = vadd.f32 %v4209_v43, %v4179_v42  ;;  %v4016_v29 = vadd.f32 1.0, %v7054_v47  ;;  %v3858_v14 = vmul.f32 %v3826_v19, %v10780_v11  ;;  %v3034_v22 = vpop.f32.mrb[15].mxu1 }
 0x663   : > { %v7058_v37 = vpop.eup %7057  ;;  %v4014_v31 = vadd.f32 1.0, %v7056_v51  ;;  %v3249_v50 = vmul.f32 0.7978846, %v3217_v6  ;;  %v3247_v48 = vmul.f32 0.7978846, %v3215_v5  ;;  %v3827_v53 = vmul.f32 %v10788_v24, %v10788_v24 }
 0x664   : > { %v4211_v36 = vadd.f32 %v4210_v2, %v4180_v38  ;;  %v4048_v54 = vmul.f32 0.5, %v4016_v29  ;;  %v4017_v1 = vadd.f32 1.0, %v7058_v37  ;;  %v3861_v28 = vmul.f32 %v3829_v58, %v10783_v52  ;;  %v10807_v13 = vpop.f32.mrb[48].mxu0 }
 0x665   : > { %v7060_v32 = vpop.eup %7059  ;;  %v4046_v17 = vmul.f32 0.5, %v4014_v31  ;;  %7065 = vtanh.f32 %v3249_v50  ;;  %v3892_v57 = vmul.f32 0.044715, %v3860_v41  ;;  %v3890_v45 = vmul.f32 0.044715, %v3858_v14  ;;  %v10809_v34 = vpop.f32.mrb[49].mxu0 }
 0x666   : > { %v7062_v63 = vpop.eup %7061  ;;  %v4080_v49 = vmul.f32 %v4048_v54, %v10689_v59  ;;  %v4049_v46 = vmul.f32 0.5, %v4017_v1  ;;  %v4015_v21 = vadd.f32 1.0, %v7060_v32  ;;  %v4140_v38 = vadd.f32 %v4139_v15, %v10768_v23  ;;  %v10813_v43 = vpop.f32.mrb[50].mxu0 }
 0x667   : > { %v7064_v30 = vpop.eup %7063  ;;  %v3312_v26 = vadd.f32 1.0, %v7062_v63  ;;  %v10815_v25 = vadd.f32 %v4211_v36, %v4181_v18  ;;  %7067 = vtanh.f32 %v3247_v48  ;;  %v3924_v60 = vadd.f32 %v3892_v57, %v10774_v27  ;;  %v10818_v42 = vpop.f32.mrb[51].mxu0 }
 0x668   : > { %v4078_v19 = vmul.f32 %v4046_v17, %v10700_v61  ;;  %v10822_v58 = vmul.f32 %v4049_v46, %v10705_v40  ;;  %v3310_v59 = vadd.f32 1.0, %v7064_v30  ;;  %v3922_v47 = vadd.f32 %v3890_v45, %v10780_v11 }
 0x669   : > { %v3344_v6 = vmul.f32 0.5, %v3312_v26  ;;  %v3956_v5 = vmul.f32 0.7978846, %v3924_v60  ;;  %v3893_v41 = vmul.f32 0.044715, %v3861_v28  ;;  %v3859_v51 = vmul.f32 %v3827_v53, %v10788_v24 }
 0x66a   : > { %v4047_v18 = vmul.f32 0.5, %v4015_v21  ;;  %v3342_v15 = vmul.f32 0.5, %v3310_v59  ;;  %v3954_v2 = vmul.f32 0.7978846, %v3922_v47  ;;  %v10827_v29 = vadd.f32 %v6532_v0, %v10569_v56 }
 0x66b   : > { %v3376_v14 = vmul.f32 %v3344_v6, %v10716_v33  ;;  %7069 = vtanh.f32 %v3956_v5  ;;  %v3925_v61 = vadd.f32 %v3893_v41, %v10783_v52  ;;  %v3891_v40 = vmul.f32 0.044715, %v3859_v51 }
 0x66c   : > { %v3374_v37 = vmul.f32 %v3342_v15, %v10719_v39  ;;  %7071 = vtanh.f32 %v3954_v2  ;;  %v3124_v31 = vmul.f32 %v10827_v29, %v10827_v29  ;;  %v10835_v50 = vadd.f32 %v10569_v56, %v3031_v10 }
 0x66d   : > { %v10837_v48 = vadd.f32 %v4080_v49, %v3376_v14  ;;  %v3957_v53 = vmul.f32 0.7978846, %v3925_v61  ;;  %v3923_v0 = vadd.f32 %v3891_v40, %v10788_v24  ;;  %v10841_v33 = vadd.f32 %v6533_v16, %v10569_v56 }
 0x66e   : > { %v10843_v36 = vadd.f32 %v4078_v19, %v3374_v37  ;;  %v3156_v54 = vmul.f32 %v3124_v31, %v10827_v29  ;;  %v3122_v39 = vmul.f32 %v10835_v50, %v10835_v50  ;;  %v10849_v1 = vadd.f32 %v10569_v56, %v3034_v22 }
 0x66f   : > { %12854 = vst [vmem:[#allocation55_spill] sm:$0xff] %v10837_v48  ;;  %v7066_v10 = vpop.eup %7065  ;;  %v4079_v28 = vmul.f32 %v4047_v18, %v10708_v44  ;;  %7073 = vtanh.f32 %v3957_v53  ;;  %v3955_v32 = vmul.f32 0.7978846, %v3923_v0  ;;  %v3125_v17 = vmul.f32 %v10841_v33, %v10841_v33 }
 0x670   : > { %v10856_v16 = vmul.f32 %v10837_v48, %v10837_v48  ;;  %v4141_v57 = vadd.f32 %v4140_v38, %v10843_v36  ;;  %v3313_v45 = vadd.f32 1.0, %v7066_v10  ;;  %v3188_v63 = vmul.f32 0.044715, %v3156_v54 }
 0x671   : > { %v7068_v49 = vpop.eup %7067  ;;  %7075 = vtanh.f32 %v3955_v32  ;;  %v3154_v22 = vmul.f32 %v3122_v39, %v10835_v50  ;;  %v3157_v46 = vmul.f32 %v3125_v17, %v10841_v33  ;;  %v3123_v44 = vmul.f32 %v10849_v1, %v10849_v1  ;;  %v10863_v21 = vpop.f32.mrb[16].mxu1 }
 0x672   : > { %v4182_v30 = vmul.f32 %v10843_v36, %v10843_v36  ;;  %v3345_v26 = vmul.f32 0.5, %v3313_v45  ;;  %v3311_v60 = vadd.f32 1.0, %v7068_v49  ;;  %v3220_v38 = vadd.f32 %v3188_v63, %v10827_v29  ;;  %v10868_v19 = vpop.f32.mrb[17].mxu1 }
 0x673   : > { %v3186_v59 = vmul.f32 0.044715, %v3154_v22  ;;  %v3189_v47 = vmul.f32 0.044715, %v3157_v46  ;;  %v3155_v6 = vmul.f32 %v3123_v44, %v10849_v1  ;;  %v10873_v5 = vadd.f32 %v10807_v13, %v10538_v8  ;;  %v10875_v41 = vpop.f32.mrb[18].mxu1 }
 0x674   : > { %v3377_v51 = vmul.f32 %v3345_v26, %v10727_v7  ;;  %v3343_v18 = vmul.f32 0.5, %v3311_v60  ;;  %v3252_v15 = vmul.f32 0.7978846, %v3220_v38  ;;  %v10880_v2 = vadd.f32 %v10538_v8, %v10809_v34  ;;  %v10882_v14 = vpop.f32.mrb[19].mxu1 }
 0x675   : > { %v7070_v61 = vpop.eup %7069  ;;  %v3218_v40 = vadd.f32 %v3186_v59, %v10835_v50  ;;  %v3221_v37 = vadd.f32 %v3189_v47, %v10841_v33  ;;  %v3187_v31 = vmul.f32 0.044715, %v3155_v6  ;;  %v3832_v13 = vmul.f32 %v10873_v5, %v10873_v5 }
 0x676   : > { %v7072_v53 = vpop.eup %7071  ;;  %v10889_v7 = vadd.f32 %v10822_v58, %v3377_v51  ;;  %v3375_v0 = vmul.f32 %v3343_v18, %v10735_v35  ;;  %v4020_v54 = vadd.f32 1.0, %v7070_v61  ;;  %7077 = vtanh.f32 %v3252_v15  ;;  %v10892_v34 = vpop.f32.mrb[52].mxu0 }
 0x677   : > { %v4018_v39 = vadd.f32 1.0, %v7072_v53  ;;  %v3250_v10 = vmul.f32 0.7978846, %v3218_v40  ;;  %v3253_v32 = vmul.f32 0.7978846, %v3221_v37  ;;  %v3219_v17 = vadd.f32 %v3187_v31, %v10849_v1  ;;  %v10895_v45 = vpop.f32.mrb[53].mxu0 }
 0x678   : > { %12855 = vst [vmem:[#allocation57_spill] sm:$0xff] %v10889_v7  ;;  %v4213_v63 = vadd.f32 %v10815_v25, %v4182_v30  ;;  %v10898_v49 = vadd.f32 %v4079_v28, %v3375_v0  ;;  %v4052_v22 = vmul.f32 0.5, %v4020_v54  ;;  %v3864_v58 = vmul.f32 %v3832_v13, %v10873_v5  ;;  %v10901_v46 = vpop.f32.mrb[54].mxu0 }
 0x679   : > { %v7074_v35 = vpop.eup %7073  ;;  %v10905_v44 = vmul.f32 %v10889_v7, %v10889_v7  ;;  %7079 = vtanh.f32 %v3250_v10  ;;  %v3251_v26 = vmul.f32 0.7978846, %v3219_v17  ;;  %v3830_v60 = vmul.f32 %v10880_v2, %v10880_v2  ;;  %v10909_v38 = vpop.f32.mrb[55].mxu0 }
 0x67a   : > { %12856 = vst [vmem:[#allocation58_spill] sm:$0xff] %v10898_v49  ;;  %v4142_v25 = vadd.f32 %v4141_v57, %v10898_v49  ;;  %v4183_v28 = vmul.f32 %v10898_v49, %v10898_v49  ;;  %v4050_v30 = vmul.f32 0.5, %v4018_v39  ;;  %v4021_v59 = vadd.f32 1.0, %v7074_v35 }
 0x67b   : > { %v7076_v47 = vpop.eup %7075  ;;  %v4084_v6 = vmul.f32 %v4052_v22, %v10774_v27  ;;  %7081 = vtanh.f32 %v3253_v32  ;;  %v3896_v51 = vmul.f32 0.044715, %v3864_v58  ;;  %v3862_v18 = vmul.f32 %v3830_v60, %v10880_v2 }
 0x67c   : > { %v4143_v15 = vadd.f32 %v4142_v25, %v10837_v48  ;;  %v4214_v61 = vadd.f32 %v4213_v63, %v4183_v28  ;;  %v4053_v40 = vmul.f32 0.5, %v4021_v59  ;;  %v4019_v37 = vadd.f32 1.0, %v7076_v47 }
 0x67d   : > { %7083 = vtanh.f32 %v3251_v26  ;;  %v3928_v57 = vadd.f32 %v3896_v51, %v10873_v5  ;;  %v3894_v31 = vmul.f32 0.044715, %v3862_v18  ;;  %v10920_v13 = vadd.f32 %v10813_v43, %v10538_v8 }
 0x67e   : > { %v4215_v53 = vadd.f32 %v4214_v61, %v10856_v16  ;;  %v4082_v27 = vmul.f32 %v4050_v30, %v10780_v11  ;;  %v10925_v0 = vmul.f32 %v4053_v40, %v10783_v52  ;;  %v4051_v54 = vmul.f32 0.5, %v4019_v37 }
 0x67f   : > { %v3960_v39 = vmul.f32 0.7978846, %v3928_v57  ;;  %v3926_v10 = vadd.f32 %v3894_v31, %v10880_v2  ;;  %v3833_v32 = vmul.f32 %v10920_v13, %v10920_v13  ;;  %v10932_v17 = vadd.f32 %v10538_v8, %v10818_v42 }
 0x680   : > { %v7078_v43 = vpop.eup %7077  ;;  %v10935_v63 = vmul.f32 %v4051_v54, %v10788_v24  ;;  %v4144_v11 = vadd.f32 %v4143_v15, %v10889_v7  ;;  %v10940_v52 = vadd.f32 %v10863_v21, %v10569_v56  ;;  %v10944_v16 = vadd.f32 %v10569_v56, %v10868_v19 }
 0x681   : > { %v3316_v22 = vadd.f32 1.0, %v7078_v43  ;;  %7085 = vtanh.f32 %v3960_v39  ;;  %v3958_v58 = vmul.f32 0.7978846, %v3926_v10  ;;  %v3865_v8 = vmul.f32 %v3833_v32, %v10920_v13 }
 0x682   : > { %v3831_v42 = vmul.f32 %v10932_v17, %v10932_v17  ;;  %v3128_v24 = vmul.f32 %v10940_v52, %v10940_v52  ;;  %v3126_v35 = vmul.f32 %v10944_v16, %v10944_v16  ;;  %v10955_v21 = vadd.f32 %v10875_v41, %v10569_v56 }
 0x683   : > { %v7080_v19 = vpop.eup %7079  ;;  %v3348_v26 = vmul.f32 0.5, %v3316_v22  ;;  %7087 = vtanh.f32 %v3958_v58  ;;  %v3897_v60 = vmul.f32 0.044715, %v3865_v8  ;;  %v10959_v25 = vadd.f32 %v10569_v56, %v10882_v14 }
 0x684   : > { %v3314_v28 = vadd.f32 1.0, %v7080_v19  ;;  %v3863_v30 = vmul.f32 %v3831_v42, %v10932_v17  ;;  %v3160_v59 = vmul.f32 %v3128_v24, %v10940_v52  ;;  %v3158_v47 = vmul.f32 %v3126_v35, %v10944_v16 }
 0x685   : > { %v7082_v51 = vpop.eup %7081  ;;  %v3380_v18 = vmul.f32 %v3348_v26, %v10827_v29  ;;  %v3929_v41 = vadd.f32 %v3897_v60, %v10920_v13  ;;  %v3129_v15 = vmul.f32 %v10955_v21, %v10955_v21  ;;  %v3127_v61 = vmul.f32 %v10959_v25, %v10959_v25  ;;  %v10970_v14 = vpop.f32.mrb[20].mxu1 }
 0x686   : > { %v3346_v40 = vmul.f32 0.5, %v3314_v28  ;;  %v3317_v37 = vadd.f32 1.0, %v7082_v51  ;;  %v3895_v57 = vmul.f32 0.044715, %v3863_v30  ;;  %v3192_v31 = vmul.f32 0.044715, %v3160_v59 }
 0x687   : > { %v7084_v54 = vpop.eup %7083  ;;  %v10972_v39 = vadd.f32 %v4084_v6, %v3380_v18  ;;  %v3961_v10 = vmul.f32 0.7978846, %v3929_v41  ;;  %v3190_v32 = vmul.f32 0.044715, %v3158_v47  ;;  %v3161_v29 = vmul.f32 %v3129_v15, %v10955_v21  ;;  %v10975_v43 = vpop.f32.mrb[21].mxu1 }
 0x688   : > { %v3378_v22 = vmul.f32 %v3346_v40, %v10835_v50  ;;  %v3349_v58 = vmul.f32 0.5, %v3317_v37  ;;  %v3315_v8 = vadd.f32 1.0, %v7084_v54  ;;  %v3927_v42 = vadd.f32 %v3895_v57, %v10932_v17  ;;  %v10979_v24 = vpop.f32.mrb[22].mxu1 }
 0x689   : > { %12857 = vst [vmem:[#allocation70_spill] sm:$0xff] %v10972_v39  ;;  %v4216_v35 = vadd.f32 %v4215_v53, %v10905_v44  ;;  %7089 = vtanh.f32 %v3961_v10  ;;  %v3224_v6 = vadd.f32 %v3192_v31, %v10940_v52  ;;  %v3222_v19 = vadd.f32 %v3190_v32, %v10944_v16  ;;  %v10984_v26 = vpop.f32.mrb[23].mxu1 }
 0x68a   : > { %v10986_v60 = vadd.f32 %v4082_v27, %v3378_v22  ;;  %v3381_v28 = vmul.f32 %v3349_v58, %v10841_v33  ;;  %v3347_v50 = vmul.f32 0.5, %v3315_v8  ;;  %v3959_v30 = vmul.f32 0.7978846, %v3927_v42  ;;  %v10989_v59 = vpop.f32.mrb[56].mxu0 }
 0x68b   : > { %v7086_v47 = vpop.eup %7085  ;;  %v3256_v51 = vmul.f32 0.7978846, %v3224_v6  ;;  %v3254_v18 = vmul.f32 0.7978846, %v3222_v19  ;;  %v3193_v41 = vmul.f32 0.044715, %v3161_v29  ;;  %v3159_v44 = vmul.f32 %v3127_v61, %v10959_v25 }
 0x68c   : > { %12858 = vst [vmem:[#allocation67_spill] sm:$0xff] %v10986_v60  ;;  %v4145_v53 = vadd.f32 %v4144_v11, %v10986_v60  ;;  %v4186_v15 = vmul.f32 %v10986_v60, %v10986_v60  ;;  %v10996_v27 = vadd.f32 %v10925_v0, %v3381_v28  ;;  %v3379_v33 = vmul.f32 %v3347_v50, %v10849_v1  ;;  %v10999_v40 = vpop.f32.mrb[57].mxu0  ;;  %v11016_v6 = vld [vmem:[%s8219_s14] ss:$0 sm:$0xff]  ;;  %s12862_s14 = sld [smem:[#allocation40_spill]] }
 0x68d   : > { %v7088_v37 = vpop.eup %7087  ;;  %v4024_v57 = vadd.f32 1.0, %v7086_v47  ;;  %7091 = vtanh.f32 %v3959_v30  ;;  %v3225_v31 = vadd.f32 %v3193_v41, %v10955_v21  ;;  %v3191_v54 = vmul.f32 0.044715, %v3159_v44  ;;  %v11002_v61 = vpop.f32.mrb[58].mxu0 }
 0x68e   : > { %12859 = vst [vmem:[#allocation46_spill] sm:$0xff] %v10996_v27  ;;  %v11005_v11 = vadd.f32 %v10935_v63, %v3379_v33  ;;  %v4022_v10 = vadd.f32 1.0, %v7088_v37  ;;  %v11007_v32 = vpop.f32.mrb[59].mxu0  ;;  %7093 = vtanh.f32 %v3256_v51  ;;  %v4217_v22 = vadd.f32 %v4216_v35, %v4186_v15 }
 0x68f   : > { %v4056_v0 = vmul.f32 0.5, %v4024_v57  ;;  %v3257_v1 = vmul.f32 0.7978846, %v3225_v31  ;;  %v3223_v29 = vadd.f32 %v3191_v54, %v10959_v25  ;;  %7095 = vtanh.f32 %v3254_v18  ;;  %v11060_v31 = vld [vmem:[%s12853_s29] ss:$0 sm:$0xff] }
 0x690   : > { %12860 = vst [vmem:[#allocation48_spill] sm:$0xff] %v11005_v11  ;;  %v4146_v58 = vadd.f32 %v4145_v53, %v11005_v11  ;;  %v4187_v8 = vmul.f32 %v11005_v11, %v11005_v11  ;;  %v4188_v42 = vmul.f32 %v10972_v39, %v10972_v39  ;;  %v11020_v19 = vadd.f32 %v11016_v6, %v10892_v34 }
 0x691   : > { %7097 = vtanh.f32 %v3257_v1  ;;  %v3255_v63 = vmul.f32 0.7978846, %v3223_v29  ;;  %v11024_v35 = vmul.f32 %v10996_v27, %v10996_v27  ;;  %v11027_v28 = vmul.f32 %v4056_v0, %v10873_v5 }
 0x692   : > { %v4054_v50 = vmul.f32 0.5, %v4022_v10  ;;  %v11031_v30 = vadd.f32 %v11016_v6, %v10895_v45  ;;  %v3836_v51 = vmul.f32 %v11020_v19, %v11020_v19  ;;  %v11037_v34 = vadd.f32 %v11016_v6, %v10901_v46 }
 0x693   : > { %v7090_v47 = vpop.eup %7089  ;;  %7099 = vtanh.f32 %v3255_v63  ;;  %v11041_v18 = vadd.f32 %v11016_v6, %v10909_v38  ;;  %v11044_v5 = vadd.f32 %v4146_v58, %v10972_v39  ;;  %v4218_v41 = vadd.f32 %v4217_v22, %v4187_v8 }
 0x694   : > { %v4025_v45 = vadd.f32 1.0, %v7090_v47  ;;  %v3834_v44 = vmul.f32 %v11031_v30, %v11031_v30  ;;  %v3868_v53 = vmul.f32 %v3836_v51, %v11020_v19  ;;  %v3837_v15 = vmul.f32 %v11037_v34, %v11037_v34 }
 0x695   : > { %v3835_v46 = vmul.f32 %v11041_v18, %v11041_v18  ;;  %v11055_v38 = vadd.f32 %v10970_v14, %v10569_v56  ;;  %v4086_v33 = vmul.f32 %v4054_v50, %v10880_v2  ;;  %v11064_v54 = vadd.f32 %v11060_v31, %v10975_v43 }
 0x696   : > { %v4057_v37 = vmul.f32 0.5, %v4025_v45  ;;  %v3866_v57 = vmul.f32 %v3834_v44, %v11031_v30  ;;  %v11066_v10 = vpop.f32.mrb[24].mxu1  ;;  %v3900_v1 = vmul.f32 0.044715, %v3868_v53  ;;  %v3869_v29 = vmul.f32 %v3837_v15, %v11037_v34 }
 0x697   : > { %v7092_v0 = vpop.eup %7091  ;;  %v3867_v56 = vmul.f32 %v3835_v46, %v11041_v18  ;;  %v3132_v2 = vmul.f32 %v11055_v38, %v11055_v38  ;;  %v11072_v14 = vpop.f32.mrb[25].mxu1  ;;  %v4219_v22 = vadd.f32 %v4218_v41, %v4188_v42  ;;  %v3130_v43 = vmul.f32 %v11064_v54, %v11064_v54 }
 0x698   : > { %v4023_v58 = vadd.f32 1.0, %v7092_v0  ;;  %v3898_v8 = vmul.f32 0.044715, %v3866_v57  ;;  %v11076_v63 = vpop.f32.mrb[26].mxu1  ;;  %v7094_v50 = vpop.eup %7093  ;;  %v4089_v47 = vmul.f32 %v4057_v37, %v10920_v13  ;;  %v3932_v51 = vadd.f32 %v3900_v1, %v11020_v19 }
 0x699   : > { %v3901_v45 = vmul.f32 0.044715, %v3869_v29  ;;  %v3899_v44 = vmul.f32 0.044715, %v3867_v56  ;;  %v11080_v53 = vpop.f32.mrb[27].mxu1  ;;  %v7096_v15 = vpop.eup %7095  ;;  %v3320_v46 = vadd.f32 1.0, %v7094_v50  ;;  %v3164_v41 = vmul.f32 %v3132_v2, %v11055_v38 }
 0x69a   : > { %v3930_v42 = vadd.f32 %v3898_v8, %v11031_v30  ;;  %v3162_v57 = vmul.f32 %v3130_v43, %v11064_v54  ;;  %v3318_v39 = vadd.f32 1.0, %v7096_v15  ;;  %v3964_v11 = vmul.f32 0.7978846, %v3932_v51  ;;  %v11087_v37 = vpop.f32.mrb[60].mxu0 }
 0x69b   : > { %v7098_v0 = vpop.eup %7097  ;;  %v3933_v60 = vadd.f32 %v3901_v45, %v11037_v34  ;;  %v3931_v13 = vadd.f32 %v3899_v44, %v11041_v18  ;;  %v4055_v1 = vmul.f32 0.5, %v4023_v58  ;;  %v3352_v29 = vmul.f32 0.5, %v3320_v46  ;;  %v11089_v50 = vpop.f32.mrb[61].mxu0 }
 0x69c   : > { %v3321_v56 = vadd.f32 1.0, %v7098_v0  ;;  %v3962_v7 = vmul.f32 0.7978846, %v3930_v42  ;;  %v3350_v48 = vmul.f32 0.5, %v3318_v39  ;;  %7101 = vtanh.f32 %v3964_v11  ;;  %v11091_v49 = vpop.f32.mrb[62].mxu0 }
 0x69d   : > { %v7100_v8 = vpop.eup %7099  ;;  %v3965_v2 = vmul.f32 0.7978846, %v3933_v60  ;;  %v3963_v43 = vmul.f32 0.7978846, %v3931_v13  ;;  %v3384_v51 = vmul.f32 %v3352_v29, %v10940_v52  ;;  %v11094_v44 = vpop.f32.mrb[63].mxu0  ;;  %v11107_v13 = vadd.f32 %v11060_v31, %v10979_v24 }
 0x69e   : > { %v3353_v45 = vmul.f32 0.5, %v3321_v56  ;;  %v3319_v15 = vadd.f32 1.0, %v7100_v8  ;;  %7103 = vtanh.f32 %v3962_v7  ;;  %v3382_v58 = vmul.f32 %v3350_v48, %v10944_v16 }
 0x69f   : > { %7105 = vtanh.f32 %v3965_v2  ;;  %v3196_v46 = vmul.f32 0.044715, %v3164_v41  ;;  %v3194_v42 = vmul.f32 0.044715, %v3162_v57  ;;  %v11098_v0 = vadd.f32 %v11027_v28, %v3384_v51 }
 0x6a0   : > { %v3385_v39 = vmul.f32 %v3353_v45, %v10955_v21  ;;  %v3351_v60 = vmul.f32 0.5, %v3319_v15  ;;  %7107 = vtanh.f32 %v3963_v43  ;;  %v11101_v11 = vadd.f32 %v4086_v33, %v3382_v58 }
 0x6a1   : > { %v3228_v52 = vadd.f32 %v3196_v46, %v11055_v38  ;;  %v3226_v7 = vadd.f32 %v3194_v42, %v11064_v54  ;;  %v4087_v48 = vmul.f32 %v4055_v1, %v10932_v17  ;;  %v11115_v21 = vadd.f32 %v11060_v31, %v10984_v26 }
 0x6a2   : > { %12861 = vst [vmem:[#allocation49_spill] sm:$0xff] %v11101_v11  ;;  %v11110_v16 = vadd.f32 %v4089_v47, %v3385_v39  ;;  %v3383_v28 = vmul.f32 %v3351_v60, %v10959_v25  ;;  %v4148_v33 = vadd.f32 %v11044_v5, %v10996_v27  ;;  %v4220_v41 = vadd.f32 %v4219_v22, %v11024_v35 }
 0x6a3   : > { %v3260_v57 = vmul.f32 0.7978846, %v3228_v52  ;;  %v3258_v29 = vmul.f32 0.7978846, %v3226_v7  ;;  %v4190_v24 = vmul.f32 %v11101_v11, %v11101_v11  ;;  %v3133_v17 = vmul.f32 %v11107_v13, %v11107_v13 }
 0x6a4   : > { %v11122_v56 = vadd.f32 %v4087_v48, %v3383_v28  ;;  %v3131_v25 = vmul.f32 %v11115_v21, %v11115_v21  ;;  %v11130_v26 = vadd.f32 %v11016_v6, %v10989_v59  ;;  %v11134_v35 = vadd.f32 %v11016_v6, %v10999_v40 }
 0x6a5   : > { %7109 = vtanh.f32 %v3260_v57  ;;  %v3165_v5 = vmul.f32 %v3133_v17, %v11107_v13  ;;  %v11137_v22 = vpop.f32.mrb[28].mxu1  ;;  %v4149_v1 = vadd.f32 %v4148_v33, %v11101_v11  ;;  %v4221_v51 = vadd.f32 %v4220_v41, %v4190_v24 }
 0x6a6   : > { %7111 = vtanh.f32 %v3258_v29  ;;  %v7102_v47 = vpop.eup %7101  ;;  %v3163_v8 = vmul.f32 %v3131_v25, %v11115_v21  ;;  %v3840_v2 = vmul.f32 %v11130_v26, %v11130_v26  ;;  %v3838_v59 = vmul.f32 %v11134_v35, %v11134_v35  ;;  %v11145_v43 = vpop.f32.mrb[29].mxu1 }
 0x6a7   : > { %v4191_v45 = vmul.f32 %v11122_v56, %v11122_v56  ;;  %v4028_v15 = vadd.f32 1.0, %v7102_v47  ;;  %v3197_v58 = vmul.f32 0.044715, %v3165_v5  ;;  %v11149_v46 = vpop.f32.mrb[30].mxu1  ;;  %v11157_v41 = vadd.f32 %v11016_v6, %v11002_v61 }
 0x6a8   : > { %v7104_v40 = vpop.eup %7103  ;;  %v3195_v60 = vmul.f32 0.044715, %v3163_v8  ;;  %v3872_v52 = vmul.f32 %v3840_v2, %v11130_v26  ;;  %v11152_v7 = vpop.f32.mrb[31].mxu1  ;;  %v3870_v57 = vmul.f32 %v3838_v59, %v11134_v35  ;;  %v4192_v29 = vmul.f32 %v11098_v0, %v11098_v0 }
 0x6a9   : > { %v7106_v42 = vpop.eup %7105  ;;  %v4026_v39 = vadd.f32 1.0, %v7104_v40  ;;  %v4060_v28 = vmul.f32 0.5, %v4028_v15  ;;  %v3229_v17 = vadd.f32 %v3197_v58, %v11107_v13  ;;  %v11165_v5 = vmul.f32 %v11110_v16, %v11110_v16 }
 0x6aa   : > { %v7108_v48 = vpop.eup %7107  ;;  %v4029_v33 = vadd.f32 1.0, %v7106_v42  ;;  %v3227_v25 = vadd.f32 %v3195_v60, %v11115_v21  ;;  %v4150_v47 = vadd.f32 %v4149_v1, %v11122_v56  ;;  %v4222_v8 = vadd.f32 %v4221_v51, %v4191_v45 }
 0x6ab   : > { %v4058_v24 = vmul.f32 0.5, %v4026_v39  ;;  %v3904_v2 = vmul.f32 0.044715, %v3872_v52  ;;  %v4092_v59 = vmul.f32 %v4060_v28, %v11020_v19  ;;  %v4027_v61 = vadd.f32 1.0, %v7108_v48 }
 0x6ac   : > { %v3261_v40 = vmul.f32 0.7978846, %v3229_v17  ;;  %v3259_v15 = vmul.f32 0.7978846, %v3227_v25  ;;  %v4061_v42 = vmul.f32 0.5, %v4029_v33  ;;  %v3841_v58 = vmul.f32 %v11157_v41, %v11157_v41 }
 0x6ad   : > { %v3936_v39 = vadd.f32 %v3904_v2, %v11130_v26  ;;  %v3902_v11 = vmul.f32 0.044715, %v3870_v57  ;;  %v4090_v27 = vmul.f32 %v4058_v24, %v11031_v30  ;;  %v11175_v1 = vadd.f32 %v11016_v6, %v11007_v32 }
 0x6ae   : > { %7113 = vtanh.f32 %v3261_v40  ;;  %v11179_v19 = vadd.f32 %v11060_v31, %v11066_v10  ;;  %v3873_v33 = vmul.f32 %v3841_v58, %v11157_v41  ;;  %v11189_v10 = vadd.f32 %v11060_v31, %v11072_v14 }
 0x6af   : > { %v7110_v60 = vpop.eup %7109  ;;  %7115 = vtanh.f32 %v3259_v15  ;;  %v3968_v52 = vmul.f32 0.7978846, %v3936_v39  ;;  %v3934_v48 = vadd.f32 %v3902_v11, %v11134_v35  ;;  %v3839_v30 = vmul.f32 %v11175_v1, %v11175_v1 }
 0x6b0   : > { %v7112_v51 = vpop.eup %7111  ;;  %v3324_v45 = vadd.f32 1.0, %v7110_v60  ;;  %v3136_v32 = vmul.f32 %v11179_v19, %v11179_v19  ;;  %v3905_v25 = vmul.f32 0.044715, %v3873_v33  ;;  %v3134_v15 = vmul.f32 %v11189_v10, %v11189_v10 }
 0x6b1   : > { %v3322_v28 = vadd.f32 1.0, %v7112_v51  ;;  %7117 = vtanh.f32 %v3968_v52  ;;  %v3966_v24 = vmul.f32 0.7978846, %v3934_v48  ;;  %v3871_v11 = vmul.f32 %v3839_v30, %v11175_v1 }
 0x6b2   : > { %v3356_v57 = vmul.f32 0.5, %v3324_v45  ;;  %v3168_v2 = vmul.f32 %v3136_v32, %v11179_v19  ;;  %v11198_v39 = vadd.f32 %v11060_v31, %v11076_v63  ;;  %v3937_v14 = vadd.f32 %v3905_v25, %v11157_v41 }
 0x6b3   : > { %v3354_v17 = vmul.f32 0.5, %v3322_v28  ;;  %7119 = vtanh.f32 %v3966_v24  ;;  %v3903_v60 = vmul.f32 0.044715, %v3871_v11  ;;  %v3166_v52 = vmul.f32 %v3134_v15, %v11189_v10 }
 0x6b4   : > { %v3388_v40 = vmul.f32 %v3356_v57, %v11055_v38  ;;  %v3200_v51 = vmul.f32 0.044715, %v3168_v2  ;;  %v3137_v38 = vmul.f32 %v11198_v39, %v11198_v39  ;;  %v11209_v48 = vadd.f32 %v11060_v31, %v11080_v53 }
 0x6b5   : > { %v3386_v58 = vmul.f32 %v3354_v17, %v11064_v54  ;;  %v3969_v63 = vmul.f32 0.7978846, %v3937_v14  ;;  %v3935_v54 = vadd.f32 %v3903_v60, %v11175_v1  ;;  %v4151_v30 = vadd.f32 %v4150_v47, %v11098_v0 }
 0x6b6   : > { %v11202_v45 = vadd.f32 %v4092_v59, %v3388_v40  ;;  %v3232_v33 = vadd.f32 %v3200_v51, %v11179_v19  ;;  %v3198_v59 = vmul.f32 0.044715, %v3166_v52  ;;  %v3169_v32 = vmul.f32 %v3137_v38, %v11198_v39 }
 0x6b7   : > { %v11211_v28 = vadd.f32 %v4090_v27, %v3386_v58  ;;  %v3135_v57 = vmul.f32 %v11209_v48, %v11209_v48  ;;  %v4223_v17 = vadd.f32 %v4222_v8, %v4192_v29  ;;  %v4059_v25 = vmul.f32 0.5, %v4027_v61 }
 0x6b8   : > { %v7114_v24 = vpop.eup %7113  ;;  %7121 = vtanh.f32 %v3969_v63  ;;  %v3967_v53 = vmul.f32 0.7978846, %v3935_v54  ;;  %v3264_v2 = vmul.f32 0.7978846, %v3232_v33  ;;  %v3230_v40 = vadd.f32 %v3198_v59, %v11189_v10 }
 0x6b9   : > { %v7116_v27 = vpop.eup %7115  ;;  %v3325_v11 = vadd.f32 1.0, %v7114_v24  ;;  %v3201_v15 = vmul.f32 0.044715, %v3169_v32  ;;  %v4093_v58 = vmul.f32 %v4061_v42, %v11037_v34  ;;  %v3167_v14 = vmul.f32 %v3135_v57, %v11209_v48 }
 0x6ba   : > { %v3323_v47 = vadd.f32 1.0, %v7116_v27  ;;  %7123 = vtanh.f32 %v3967_v53  ;;  %v3262_v52 = vmul.f32 0.7978846, %v3230_v40  ;;  %v4091_v8 = vmul.f32 %v4059_v25, %v11041_v18 }
 0x6bb   : > { %v7118_v60 = vpop.eup %7117  ;;  %v3357_v51 = vmul.f32 0.5, %v3325_v11  ;;  %7125 = vtanh.f32 %v3264_v2  ;;  %v3233_v29 = vadd.f32 %v3201_v15, %v11198_v39  ;;  %v3199_v38 = vmul.f32 0.044715, %v3167_v14 }
 0x6bc   : > { %v3355_v61 = vmul.f32 0.5, %v3323_v47  ;;  %v11226_v63 = vadd.f32 %v11016_v6, %v11087_v37  ;;  %7127 = vtanh.f32 %v3262_v52  ;;  %v11231_v33 = vadd.f32 %v11016_v6, %v11089_v50 }
 0x6bd   : > { %v7120_v54 = vpop.eup %7119  ;;  %v3389_v34 = vmul.f32 %v3357_v51, %v11107_v13  ;;  %v3265_v42 = vmul.f32 0.7978846, %v3233_v29  ;;  %v4032_v32 = vadd.f32 1.0, %v7118_v60  ;;  %v3231_v18 = vadd.f32 %v3199_v38, %v11209_v48 }
 0x6be   : > { %v3387_v59 = vmul.f32 %v3355_v61, %v11115_v21  ;;  %v4030_v57 = vadd.f32 1.0, %v7120_v54  ;;  %v3844_v37 = vmul.f32 %v11226_v63, %v11226_v63  ;;  %v3842_v13 = vmul.f32 %v11231_v33, %v11231_v33 }
 0x6bf   : > { %v11235_v24 = vadd.f32 %v4093_v58, %v3389_v34  ;;  %7129 = vtanh.f32 %v3265_v42  ;;  %v4152_v25 = vadd.f32 %v4151_v30, %v11110_v16  ;;  %v3263_v50 = vmul.f32 0.7978846, %v3231_v18 }
 0x6c0   : > { %v11242_v53 = vadd.f32 %v4091_v8, %v3387_v59  ;;  %v4224_v21 = vadd.f32 %v4223_v17, %v11165_v5  ;;  %v3876_v27 = vmul.f32 %v3844_v37, %v11226_v63  ;;  %v3874_v11 = vmul.f32 %v3842_v13, %v11231_v33 }
 0x6c1   : > { %v11249_v2 = vadd.f32 %v11016_v6, %v11091_v49  ;;  %v4194_v15 = vmul.f32 %v11211_v28, %v11211_v28  ;;  %v4064_v58 = vmul.f32 0.5, %v4032_v32  ;;  %v4062_v47 = vmul.f32 0.5, %v4030_v57 }
 0x6c2   : > { %v7122_v40 = vpop.eup %7121  ;;  %7131 = vtanh.f32 %v3263_v50  ;;  %v3908_v14 = vmul.f32 0.044715, %v3876_v27  ;;  %v3906_v60 = vmul.f32 0.044715, %v3874_v11  ;;  %v4153_v51 = vadd.f32 %v4152_v25, %v11211_v28 }
 0x6c3   : > { %v4033_v30 = vadd.f32 1.0, %v7122_v40  ;;  %v3845_v5 = vmul.f32 %v11249_v2, %v11249_v2  ;;  %v11258_v49 = vadd.f32 %v11016_v6, %v11094_v44  ;;  %v11263_v38 = vadd.f32 %v11060_v31, %v11137_v22 }
 0x6c4   : > { %v7124_v17 = vpop.eup %7123  ;;  %v3940_v61 = vadd.f32 %v3908_v14, %v11226_v63  ;;  %v4225_v54 = vadd.f32 %v4224_v21, %v4194_v15  ;;  %v3938_v42 = vadd.f32 %v3906_v60, %v11231_v33  ;;  %v4195_v6 = vmul.f32 %v11242_v53, %v11242_v53 }
 0x6c5   : > { %v7126_v52 = vpop.eup %7125  ;;  %v4065_v29 = vmul.f32 0.5, %v4033_v30  ;;  %v4031_v8 = vadd.f32 1.0, %v7124_v17  ;;  %v3877_v59 = vmul.f32 %v3845_v5, %v11249_v2  ;;  %v4096_v44 = vmul.f32 %v4064_v58, %v11130_v26 }
 0x6c6   : > { %v3328_v34 = vadd.f32 1.0, %v7126_v52  ;;  %v7128_v32 = vpop.eup %7127  ;;  %v4094_v57 = vmul.f32 %v4062_v47, %v11134_v35  ;;  %v3843_v25 = vmul.f32 %v11258_v49, %v11258_v49  ;;  %v3972_v27 = vmul.f32 0.7978846, %v3940_v61 }
 0x6c7   : > { %v4097_v18 = vmul.f32 %v4065_v29, %v11157_v41  ;;  %v3326_v13 = vadd.f32 1.0, %v7128_v32  ;;  %v3909_v22 = vmul.f32 0.044715, %v3877_v59  ;;  %v4063_v21 = vmul.f32 0.5, %v4031_v8 }
 0x6c8   : > { %v3360_v37 = vmul.f32 0.5, %v3328_v34  ;;  %v3140_v11 = vmul.f32 %v11263_v38, %v11263_v38  ;;  %v11278_v40 = vadd.f32 %v11060_v31, %v11145_v43  ;;  %v3970_v15 = vmul.f32 0.7978846, %v3938_v42 }
 0x6c9   : > { %v7130_v50 = vpop.eup %7129  ;;  %v3358_v35 = vmul.f32 0.5, %v3326_v13  ;;  %v3941_v58 = vadd.f32 %v3909_v22, %v11249_v2  ;;  %v3875_v47 = vmul.f32 %v3843_v25, %v11258_v49  ;;  %7133 = vtanh.f32 %v3972_v27 }
 0x6ca   : > { %v3392_v26 = vmul.f32 %v3360_v37, %v11179_v19  ;;  %v3329_v41 = vadd.f32 1.0, %v7130_v50  ;;  %v3172_v30 = vmul.f32 %v3140_v11, %v11263_v38  ;;  %v3138_v14 = vmul.f32 %v11278_v40, %v11278_v40 }
 0x6cb   : > { %v3390_v43 = vmul.f32 %v3358_v35, %v11189_v10  ;;  %v11291_v19 = vadd.f32 %v11060_v31, %v11149_v46  ;;  %v3907_v29 = vmul.f32 0.044715, %v3875_v47  ;;  %7135 = vtanh.f32 %v3970_v15 }
 0x6cc   : > { %v7132_v60 = vpop.eup %7131  ;;  %v11286_v5 = vadd.f32 %v4096_v44, %v3392_v26  ;;  %v3361_v17 = vmul.f32 0.5, %v3329_v41  ;;  %v3170_v8 = vmul.f32 %v3138_v14, %v11278_v40  ;;  %v3204_v42 = vmul.f32 0.044715, %v3172_v30 }
 0x6cd   : > { %v3327_v52 = vadd.f32 1.0, %v7132_v60  ;;  %v11294_v61 = vadd.f32 %v4094_v57, %v3390_v43  ;;  %v3141_v59 = vmul.f32 %v11291_v19, %v11291_v19  ;;  %v3973_v10 = vmul.f32 0.7978846, %v3941_v58 }
 0x6ce   : > { %v3393_v34 = vmul.f32 %v3361_v17, %v11198_v39  ;;  %v3202_v44 = vmul.f32 0.044715, %v3170_v8  ;;  %v4154_v46 = vadd.f32 %v4153_v51, %v11242_v53  ;;  %v3939_v13 = vadd.f32 %v3907_v29, %v11258_v49 }
 0x6cf   : > { %v3359_v32 = vmul.f32 0.5, %v3327_v52  ;;  %v3236_v22 = vadd.f32 %v3204_v42, %v11263_v38  ;;  %v4095_v57 = vmul.f32 %v4063_v21, %v11175_v1  ;;  %v3173_v50 = vmul.f32 %v3141_v59, %v11291_v19 }
 0x6d0   : > { %v11300_v37 = vadd.f32 %v4097_v18, %v3393_v34  ;;  %v3234_v25 = vadd.f32 %v3202_v44, %v11278_v40  ;;  %v4226_v27 = vadd.f32 %v4225_v54, %v4195_v6  ;;  %v11310_v26 = vadd.f32 %v11060_v31, %v11152_v7 }
 0x6d1   : > { %v3391_v39 = vmul.f32 %v3359_v32, %v11209_v48  ;;  %v3268_v11 = vmul.f32 0.7978846, %v3236_v22  ;;  %7137 = vtanh.f32 %v3973_v10  ;;  %v3205_v35 = vmul.f32 0.044715, %v3173_v50 }
 0x6d2   : > { %v3266_v18 = vmul.f32 0.7978846, %v3234_v25  ;;  %v3971_v41 = vmul.f32 0.7978846, %v3939_v13  ;;  %v3139_v1 = vmul.f32 %v11310_v26, %v11310_v26  ;;  %v4196_v48 = vmul.f32 %v11202_v45, %v11202_v45 }
 0x6d3   : > { %v11312_v51 = vadd.f32 %v4095_v57, %v3391_v39  ;;  %7139 = vtanh.f32 %v3268_v11  ;;  %v4155_v54 = vadd.f32 %v4154_v46, %v11202_v45  ;;  %v3237_v6 = vadd.f32 %v3205_v35, %v11291_v19  ;;  %v7134_v7 = vpop.eup %7133 }
 0x6d4   : > { %7141 = vtanh.f32 %v3266_v18  ;;  %v3171_v31 = vmul.f32 %v3139_v1, %v11310_v26  ;;  %v4227_v21 = vadd.f32 %v4226_v27, %v4196_v48  ;;  %v4197_v30 = vmul.f32 %v11235_v24, %v11235_v24 }
 0x6d5   : > { %v3269_v15 = vmul.f32 0.7978846, %v3237_v6  ;;  %7143 = vtanh.f32 %v3971_v41  ;;  %v7136_v47 = vpop.eup %7135  ;;  %v4156_v14 = vadd.f32 %v4155_v54, %v11235_v24  ;;  %v4198_v43 = vmul.f32 %v11294_v61, %v11294_v61 }
 0x6d6   : > { %v3203_v58 = vmul.f32 0.044715, %v3171_v31  ;;  %v4036_v17 = vadd.f32 1.0, %v7134_v7  ;;  %v4228_v52 = vadd.f32 %v4227_v21, %v4197_v30  ;;  %v4034_v29 = vadd.f32 1.0, %v7136_v47 }
 0x6d7   : > { %7145 = vtanh.f32 %v3269_v15  ;;  %v4157_v42 = vadd.f32 %v4156_v14, %v11294_v61  ;;  %v4199_v10 = vmul.f32 %v11312_v51, %v11312_v51 }
 0x6d8   : > { %v3235_v60 = vadd.f32 %v3203_v58, %v11310_v26  ;;  %v4068_v44 = vmul.f32 0.5, %v4036_v17  ;;  %v4229_v13 = vadd.f32 %v4228_v52, %v4198_v43  ;;  %v4066_v22 = vmul.f32 0.5, %v4034_v29 }
 0x6d9   : > { %v4158_v50 = vadd.f32 %v4157_v42, %v11312_v51  ;;  %v4200_v58 = vmul.f32 %v11286_v5, %v11286_v5  ;;  %v4201_v17 = vmul.f32 %v11300_v37, %v11300_v37 }
 0x6da   : > { %v3267_v8 = vmul.f32 0.7978846, %v3235_v60  ;;  %v4100_v35 = vmul.f32 %v4068_v44, %v11226_v63  ;;  %v4230_v1 = vadd.f32 %v4229_v13, %v4199_v10  ;;  %v4098_v48 = vmul.f32 %v4066_v22, %v11231_v33 }
 0x6db   : > { %v7138_v34 = vpop.eup %7137  ;;  %v4159_v15 = vadd.f32 %v4158_v50, %v11286_v5  ;;  %v6930_v50 = vld [vmem:[%s12862_s14 + $0x8] sm:$0xff]  }
 0x6dc   : > { %7147 = vtanh.f32 %v3267_v8  ;;  %v4037_v39 = vadd.f32 1.0, %v7138_v34  ;;  %v4231_v30 = vadd.f32 %v4230_v1, %v4200_v58 }
 0x6dd   : > { %v7140_v59 = vpop.eup %7139  ;;  %v4160_v43 = vadd.f32 %v4159_v15, %v11300_v37 }
 0x6de   : > { %v7142_v32 = vpop.eup %7141  ;;  %v3332_v46 = vadd.f32 1.0, %v7140_v59  ;;  %v4069_v31 = vmul.f32 0.5, %v4037_v39  ;;  %v4232_v34 = vadd.f32 %v4231_v30, %v4201_v17  ;;  %v6936_v30 = vld [vmem:[%s12862_s14 + $0x38] sm:$0xff]  }
 0x6df   : > { %v3330_v57 = vadd.f32 1.0, %v7142_v32  ;;  %v7144_v27 = vpop.eup %7143 }
 0x6e0   : > { %v3364_v25 = vmul.f32 0.5, %v3332_v46  ;;  %v4035_v7 = vadd.f32 1.0, %v7144_v27  ;;  %v4101_v33 = vmul.f32 %v4069_v31, %v11249_v2  ;;  %v6931_v27 = vld [vmem:[%s12862_s14 + $0x10] sm:$0xff]  }
 0x6e1   : > { %v3362_v11 = vmul.f32 0.5, %v3330_v57  ;;  %v7146_v18 = vpop.eup %7145 }
 0x6e2   : > { %v3396_v41 = vmul.f32 %v3364_v25, %v11263_v38  ;;  %v3333_v6 = vadd.f32 1.0, %v7146_v18  ;;  %v6929_v25 = vld [vmem:[%s12862_s14] sm:$0xff]  }
 0x6e3   : > { %v3394_v54 = vmul.f32 %v3362_v11, %v11278_v40  ;;  %v4067_v40 = vmul.f32 0.5, %v4035_v7  ;;  %6598 = vmatprep.subr.bf16.mxu1 %v6929_v25  ;;  %v6932_v11 = vld [vmem:[%s12862_s14 + $0x18] sm:$0xff]   ;;  %v6933_v18 = vld [vmem:[%s12862_s14 + $0x20] sm:$0xff]  }
 0x6e4   : > { %v11335_v21 = vadd.f32 %v4100_v35, %v3396_v41  ;;  %v3365_v63 = vmul.f32 0.5, %v3333_v6  ;;  %6599 = vmatpush3.bf16.msra.mxu1 %v6929_v25  ;;  %v6934_v35 = vld [vmem:[%s12862_s14 + $0x28] sm:$0xff]   ;;  %v6935_v41 = vld [vmem:[%s12862_s14 + $0x30] sm:$0xff]  }
 0x6e5   : > { %v11340_v47 = vadd.f32 %v4098_v48, %v3394_v54  ;;  %v4099_v42 = vmul.f32 %v4067_v40, %v11258_v49  ;;  %6600 = vmatprep.subr.bf16.mxu1 %v6930_v50 }
 0x6e6   : > { %v7148_v38 = vpop.eup %7147  ;;  %v3397_v14 = vmul.f32 %v3365_v63, %v11291_v19  ;;  %v4204_v49 = vmul.f32 %v11335_v21, %v11335_v21 }
 0x6e7   : > { %v3331_v60 = vadd.f32 1.0, %v7148_v38  ;;  %v4202_v8 = vmul.f32 %v11340_v47, %v11340_v47  ;;  %v4161_v2 = vadd.f32 %v4160_v43, %v11340_v47 }
 0x6e8   : > { %v11347_v52 = vadd.f32 %v4101_v33, %v3397_v14  ;;  %6601 = vmatpush3.bf16.msra.mxu1 %v6930_v50 }
 0x6e9   : > { %v3363_v29 = vmul.f32 0.5, %v3331_v60  ;;  %v4233_v32 = vadd.f32 %v4232_v34, %v4202_v8  ;;  %6602 = vmatprep.subr.bf16.mxu1 %v6931_v27 }
 0x6ea   : > { %v4205_v22 = vmul.f32 %v11347_v52, %v11347_v52 }
 0x6eb   : > { %v3395_v19 = vmul.f32 %v3363_v29, %v11310_v26 }
 0x6ec   : > { %6603 = vmatpush3.bf16.msra.mxu1 %v6931_v27 }
 0x6ed   : > { %v11354_v59 = vadd.f32 %v4099_v42, %v3395_v19  ;;  %6604 = vmatprep.subr.bf16.mxu1 %v6932_v11 }
 0x6ef   : > { %v4162_v10 = vadd.f32 %v4161_v2, %v11354_v59  ;;  %v4203_v44 = vmul.f32 %v11354_v59, %v11354_v59 }
 0x6f0   : > { %6605 = vmatpush3.bf16.msra.mxu1 %v6932_v11 }
 0x6f1   : > { %v4163_v46 = vadd.f32 %v4162_v10, %v11335_v21  ;;  %v4234_v13 = vadd.f32 %v4233_v32, %v4203_v44  ;;  %6606 = vmatprep.subr.bf16.mxu1 %v6933_v18 }
 0x6f3   : > { %v4164_v26 = vadd.f32 %v4163_v46, %v11347_v52  ;;  %v4235_v57 = vadd.f32 %v4234_v13, %v4204_v49  ;;  %v11410_v49 = vld [vmem:[%s1098_s26] ss:$0 sm:$0xff]  ;;  %v12866_v13 = vld [vmem:[#allocation58_spill] sm:$0xff] }
 0x6f4   : > { %6607 = vmatpush3.bf16.msra.mxu1 %v6933_v18 }
 0x6f5   : > { %4165 = vadd.xlane.f32.xlu0 %v4164_v26  ;;  %v4236_v39 = vadd.f32 %v4235_v57, %v4205_v22  ;;  %6608 = vmatprep.subr.bf16.mxu1 %v6934_v35 }
 0x6f7   : > { %4237 = vadd.xlane.f32.xlu1 %v4236_v39 }
 0x6f8   : > { %6609 = vmatpush3.bf16.msra.mxu1 %v6934_v35 }
 0x6f9   : > { %6610 = vmatprep.subr.bf16.mxu1 %v6935_v41 }
 0x6fc   : > { %6611 = vmatpush3.bf16.msra.mxu1 %v6935_v41 }
 0x6fd   : > { %6612 = vmatprep.subr.bf16.mxu1 %v6936_v30 }
 0x700   : > { %6613 = vmatpush3.bf16.msra.mxu1 %v6936_v30 }
 0x782   : > { %v4166_v1 = vpop.xlane.xlu0 %4165 }
 0x783   : > { %v4167_v48 = vrot.slane %v4166_v1, 4 }
 0x784   : > { %v4238_v54 = vpop.xlane.xlu1 %4237 }
 0x785   : > { %v4168_v6 = vadd.f32 %v4167_v48, %v4166_v1  ;;  %v4239_v31 = vrot.slane %v4238_v54, 4 }
 0x787   : > { %v4169_v7 = vrot.slane %v4168_v6, 2  ;;  %v4240_v15 = vadd.f32 %v4239_v31, %v4238_v54 }
 0x789   : > { %v4241_v58 = vrot.slane %v4240_v15, 2  ;;  %v4170_v63 = vadd.f32 %v4169_v7, %v4168_v6 }
 0x78b   : > { %v4171_v38 = vrot.slane %v4170_v63, 1  ;;  %v4242_v14 = vadd.f32 %v4241_v58, %v4240_v15 }
 0x78d   : > { %v4172_v33 = vadd.f32 %v4171_v38, %v4170_v63  ;;  %v4243_v40 = vrot.slane %v4242_v14, 1 }
 0x78f   : > { %6754 = vpush %v4172_v33  ;;  %v4244_v60 = vadd.f32 %v4243_v40, %v4242_v14  ;;  %v12867_v33 = vld [vmem:[#allocation55_spill] sm:$0xff] }
 0x791   : > { %6756 = vpush %v4244_v60  ;;  %v12868_v60 = vld [vmem:[#allocation57_spill] sm:$0xff] }
 0x7c0   : > { %s6755_s12 = spop %6754 }
 0x7c1   : > { %s4248_s24 = smul.f32 0.00012207031, %s6755_s12 }
 0x7c2   : > { %s6757_s28 = spop %6756 }
 0x7c3   : > { %s4252_s17 = smul.f32 %s4248_s24, %s4248_s24  ;;  %v11374_v29 = vstv %s4248_s24 }
 0x7c4   : > { %s4251_s19 = smul.f32 0.00012207031, %s6757_s28  ;;  %v4258_v8 = vsub.f32 %v10658_v3, %v11374_v29  ;;  %v4259_v34 = vsub.f32 %v10665_v12, %v11374_v29  ;;  %v4256_v42 = vsub.f32 %v10662_v20, %v11374_v29  ;;  %v4257_v19 = vsub.f32 %v10670_v4, %v11374_v29  ;;  %v11393_v3 = vld [vmem:[%s12864_s22] ss:$0 sm:$0xff] }
 0x7c5   : > { %v4260_v2 = vsub.f32 %v10751_v62, %v11374_v29  ;;  %v4261_v12 = vsub.f32 %v10777_v55, %v11374_v29  ;;  %v4262_v20 = vsub.f32 %v10748_v9, %v11374_v29  ;;  %v4263_v4 = vsub.f32 %v10768_v23, %v11374_v29 }
 0x7c6   : > { %s4253_s25 = ssub.f32 %s4251_s19, %s4252_s17  ;;  %v4264_v23 = vsub.f32 %v10843_v36, %v11374_v29  ;;  %v4265_v26 = vsub.f32 %v12866_v13, %v11374_v29  ;;  %v4266_v40 = vsub.f32 %v12867_v33, %v11374_v29  ;;  %v4277_v33 = vsub.f32 %v11242_v53, %v11374_v29 }
 0x7c8   : > { %s4254_s5 = smax.f32 %s7608_s6, %s4253_s25 }
 0x7c9   : > { %s4288_s15 = sadd.f32 1e-05, %s4254_s5 }
 0x7cb   : > { %v4289_v43 = vstv %s4288_s15 }
 0x7cc   : > { %7149 = vrsqrt.f32 %v4289_v43  ;;  %v4267_v43 = vsub.f32 %v12868_v60, %v11374_v29 }
 0x7d6   : > { %v7150_v17 = vpop.eup %7149 }
 0x7d7   : > { %6758 = vpush %v7150_v17  ;;  %v12869_v17 = vld [vmem:[#allocation67_spill] sm:$0xff] }
 0x808   : > { %s6759_s0 = spop %6758 }
 0x809   : > { %v11386_v32 = vstv %s6759_s0 }
 0x80a   : > { %v4295_v10 = vmul.f32 %v11386_v32, %v4258_v8  ;;  %v4296_v62 = vmul.f32 %v11386_v32, %v4259_v34  ;;  %v4293_v44 = vmul.f32 %v11386_v32, %v4256_v42  ;;  %v4294_v46 = vmul.f32 %v11386_v32, %v4257_v19  ;;  %v12870_v34 = vld [vmem:[#allocation48_spill] sm:$0xff] }
 0x80b   : > { %v4297_v55 = vmul.f32 %v11386_v32, %v4260_v2  ;;  %v4298_v9 = vmul.f32 %v11386_v32, %v4261_v12  ;;  %v4299_v11 = vmul.f32 %v11386_v32, %v4262_v20  ;;  %v4300_v18 = vmul.f32 %v11386_v32, %v4263_v4 }
 0x80c   : > { %v4332_v22 = vmul.f32 %v11393_v3, %v4293_v44  ;;  %v4333_v57 = vmul.f32 %v11393_v3, %v4294_v46  ;;  %v4334_v39 = vmul.f32 %v11393_v3, %v4295_v10  ;;  %v4335_v25 = vmul.f32 %v11393_v3, %v4296_v62 }
 0x80d   : > { %v4336_v50 = vmul.f32 %v11393_v3, %v4297_v55  ;;  %v4337_v27 = vmul.f32 %v11393_v3, %v4298_v9  ;;  %v4301_v7 = vmul.f32 %v11386_v32, %v4264_v23  ;;  %v4302_v15 = vmul.f32 %v11386_v32, %v4265_v26 }
 0x80e   : > { %v4371_v36 = vadd.f32 %v11410_v49, %v4332_v22  ;;  %v4372_v35 = vadd.f32 %v11410_v49, %v4333_v57  ;;  %v4373_v41 = vadd.f32 %v11410_v49, %v4334_v39  ;;  %v4374_v1 = vadd.f32 %v11410_v49, %v4335_v25  ;;  %v12871_v22 = vld [vmem:[#allocation70_spill] sm:$0xff] }
 0x80f   : > { %v4375_v48 = vadd.f32 %v11410_v49, %v4336_v50  ;;  %v4376_v54 = vadd.f32 %v11410_v49, %v4337_v27  ;;  %v4338_v58 = vmul.f32 %v11393_v3, %v4299_v11  ;;  %v4339_v63 = vmul.f32 %v11393_v3, %v4300_v18  ;;  %v12872_v39 = vld [vmem:[#allocation46_spill] sm:$0xff]  ;;  %v12873_v50 = vld [vmem:[#allocation49_spill] sm:$0xff] }
 0x810   : > { %v4403_v6 = vpack.c.bf16 %v4372_v35, %v4371_v36  ;;  %v4404_v31 = vpack.c.bf16 %v4374_v1, %v4373_v41  ;;  %v4340_v38 = vmul.f32 %v11393_v3, %v4301_v7  ;;  %v4341_v14 = vmul.f32 %v11393_v3, %v4302_v15 }
 0x811   : > { %v4405_v30 = vpack.c.bf16 %v4376_v54, %v4375_v48  ;;  %v4268_v8 = vsub.f32 %v12869_v17, %v11374_v29  ;;  %v4269_v42 = vsub.f32 %v12870_v34, %v11374_v29  ;;  %v4377_v19 = vadd.f32 %v11410_v49, %v4338_v58 }
 0x812   : > { %6614 = vmatprep.mubr.bf16.mxu1 %v4403_v6  ;;  %v4378_v2 = vadd.f32 %v11410_v49, %v4339_v63  ;;  %v4303_v12 = vmul.f32 %v11386_v32, %v4266_v40  ;;  %v4304_v20 = vmul.f32 %v11386_v32, %v4267_v43  ;;  %v4379_v4 = vadd.f32 %v11410_v49, %v4340_v38 }
 0x813   : > { %6615 = vmatmul.mubr.bf16.vlgmr.msra.gmra.mrb[32].mxu1 %v4404_v31  ;;  %v4380_v10 = vadd.f32 %v11410_v49, %v4341_v14  ;;  %v4305_v62 = vmul.f32 %v11386_v32, %v4268_v8  ;;  %v4306_v44 = vmul.f32 %v11386_v32, %v4269_v42  ;;  %v4270_v57 = vsub.f32 %v12871_v22, %v11374_v29 }
 0x814   : > { %6618 = vmatprep.mubr.bf16.mxu1 %v4405_v30  ;;  %v4406_v46 = vpack.c.bf16 %v4378_v2, %v4377_v19  ;;  %v4342_v55 = vmul.f32 %v11393_v3, %v4303_v12  ;;  %v4343_v9 = vmul.f32 %v11393_v3, %v4304_v20  ;;  %v4271_v25 = vsub.f32 %v12872_v39, %v11374_v29 }
 0x815   : > { %v4407_v23 = vpack.c.bf16 %v4380_v10, %v4379_v4  ;;  %v4344_v13 = vmul.f32 %v11393_v3, %v4305_v62  ;;  %v4345_v26 = vmul.f32 %v11393_v3, %v4306_v44  ;;  %v4272_v27 = vsub.f32 %v12873_v50, %v11374_v29 }
 0x816   : > { %v4273_v11 = vsub.f32 %v11122_v56, %v11374_v29  ;;  %v4381_v18 = vadd.f32 %v11410_v49, %v4342_v55  ;;  %v4382_v36 = vadd.f32 %v11410_v49, %v4343_v9  ;;  %v4307_v35 = vmul.f32 %v11386_v32, %v4270_v57 }
 0x817   : > { %v4308_v41 = vmul.f32 %v11386_v32, %v4271_v25  ;;  %v4383_v1 = vadd.f32 %v11410_v49, %v4344_v13  ;;  %v4384_v48 = vadd.f32 %v11410_v49, %v4345_v26  ;;  %v4309_v54 = vmul.f32 %v11386_v32, %v4272_v27 }
 0x818   : > { %v4310_v6 = vmul.f32 %v11386_v32, %v4273_v11  ;;  %v4408_v31 = vpack.c.bf16 %v4382_v36, %v4381_v18  ;;  %v4346_v7 = vmul.f32 %v11393_v3, %v4307_v35  ;;  %v4274_v30 = vsub.f32 %v11098_v0, %v11374_v29 }
 0x819   : > { %v4347_v56 = vmul.f32 %v11393_v3, %v4308_v41  ;;  %v4409_v15 = vpack.c.bf16 %v4384_v48, %v4383_v1  ;;  %v4348_v58 = vmul.f32 %v11393_v3, %v4309_v54  ;;  %v4275_v38 = vsub.f32 %v11110_v16, %v11374_v29 }
 0x81a   : > { %v4349_v63 = vmul.f32 %v11393_v3, %v4310_v6  ;;  %v4276_v14 = vsub.f32 %v11211_v28, %v11374_v29  ;;  %v4385_v40 = vadd.f32 %v11410_v49, %v4346_v7  ;;  %v4311_v43 = vmul.f32 %v11386_v32, %v4274_v30 }
 0x81b   : > { %6619 = vmatmul.mubr.bf16.gmra.mrb[36].mxu1 %v4406_v46  ;;  %v4386_v60 = vadd.f32 %v11410_v49, %v4347_v56  ;;  %v4312_v17 = vmul.f32 %v11386_v32, %v4275_v38  ;;  %v4387_v0 = vadd.f32 %v11410_v49, %v4348_v58  ;;  %v4314_v34 = vmul.f32 %v11386_v32, %v4277_v33 }
 0x81c   : > { %6622 = vmatprep.mubr.bf16.mxu1 %v4407_v23  ;;  %v4388_v8 = vadd.f32 %v11410_v49, %v4349_v63  ;;  %v4313_v16 = vmul.f32 %v11386_v32, %v4276_v14  ;;  %v4350_v42 = vmul.f32 %v11393_v3, %v4311_v43  ;;  %v4278_v20 = vsub.f32 %v11202_v45, %v11374_v29 }
 0x81d   : > { %v4410_v28 = vpack.c.bf16 %v4386_v60, %v4385_v40  ;;  %v4351_v53 = vmul.f32 %v11393_v3, %v4312_v17  ;;  %v4353_v12 = vmul.f32 %v11393_v3, %v4314_v34  ;;  %v4279_v4 = vsub.f32 %v11235_v24, %v11374_v29 }
 0x81e   : > { %v4411_v19 = vpack.c.bf16 %v4388_v8, %v4387_v0  ;;  %v4352_v2 = vmul.f32 %v11393_v3, %v4313_v16  ;;  %v4280_v10 = vsub.f32 %v11294_v61, %v11374_v29  ;;  %v4281_v62 = vsub.f32 %v11312_v51, %v11374_v29 }
 0x81f   : > { %v4389_v44 = vadd.f32 %v11410_v49, %v4350_v42  ;;  %v4390_v46 = vadd.f32 %v11410_v49, %v4351_v53  ;;  %v4315_v55 = vmul.f32 %v11386_v32, %v4278_v20  ;;  %v4316_v9 = vmul.f32 %v11386_v32, %v4279_v4  ;;  %v7219_v53 = vld [vmem:[#allocation2] sm:$0xff]  ;;  %v7221_v20 = vld [vmem:[#allocation2 + $0x8] sm:$0xff] }
 0x820   : > { %v4391_v45 = vadd.f32 %v11410_v49, %v4352_v2  ;;  %v4392_v23 = vadd.f32 %v11410_v49, %v4353_v12  ;;  %v4317_v24 = vmul.f32 %v11386_v32, %v4280_v10  ;;  %v4318_v13 = vmul.f32 %v11386_v32, %v4281_v62  ;;  %v7220_v2 = vld [vmem:[#allocation2 + $0x10] sm:$0xff]  ;;  %v7222_v10 = vld [vmem:[#allocation2 + $0x18] sm:$0xff] }
 0x821   : > { %v4412_v61 = vpack.c.bf16 %v4390_v46, %v4389_v44  ;;  %v4354_v26 = vmul.f32 %v11393_v3, %v4315_v55  ;;  %v4355_v51 = vmul.f32 %v11393_v3, %v4316_v9  ;;  %v4282_v25 = vsub.f32 %v11286_v5, %v11374_v29 }
 0x822   : > { %v4413_v22 = vpack.c.bf16 %v4392_v23, %v4391_v45  ;;  %v4356_v57 = vmul.f32 %v11393_v3, %v4317_v24  ;;  %v4357_v39 = vmul.f32 %v11393_v3, %v4318_v13  ;;  %v4283_v50 = vsub.f32 %v11300_v37, %v11374_v29 }
 0x823   : > { %6623 = vmatmul.mubr.bf16.gmra.mrb[40].mxu1 %v4408_v31  ;;  %v4284_v27 = vsub.f32 %v11340_v47, %v11374_v29  ;;  %v4285_v11 = vsub.f32 %v11354_v59, %v11374_v29  ;;  %v4393_v18 = vadd.f32 %v11410_v49, %v4354_v26  ;;  %v4394_v36 = vadd.f32 %v11410_v49, %v4355_v51 }
 0x824   : > { %6626 = vmatprep.mubr.bf16.mxu1 %v4409_v15  ;;  %v4319_v35 = vmul.f32 %v11386_v32, %v4282_v25  ;;  %v4320_v41 = vmul.f32 %v11386_v32, %v4283_v50  ;;  %v4395_v5 = vadd.f32 %v11410_v49, %v4356_v57  ;;  %v4396_v1 = vadd.f32 %v11410_v49, %v4357_v39  ;;  %v7223_v50 = vld [vmem:[#allocation2 + $0x20] sm:$0xff] }
 0x825   : > { %v4321_v37 = vmul.f32 %v11386_v32, %v4284_v27  ;;  %v4322_v48 = vmul.f32 %v11386_v32, %v4285_v11  ;;  %v4414_v47 = vpack.c.bf16 %v4394_v36, %v4393_v18  ;;  %v4287_v56 = vsub.f32 %v11347_v52, %v11374_v29  ;;  %v7224_v36 = vld [vmem:[#allocation2 + $0x30] sm:$0xff] }
 0x826   : > { %v4358_v54 = vmul.f32 %v11393_v3, %v4319_v35  ;;  %v4359_v59 = vmul.f32 %v11393_v3, %v4320_v41  ;;  %v4415_v6 = vpack.c.bf16 %v4396_v1, %v4395_v5  ;;  %v4286_v15 = vsub.f32 %v11335_v21, %v11374_v29 }
 0x827   : > { %v4360_v31 = vmul.f32 %v11393_v3, %v4321_v37  ;;  %v4361_v7 = vmul.f32 %v11393_v3, %v4322_v48  ;;  %v4324_v38 = vmul.f32 %v11386_v32, %v4287_v56  ;;  %v7225_v37 = vld [vmem:[#allocation2 + $0x28] sm:$0xff] }
 0x828   : > { %v4397_v58 = vadd.f32 %v11410_v49, %v4358_v54  ;;  %v4398_v63 = vadd.f32 %v11410_v49, %v4359_v59  ;;  %v4323_v30 = vmul.f32 %v11386_v32, %v4286_v15  ;;  %v11557_v32 = vld [vmem:[%s1101_s3] ss:$0 sm:$0xff]  ;;  %s12896_s3 = sld [smem:[#allocation41_spill]] }
 0x829   : > { %v4399_v14 = vadd.f32 %v11410_v49, %v4360_v31  ;;  %v4400_v33 = vadd.f32 %v11410_v49, %v4361_v7  ;;  %v4363_v60 = vmul.f32 %v11393_v3, %v4324_v38 }
 0x82a   : > { %v4416_v40 = vpack.c.bf16 %v4398_v63, %v4397_v58  ;;  %v4362_v52 = vmul.f32 %v11393_v3, %v4323_v30 }
 0x82b   : > { %6627 = vmatmul.mubr.bf16.gmra.mrb[44].mxu1 %v4410_v28  ;;  %v4417_v21 = vpack.c.bf16 %v4400_v33, %v4399_v14  ;;  %v4402_v43 = vadd.f32 %v11410_v49, %v4363_v60 }
 0x82c   : > { %6630 = vmatprep.mubr.bf16.mxu1 %v4411_v19  ;;  %v4401_v29 = vadd.f32 %v11410_v49, %v4362_v52 }
 0x82e   : > { %v4418_v17 = vpack.c.bf16 %v4402_v43, %v4401_v29 }
 0x833   : > { %6631 = vmatmul.mubr.bf16.gmra.mrb[48].mxu1 %v4412_v61 }
 0x834   : > { %6634 = vmatprep.mubr.bf16.mxu1 %v4413_v22 }
 0x83b   : > { %6635 = vmatmul.mubr.bf16.gmra.mrb[52].mxu1 %v4414_v47  ;;  %v7226_v47 = vld [vmem:[#allocation2 + $0x38] sm:$0xff] }
 0x83c   : > { %6638 = vmatprep.mubr.bf16.mxu1 %v4415_v6 }
 0x843   : > { %6639 = vmatmul.mubr.bf16.gmra.mrb[56].mxu1 %v4416_v40 }
 0x844   : > { %6642 = vmatprep.mubr.bf16.mxu1 %v4417_v21  ;;  %v7227_v21 = vld [vmem:[#allocation2 + $0x40] sm:$0xff] }
 0x84b   : > { %6643 = vmatmul.mubr.bf16.gmra.mrb[60].mxu1 %v4418_v17 }
 0x8e6   : > { %v6616_v0 = vpop.f32.mrb[32].mxu1 }
 0x8e7   : > { %v4524_v8 = vpop.f32.mrb[33].mxu1  ;;  %v4533_v16 = vadd.f32 %v6616_v0, %v11557_v32  ;;  %v7228_v0 = vld [vmem:[#allocation2 + $0x50] sm:$0xff] }
 0x8e8   : > { %v4525_v3 = vadd.f32 %v11557_v32, %v4524_v8  ;;  %v6617_v34 = vpop.f32.mrb[34].mxu1 }
 0x8e9   : > { %v4536_v28 = vadd.f32 %v6617_v34, %v11557_v32  ;;  %v4527_v42 = vpop.f32.mrb[35].mxu1  ;;  %v11565_v12 = vadd.f32 %v7220_v2, %v4533_v16 }
 0x8ea   : > { %v11562_v49 = vadd.f32 %v7219_v53, %v4525_v3  ;;  %v4528_v19 = vadd.f32 %v11557_v32, %v4527_v42  ;;  %v7230_v53 = vld [vmem:[#allocation2 + $0x58] sm:$0xff] }
 0x8eb   : > { %v11569_v62 = vadd.f32 %v7222_v10, %v4536_v28  ;;  %v4725_v24 = vmul.f32 %v11565_v12, %v11565_v12  ;;  %v7229_v28 = vld [vmem:[#allocation2 + $0x48] sm:$0xff] }
 0x8ec   : > { %v11567_v4 = vadd.f32 %v7221_v20, %v4528_v19  ;;  %v4723_v44 = vmul.f32 %v11562_v49, %v11562_v49 }
 0x8ed   : > { %v4726_v22 = vmul.f32 %v11569_v62, %v11569_v62 }
 0x8ee   : > { %v4683_v46 = vadd.f32 %v11567_v4, %v11562_v49  ;;  %v4724_v55 = vmul.f32 %v11567_v4, %v11567_v4  ;;  %v6620_v9 = vpop.f32.mrb[36].mxu1 }
 0x8ef   : > { %v4549_v45 = vadd.f32 %v6620_v9, %v11557_v32  ;;  %v4540_v23 = vpop.f32.mrb[37].mxu1 }
 0x8f0   : > { %v4684_v13 = vadd.f32 %v4683_v46, %v11565_v12  ;;  %v4755_v61 = vadd.f32 %v4724_v55, %v4723_v44  ;;  %v4541_v26 = vadd.f32 %v11557_v32, %v4540_v23  ;;  %v6621_v51 = vpop.f32.mrb[38].mxu1 }
 0x8f1   : > { %v4552_v57 = vadd.f32 %v6621_v51, %v11557_v32  ;;  %v4543_v39 = vpop.f32.mrb[39].mxu1  ;;  %v11589_v35 = vadd.f32 %v7224_v36, %v4549_v45 }
 0x8f2   : > { %v4756_v25 = vadd.f32 %v4755_v61, %v4725_v24  ;;  %v11585_v27 = vadd.f32 %v7223_v50, %v4541_v26  ;;  %v4685_v11 = vadd.f32 %v4684_v13, %v11569_v62  ;;  %v4544_v18 = vadd.f32 %v11557_v32, %v4543_v39 }
 0x8f3   : > { %v11596_v54 = vadd.f32 %v7226_v47, %v4552_v57  ;;  %v4729_v58 = vmul.f32 %v11589_v35, %v11589_v35  ;;  %v7231_v57 = vld [vmem:[#allocation2 + $0x60] sm:$0xff]  ;;  %v7234_v47 = vld [vmem:[#allocation2 + $0x78] sm:$0xff] }
 0x8f4   : > { %v4686_v41 = vadd.f32 %v4685_v11, %v11585_v27  ;;  %v4727_v5 = vmul.f32 %v11585_v27, %v11585_v27  ;;  %v4757_v1 = vadd.f32 %v4756_v25, %v4726_v22  ;;  %v11594_v48 = vadd.f32 %v7225_v37, %v4544_v18  ;;  %v7232_v11 = vld [vmem:[#allocation2 + $0x70] sm:$0xff] }
 0x8f5   : > { %v4730_v33 = vmul.f32 %v11596_v54, %v11596_v54 }
 0x8f6   : > { %v4758_v59 = vadd.f32 %v4757_v1, %v4727_v5  ;;  %v4687_v6 = vadd.f32 %v4686_v41, %v11594_v48  ;;  %v4728_v31 = vmul.f32 %v11594_v48, %v11594_v48  ;;  %v6624_v7 = vpop.f32.mrb[40].mxu1  ;;  %v7233_v1 = vld [vmem:[#allocation2 + $0x68] sm:$0xff] }
 0x8f7   : > { %v4565_v56 = vadd.f32 %v6624_v7, %v11557_v32  ;;  %v4556_v15 = vpop.f32.mrb[41].mxu1 }
 0x8f8   : > { %v4688_v63 = vadd.f32 %v4687_v6, %v11589_v35  ;;  %v4759_v30 = vadd.f32 %v4758_v59, %v4728_v31  ;;  %v4557_v38 = vadd.f32 %v11557_v32, %v4556_v15  ;;  %v6625_v14 = vpop.f32.mrb[42].mxu1 }
 0x8f9   : > { %v4568_v40 = vadd.f32 %v6625_v14, %v11557_v32  ;;  %v4559_v52 = vpop.f32.mrb[43].mxu1  ;;  %v11613_v8 = vadd.f32 %v7228_v0, %v4565_v56 }
 0x8fa   : > { %v4760_v60 = vadd.f32 %v4759_v30, %v4729_v58  ;;  %v11609_v29 = vadd.f32 %v7227_v21, %v4557_v38  ;;  %v4689_v43 = vadd.f32 %v4688_v63, %v11596_v54  ;;  %v4560_v17 = vadd.f32 %v11557_v32, %v4559_v52 }
 0x8fb   : > { %v11620_v19 = vadd.f32 %v7230_v53, %v4568_v40  ;;  %v4733_v9 = vmul.f32 %v11613_v8, %v11613_v8 }
 0x8fc   : > { %v4690_v16 = vadd.f32 %v4689_v43, %v11609_v29  ;;  %v4731_v3 = vmul.f32 %v11609_v29, %v11609_v29  ;;  %v4761_v34 = vadd.f32 %v4760_v60, %v4730_v33  ;;  %v11618_v42 = vadd.f32 %v7229_v28, %v4560_v17  ;;  %v7235_v43 = vld [vmem:[#allocation2 + $0x80] sm:$0xff] }
 0x8fd   : > { %12876 = vst [vmem:[#allocation51_spill] sm:$0xff] %v11620_v19  ;;  %v4734_v61 = vmul.f32 %v11620_v19, %v11620_v19 }
 0x8fe   : > { %12875 = vst [vmem:[#allocation50_spill] sm:$0xff] %v11618_v42  ;;  %v4762_v2 = vadd.f32 %v4761_v34, %v4731_v3  ;;  %v4691_v20 = vadd.f32 %v4690_v16, %v11618_v42  ;;  %v4732_v10 = vmul.f32 %v11618_v42, %v11618_v42  ;;  %v6628_v44 = vpop.f32.mrb[44].mxu1  ;;  %v7236_v3 = vld [vmem:[#allocation2 + $0x90] sm:$0xff] }
 0x8ff   : > { %v4581_v46 = vadd.f32 %v6628_v44, %v11557_v32  ;;  %v4572_v55 = vpop.f32.mrb[45].mxu1  ;;  %v7238_v44 = vld [vmem:[#allocation2 + $0x98] sm:$0xff] }
 0x900   : > { %v4692_v45 = vadd.f32 %v4691_v20, %v11613_v8  ;;  %v4763_v23 = vadd.f32 %v4762_v2, %v4732_v10  ;;  %v4573_v24 = vadd.f32 %v11557_v32, %v4572_v55  ;;  %v6629_v13 = vpop.f32.mrb[46].mxu1  ;;  %v7237_v20 = vld [vmem:[#allocation2 + $0x88] sm:$0xff] }
 0x901   : > { %v4584_v26 = vadd.f32 %v6629_v13, %v11557_v32  ;;  %v4575_v51 = vpop.f32.mrb[47].mxu1  ;;  %v11637_v18 = vadd.f32 %v7232_v11, %v4581_v46 }
 0x902   : > { %v4764_v22 = vadd.f32 %v4763_v23, %v4733_v9  ;;  %v11633_v39 = vadd.f32 %v7231_v57, %v4573_v24  ;;  %v4693_v25 = vadd.f32 %v4692_v45, %v11620_v19  ;;  %v4576_v50 = vadd.f32 %v11557_v32, %v4575_v51 }
 0x903   : > { %12878 = vst [vmem:[#allocation53_spill] sm:$0xff] %v11637_v18  ;;  %v11644_v59 = vadd.f32 %v7234_v47, %v4584_v26  ;;  %v4737_v63 = vmul.f32 %v11637_v18, %v11637_v18 }
 0x904   : > { %12877 = vst [vmem:[#allocation52_spill] sm:$0xff] %v11633_v39  ;;  %v4694_v36 = vadd.f32 %v4693_v25, %v11633_v39  ;;  %v4735_v41 = vmul.f32 %v11633_v39, %v11633_v39  ;;  %v4765_v5 = vadd.f32 %v4764_v22, %v4734_v61  ;;  %v11642_v37 = vadd.f32 %v7233_v1, %v4576_v50 }
 0x905   : > { %12880 = vst [vmem:[#allocation56_spill] sm:$0xff] %v11644_v59  ;;  %v4738_v40 = vmul.f32 %v11644_v59, %v11644_v59 }
 0x906   : > { %12879 = vst [vmem:[#allocation54_spill] sm:$0xff] %v11642_v37  ;;  %v4766_v6 = vadd.f32 %v4765_v5, %v4735_v41  ;;  %v4695_v31 = vadd.f32 %v4694_v36, %v11642_v37  ;;  %v4736_v7 = vmul.f32 %v11642_v37, %v11642_v37  ;;  %v6632_v56 = vpop.f32.mrb[48].mxu1  ;;  %v7239_v41 = vld [vmem:[#allocation2 + $0xa0] sm:$0xff] }
 0x907   : > { %v4597_v15 = vadd.f32 %v6632_v56, %v11557_v32  ;;  %v4588_v58 = vpop.f32.mrb[49].mxu1 }
 0x908   : > { %v4696_v30 = vadd.f32 %v4695_v31, %v11637_v18  ;;  %v4767_v38 = vadd.f32 %v4766_v6, %v4736_v7  ;;  %v4589_v14 = vadd.f32 %v11557_v32, %v4588_v58  ;;  %v6633_v33 = vpop.f32.mrb[50].mxu1  ;;  %v7240_v6 = vld [vmem:[#allocation2 + $0xb0] sm:$0xff]  ;;  %v7241_v58 = vld [vmem:[#allocation2 + $0xa8] sm:$0xff] }
 0x909   : > { %v4600_v52 = vadd.f32 %v6633_v33, %v11557_v32  ;;  %v4591_v60 = vpop.f32.mrb[51].mxu1  ;;  %v11661_v34 = vadd.f32 %v7236_v3, %v4597_v15 }
 0x90a   : > { %v4768_v21 = vadd.f32 %v4767_v38, %v4737_v63  ;;  %v11657_v17 = vadd.f32 %v7235_v43, %v4589_v14  ;;  %v4697_v0 = vadd.f32 %v4696_v30, %v11644_v59  ;;  %v4592_v16 = vadd.f32 %v11557_v32, %v4591_v60  ;;  %v7242_v30 = vld [vmem:[#allocation2 + $0xb8] sm:$0xff] }
 0x90b   : > { %12882 = vst [vmem:[#allocation59_spill] sm:$0xff] %v11661_v34  ;;  %v11668_v46 = vadd.f32 %v7238_v44, %v4600_v52  ;;  %v4741_v61 = vmul.f32 %v11661_v34, %v11661_v34 }
 0x90c   : > { %12881 = vst [vmem:[#allocation44_spill] sm:$0xff] %v11657_v17  ;;  %v4698_v28 = vadd.f32 %v4697_v0, %v11657_v17  ;;  %v4739_v53 = vmul.f32 %v11657_v17, %v11657_v17  ;;  %v4769_v2 = vadd.f32 %v4768_v21, %v4738_v40  ;;  %v11666_v10 = vadd.f32 %v7237_v20, %v4592_v16 }
 0x90d   : > { %12884 = vst [vmem:[#allocation61_spill] sm:$0xff] %v11668_v46  ;;  %v4742_v25 = vmul.f32 %v11668_v46, %v11668_v46 }
 0x90e   : > { %12883 = vst [vmem:[#allocation60_spill] sm:$0xff] %v11666_v10  ;;  %v4770_v55 = vadd.f32 %v4769_v2, %v4739_v53  ;;  %v4699_v9 = vadd.f32 %v4698_v28, %v11666_v10  ;;  %v4740_v45 = vmul.f32 %v11666_v10, %v11666_v10  ;;  %v6636_v23 = vpop.f32.mrb[52].mxu1 }
 0x90f   : > { %v4613_v24 = vadd.f32 %v6636_v23, %v11557_v32  ;;  %v4604_v13 = vpop.f32.mrb[53].mxu1 }
 0x910   : > { %v4700_v26 = vadd.f32 %v4699_v9, %v11661_v34  ;;  %v4771_v51 = vadd.f32 %v4770_v55, %v4740_v45  ;;  %v4605_v22 = vadd.f32 %v11557_v32, %v4604_v13  ;;  %v6637_v57 = vpop.f32.mrb[54].mxu1  ;;  %v7243_v55 = vld [vmem:[#allocation2 + $0xc0] sm:$0xff] }
 0x911   : > { %v4616_v50 = vadd.f32 %v6637_v57, %v11557_v32  ;;  %v4607_v11 = vpop.f32.mrb[55].mxu1  ;;  %v11685_v31 = vadd.f32 %v7240_v6, %v4613_v24  ;;  %v7244_v24 = vld [vmem:[#allocation2 + $0xd0] sm:$0xff] }
 0x912   : > { %v4772_v36 = vadd.f32 %v4771_v51, %v4741_v61  ;;  %v11681_v5 = vadd.f32 %v7239_v41, %v4605_v22  ;;  %v4701_v1 = vadd.f32 %v4700_v26, %v11668_v46  ;;  %v4608_v47 = vadd.f32 %v11557_v32, %v4607_v11  ;;  %v7245_v22 = vld [vmem:[#allocation2 + $0xc8] sm:$0xff] }
 0x913   : > { %12886 = vst [vmem:[#allocation63_spill] sm:$0xff] %v11685_v31  ;;  %v11692_v38 = vadd.f32 %v7242_v30, %v4616_v50  ;;  %v4745_v43 = vmul.f32 %v11685_v31, %v11685_v31 }
 0x914   : > { %12885 = vst [vmem:[#allocation62_spill] sm:$0xff] %v11681_v5  ;;  %v4702_v7 = vadd.f32 %v4701_v1, %v11681_v5  ;;  %v4743_v56 = vmul.f32 %v11681_v5, %v11681_v5  ;;  %v4773_v15 = vadd.f32 %v4772_v36, %v4742_v25  ;;  %v11690_v63 = vadd.f32 %v7241_v58, %v4608_v47  ;;  %v7246_v25 = vld [vmem:[#allocation2 + $0xd8] sm:$0xff] }
 0x915   : > { %12888 = vst [vmem:[#allocation65_spill] sm:$0xff] %v11692_v38  ;;  %v4746_v53 = vmul.f32 %v11692_v38, %v11692_v38 }
 0x916   : > { %12887 = vst [vmem:[#allocation64_spill] sm:$0xff] %v11690_v63  ;;  %v4774_v14 = vadd.f32 %v4773_v15, %v4743_v56  ;;  %v4703_v33 = vadd.f32 %v4702_v7, %v11690_v63  ;;  %v4744_v40 = vmul.f32 %v11690_v63, %v11690_v63  ;;  %v6640_v52 = vpop.f32.mrb[56].mxu1 }
 0x917   : > { %v4629_v60 = vadd.f32 %v6640_v52, %v11557_v32  ;;  %v4620_v21 = vpop.f32.mrb[57].mxu1  ;;  %v7247_v52 = vld [vmem:[#allocation2 + $0xe0] sm:$0xff] }
 0x918   : > { %v4704_v0 = vadd.f32 %v4703_v33, %v11685_v31  ;;  %v4775_v16 = vadd.f32 %v4774_v14, %v4744_v40  ;;  %v4621_v3 = vadd.f32 %v11557_v32, %v4620_v21  ;;  %v6641_v28 = vpop.f32.mrb[58].mxu1 }
 0x919   : > { %v4632_v2 = vadd.f32 %v6641_v28, %v11557_v32  ;;  %v4623_v20 = vpop.f32.mrb[59].mxu1  ;;  %v11709_v13 = vadd.f32 %v7244_v24, %v4629_v60  ;;  %v7249_v28 = vld [vmem:[#allocation2 + $0xe8] sm:$0xff] }
 0x91a   : > { %v4776_v44 = vadd.f32 %v4775_v16, %v4745_v43  ;;  %v11705_v9 = vadd.f32 %v7243_v55, %v4621_v3  ;;  %v4705_v45 = vadd.f32 %v4704_v0, %v11692_v38  ;;  %v4624_v23 = vadd.f32 %v11557_v32, %v4623_v20  ;;  %v7248_v16 = vld [vmem:[#allocation2 + $0xf0] sm:$0xff]  ;;  %v7250_v55 = vld [vmem:[#allocation2 + $0xf8] sm:$0xff] }
 0x91b   : > { %12890 = vst [vmem:[#allocation68_spill] sm:$0xff] %v11709_v13  ;;  %v11716_v50 = vadd.f32 %v7246_v25, %v4632_v2  ;;  %v4749_v7 = vmul.f32 %v11709_v13, %v11709_v13 }
 0x91c   : > { %12889 = vst [vmem:[#allocation66_spill] sm:$0xff] %v11705_v9  ;;  %v4706_v61 = vadd.f32 %v4705_v45, %v11705_v9  ;;  %v4747_v26 = vmul.f32 %v11705_v9, %v11705_v9  ;;  %v4777_v51 = vadd.f32 %v4776_v44, %v4746_v53  ;;  %v11714_v57 = vadd.f32 %v7245_v22, %v4624_v23 }
 0x91d   : > { %12892 = vst [vmem:[#allocation47_spill] sm:$0xff] %v11716_v50  ;;  %v4750_v14 = vmul.f32 %v11716_v50, %v11716_v50 }
 0x91e   : > { %12891 = vst [vmem:[#allocation69_spill] sm:$0xff] %v11714_v57  ;;  %v4778_v11 = vadd.f32 %v4777_v51, %v4747_v26  ;;  %v4707_v36 = vadd.f32 %v4706_v61, %v11714_v57  ;;  %v4748_v41 = vmul.f32 %v11714_v57, %v11714_v57  ;;  %v6644_v1 = vpop.f32.mrb[60].mxu1 }
 0x91f   : > { %v4645_v47 = vadd.f32 %v6644_v1, %v11557_v32  ;;  %v4636_v6 = vpop.f32.mrb[61].mxu1  ;;  %v6938_v1 = vld [vmem:[%s12896_s3 + $0x8] sm:$0xff]  }
 0x920   : > { %v4779_v56 = vadd.f32 %v4778_v11, %v4748_v41  ;;  %v4637_v15 = vadd.f32 %v11557_v32, %v4636_v6  ;;  %v6645_v58 = vpop.f32.mrb[62].mxu1  ;;  %v4708_v30 = vadd.f32 %v4707_v36, %v11709_v13  ;;  %v6937_v41 = vld [vmem:[%s12896_s3] sm:$0xff]   ;;  %v6940_v6 = vld [vmem:[%s12896_s3 + $0x18] sm:$0xff]  }
 0x921   : > { %v4648_v33 = vadd.f32 %v6645_v58, %v11557_v32  ;;  %v4639_v40 = vpop.f32.mrb[63].mxu1  ;;  %v11733_v3 = vadd.f32 %v7248_v16, %v4645_v47  ;;  %6646 = vmatprep.subr.bf16.mxu0 %v6937_v41  ;;  %v6939_v47 = vld [vmem:[%s12896_s3 + $0x10] sm:$0xff]  }
 0x922   : > { %v11729_v60 = vadd.f32 %v7247_v52, %v4637_v15  ;;  %v4640_v21 = vadd.f32 %v11557_v32, %v4639_v40  ;;  %v4709_v43 = vadd.f32 %v4708_v30, %v11716_v50  ;;  %v4780_v0 = vadd.f32 %v4779_v56, %v4749_v7  ;;  %6647 = vmatpush3.bf16.msra.mxu0 %v6937_v41  ;;  %v6941_v7 = vld [vmem:[%s12896_s3 + $0x20] sm:$0xff]   ;;  %v6942_v56 = vld [vmem:[%s12896_s3 + $0x28] sm:$0xff]   ;;  %v6943_v15 = vld [vmem:[%s12896_s3 + $0x30] sm:$0xff]  }
 0x923   : > { %12894 = vst [vmem:[#allocation45_spill] sm:$0xff] %v11733_v3  ;;  %v11740_v45 = vadd.f32 %v7250_v55, %v4648_v33  ;;  %v4753_v26 = vmul.f32 %v11733_v3, %v11733_v3  ;;  %6648 = vmatprep.subr.bf16.mxu0 %v6938_v1 }
 0x924   : > { %12893 = vst [vmem:[#allocation43_spill] sm:$0xff] %v11729_v60  ;;  %v11735_v53 = vadd.f32 %v7249_v28, %v4640_v21  ;;  %v4710_v2 = vadd.f32 %v4709_v43, %v11729_v60  ;;  %v4751_v20 = vmul.f32 %v11729_v60, %v11729_v60  ;;  %v4781_v44 = vadd.f32 %v4780_v0, %v4750_v14 }
 0x925   : > { %12897 = vst [vmem:[#allocation55_spill] sm:$0xff] %v11740_v45  ;;  %v4754_v25 = vmul.f32 %v11740_v45, %v11740_v45 }
 0x926   : > { %12895 = vst [vmem:[#allocation58_spill] sm:$0xff] %v11735_v53  ;;  %v4711_v32 = vadd.f32 %v4710_v2, %v11735_v53  ;;  %v4752_v23 = vmul.f32 %v11735_v53, %v11735_v53  ;;  %v4782_v24 = vadd.f32 %v4781_v44, %v4751_v20  ;;  %6649 = vmatpush3.bf16.msra.mxu0 %v6938_v1  ;;  %v6944_v44 = vld [vmem:[%s12896_s3 + $0x38] sm:$0xff]  }
 0x927   : > { %6650 = vmatprep.subr.bf16.mxu0 %v6939_v47 }
 0x928   : > { %v4712_v61 = vadd.f32 %v4711_v32, %v11733_v3  ;;  %v4783_v51 = vadd.f32 %v4782_v24, %v4752_v23  ;;  %v6945_v23 = vld [vmem:[%s8250_s9] sm:$0xff]   ;;  %v6946_v24 = vld [vmem:[%s8250_s9 + $0x8] sm:$0xff]  }
 0x929   : > { %6694 = vmatprep.subr.bf16.mxu1 %v6945_v23 }
 0x92a   : > { %v4713_v22 = vadd.f32 %v4712_v61, %v11740_v45  ;;  %v4784_v11 = vadd.f32 %v4783_v51, %v4753_v26  ;;  %6651 = vmatpush3.bf16.msra.mxu0 %v6939_v47  ;;  %6695 = vmatpush3.bf16.msra.mxu1 %v6945_v23  ;;  %v6947_v61 = vld [vmem:[%s8250_s9 + $0x10] sm:$0xff]   ;;  %v6948_v26 = vld [vmem:[%s8250_s9 + $0x18] sm:$0xff]   ;;  %v11781_v47 = vld [vmem:[%s1104_s1] ss:$0 sm:$0xff] }
 0x92b   : > { %6652 = vmatprep.subr.bf16.mxu0 %v6940_v6  ;;  %6696 = vmatprep.subr.bf16.mxu1 %v6946_v24 }
 0x92c   : > { %4714 = vadd.xlane.f32.xlu0 %v4713_v22  ;;  %v4785_v36 = vadd.f32 %v4784_v11, %v4754_v25 }
 0x92e   : > { %4786 = vadd.xlane.f32.xlu1 %v4785_v36  ;;  %6653 = vmatpush3.bf16.msra.mxu0 %v6940_v6 }
 0x92f   : > { %6654 = vmatprep.subr.bf16.mxu0 %v6941_v7  ;;  %6697 = vmatpush3.bf16.msra.mxu1 %v6946_v24 }
 0x930   : > { %6698 = vmatprep.subr.bf16.mxu1 %v6947_v61 }
 0x932   : > { %6655 = vmatpush3.bf16.msra.mxu0 %v6941_v7 }
 0x933   : > { %6656 = vmatprep.subr.bf16.mxu0 %v6942_v56  ;;  %6699 = vmatpush3.bf16.msra.mxu1 %v6947_v61 }
 0x934   : > { %6700 = vmatprep.subr.bf16.mxu1 %v6948_v26 }
 0x936   : > { %6657 = vmatpush3.bf16.msra.mxu0 %v6942_v56 }
 0x937   : > { %6658 = vmatprep.subr.bf16.mxu0 %v6943_v15  ;;  %6701 = vmatpush3.bf16.msra.mxu1 %v6948_v26 }
 0x93a   : > { %6659 = vmatpush3.bf16.msra.mxu0 %v6943_v15 }
 0x93b   : > { %6660 = vmatprep.subr.bf16.mxu0 %v6944_v44 }
 0x93e   : > { %6661 = vmatpush3.bf16.msra.mxu0 %v6944_v44 }
 0x9b9   : > { %v4715_v58 = vpop.xlane.xlu0 %4714 }
 0x9ba   : > { %v4716_v30 = vrot.slane %v4715_v58, 4 }
 0x9bb   : > { %v4787_v14 = vpop.xlane.xlu1 %4786 }
 0x9bc   : > { %v4717_v33 = vadd.f32 %v4716_v30, %v4715_v58  ;;  %v4788_v40 = vrot.slane %v4787_v14, 4 }
 0x9be   : > { %v4718_v52 = vrot.slane %v4717_v33, 2  ;;  %v4789_v21 = vadd.f32 %v4788_v40, %v4787_v14 }
 0x9c0   : > { %v4719_v43 = vadd.f32 %v4718_v52, %v4717_v33  ;;  %v4790_v0 = vrot.slane %v4789_v21, 2 }
 0x9c2   : > { %v4791_v16 = vadd.f32 %v4790_v0, %v4789_v21  ;;  %v4720_v28 = vrot.slane %v4719_v43, 1  ;;  %v11804_v21 = vld [vmem:[%s1107_s30] ss:$0 sm:$0xff] }
 0x9c4   : > { %v4721_v2 = vadd.f32 %v4720_v28, %v4719_v43  ;;  %v4792_v20 = vrot.slane %v4791_v16, 1 }
 0x9c6   : > { %6760 = vpush %v4721_v2  ;;  %v4793_v55 = vadd.f32 %v4792_v20, %v4791_v16 }
 0x9c8   : > { %6762 = vpush %v4793_v55 }
 0x9f7   : > { %s6761_s29 = spop %6760 }
 0x9f8   : > { %s4797_s14 = smul.f32 0.00012207031, %s6761_s29 }
 0x9f9   : > { %s6763_s12 = spop %6762 }
 0x9fa   : > { %s4801_s24 = smul.f32 %s4797_s14, %s4797_s14  ;;  %v11764_v22 = vstv %s4797_s14 }
 0x9fb   : > { %s4800_s28 = smul.f32 0.00012207031, %s6763_s12  ;;  %v4805_v25 = vsub.f32 %v11562_v49, %v11764_v22  ;;  %v4806_v11 = vsub.f32 %v11567_v4, %v11764_v22  ;;  %v4807_v36 = vsub.f32 %v11565_v12, %v11764_v22  ;;  %v4808_v41 = vsub.f32 %v11569_v62, %v11764_v22 }
 0x9fc   : > { %v4809_v1 = vsub.f32 %v11585_v27, %v11764_v22  ;;  %v4810_v6 = vsub.f32 %v11594_v48, %v11764_v22  ;;  %v4811_v7 = vsub.f32 %v11589_v35, %v11764_v22  ;;  %v4812_v56 = vsub.f32 %v11596_v54, %v11764_v22 }
 0x9fd   : > { %s4802_s17 = ssub.f32 %s4800_s28, %s4801_s24  ;;  %v4813_v40 = vsub.f32 %v11609_v29, %v11764_v22  ;;  %v4814_v52 = vsub.f32 %v11618_v42, %v11764_v22 }
 0x9ff   : > { %s4803_s19 = smax.f32 %s7608_s6, %s4802_s17 }
 0xa00   : > { %s4837_s25 = sadd.f32 1e-05, %s4803_s19 }
 0xa02   : > { %v4838_v32 = vstv %s4837_s25 }
 0xa03   : > { %7151 = vrsqrt.f32 %v4838_v32 }
 0xa0d   : > { %v7152_v51 = vpop.eup %7151 }
 0xa0e   : > { %6764 = vpush %v7152_v51 }
 0xa3f   : > { %s6765_s6 = spop %6764 }
 0xa40   : > { %v11789_v15 = vstv %s6765_s6 }
 0xa41   : > { %v4844_v58 = vmul.f32 %v11789_v15, %v4807_v36  ;;  %v4845_v30 = vmul.f32 %v11789_v15, %v4808_v41  ;;  %v4842_v14 = vmul.f32 %v11789_v15, %v4805_v25  ;;  %v4843_v33 = vmul.f32 %v11789_v15, %v4806_v11 }
 0xa42   : > { %v4846_v43 = vmul.f32 %v11789_v15, %v4809_v1  ;;  %v4847_v0 = vmul.f32 %v11789_v15, %v4810_v6  ;;  %v4848_v32 = vmul.f32 %v11789_v15, %v4811_v7  ;;  %v4849_v23 = vmul.f32 %v11789_v15, %v4812_v56 }
 0xa43   : > { %v4883_v16 = vmul.f32 %v11781_v47, %v4844_v58  ;;  %v4884_v28 = vmul.f32 %v11781_v47, %v4845_v30  ;;  %v4881_v2 = vmul.f32 %v11781_v47, %v4842_v14  ;;  %v4882_v20 = vmul.f32 %v11781_v47, %v4843_v33 }
 0xa44   : > { %v4885_v44 = vmul.f32 %v11781_v47, %v4846_v43  ;;  %v4886_v55 = vmul.f32 %v11781_v47, %v4847_v0  ;;  %v4850_v1 = vmul.f32 %v11789_v15, %v4813_v40  ;;  %v4851_v6 = vmul.f32 %v11789_v15, %v4814_v52 }
 0xa45   : > { %v4920_v24 = vadd.f32 %v11804_v21, %v4881_v2  ;;  %v4921_v61 = vadd.f32 %v11804_v21, %v4882_v20  ;;  %v4922_v26 = vadd.f32 %v11804_v21, %v4883_v16  ;;  %v4923_v51 = vadd.f32 %v11804_v21, %v4884_v28 }
 0xa46   : > { %v4924_v25 = vadd.f32 %v11804_v21, %v4885_v44  ;;  %v4925_v11 = vadd.f32 %v11804_v21, %v4886_v55  ;;  %v4887_v7 = vmul.f32 %v11781_v47, %v4848_v32  ;;  %v4888_v56 = vmul.f32 %v11781_v47, %v4849_v23 }
 0xa47   : > { %v4952_v36 = vpack.c.bf16 %v4921_v61, %v4920_v24  ;;  %v4953_v41 = vpack.c.bf16 %v4923_v51, %v4922_v26  ;;  %v4889_v30 = vmul.f32 %v11781_v47, %v4850_v1  ;;  %v4890_v14 = vmul.f32 %v11781_v47, %v4851_v6 }
 0xa48   : > { %v4954_v58 = vpack.c.bf16 %v4925_v11, %v4924_v25  ;;  %v4815_v33 = vsub.f32 %v11613_v8, %v11764_v22  ;;  %v4816_v43 = vsub.f32 %v11620_v19, %v11764_v22  ;;  %v4817_v40 = vsub.f32 %v11633_v39, %v11764_v22 }
 0xa49   : > { %6662 = vmatprep.mubr.bf16.mxu0 %v4952_v36  ;;  %v4818_v52 = vsub.f32 %v11642_v37, %v11764_v22  ;;  %v4926_v0 = vadd.f32 %v11804_v21, %v4887_v7  ;;  %v4927_v16 = vadd.f32 %v11804_v21, %v4888_v56  ;;  %v4928_v20 = vadd.f32 %v11804_v21, %v4889_v30 }
 0xa4a   : > { %6663 = vmatmul.mubr.bf16.vlgmr.msra.gmra.mrb[64].mxu0 %v4953_v41  ;;  %v4852_v28 = vmul.f32 %v11789_v15, %v4815_v33  ;;  %v4853_v2 = vmul.f32 %v11789_v15, %v4816_v43  ;;  %v4929_v44 = vadd.f32 %v11804_v21, %v4890_v14  ;;  %v4854_v55 = vmul.f32 %v11789_v15, %v4817_v40 }
 0xa4b   : > { %6666 = vmatprep.mubr.bf16.mxu0 %v4954_v58  ;;  %v4855_v32 = vmul.f32 %v11789_v15, %v4818_v52  ;;  %v4955_v23 = vpack.c.bf16 %v4927_v16, %v4926_v0  ;;  %v4819_v11 = vsub.f32 %v11637_v18, %v11764_v22  ;;  %v4820_v36 = vsub.f32 %v11644_v59, %v11764_v22 }
 0xa4c   : > { %v4891_v24 = vmul.f32 %v11781_v47, %v4852_v28  ;;  %v4892_v61 = vmul.f32 %v11781_v47, %v4853_v2  ;;  %v4956_v26 = vpack.c.bf16 %v4929_v44, %v4928_v20  ;;  %v4893_v51 = vmul.f32 %v11781_v47, %v4854_v55 }
 0xa4d   : > { %v4894_v25 = vmul.f32 %v11781_v47, %v4855_v32  ;;  %v4821_v41 = vsub.f32 %v11657_v17, %v11764_v22  ;;  %v4822_v1 = vsub.f32 %v11666_v10, %v11764_v22  ;;  %v4856_v56 = vmul.f32 %v11789_v15, %v4819_v11 }
 0xa4e   : > { %v4930_v6 = vadd.f32 %v11804_v21, %v4891_v24  ;;  %v4931_v7 = vadd.f32 %v11804_v21, %v4892_v61  ;;  %v4857_v58 = vmul.f32 %v11789_v15, %v4820_v36  ;;  %v4932_v30 = vadd.f32 %v11804_v21, %v4893_v51 }
 0xa4f   : > { %v4933_v14 = vadd.f32 %v11804_v21, %v4894_v25  ;;  %v4858_v33 = vmul.f32 %v11789_v15, %v4821_v41  ;;  %v4859_v43 = vmul.f32 %v11789_v15, %v4822_v1  ;;  %v4895_v52 = vmul.f32 %v11781_v47, %v4856_v56 }
 0xa50   : > { %v4957_v40 = vpack.c.bf16 %v4931_v7, %v4930_v6  ;;  %v4896_v0 = vmul.f32 %v11781_v47, %v4857_v58  ;;  %v4823_v20 = vsub.f32 %v11661_v34, %v11764_v22  ;;  %v4824_v44 = vsub.f32 %v11668_v46, %v11764_v22 }
 0xa51   : > { %v4958_v16 = vpack.c.bf16 %v4933_v14, %v4932_v30  ;;  %v4897_v28 = vmul.f32 %v11781_v47, %v4858_v33  ;;  %v4898_v2 = vmul.f32 %v11781_v47, %v4859_v43  ;;  %v4825_v55 = vsub.f32 %v11681_v5, %v11764_v22 }
 0xa52   : > { %6667 = vmatmul.mubr.bf16.gmra.mrb[68].mxu0 %v4955_v23  ;;  %v4826_v32 = vsub.f32 %v11690_v63, %v11764_v22  ;;  %v4934_v23 = vadd.f32 %v11804_v21, %v4895_v52  ;;  %v4935_v24 = vadd.f32 %v11804_v21, %v4896_v0  ;;  %v4860_v61 = vmul.f32 %v11789_v15, %v4823_v20 }
 0xa53   : > { %6670 = vmatprep.mubr.bf16.mxu0 %v4956_v26  ;;  %v4861_v26 = vmul.f32 %v11789_v15, %v4824_v44  ;;  %v4936_v51 = vadd.f32 %v11804_v21, %v4897_v28  ;;  %v4937_v25 = vadd.f32 %v11804_v21, %v4898_v2  ;;  %v4862_v11 = vmul.f32 %v11789_v15, %v4825_v55 }
 0xa54   : > { %v4863_v36 = vmul.f32 %v11789_v15, %v4826_v32  ;;  %v4959_v41 = vpack.c.bf16 %v4935_v24, %v4934_v23  ;;  %v4899_v1 = vmul.f32 %v11781_v47, %v4860_v61  ;;  %v4827_v30 = vsub.f32 %v11685_v31, %v11764_v22 }
 0xa55   : > { %v4900_v6 = vmul.f32 %v11781_v47, %v4861_v26  ;;  %v4960_v7 = vpack.c.bf16 %v4937_v25, %v4936_v51  ;;  %v4901_v56 = vmul.f32 %v11781_v47, %v4862_v11  ;;  %v4828_v14 = vsub.f32 %v11692_v38, %v11764_v22 }
 0xa56   : > { %v4902_v58 = vmul.f32 %v11781_v47, %v4863_v36  ;;  %v4829_v33 = vsub.f32 %v11705_v9, %v11764_v22  ;;  %v4830_v43 = vsub.f32 %v11714_v57, %v11764_v22  ;;  %v4864_v0 = vmul.f32 %v11789_v15, %v4827_v30 }
 0xa57   : > { %v4939_v52 = vadd.f32 %v11804_v21, %v4900_v6  ;;  %v4940_v28 = vadd.f32 %v11804_v21, %v4901_v56  ;;  %v4831_v51 = vsub.f32 %v11709_v13, %v11764_v22  ;;  %v4832_v25 = vsub.f32 %v11716_v50, %v11764_v22 }
 0xa58   : > { %v4941_v2 = vadd.f32 %v11804_v21, %v4902_v58  ;;  %v4866_v20 = vmul.f32 %v11789_v15, %v4829_v33  ;;  %v4867_v44 = vmul.f32 %v11789_v15, %v4830_v43  ;;  %v4903_v32 = vmul.f32 %v11781_v47, %v4864_v0 }
 0xa59   : > { %v4833_v11 = vsub.f32 %v11729_v60, %v11764_v22  ;;  %v4834_v36 = vsub.f32 %v11735_v53, %v11764_v22  ;;  %v4868_v6 = vmul.f32 %v11789_v15, %v4831_v51 }
 0xa5a   : > { %6671 = vmatmul.mubr.bf16.gmra.mrb[72].mxu0 %v4957_v40  ;;  %v4938_v40 = vadd.f32 %v11804_v21, %v4899_v1  ;;  %v4962_v24 = vpack.c.bf16 %v4941_v2, %v4940_v28  ;;  %v4905_v61 = vmul.f32 %v11781_v47, %v4866_v20  ;;  %v4906_v26 = vmul.f32 %v11781_v47, %v4867_v44 }
 0xa5b   : > { %6674 = vmatprep.mubr.bf16.mxu0 %v4958_v16  ;;  %v4865_v16 = vmul.f32 %v11789_v15, %v4828_v14  ;;  %v4870_v30 = vmul.f32 %v11789_v15, %v4833_v11  ;;  %v4871_v14 = vmul.f32 %v11789_v15, %v4834_v36  ;;  %v4907_v43 = vmul.f32 %v11781_v47, %v4868_v6  ;;  %v6949_v36 = vld [vmem:[%s8250_s9 + $0x20] sm:$0xff]  }
 0xa5c   : > { %v4961_v55 = vpack.c.bf16 %v4939_v52, %v4938_v40  ;;  %v4944_v56 = vadd.f32 %v11804_v21, %v4905_v61  ;;  %v4945_v58 = vadd.f32 %v11804_v21, %v4906_v26  ;;  %v4835_v28 = vsub.f32 %v11733_v3, %v11764_v22  ;;  %6702 = vmatprep.subr.bf16.mxu1 %v6949_v36  ;;  %v11951_v6 = vld [vmem:[%s1110_s20] ss:$0 sm:$0xff] }
 0xa5d   : > { %v4904_v23 = vmul.f32 %v11781_v47, %v4865_v16  ;;  %v4909_v0 = vmul.f32 %v11781_v47, %v4870_v30  ;;  %v4910_v16 = vmul.f32 %v11781_v47, %v4871_v14  ;;  %v4836_v2 = vsub.f32 %v11740_v45, %v11764_v22  ;;  %6703 = vmatpush3.bf16.msra.mxu1 %v6949_v36 }
 0xa5e   : > { %v4964_v52 = vpack.c.bf16 %v4945_v58, %v4944_v56  ;;  %v4946_v20 = vadd.f32 %v11804_v21, %v4907_v43 }
 0xa5f   : > { %v4943_v1 = vadd.f32 %v11804_v21, %v4904_v23  ;;  %v4948_v23 = vadd.f32 %v11804_v21, %v4909_v0 }
 0xa62   : > { %6675 = vmatmul.mubr.bf16.gmra.mrb[76].mxu0 %v4959_v41  ;;  %v4942_v41 = vadd.f32 %v11804_v21, %v4903_v32  ;;  %v4873_v32 = vmul.f32 %v11789_v15, %v4836_v2 }
 0xa63   : > { %6678 = vmatprep.mubr.bf16.mxu0 %v4960_v7  ;;  %v4869_v7 = vmul.f32 %v11789_v15, %v4832_v25 }
 0xa64   : > { %v4963_v33 = vpack.c.bf16 %v4943_v1, %v4942_v41  ;;  %v4912_v26 = vmul.f32 %v11781_v47, %v4873_v32  ;;  %v6950_v41 = vld [vmem:[%s8250_s9 + $0x28] sm:$0xff]   ;;  %v6951_v1 = vld [vmem:[%s8250_s9 + $0x30] sm:$0xff]  }
 0xa65   : > { %v4908_v40 = vmul.f32 %v11781_v47, %v4869_v7  ;;  %6704 = vmatprep.subr.bf16.mxu1 %v6950_v41 }
 0xa66   : > { %v4951_v11 = vadd.f32 %v11804_v21, %v4912_v26  ;;  %6705 = vmatpush3.bf16.msra.mxu1 %v6950_v41 }
 0xa67   : > { %v4947_v44 = vadd.f32 %v11804_v21, %v4908_v40  ;;  %6706 = vmatprep.subr.bf16.mxu1 %v6951_v1 }
 0xa69   : > { %v4965_v61 = vpack.c.bf16 %v4947_v44, %v4946_v20 }
 0xa6a   : > { %6679 = vmatmul.mubr.bf16.gmra.mrb[80].mxu0 %v4961_v55  ;;  %v4872_v55 = vmul.f32 %v11789_v15, %v4835_v28  ;;  %6707 = vmatpush3.bf16.msra.mxu1 %v6951_v1 }
 0xa6b   : > { %6682 = vmatprep.mubr.bf16.mxu0 %v4962_v24  ;;  %v4949_v24 = vadd.f32 %v11804_v21, %v4910_v16 }
 0xa6c   : > { %v4911_v22 = vmul.f32 %v11781_v47, %v4872_v55  ;;  %v6952_v47 = vld [vmem:[%s8250_s9 + $0x38] sm:$0xff]  }
 0xa6d   : > { %v4966_v51 = vpack.c.bf16 %v4949_v24, %v4948_v23  ;;  %6708 = vmatprep.subr.bf16.mxu1 %v6952_v47 }
 0xa6e   : > { %v4950_v25 = vadd.f32 %v11804_v21, %v4911_v22  ;;  %6709 = vmatpush3.bf16.msra.mxu1 %v6952_v47 }
 0xa70   : > { %v4967_v15 = vpack.c.bf16 %v4951_v11, %v4950_v25 }
 0xa72   : > { %6683 = vmatmul.mubr.bf16.gmra.mrb[84].mxu0 %v4963_v33 }
 0xa73   : > { %6686 = vmatprep.mubr.bf16.mxu0 %v4964_v52 }
 0xa7a   : > { %6687 = vmatmul.mubr.bf16.gmra.mrb[88].mxu0 %v4965_v61 }
 0xa7b   : > { %6690 = vmatprep.mubr.bf16.mxu0 %v4966_v51 }
 0xa82   : > { %6691 = vmatmul.mubr.bf16.gmra.mrb[92].mxu0 %v4967_v15 }
 0xb1d   : > { %v6664_v21 = vpop.f32.mrb[64].mxu0 }
 0xb1e   : > { %v11954_v7 = vadd.f32 %v6664_v21, %v11951_v6  ;;  %v5073_v56 = vpop.f32.mrb[65].mxu0 }
 0xb1f   : > { %v11957_v58 = vadd.f32 %v11951_v6, %v5073_v56  ;;  %v6665_v30 = vpop.f32.mrb[66].mxu0 }
 0xb20   : > { %v5202_v14 = vmul.f32 %v11954_v7, %v11954_v7  ;;  %v11962_v33 = vadd.f32 %v6665_v30, %v11951_v6  ;;  %v5076_v43 = vpop.f32.mrb[67].mxu0 }
 0xb21   : > { %v5200_v40 = vmul.f32 %v11957_v58, %v11957_v58  ;;  %v11967_v52 = vadd.f32 %v11951_v6, %v5076_v43 }
 0xb22   : > { %v5234_v0 = vmul.f32 %v5202_v14, %v11954_v7  ;;  %v5203_v16 = vmul.f32 %v11962_v33, %v11962_v33 }
 0xb23   : > { %v5232_v28 = vmul.f32 %v5200_v40, %v11957_v58  ;;  %v5201_v2 = vmul.f32 %v11967_v52, %v11967_v52 }
 0xb24   : > { %v5266_v20 = vmul.f32 0.044715, %v5234_v0  ;;  %v5235_v44 = vmul.f32 %v5203_v16, %v11962_v33 }
 0xb25   : > { %v5264_v55 = vmul.f32 0.044715, %v5232_v28  ;;  %v5233_v32 = vmul.f32 %v5201_v2, %v11967_v52  ;;  %v6668_v23 = vpop.f32.mrb[68].mxu0 }
 0xb26   : > { %v5298_v24 = vadd.f32 %v5266_v20, %v11954_v7  ;;  %v5267_v61 = vmul.f32 0.044715, %v5235_v44  ;;  %v11979_v22 = vadd.f32 %v6668_v23, %v11951_v6  ;;  %v5089_v26 = vpop.f32.mrb[69].mxu0 }
 0xb27   : > { %v5296_v51 = vadd.f32 %v5264_v55, %v11957_v58  ;;  %v5265_v25 = vmul.f32 0.044715, %v5233_v32  ;;  %v11983_v11 = vadd.f32 %v11951_v6, %v5089_v26  ;;  %v6669_v15 = vpop.f32.mrb[70].mxu0 }
 0xb28   : > { %v5330_v36 = vmul.f32 0.7978846, %v5298_v24  ;;  %v5299_v41 = vadd.f32 %v5267_v61, %v11962_v33  ;;  %v5206_v1 = vmul.f32 %v11979_v22, %v11979_v22  ;;  %v11989_v47 = vadd.f32 %v6669_v15, %v11951_v6  ;;  %v5092_v21 = vpop.f32.mrb[71].mxu0 }
 0xb29   : > { %v5328_v56 = vmul.f32 0.7978846, %v5296_v51  ;;  %v5297_v30 = vadd.f32 %v5265_v25, %v11967_v52  ;;  %v5204_v14 = vmul.f32 %v11983_v11, %v11983_v11  ;;  %v11995_v43 = vadd.f32 %v11951_v6, %v5092_v21 }
 0xb2a   : > { %7153 = vtanh.f32 %v5330_v36  ;;  %v5331_v40 = vmul.f32 0.7978846, %v5299_v41  ;;  %v5238_v0 = vmul.f32 %v5206_v1, %v11979_v22  ;;  %v5207_v16 = vmul.f32 %v11989_v47, %v11989_v47 }
 0xb2b   : > { %7155 = vtanh.f32 %v5328_v56  ;;  %v5329_v28 = vmul.f32 0.7978846, %v5297_v30  ;;  %v5236_v2 = vmul.f32 %v5204_v14, %v11983_v11  ;;  %v5205_v20 = vmul.f32 %v11995_v43, %v11995_v43 }
 0xb2c   : > { %7157 = vtanh.f32 %v5331_v40  ;;  %v5270_v44 = vmul.f32 0.044715, %v5238_v0  ;;  %v5239_v55 = vmul.f32 %v5207_v16, %v11989_v47 }
 0xb2d   : > { %v5268_v32 = vmul.f32 0.044715, %v5236_v2  ;;  %v5237_v23 = vmul.f32 %v5205_v20, %v11995_v43  ;;  %v6672_v24 = vpop.f32.mrb[72].mxu0  ;;  %7159 = vtanh.f32 %v5329_v28 }
 0xb2e   : > { %v5302_v61 = vadd.f32 %v5270_v44, %v11979_v22  ;;  %v5271_v26 = vmul.f32 0.044715, %v5239_v55  ;;  %v12007_v51 = vadd.f32 %v6672_v24, %v11951_v6  ;;  %v5105_v25 = vpop.f32.mrb[73].mxu0 }
 0xb2f   : > { %v5300_v15 = vadd.f32 %v5268_v32, %v11983_v11  ;;  %v5269_v36 = vmul.f32 0.044715, %v5237_v23  ;;  %v12011_v41 = vadd.f32 %v11951_v6, %v5105_v25  ;;  %v6673_v1 = vpop.f32.mrb[74].mxu0 }
 0xb30   : > { %v5334_v21 = vmul.f32 0.7978846, %v5302_v61  ;;  %v5303_v56 = vadd.f32 %v5271_v26, %v11989_v47  ;;  %v5210_v30 = vmul.f32 %v12007_v51, %v12007_v51  ;;  %v12017_v14 = vadd.f32 %v6673_v1, %v11951_v6  ;;  %v5108_v40 = vpop.f32.mrb[75].mxu0 }
 0xb31   : > { %v5332_v0 = vmul.f32 0.7978846, %v5300_v15  ;;  %v5301_v16 = vadd.f32 %v5269_v36, %v11995_v43  ;;  %v5208_v28 = vmul.f32 %v12011_v41, %v12011_v41  ;;  %v12023_v2 = vadd.f32 %v11951_v6, %v5108_v40 }
 0xb32   : > { %7161 = vtanh.f32 %v5334_v21  ;;  %v5335_v20 = vmul.f32 0.7978846, %v5303_v56  ;;  %v5242_v44 = vmul.f32 %v5210_v30, %v12007_v51  ;;  %v5211_v55 = vmul.f32 %v12017_v14, %v12017_v14 }
 0xb33   : > { %7163 = vtanh.f32 %v5332_v0  ;;  %v5333_v32 = vmul.f32 0.7978846, %v5301_v16  ;;  %v5240_v23 = vmul.f32 %v5208_v28, %v12011_v41  ;;  %v5209_v24 = vmul.f32 %v12023_v2, %v12023_v2 }
 0xb34   : > { %v7154_v61 = vpop.eup %7153  ;;  %7165 = vtanh.f32 %v5335_v20  ;;  %v5274_v26 = vmul.f32 0.044715, %v5242_v44  ;;  %v5243_v25 = vmul.f32 %v5211_v55, %v12017_v14 }
 0xb35   : > { %v7156_v15 = vpop.eup %7155  ;;  %v5394_v36 = vadd.f32 1.0, %v7154_v61  ;;  %7167 = vtanh.f32 %v5333_v32  ;;  %v5272_v1 = vmul.f32 0.044715, %v5240_v23  ;;  %v5241_v21 = vmul.f32 %v5209_v24, %v12023_v2  ;;  %v6676_v56 = vpop.f32.mrb[76].mxu0 }
 0xb36   : > { %v7158_v30 = vpop.eup %7157  ;;  %v5306_v40 = vadd.f32 %v5274_v26, %v12007_v51  ;;  %v5275_v0 = vmul.f32 0.044715, %v5243_v25  ;;  %v12035_v16 = vadd.f32 %v6676_v56, %v11951_v6  ;;  %v5121_v28 = vpop.f32.mrb[77].mxu0  ;;  %v5392_v53 = vadd.f32 1.0, %v7156_v15 }
 0xb37   : > { %v5426_v20 = vmul.f32 0.5, %v5394_v36  ;;  %v5395_v44 = vadd.f32 1.0, %v7158_v30  ;;  %v5304_v55 = vadd.f32 %v5272_v1, %v12011_v41  ;;  %v5273_v45 = vmul.f32 0.044715, %v5241_v21  ;;  %v6677_v61 = vpop.f32.mrb[78].mxu0  ;;  %v7160_v56 = vpop.eup %7159 }
 0xb38   : > { %v5338_v32 = vmul.f32 0.7978846, %v5306_v40  ;;  %v5307_v23 = vadd.f32 %v5275_v0, %v12017_v14  ;;  %v5214_v24 = vmul.f32 %v12035_v16, %v12035_v16  ;;  %v12042_v26 = vadd.f32 %v11951_v6, %v5121_v28  ;;  %v5124_v25 = vpop.f32.mrb[79].mxu0 }
 0xb39   : > { %v12045_v60 = vmul.f32 %v5426_v20, %v11954_v7  ;;  %v5427_v15 = vmul.f32 0.5, %v5395_v44  ;;  %v5336_v36 = vmul.f32 0.7978846, %v5304_v55  ;;  %v5305_v1 = vadd.f32 %v5273_v45, %v12023_v2 }
 0xb3a   : > { %7169 = vtanh.f32 %v5338_v32  ;;  %v5339_v21 = vmul.f32 0.7978846, %v5307_v23  ;;  %v5246_v30 = vmul.f32 %v5214_v24, %v12035_v16  ;;  %v5212_v40 = vmul.f32 %v12042_v26, %v12042_v26 }
 0xb3b   : > { %v12052_v0 = vmul.f32 %v5427_v15, %v11962_v33  ;;  %7171 = vtanh.f32 %v5336_v36  ;;  %v5337_v28 = vmul.f32 0.7978846, %v5305_v1  ;;  %v12055_v3 = vadd.f32 %v6677_v61, %v11951_v6 }
 0xb3c   : > { %v12057_v7 = vpop.eup %7161  ;;  %7173 = vtanh.f32 %v5339_v21  ;;  %v5278_v20 = vmul.f32 0.044715, %v5246_v30  ;;  %v5244_v45 = vmul.f32 %v5212_v40, %v12042_v26  ;;  %v12061_v44 = vadd.f32 %v11951_v6, %v5124_v25 }
 0xb3d   : > { %v12063_v55 = vpop.eup %7163  ;;  %7175 = vtanh.f32 %v5337_v28  ;;  %v5215_v32 = vmul.f32 %v12055_v3, %v12055_v3  ;;  %v6680_v61 = vpop.f32.mrb[80].mxu0  ;;  %v5393_v23 = vadd.f32 1.0, %v7160_v56  ;;  %v5424_v33 = vmul.f32 0.5, %v5392_v53 }
 0xb3e   : > { %v12069_v24 = vpop.eup %7165  ;;  %v5310_v15 = vadd.f32 %v5278_v20, %v12035_v16  ;;  %v5276_v36 = vmul.f32 0.044715, %v5244_v45  ;;  %v5213_v25 = vmul.f32 %v12061_v44, %v12061_v44  ;;  %v12075_v1 = vadd.f32 %v6680_v61, %v11951_v6  ;;  %v5137_v21 = vpop.f32.mrb[81].mxu0 }
 0xb3f   : > { %v12077_v30 = vpop.eup %7167  ;;  %v5247_v40 = vmul.f32 %v5215_v32, %v12055_v3  ;;  %v12081_v28 = vadd.f32 %v11951_v6, %v5137_v21  ;;  %v6681_v56 = vpop.f32.mrb[82].mxu0  ;;  %v5425_v57 = vmul.f32 0.5, %v5393_v23 }
 0xb40   : > { %v5342_v50 = vmul.f32 0.7978846, %v5310_v15  ;;  %v5308_v20 = vadd.f32 %v5276_v36, %v12042_v26  ;;  %v5245_v45 = vmul.f32 %v5213_v25, %v12061_v44  ;;  %v5218_v61 = vmul.f32 %v12075_v1, %v12075_v1  ;;  %v5140_v9 = vpop.f32.mrb[83].mxu0 }
 0xb41   : > { %v5279_v13 = vmul.f32 0.044715, %v5247_v40  ;;  %v5216_v63 = vmul.f32 %v12081_v28, %v12081_v28  ;;  %v12090_v32 = vadd.f32 %v6681_v56, %v11951_v6  ;;  %v12093_v21 = vadd.f32 %v11951_v6, %v5140_v9 }
 0xb42   : > { %7177 = vtanh.f32 %v5342_v50  ;;  %v5340_v53 = vmul.f32 0.7978846, %v5308_v20  ;;  %v5277_v23 = vmul.f32 0.044715, %v5245_v45  ;;  %v5250_v15 = vmul.f32 %v5218_v61, %v12075_v1 }
 0xb43   : > { %v5311_v36 = vadd.f32 %v5279_v13, %v12055_v3  ;;  %v5248_v25 = vmul.f32 %v5216_v63, %v12081_v28  ;;  %v5219_v40 = vmul.f32 %v12090_v32, %v12090_v32  ;;  %v5217_v38 = vmul.f32 %v12093_v21, %v12093_v21 }
 0xb44   : > { %v12102_v56 = vpop.eup %7169  ;;  %7179 = vtanh.f32 %v5340_v53  ;;  %v5309_v9 = vadd.f32 %v5277_v23, %v12061_v44  ;;  %v5282_v50 = vmul.f32 0.044715, %v5250_v15  ;;  %v5456_v20 = vmul.f32 %v5424_v33, %v11957_v58 }
 0xb45   : > { %v12106_v45 = vpop.eup %7171  ;;  %v5343_v61 = vmul.f32 0.7978846, %v5311_v36  ;;  %v5280_v13 = vmul.f32 0.044715, %v5248_v25  ;;  %v5251_v63 = vmul.f32 %v5219_v40, %v12090_v32  ;;  %v5249_v5 = vmul.f32 %v5217_v38, %v12093_v21  ;;  %v6684_v31 = vpop.f32.mrb[84].mxu0 }
 0xb46   : > { %v12110_v10 = vpop.eup %7173  ;;  %v5341_v46 = vmul.f32 0.7978846, %v5309_v9  ;;  %v5314_v17 = vadd.f32 %v5282_v50, %v12075_v1  ;;  %v5457_v53 = vmul.f32 %v5425_v57, %v11967_v52  ;;  %v12115_v23 = vadd.f32 %v6684_v31, %v11951_v6  ;;  %v5153_v58 = vpop.f32.mrb[85].mxu0 }
 0xb47   : > { %v12117_v33 = vpop.eup %7175  ;;  %7181 = vtanh.f32 %v5343_v61  ;;  %v5312_v15 = vadd.f32 %v5280_v13, %v12081_v28  ;;  %v5283_v36 = vmul.f32 0.044715, %v5251_v63  ;;  %v5281_v25 = vmul.f32 0.044715, %v5249_v5  ;;  %v6685_v38 = vpop.f32.mrb[86].mxu0 }
 0xb48   : > { %7183 = vtanh.f32 %v5341_v46  ;;  %v5346_v40 = vmul.f32 0.7978846, %v5314_v17  ;;  %v5488_v34 = vpack.c.bf16 %v5457_v53, %v5456_v20  ;;  %v5222_v9 = vmul.f32 %v12115_v23, %v12115_v23  ;;  %v5156_v50 = vpop.f32.mrb[87].mxu0 }
 0xb49   : > { %v5344_v57 = vmul.f32 0.7978846, %v5312_v15  ;;  %v5315_v31 = vadd.f32 %v5283_v36, %v12090_v32  ;;  %v5313_v52 = vadd.f32 %v5281_v25, %v12093_v21  ;;  %v12125_v37 = vadd.f32 %v11951_v6, %v5153_v58 }
 0xb4a   : > { %7185 = vtanh.f32 %v5346_v40  ;;  %6710 = vmatprep.mubr.bf16.mxu1 %v5488_v34  ;;  %v5254_v5 = vmul.f32 %v5222_v9, %v12115_v23  ;;  %v12129_v46 = vadd.f32 %v6685_v38, %v11951_v6  ;;  %v12132_v17 = vadd.f32 %v11951_v6, %v5156_v50 }
 0xb4b   : > { %7187 = vtanh.f32 %v5344_v57  ;;  %v5347_v20 = vmul.f32 0.7978846, %v5315_v31  ;;  %v5345_v61 = vmul.f32 0.7978846, %v5313_v52  ;;  %v12901_v13 = vpack.c.bf16 %v12052_v0, %v12045_v60 }
 0xb4c   : > { %v5220_v63 = vmul.f32 %v12125_v37, %v12125_v37  ;;  %v12139_v53 = vpop.eup %7177  ;;  %v5286_v34 = vmul.f32 0.044715, %v5254_v5  ;;  %v5223_v58 = vmul.f32 %v12129_v46, %v12129_v46  ;;  %v5221_v15 = vmul.f32 %v12132_v17, %v12132_v17 }
 0xb4d   : > { %6711 = vmatmul.mubr.bf16.vlgmr.msra.gmra.mrb[64].mxu1 %v12901_v13  ;;  %v5396_v36 = vadd.f32 1.0, %v12063_v55  ;;  %7189 = vtanh.f32 %v5347_v20  ;;  %v5397_v60 = vadd.f32 1.0, %v12077_v30  ;;  %v5398_v0 = vadd.f32 1.0, %v12057_v7  ;;  %v6688_v38 = vpop.f32.mrb[88].mxu0 }
 0xb4e   : > { %v5252_v25 = vmul.f32 %v5220_v63, %v12125_v37  ;;  %v12149_v40 = vpop.eup %7179  ;;  %7191 = vtanh.f32 %v5345_v61  ;;  %v5318_v9 = vadd.f32 %v5286_v34, %v12115_v23  ;;  %v5255_v50 = vmul.f32 %v5223_v58, %v12129_v46  ;;  %v5169_v31 = vpop.f32.mrb[89].mxu0 }
 0xb4f   : > { %v5253_v57 = vmul.f32 %v5221_v15, %v12132_v17  ;;  %v5428_v55 = vmul.f32 0.5, %v5396_v36  ;;  %v5429_v5 = vmul.f32 0.5, %v5397_v60  ;;  %v5399_v20 = vadd.f32 1.0, %v12069_v24  ;;  %v6689_v13 = vpop.f32.mrb[90].mxu0 }
 0xb50   : > { %v5284_v52 = vmul.f32 0.044715, %v5252_v25  ;;  %v5350_v30 = vmul.f32 0.7978846, %v5318_v9  ;;  %v5287_v63 = vmul.f32 0.044715, %v5255_v50  ;;  %v12156_v59 = vadd.f32 %v6688_v38, %v11951_v6 }
 0xb51   : > { %v5285_v7 = vmul.f32 0.044715, %v5253_v57  ;;  %v12158_v61 = vpop.eup %7181  ;;  %v5460_v58 = vmul.f32 %v5428_v55, %v11983_v11  ;;  %v5461_v15 = vmul.f32 %v5429_v5, %v11995_v43  ;;  %v5430_v25 = vmul.f32 0.5, %v5398_v0  ;;  %v5172_v36 = vpop.f32.mrb[91].mxu0 }
 0xb52   : > { %v5316_v34 = vadd.f32 %v5284_v52, %v12125_v37  ;;  %v12163_v60 = vpop.eup %7183  ;;  %7193 = vtanh.f32 %v5350_v30  ;;  %v5319_v24 = vadd.f32 %v5287_v63, %v12129_v46  ;;  %v5431_v50 = vmul.f32 0.5, %v5399_v20 }
 0xb53   : > { %v5317_v9 = vadd.f32 %v5285_v7, %v12132_v17  ;;  %v5490_v57 = vpack.c.bf16 %v5461_v15, %v5460_v58  ;;  %v5462_v39 = vmul.f32 %v5430_v25, %v11979_v22  ;;  %v5226_v52 = vmul.f32 %v12156_v59, %v12156_v59 }
 0xb54   : > { %v5348_v38 = vmul.f32 0.7978846, %v5316_v34  ;;  %v12170_v11 = vpop.eup %7185  ;;  %v5351_v43 = vmul.f32 0.7978846, %v5319_v24  ;;  %v5463_v55 = vmul.f32 %v5431_v50, %v11989_v47  ;;  %v12174_v5 = vadd.f32 %v11951_v6, %v5169_v31 }
 0xb55   : > { %v5349_v0 = vmul.f32 0.7978846, %v5317_v9  ;;  %v12176_v30 = vpop.eup %7187  ;;  %6714 = vmatprep.mubr.bf16.mxu1 %v5490_v57  ;;  %v5258_v20 = vmul.f32 %v5226_v52, %v12156_v59  ;;  %v12180_v22 = vadd.f32 %v6689_v13, %v11951_v6  ;;  %v12183_v63 = vadd.f32 %v11951_v6, %v5172_v36  ;;  %v6692_v7 = vpop.f32.mrb[92].mxu0 }
 0xb56   : > { %7195 = vtanh.f32 %v5348_v38  ;;  %v5491_v34 = vpack.c.bf16 %v5463_v55, %v5462_v39  ;;  %v5224_v47 = vmul.f32 %v12174_v5, %v12174_v5  ;;  %v5400_v31 = vadd.f32 1.0, %v12106_v45  ;;  %v5185_v58 = vpop.f32.mrb[93].mxu0 }
 0xb57   : > { %7197 = vtanh.f32 %v5351_v43  ;;  %v12188_v15 = vpop.eup %7189  ;;  %v5290_v25 = vmul.f32 0.044715, %v5258_v20  ;;  %v5227_v13 = vmul.f32 %v12180_v22, %v12180_v22  ;;  %v5225_v36 = vmul.f32 %v12183_v63, %v12183_v63  ;;  %v6693_v24 = vpop.f32.mrb[94].mxu0 }
 0xb58   : > { %7199 = vtanh.f32 %v5349_v0  ;;  %v12194_v9 = vpop.eup %7191  ;;  %6715 = vmatmul.mubr.bf16.gmra.mrb[68].mxu1 %v5491_v34  ;;  %v5256_v39 = vmul.f32 %v5224_v47, %v12174_v5  ;;  %v5401_v50 = vadd.f32 1.0, %v12117_v33  ;;  %v5432_v45 = vmul.f32 0.5, %v5400_v31  ;;  %v5188_v57 = vpop.f32.mrb[95].mxu0 }
 0xb59   : > { %v5402_v38 = vadd.f32 1.0, %v12102_v56  ;;  %v5322_v52 = vadd.f32 %v5290_v25, %v12156_v59  ;;  %v5259_v43 = vmul.f32 %v5227_v13, %v12180_v22  ;;  %v5257_v0 = vmul.f32 %v5225_v36, %v12183_v63 }
 0xb5a   : > { %v5403_v55 = vadd.f32 1.0, %v12110_v10  ;;  %v5288_v20 = vmul.f32 0.044715, %v5256_v39  ;;  %v5433_v18 = vmul.f32 0.5, %v5401_v50  ;;  %v5464_v34 = vmul.f32 %v5432_v45, %v12011_v41 }
 0xb5b   : > { %v5434_v42 = vmul.f32 0.5, %v5402_v38  ;;  %v5354_v47 = vmul.f32 0.7978846, %v5322_v52  ;;  %v5291_v19 = vmul.f32 0.044715, %v5259_v43  ;;  %v12205_v31 = vadd.f32 %v6692_v7, %v11951_v6 }
 0xb5c   : > { %v5289_v33 = vmul.f32 0.044715, %v5257_v0  ;;  %v12207_v56 = vpop.eup %7193  ;;  %v5320_v25 = vadd.f32 %v5288_v20, %v12174_v5  ;;  %v5465_v13 = vmul.f32 %v5433_v18, %v12023_v2  ;;  %v5435_v36 = vmul.f32 0.5, %v5403_v55 }
 0xb5d   : > { %v5466_v10 = vmul.f32 %v5434_v42, %v12007_v51  ;;  %7201 = vtanh.f32 %v5354_v47  ;;  %v5323_v39 = vadd.f32 %v5291_v19, %v12180_v22  ;;  %v5230_v50 = vmul.f32 %v12205_v31, %v12205_v31 }
 0xb5e   : > { %v5321_v41 = vadd.f32 %v5289_v33, %v12183_v63  ;;  %v5352_v45 = vmul.f32 0.7978846, %v5320_v25  ;;  %v5492_v7 = vpack.c.bf16 %v5465_v13, %v5464_v34  ;;  %v5467_v38 = vmul.f32 %v5435_v36, %v12017_v14 }
 0xb5f   : > { %v12218_v52 = vadd.f32 %v11951_v6, %v5185_v58  ;;  %v5355_v18 = vmul.f32 0.7978846, %v5323_v39  ;;  %v5262_v42 = vmul.f32 %v5230_v50, %v12205_v31  ;;  %v12224_v19 = vadd.f32 %v6693_v24, %v11951_v6 }
 0xb60   : > { %v12220_v43 = vpop.eup %7195  ;;  %v5353_v2 = vmul.f32 0.7978846, %v5321_v41  ;;  %7203 = vtanh.f32 %v5352_v45  ;;  %6718 = vmatprep.mubr.bf16.mxu1 %v5492_v7  ;;  %v5493_v0 = vpack.c.bf16 %v5467_v38, %v5466_v10  ;;  %v12231_v58 = vadd.f32 %v11951_v6, %v5188_v57 }
 0xb61   : > { %v12226_v51 = vpop.eup %7197  ;;  %v5228_v14 = vmul.f32 %v12218_v52, %v12218_v52  ;;  %7205 = vtanh.f32 %v5355_v18  ;;  %v5294_v20 = vmul.f32 0.044715, %v5262_v42  ;;  %v5231_v34 = vmul.f32 %v12224_v19, %v12224_v19 }
 0xb62   : > { %v7200_v55 = vpop.eup %7199  ;;  %v5404_v24 = vadd.f32 1.0, %v12149_v40  ;;  %7207 = vtanh.f32 %v5353_v2  ;;  %6719 = vmatmul.mubr.bf16.gmra.mrb[72].mxu1 %v5493_v0  ;;  %v5229_v33 = vmul.f32 %v12231_v58, %v12231_v58  ;;  %v5405_v25 = vadd.f32 1.0, %v12163_v60 }
 0xb63   : > { %v5260_v47 = vmul.f32 %v5228_v14, %v12218_v52  ;;  %v5326_v6 = vadd.f32 %v5294_v20, %v12205_v31  ;;  %v5263_v57 = vmul.f32 %v5231_v34, %v12224_v19  ;;  %v5406_v36 = vadd.f32 1.0, %v12139_v53 }
 0xb64   : > { %v5436_v13 = vmul.f32 0.5, %v5404_v24  ;;  %v5261_v39 = vmul.f32 %v5229_v33, %v12231_v58  ;;  %v5437_v40 = vmul.f32 0.5, %v5405_v25  ;;  %v5407_v41 = vadd.f32 1.0, %v12158_v61 }
 0xb65   : > { %v5292_v10 = vmul.f32 0.044715, %v5260_v47  ;;  %v5358_v50 = vmul.f32 0.7978846, %v5326_v6  ;;  %v5295_v45 = vmul.f32 0.044715, %v5263_v57 }
 0xb66   : > { %v5468_v7 = vmul.f32 %v5436_v13, %v12042_v26  ;;  %v5438_v38 = vmul.f32 0.5, %v5406_v36  ;;  %v5293_v18 = vmul.f32 0.044715, %v5261_v39  ;;  %v5469_v2 = vmul.f32 %v5437_v40, %v12061_v44 }
 0xb67   : > { %v5324_v60 = vadd.f32 %v5292_v10, %v12218_v52  ;;  %v5439_v42 = vmul.f32 0.5, %v5407_v41  ;;  %v7202_v0 = vpop.eup %7201  ;;  %7209 = vtanh.f32 %v5358_v50  ;;  %v5327_v53 = vadd.f32 %v5295_v45, %v12224_v19 }
 0xb68   : > { %v5470_v14 = vmul.f32 %v5438_v38, %v12035_v16  ;;  %v5408_v20 = vadd.f32 1.0, %v12176_v30  ;;  %v5325_v34 = vadd.f32 %v5293_v18, %v12231_v58  ;;  %v5494_v24 = vpack.c.bf16 %v5469_v2, %v5468_v7 }
 0xb69   : > { %v5356_v61 = vmul.f32 0.7978846, %v5324_v60  ;;  %v5471_v26 = vmul.f32 %v5439_v42, %v12055_v3  ;;  %v5359_v47 = vmul.f32 0.7978846, %v5327_v53  ;;  %v5409_v33 = vadd.f32 1.0, %v12194_v9 }
 0xb6a   : > { %v5440_v25 = vmul.f32 0.5, %v5408_v20  ;;  %v5410_v44 = vadd.f32 1.0, %v12170_v11  ;;  %v7204_v6 = vpop.eup %7203  ;;  %v5357_v57 = vmul.f32 0.7978846, %v5325_v34  ;;  %6722 = vmatprep.mubr.bf16.mxu1 %v5494_v24  ;;  %v5411_v16 = vadd.f32 1.0, %v12188_v15 }
 0xb6b   : > { %7211 = vtanh.f32 %v5356_v61  ;;  %v5495_v13 = vpack.c.bf16 %v5471_v26, %v5470_v14  ;;  %v7206_v30 = vpop.eup %7205  ;;  %v5441_v36 = vmul.f32 0.5, %v5409_v33  ;;  %v5412_v40 = vadd.f32 1.0, %v12220_v43 }
 0xb6c   : > { %7213 = vtanh.f32 %v5359_v47  ;;  %v5472_v10 = vmul.f32 %v5440_v25, %v12081_v28  ;;  %v5442_v39 = vmul.f32 0.5, %v5410_v44  ;;  %v7208_v3 = vpop.eup %7207  ;;  %v5443_v9 = vmul.f32 0.5, %v5411_v16 }
 0xb6d   : > { %7215 = vtanh.f32 %v5357_v57  ;;  %6723 = vmatmul.mubr.bf16.gmra.mrb[76].mxu1 %v5495_v13  ;;  %v5413_v11 = vadd.f32 1.0, %v7200_v55  ;;  %v5473_v41 = vmul.f32 %v5441_v36, %v12093_v21  ;;  %v5414_v45 = vadd.f32 1.0, %v12207_v56 }
 0xb6e   : > { %v5474_v50 = vmul.f32 %v5442_v39, %v12075_v1  ;;  %v5415_v15 = vadd.f32 1.0, %v12226_v51  ;;  %v5475_v7 = vmul.f32 %v5443_v9, %v12090_v32  ;;  %v5444_v38 = vmul.f32 0.5, %v5412_v40 }
 0xb6f   : > { %v5445_v28 = vmul.f32 0.5, %v5413_v11  ;;  %v5416_v60 = vadd.f32 1.0, %v7204_v6  ;;  %v5496_v18 = vpack.c.bf16 %v5473_v41, %v5472_v10  ;;  %v5446_v2 = vmul.f32 0.5, %v5414_v45  ;;  %v12280_v11 = vld [vmem:[%s1113_s16] ss:$0 sm:$0xff] }
 0xb70   : > { %v5447_v42 = vmul.f32 0.5, %v5415_v15  ;;  %v5417_v53 = vadd.f32 1.0, %v7208_v3  ;;  %v5497_v14 = vpack.c.bf16 %v5475_v7, %v5474_v50  ;;  %v5476_v43 = vmul.f32 %v5444_v38, %v12125_v37 }
 0xb71   : > { %v5477_v21 = vmul.f32 %v5445_v28, %v12132_v17  ;;  %v5448_v55 = vmul.f32 0.5, %v5416_v60  ;;  %v7210_v1 = vpop.eup %7209  ;;  %6726 = vmatprep.mubr.bf16.mxu1 %v5496_v18  ;;  %v5478_v56 = vmul.f32 %v5446_v2, %v12115_v23  ;;  %v5418_v20 = vadd.f32 1.0, %v7202_v0 }
 0xb72   : > { %v5479_v51 = vmul.f32 %v5447_v42, %v12129_v46  ;;  %v5449_v32 = vmul.f32 0.5, %v5417_v53  ;;  %v5419_v34 = vadd.f32 1.0, %v7206_v30  ;;  %v5422_v24 = vadd.f32 1.0, %v7210_v1 }
 0xb73   : > { %v5498_v61 = vpack.c.bf16 %v5477_v21, %v5476_v43  ;;  %v5480_v47 = vmul.f32 %v5448_v55, %v12174_v5  ;;  %v5450_v37 = vmul.f32 0.5, %v5418_v20 }
 0xb74   : > { %v5499_v26 = vpack.c.bf16 %v5479_v51, %v5478_v56  ;;  %v5481_v33 = vmul.f32 %v5449_v32, %v12183_v63  ;;  %v5451_v17 = vmul.f32 0.5, %v5419_v34  ;;  %v5454_v16 = vmul.f32 0.5, %v5422_v24  ;;  %v12903_v34 = vld [vmem:[#allocation51_spill] sm:$0xff] }
 0xb75   : > { %v7212_v25 = vpop.eup %7211  ;;  %6727 = vmatmul.mubr.bf16.gmra.mrb[80].mxu1 %v5497_v14  ;;  %v5482_v46 = vmul.f32 %v5450_v37, %v12156_v59 }
 0xb76   : > { %v7214_v44 = vpop.eup %7213  ;;  %6730 = vmatprep.mubr.bf16.mxu1 %v5498_v61  ;;  %v5500_v6 = vpack.c.bf16 %v5481_v33, %v5480_v47  ;;  %v5420_v23 = vadd.f32 1.0, %v7212_v25  ;;  %v5483_v0 = vmul.f32 %v5451_v17, %v12180_v22  ;;  %v5486_v39 = vmul.f32 %v5454_v16, %v12205_v31  ;;  %v12905_v17 = vld [vmem:[#allocation53_spill] sm:$0xff] }
 0xb77   : > { %v7216_v57 = vpop.eup %7215  ;;  %v5423_v13 = vadd.f32 1.0, %v7214_v44 }
 0xb78   : > { %v5421_v30 = vadd.f32 1.0, %v7216_v57  ;;  %v5452_v5 = vmul.f32 0.5, %v5420_v23  ;;  %v5501_v36 = vpack.c.bf16 %v5483_v0, %v5482_v46  ;;  %v12906_v57 = vld [vmem:[#allocation52_spill] sm:$0xff] }
 0xb79   : > { %v5455_v63 = vmul.f32 0.5, %v5423_v13  ;;  %v12907_v13 = vld [vmem:[#allocation56_spill] sm:$0xff] }
 0xb7a   : > { %v5453_v10 = vmul.f32 0.5, %v5421_v30  ;;  %v5484_v9 = vmul.f32 %v5452_v5, %v12218_v52  ;;  %v12908_v30 = vld [vmem:[#allocation54_spill] sm:$0xff] }
 0xb7b   : > { %v5487_v3 = vmul.f32 %v5455_v63, %v12224_v19 }
 0xb7c   : > { %v5485_v40 = vmul.f32 %v5453_v10, %v12231_v58 }
 0xb7d   : > { %6731 = vmatmul.mubr.bf16.gmra.mrb[84].mxu1 %v5499_v26  ;;  %v5503_v59 = vpack.c.bf16 %v5487_v3, %v5486_v39  ;;  %v12904_v26 = vld [vmem:[#allocation50_spill] sm:$0xff] }
 0xb7e   : > { %6734 = vmatprep.mubr.bf16.mxu1 %v5500_v6  ;;  %v5502_v22 = vpack.c.bf16 %v5485_v40, %v5484_v9  ;;  %v12909_v9 = vld [vmem:[#allocation59_spill] sm:$0xff] }
 0xb85   : > { %6735 = vmatmul.mubr.bf16.gmra.mrb[88].mxu1 %v5501_v36 }
 0xb86   : > { %6738 = vmatprep.mubr.bf16.mxu1 %v5502_v22 }
 0xb8d   : > { %6739 = vmatmul.mubr.bf16.gmra.mrb[92].mxu1 %v5503_v59 }
 0xc20   : > { %v6712_v31 = vpop.f32.mrb[64].mxu1 }
 0xc21   : > { %v5618_v19 = vadd.f32 %v6712_v31, %v12280_v11  ;;  %v5609_v41 = vpop.f32.mrb[65].mxu1  ;;  %v12910_v31 = vld [vmem:[#allocation44_spill] sm:$0xff] }
 0xc22   : > { %v5610_v52 = vadd.f32 %v12280_v11, %v5609_v41  ;;  %v6713_v58 = vpop.f32.mrb[66].mxu1 }
 0xc23   : > { %v12285_v50 = vadd.f32 %v5618_v19, %v11565_v12  ;;  %v5621_v45 = vadd.f32 %v6713_v58, %v12280_v11  ;;  %v5612_v15 = vpop.f32.mrb[67].mxu1 }
 0xc24   : > { %v12289_v7 = vadd.f32 %v5610_v52, %v11562_v49  ;;  %v5613_v38 = vadd.f32 %v12280_v11, %v5612_v15  ;;  %v12911_v52 = vld [vmem:[#allocation61_spill] sm:$0xff] }
 0xc25   : > { %5770 = vst [vmem:[#allocation2 + $0x10] sm:$0xff] %v12285_v50  ;;  %v12294_v28 = vadd.f32 %v5621_v45, %v11569_v62  ;;  %v12912_v45 = vld [vmem:[#allocation60_spill] sm:$0xff]  ;;  %5806 = vst [vmem:[%s8254_s13 + $0x10] sm:$0xff] (!%p6296_p2), %v12285_v50 }
 0xc26   : > { %5768 = vst [vmem:[#allocation2] sm:$0xff] %v12289_v7  ;;  %v12298_v60 = vadd.f32 %v5613_v38, %v11567_v4  ;;  %5804 = vst [vmem:[%s8254_s13] sm:$0xff] (!%p6296_p2), %v12289_v7 }
 0xc27   : > { %5771 = vst [vmem:[#allocation2 + $0x18] sm:$0xff] %v12294_v28  ;;  %5807 = vst [vmem:[%s8254_s13 + $0x18] sm:$0xff] (!%p6296_p2), %v12294_v28 }
 0xc28   : > { %5769 = vst [vmem:[#allocation2 + $0x8] sm:$0xff] %v12298_v60  ;;  %5805 = vst [vmem:[%s8254_s13 + $0x8] sm:$0xff] (!%p6296_p2), %v12298_v60 }
 0xc2b   : > { %v6716_v12 = vpop.f32.mrb[68].mxu1 }
 0xc2c   : > { %v5634_v49 = vadd.f32 %v6716_v12, %v12280_v11  ;;  %v5625_v18 = vpop.f32.mrb[69].mxu1 }
 0xc2d   : > { %v5626_v2 = vadd.f32 %v12280_v11, %v5625_v18  ;;  %v6717_v42 = vpop.f32.mrb[70].mxu1 }
 0xc2e   : > { %v12305_v53 = vadd.f32 %v5634_v49, %v11589_v35  ;;  %v5637_v62 = vadd.f32 %v6717_v42, %v12280_v11  ;;  %v5628_v14 = vpop.f32.mrb[71].mxu1  ;;  %v12913_v42 = vld [vmem:[#allocation63_spill] sm:$0xff] }
 0xc2f   : > { %v12309_v4 = vadd.f32 %v5626_v2, %v11585_v27  ;;  %v5629_v43 = vadd.f32 %v12280_v11, %v5628_v14 }
 0xc30   : > { %5774 = vst [vmem:[#allocation2 + $0x30] sm:$0xff] %v12305_v53  ;;  %v12314_v21 = vadd.f32 %v5637_v62, %v11596_v54  ;;  %5810 = vst [vmem:[%s8254_s13 + $0x30] sm:$0xff] (!%p6296_p2), %v12305_v53 }
 0xc31   : > { %5772 = vst [vmem:[#allocation2 + $0x20] sm:$0xff] %v12309_v4  ;;  %v12318_v55 = vadd.f32 %v5629_v43, %v11594_v48  ;;  %5808 = vst [vmem:[%s8254_s13 + $0x20] sm:$0xff] (!%p6296_p2), %v12309_v4 }
 0xc32   : > { %5775 = vst [vmem:[#allocation2 + $0x38] sm:$0xff] %v12314_v21  ;;  %5811 = vst [vmem:[%s8254_s13 + $0x38] sm:$0xff] (!%p6296_p2), %v12314_v21 }
 0xc33   : > { %5773 = vst [vmem:[#allocation2 + $0x28] sm:$0xff] %v12318_v55  ;;  %5809 = vst [vmem:[%s8254_s13 + $0x28] sm:$0xff] (!%p6296_p2), %v12318_v55 }
 0xc35   : > { %v6720_v35 = vpop.f32.mrb[72].mxu1 }
 0xc36   : > { %v5650_v27 = vadd.f32 %v6720_v35, %v12280_v11  ;;  %v5641_v1 = vpop.f32.mrb[73].mxu1  ;;  %v12914_v35 = vld [vmem:[#allocation62_spill] sm:$0xff] }
 0xc37   : > { %v5642_v56 = vadd.f32 %v12280_v11, %v5641_v1  ;;  %v6721_v51 = vpop.f32.mrb[74].mxu1 }
 0xc38   : > { %v12325_v32 = vadd.f32 %v5650_v27, %v11613_v8  ;;  %v5653_v54 = vadd.f32 %v6721_v51, %v12280_v11  ;;  %v5644_v20 = vpop.f32.mrb[75].mxu1 }
 0xc39   : > { %v12329_v48 = vadd.f32 %v5642_v56, %v11609_v29  ;;  %v5645_v61 = vadd.f32 %v12280_v11, %v5644_v20  ;;  %v12915_v56 = vld [vmem:[#allocation65_spill] sm:$0xff] }
 0xc3a   : > { %5778 = vst [vmem:[#allocation2 + $0x50] sm:$0xff] %v12325_v32  ;;  %v12334_v24 = vadd.f32 %v5653_v54, %v12903_v34  ;;  %v12916_v54 = vld [vmem:[#allocation64_spill] sm:$0xff]  ;;  %5814 = vst [vmem:[%s8254_s13 + $0x50] sm:$0xff] (!%p6296_p2), %v12325_v32 }
 0xc3b   : > { %5776 = vst [vmem:[#allocation2 + $0x40] sm:$0xff] %v12329_v48  ;;  %v12338_v47 = vadd.f32 %v5645_v61, %v12904_v26  ;;  %5812 = vst [vmem:[%s8254_s13 + $0x40] sm:$0xff] (!%p6296_p2), %v12329_v48 }
 0xc3c   : > { %5779 = vst [vmem:[#allocation2 + $0x58] sm:$0xff] %v12334_v24  ;;  %5815 = vst [vmem:[%s8254_s13 + $0x58] sm:$0xff] (!%p6296_p2), %v12334_v24 }
 0xc3d   : > { %5777 = vst [vmem:[#allocation2 + $0x48] sm:$0xff] %v12338_v47  ;;  %5813 = vst [vmem:[%s8254_s13 + $0x48] sm:$0xff] (!%p6296_p2), %v12338_v47 }
 0xc40   : > { %v6724_v8 = vpop.f32.mrb[76].mxu1 }
 0xc41   : > { %v5666_v29 = vadd.f32 %v6724_v8, %v12280_v11  ;;  %v5657_v33 = vpop.f32.mrb[77].mxu1 }
 0xc42   : > { %v5658_v37 = vadd.f32 %v12280_v11, %v5657_v33  ;;  %v6725_v25 = vpop.f32.mrb[78].mxu1  ;;  %v12917_v33 = vld [vmem:[#allocation68_spill] sm:$0xff] }
 0xc43   : > { %v12345_v44 = vadd.f32 %v5666_v29, %v12905_v17  ;;  %v5669_v6 = vadd.f32 %v6725_v25, %v12280_v11  ;;  %v5660_v23 = vpop.f32.mrb[79].mxu1 }
 0xc44   : > { %v12349_v46 = vadd.f32 %v5658_v37, %v12906_v57  ;;  %v5661_v0 = vadd.f32 %v12280_v11, %v5660_v23 }
 0xc45   : > { %5782 = vst [vmem:[#allocation2 + $0x70] sm:$0xff] %v12345_v44  ;;  %v12354_v16 = vadd.f32 %v5669_v6, %v12907_v13  ;;  %v12918_v6 = vld [vmem:[#allocation66_spill] sm:$0xff]  ;;  %5818 = vst [vmem:[%s8254_s13 + $0x70] sm:$0xff] (!%p6296_p2), %v12345_v44 }
 0xc46   : > { %5780 = vst [vmem:[#allocation2 + $0x60] sm:$0xff] %v12349_v46  ;;  %v12358_v5 = vadd.f32 %v5661_v0, %v12908_v30  ;;  %v12919_v0 = vld [vmem:[#allocation47_spill] sm:$0xff]  ;;  %v12920_v30 = vld [vmem:[#allocation69_spill] sm:$0xff]  ;;  %5816 = vst [vmem:[%s8254_s13 + $0x60] sm:$0xff] (!%p6296_p2), %v12349_v46 }
 0xc47   : > { %5783 = vst [vmem:[#allocation2 + $0x78] sm:$0xff] %v12354_v16  ;;  %5819 = vst [vmem:[%s8254_s13 + $0x78] sm:$0xff] (!%p6296_p2), %v12354_v16 }
 0xc48   : > { %5781 = vst [vmem:[#allocation2 + $0x68] sm:$0xff] %v12358_v5  ;;  %v6728_v36 = vpop.f32.mrb[80].mxu1  ;;  %5817 = vst [vmem:[%s8254_s13 + $0x68] sm:$0xff] (!%p6296_p2), %v12358_v5 }
 0xc49   : > { %v5682_v63 = vadd.f32 %v6728_v36, %v12280_v11  ;;  %v5673_v10 = vpop.f32.mrb[81].mxu1 }
 0xc4a   : > { %v5674_v39 = vadd.f32 %v12280_v11, %v5673_v10  ;;  %v6729_v3 = vpop.f32.mrb[82].mxu1 }
 0xc4b   : > { %v12365_v40 = vadd.f32 %v5682_v63, %v12909_v9  ;;  %v5685_v59 = vadd.f32 %v6729_v3, %v12280_v11  ;;  %v5676_v22 = vpop.f32.mrb[83].mxu1 }
 0xc4c   : > { %v12369_v19 = vadd.f32 %v5674_v39, %v12910_v31  ;;  %v5677_v41 = vadd.f32 %v12280_v11, %v5676_v22 }
 0xc4d   : > { %5786 = vst [vmem:[#allocation2 + $0x90] sm:$0xff] %v12365_v40  ;;  %v12374_v58 = vadd.f32 %v5685_v59, %v12911_v52  ;;  %v12921_v59 = vld [vmem:[#allocation45_spill] sm:$0xff]  ;;  %v12922_v52 = vld [vmem:[#allocation43_spill] sm:$0xff]  ;;  %5822 = vst [vmem:[%s8254_s13 + $0x90] sm:$0xff] (!%p6296_p2), %v12365_v40 }
 0xc4e   : > { %5784 = vst [vmem:[#allocation2 + $0x80] sm:$0xff] %v12369_v19  ;;  %v12378_v15 = vadd.f32 %v5677_v41, %v12912_v45  ;;  %5820 = vst [vmem:[%s8254_s13 + $0x80] sm:$0xff] (!%p6296_p2), %v12369_v19 }
 0xc4f   : > { %5787 = vst [vmem:[#allocation2 + $0x98] sm:$0xff] %v12374_v58  ;;  %5823 = vst [vmem:[%s8254_s13 + $0x98] sm:$0xff] (!%p6296_p2), %v12374_v58 }
 0xc50   : > { %5785 = vst [vmem:[#allocation2 + $0x88] sm:$0xff] %v12378_v15  ;;  %v6732_v38 = vpop.f32.mrb[84].mxu1  ;;  %5821 = vst [vmem:[%s8254_s13 + $0x88] sm:$0xff] (!%p6296_p2), %v12378_v15 }
 0xc51   : > { %v5698_v12 = vadd.f32 %v6732_v38, %v12280_v11  ;;  %v5689_v49 = vpop.f32.mrb[85].mxu1 }
 0xc52   : > { %v5690_v18 = vadd.f32 %v12280_v11, %v5689_v49  ;;  %v6733_v2 = vpop.f32.mrb[86].mxu1 }
 0xc53   : > { %v12385_v62 = vadd.f32 %v5698_v12, %v12913_v42  ;;  %v5701_v14 = vadd.f32 %v6733_v2, %v12280_v11  ;;  %v5692_v43 = vpop.f32.mrb[87].mxu1  ;;  %v12923_v12 = vld [vmem:[#allocation55_spill] sm:$0xff] }
 0xc54   : > { %v5756_v27 = vadd.f32 %v5690_v18, %v12914_v35  ;;  %v5693_v1 = vadd.f32 %v12280_v11, %v5692_v43  ;;  %v12924_v18 = vld [vmem:[#allocation58_spill] sm:$0xff] }
 0xc55   : > { %5790 = vst [vmem:[#allocation2 + $0xb0] sm:$0xff] %v12385_v62  ;;  %v5759_v51 = vadd.f32 %v5701_v14, %v12915_v56  ;;  %5826 = vst [vmem:[%s8254_s13 + $0xb0] sm:$0xff] (!%p6296_p2), %v12385_v62 }
 0xc56   : > { %5788 = vst [vmem:[#allocation2 + $0xa0] sm:$0xff] %v5756_v27  ;;  %v5757_v20 = vadd.f32 %v5693_v1, %v12916_v54  ;;  %5824 = vst [vmem:[%s8254_s13 + $0xa0] sm:$0xff] (!%p6296_p2), %v5756_v27 }
 0xc57   : > { %5791 = vst [vmem:[#allocation2 + $0xb8] sm:$0xff] %v5759_v51  ;;  %5827 = vst [vmem:[%s8254_s13 + $0xb8] sm:$0xff] (!%p6296_p2), %v5759_v51 }
 0xc58   : > { %5789 = vst [vmem:[#allocation2 + $0xa8] sm:$0xff] %v5757_v20  ;;  %v6736_v61 = vpop.f32.mrb[88].mxu1  ;;  %5825 = vst [vmem:[%s8254_s13 + $0xa8] sm:$0xff] (!%p6296_p2), %v5757_v20 }
 0xc59   : > { %v5714_v34 = vadd.f32 %v6736_v61, %v12280_v11  ;;  %v5705_v26 = vpop.f32.mrb[89].mxu1 }
 0xc5a   : > { %v5706_v8 = vadd.f32 %v12280_v11, %v5705_v26  ;;  %v6737_v29 = vpop.f32.mrb[90].mxu1 }
 0xc5b   : > { %v5762_v37 = vadd.f32 %v5714_v34, %v12917_v33  ;;  %v5717_v25 = vadd.f32 %v6737_v29, %v12280_v11  ;;  %v5708_v17 = vpop.f32.mrb[91].mxu1 }
 0xc5c   : > { %v5760_v23 = vadd.f32 %v5706_v8, %v12918_v6  ;;  %v5709_v57 = vadd.f32 %v12280_v11, %v5708_v17 }
 0xc5d   : > { %5794 = vst [vmem:[#allocation2 + $0xd0] sm:$0xff] %v5762_v37  ;;  %v5763_v13 = vadd.f32 %v5717_v25, %v12919_v0  ;;  %5830 = vst [vmem:[%s8254_s13 + $0xd0] sm:$0xff] (!%p6296_p2), %v5762_v37 }
 0xc5e   : > { %5792 = vst [vmem:[#allocation2 + $0xc0] sm:$0xff] %v5760_v23  ;;  %v5761_v36 = vadd.f32 %v5709_v57, %v12920_v30  ;;  %5828 = vst [vmem:[%s8254_s13 + $0xc0] sm:$0xff] (!%p6296_p2), %v5760_v23 }
 0xc5f   : > { %5795 = vst [vmem:[#allocation2 + $0xd8] sm:$0xff] %v5763_v13  ;;  %5831 = vst [vmem:[%s8254_s13 + $0xd8] sm:$0xff] (!%p6296_p2), %v5763_v13 }
 0xc60   : > { %5793 = vst [vmem:[#allocation2 + $0xc8] sm:$0xff] %v5761_v36  ;;  %v6740_v63 = vpop.f32.mrb[92].mxu1  ;;  %5829 = vst [vmem:[%s8254_s13 + $0xc8] sm:$0xff] (!%p6296_p2), %v5761_v36 }
 0xc61   : > { %v5730_v10 = vadd.f32 %v6740_v63, %v12280_v11  ;;  %v5721_v39 = vpop.f32.mrb[93].mxu1 }
 0xc62   : > { %v5722_v3 = vadd.f32 %v12280_v11, %v5721_v39  ;;  %v6741_v9 = vpop.f32.mrb[94].mxu1  ;;  %5803 = sbr.rel (%p6296_p2) target bundleno = 3177 (0xc69), region = 140 }
 0xc63   : > { %v5766_v22 = vadd.f32 %v5730_v10, %v12921_v59  ;;  %v5733_v31 = vadd.f32 %v6741_v9, %v12280_v11  ;;  %v5724_v41 = vpop.f32.mrb[95].mxu1 }
 0xc64   : > { %v5764_v45 = vadd.f32 %v5722_v3, %v12922_v52  ;;  %v5725_v38 = vadd.f32 %v12280_v11, %v5724_v41 }
 0xc65   : > { %5798 = vst [vmem:[#allocation2 + $0xf0] sm:$0xff] %v5766_v22  ;;  %v5767_v49 = vadd.f32 %v5733_v31, %v12923_v12  ;;  %5834 = vst [vmem:[%s8254_s13 + $0xf0] sm:$0xff] (!%p6296_p2), %v5766_v22 }
 0xc66   : > { %5796 = vst [vmem:[#allocation2 + $0xe0] sm:$0xff] %v5764_v45  ;;  %v5765_v2 = vadd.f32 %v5725_v38, %v12924_v18  ;;  %5832 = vst [vmem:[%s8254_s13 + $0xe0] sm:$0xff] (!%p6296_p2), %v5764_v45 }
 0xc67   : > { %5799 = vst [vmem:[#allocation2 + $0xf8] sm:$0xff] %v5767_v49  ;;  %5835 = vst [vmem:[%s8254_s13 + $0xf8] sm:$0xff] (!%p6296_p2), %v5767_v49 }
 0xc68   : > { %5797 = vst [vmem:[#allocation2 + $0xe8] sm:$0xff] %v5765_v2  ;;  %5833 = vst [vmem:[%s8254_s13 + $0xe8] sm:$0xff] (!%p6296_p2), %v5765_v2 }
 0xc69 PF: > { %s12926_s16 = sld [smem:[#allocation27_spill]]  ;;  %s12927_s4 = sld [smem:[#allocation38_spill]] }
 0xc6a   : > { %s12928_s11 = sld [smem:[#allocation92_spill]]  ;;  %s5850_s29 = sshll.u32 %s8254_s13, 4  ;;  %s12470_s29 = int_to_ptr.vmem [resolvable:$true] %s5850_s29 }
 0xc6b   : > { %s5837_s14 = scalar_lea.sflag [#allocation5], %s8142_s10  ;;  %s7461_s12 = scalar_lea.vmem %s12470_s29, 4096 }
 0xc6c   : > { %p7462_p0 = scmp.ne.s32.totalorder %s12470_s29, %s7461_s12  ;;  %s7609_s24 = smov [#allocation15]  }
 0xc6d   : > { %s7465_s28 = sshll.u32 %s7609_s24, 4  ;;  %s7466_s28 = int_to_ptr.vmem [resolvable:$false] %s7465_s28 }
 0xc6e   : > { %s7467_s17 = scalar_lea.vmem %s7466_s28, 8192  ;;  %p7468_p1 = scmp.lt.s32.totalorder %s12470_s29, %s7466_s28 }
 0xc6f   : > { %s6309_s7 = sshll.u32 %s12926_s16, 12  ;;  %p12929_p8 = scmp.ne.s32.totalorder %s12927_s4, 0 }
 0xc70   : > { %s12467_s3 = scalar_lea.hbm %s12928_s11, %s6309_s7  ;;  %p7469_p13 = scmp.lt.s32.totalorder %s7467_s17, %s7461_s12 }
 0xc71   : > { %p7463_p10 = pnand %p7462_p0, %p12929_p8 }
 0xc72   : > { %p7470_p9 = por %p7469_p13, %p7468_p1 }
 0xc73   : > { %p7464_p11 = pneg %p7463_p10 }
 0xc75   : > { %p7471_p12 = pnand %p7470_p9, %p7464_p11 }
 0xc77   : > { %7474 = shalt.err (!%p7471_p12)
}
 0xc78   : > { %s7475_s13 = scalar_lea.hbm %s12467_s3, 4096  ;;  %s7479_s6 = scalar_lea.hbm %s12928_s11, 8192 }
 0xc79   : > { %p7476_p6 = scmp.ne.s32.totalorder %s12467_s3, %s7475_s13  ;;  %p7480_p4 = scmp.lt.u32.totalorder %s12467_s3, %s12928_s11 }
 0xc7a   : > { %p7481_p3 = scmp.lt.u32.totalorder %s7479_s6, %s7475_s13  ;;  %p7483_p0 = scmp.lt.u32.totalorder %s7475_s13, %s12467_s3 }
 0xc7b   : > { %p7477_p7 = pnand %p7476_p6, %p12929_p8 }
 0xc7c   : > { %p7482_p2 = por %p7481_p3, %p7480_p4 }
 0xc7d   : > { %p7478_p5 = pneg %p7477_p7 }
 0xc7e   : > { %p7484_p10 = por %p7483_p0, %p7482_p2 }
 0xc80   : > { %p7485_p11 = pnand %p7484_p10, %p7478_p5 }
 0xc82   : > { %7488 = shalt.err (!%p7485_p11)
}
 0xc83   : > { %s7610_s0 = smov 128   ;;  %s7611_s1 = smov 8  }
 0xc84   : > { %6780 = dma.vmem_to_hbm [thread:$0]  (%p12929_p8), %s12470_s29, 4096, %s12467_s3, %s5837_s14, %s7610_s0, %s7610_s0, %s7611_s1  }
 0xc85 PF: > { %s12930_s2 = sld [smem:[#allocation30_spill]]  ;;  %s12931_s23 = sld [smem:[#allocation23_spill]] }
 0xc86   : > { %s12932_s30 = sld [smem:[#allocation39_spill]] }
 0xc8b   : > { %p6809_p1 = scmp.ge.s32.totalorder %s12930_s2, 2  ;;  %s5865_s18 = sand.u32 1, %s12931_s23  }
 0xc8c   : > { %p12933_p13 = scmp.ne.s32.totalorder %s12932_s30, 0  ;;  %s5866_s22 = scalar_lea.sflag [#allocation5], %s5865_s18 }
 0xc8e   : > { %p6805_p9 = pnand %p6809_p1, %p12933_p13 }
 0xc90   : > { %7550 = dma.done.wait (!%p6805_p9), %s5866_s22, 4096  }
 0xc91   : > { %7552 = vsyncadd (!%p6805_p9), %s5866_s22, 4294963200  ;;  %s46_s5 = sadd.s32 1, %s12930_s2   ;;  %s12934_s2 = sld [smem:[#allocation21_spill]] }
 0xc92   : > { %p43_p12 = scmp.ge.s32.totalorder %s46_s5, 6   ;;  %s12935_s25 = sld [smem:[#allocation22_spill]] }
 0xc93   : > { %s12936_s26 = sld [smem:[#allocation35_spill]]  ;;  %s12937_s27 = sld [smem:[#allocation24_spill]] }
 0xc94   : > { %s12938_s3 = sld [smem:[#allocation25_spill]]  ;;  %s12939_s28 = sld [smem:[#allocation36_spill]] }
 0xc95   : > { %s12940_s29 = sld [smem:[#allocation28_spill]]  ;;  %s12941_s0 = sld [smem:[#allocation29_spill]] }
 0xc96   : > { %s12942_s4 = sld [smem:[#allocation32_spill]]  ;;  %s12943_s30 = sld [smem:[#allocation33_spill]] }
 0xc97   :  { %45 = sbr.rel (!%p43_p12) target bundleno = 38 (0x26), region = 271 }
 0xc9e   :  { %5871 = vsyncpa [#allocation4], 1 }
 0xc9f   :  { %5873 = vsyncpa [#allocation4 + $0x1], 1 }
 0xca0   :  { %5874 = vsyncpa [#allocation7], 1 }
 0xca1   :  { %5876 = vsyncpa [#allocation7 + $0x1], 1 }
 0xca2   :  { %5877 = vsyncpa [#allocation10], 1 }
 0xca3   :  { %5879 = vsyncpa [#allocation10 + $0x1], 1 }
 0xca4   :  { %5880 = vsyncpa [#allocation13], 1 }
 0xca5   :  { %5882 = vsyncpa [#allocation13 + $0x1], 1 }
 0xca6   :  { %5883 = vsyncpa [#allocation5], 1 }
 0xca7   :  { %5885 = vsyncpa [#allocation5 + $0x1], 1 }

</bundles_post_ra>
